<compile_context>
chip_gen: v6e
topology: v6e:2x2x1
jax: 0.10.0
libtpu: 0.0.40
codegen_flags: <defaults>
</compile_context>

<pallas_src>
import functools

import jax
import jax.numpy as jnp
import numpy as np
from jax.experimental import pallas as pl
from jax.experimental.pallas import tpu as pltpu

NUM_CLASSES = 10
BN_EPS = 1e-5
LANE = 128
VMEM_LIMIT = 32 * 1024 * 1024


def _round_up(x, m):
    return (x + m - 1) // m * m


# --------------------------------------------------------------------------
# Kernel 1: fused 5x5 "same" conv + folded BatchNorm + ReLU + 2x2 max-pool.
# One MXU matmul per batch tile; pooling via leading-dim maxes only.
# --------------------------------------------------------------------------
def _conv_bn_relu_pool_kernel(slab_ref, w_ref, scale_ref, shift_ref, o_ref,
                              *, H, W2):
    # slab_ref  : (Nt, 2*H*W2, KCp) bf16  full im2col, rows ordered (p, h, t)
    #             (p = output-column parity, t = pooled column index)
    # w_ref     : (KCp, 128) bf16         (dh,dw,cin)-major weight, Cout padded
    # scale/shift : (1, 128) f32          folded BatchNorm affine (+ conv bias)
    # o_ref     : (Nt, H2*W2, 128) bf16   pooled output, rows (h2, t)
    Nt = slab_ref.shape[0]
    KCp = slab_ref.shape[-1]
    Cp = w_ref.shape[-1]
    H2 = H // 2
    M = Nt * 2 * H * W2

    lhs = slab_ref[...].reshape(M, KCp)                  # leading-dim merge only
    acc = jnp.dot(lhs, w_ref[...], preferred_element_type=jnp.float32)
    y = jnp.maximum(acc * scale_ref[...] + shift_ref[...], 0.0)

    # 2x2 max-pool, W direction: even/odd output columns live in the two
    # parity halves of M -> elementwise max over the leading parity axis.
    y = y.reshape(Nt, 2, H * W2, Cp)
    y = jnp.maximum(y[:, 0], y[:, 1])                    # (Nt, H*W2, Cp)

    # 2x2 max-pool, H direction: rows ordered (h, t) inside each image.
    y = y.reshape(Nt, H2, 2, W2, Cp)
    y = jnp.maximum(y[:, :, 0], y[:, :, 1])              # (Nt, H2, W2, Cp)

    o_ref[...] = y.reshape(Nt, H2 * W2, Cp).astype(o_ref.dtype)


def conv_bn_relu_pool(x, w_k, scale, shift, *, ksize=5, block_n=1):
    """x: (N, H, W, Cin) bf16 -> (N, H//2, W//2, 128) bf16 (Cout zero-padded)."""
    N, H, W, Cin = x.shape
    assert H % 2 == 0 and W % 2 == 0 and N % block_n == 0
    KCp, Cp = w_k.shape
    KC = ksize * ksize * Cin
    assert KCp == _round_up(KC, LANE)
    pad = ksize // 2
    H2, W2 = H // 2, W // 2

    xp = jnp.pad(x, ((0, 0), (pad, pad), (pad, pad), (0, 0)))

    def parity_slab(p):
        cols = []
        for dh in range(ksize):
            for dw in range(ksize):
                win = xp[:, dh:dh + H, p + dw::2, :][:, :, :W2, :]
                cols.append(win)
        return jnp.concatenate(cols, axis=-1)            # (N, H, W2, KC)

    slab = jnp.stack([parity_slab(0), parity_slab(1)], axis=1)   # (N,2,H,W2,KC)
    slab = jnp.pad(slab, ((0, 0),) * 4 + ((0, KCp - KC),))
    slab = slab.reshape(N, 2 * H * W2, KCp).astype(jnp.bfloat16)

    kern = functools.partial(_conv_bn_relu_pool_kernel, H=H, W2=W2)
    out = pl.pallas_call(
        kern,
        out_shape=jax.ShapeDtypeStruct((N, H2 * W2, Cp), jnp.bfloat16),
        grid_spec=pltpu.PrefetchScalarGridSpec(
            num_scalar_prefetch=0,
            grid=(N // block_n,),
            in_specs=[
                pl.BlockSpec((block_n, 2 * H * W2, KCp), lambda b: (b, 0, 0)),
                pl.BlockSpec((KCp, Cp), lambda b: (0, 0)),
                pl.BlockSpec((1, Cp), lambda b: (0, 0)),
                pl.BlockSpec((1, Cp), lambda b: (0, 0)),
            ],
            out_specs=pl.BlockSpec((block_n, H2 * W2, Cp), lambda b: (b, 0, 0)),
        ),
        compiler_params=pltpu.CompilerParams(
            dimension_semantics=("parallel",),
            vmem_limit_bytes=VMEM_LIMIT),
    )(slab, w_k, scale, shift)
    return out.reshape(N, H2, W2, Cp)


# --------------------------------------------------------------------------
# Kernel 2: fused MLP head  y = (x @ W1 + b1) @ W2 + b2
#   fc1 weight streamed in bf16 K blocks; fc2 fused into the finalize step.
#   Batch axis is a parallel grid axis; all shapes lane-dense (1024 / 128).
# --------------------------------------------------------------------------
def _mlp_kernel(x_ref, w1_ref, b1_ref, w2_ref, b2_ref, o_ref, acc_ref):
    k = pl.program_id(1)

    @pl.when(k == 0)
    def _():
        acc_ref[...] = jnp.zeros_like(acc_ref)

    acc_ref[...] += jnp.dot(x_ref[...], w1_ref[...],
                            preferred_element_type=jnp.float32)

    @pl.when(k == pl.num_programs(1) - 1)
    def _():
        h = acc_ref[...] + b1_ref[...]
        # TODO(synk): nn.Dropout() is identity here (eval-mode semantics only).
        y = jnp.dot(h.astype(jnp.bfloat16), w2_ref[...],
                    preferred_element_type=jnp.float32) + b2_ref[...]
        o_ref[...] = y.astype(o_ref.dtype)


def mlp_fc1_fc2(x, w1, b1, w2, b2, *, block_k=2048, block_n=None):
    """x: (N, K) bf16, w1: (K, M1p) bf16, w2: (M1p, M2p) bf16 -> (N, M2p) f32."""
    N, K = x.shape
    K2, M1p = w1.shape
    M2p = w2.shape[1]
    assert K == K2 and K % block_k == 0, (K, block_k)
    if block_n is None:
        block_n = N if (N <= 128 or N % 128) else 128
    assert N % block_n == 0
    nb, nk = N // block_n, K // block_k
    return pl.pallas_call(
        _mlp_kernel,
        out_shape=jax.ShapeDtypeStruct((N, M2p), jnp.float32),
        grid_spec=pltpu.PrefetchScalarGridSpec(
            num_scalar_prefetch=0,
            grid=(nb, nk),
            in_specs=[
                pl.BlockSpec((block_n, block_k), lambda b, k: (b, k)),   # x
                pl.BlockSpec((block_k, M1p), lambda b, k: (k, 0)),       # fc1 W
                pl.BlockSpec((1, M1p), lambda b, k: (0, 0)),             # fc1 b
                pl.BlockSpec((M1p, M2p), lambda b, k: (0, 0)),           # fc2 W
                pl.BlockSpec((1, M2p), lambda b, k: (0, 0)),             # fc2 b
            ],
            out_specs=pl.BlockSpec((block_n, M2p), lambda b, k: (b, 0)),
            scratch_shapes=[pltpu.VMEM((block_n, M1p), jnp.float32)],
        ),
        compiler_params=pltpu.CompilerParams(
            dimension_semantics=("parallel", "arbitrary"),
            vmem_limit_bytes=VMEM_LIMIT),
    )(x, w1, b1, w2, b2)


# --------------------------------------------------------------------------
# Parameter construction (deterministic, synthetic, torch layout)
# --------------------------------------------------------------------------
def init_params(key):
    ks = jax.random.split(key, 12)
    p = {}
    # conv1: Conv2d(3, 32, k=5, pad=2), BatchNorm2d(32)
    p["conv1_w"] = 0.1 * jax.random.normal(ks[0], (32, 3, 5, 5), jnp.float32)
    p["conv1_b"] = 0.1 * jax.random.normal(ks[1], (32,), jnp.float32)
    p["bn1_gamma"] = 1.0 + 0.1 * jax.random.normal(ks[2], (32,), jnp.float32)
    p["bn1_beta"] = 0.1 * jax.random.normal(ks[3], (32,), jnp.float32)
    p["bn1_mean"] = 0.1 * jax.random.normal(ks[4], (32,), jnp.float32)
    p["bn1_var"] = 0.5 + jnp.abs(jax.random.normal(ks[5], (32,), jnp.float32))
    # conv2: Conv2d(32, 64, k=5, pad=2), BatchNorm2d(64)
    p["conv2_w"] = 0.05 * jax.random.normal(ks[6], (64, 32, 5, 5), jnp.float32)
    p["conv2_b"] = 0.1 * jax.random.normal(ks[7], (64,), jnp.float32)
    p["bn2_gamma"] = 1.0 + 0.1 * jax.random.normal(ks[8], (64,), jnp.float32)
    p["bn2_beta"] = 0.1 * jax.random.normal(ks[9], (64,), jnp.float32)
    p["bn2_mean"] = 0.1 * jax.random.normal(ks[10], (64,), jnp.float32)
    p["bn2_var"] = 0.5 + jnp.abs(jax.random.normal(ks[11], (64,), jnp.float32))
    # fc1: Linear(4096, 1000), fc2: Linear(1000, 10)   (torch layout: (out,in))
    kf = jax.random.split(jax.random.fold_in(key, 7), 4)
    p["fc1_w"] = 0.01 * jax.random.normal(kf[0], (1000, 8 * 8 * 64), jnp.float32)
    p["fc1_b"] = 0.01 * jax.random.normal(kf[1], (1000,), jnp.float32)
    p["fc2_w"] = 0.05 * jax.random.normal(kf[2], (NUM_CLASSES, 1000), jnp.float32)
    p["fc2_b"] = 0.01 * jax.random.normal(kf[3], (NUM_CLASSES,), jnp.float32)
    return p


def _fold_bn(conv_b, gamma, beta, mean, var, cout_p):
    scale = gamma / jnp.sqrt(var + BN_EPS)
    shift = (conv_b - mean) * scale + beta
    scale = jnp.pad(scale, (0, cout_p - scale.shape[0]))   # padded lanes stay 0
    shift = jnp.pad(shift, (0, cout_p - shift.shape[0]))
    return (scale.reshape(1, -1).astype(jnp.float32),
            shift.reshape(1, -1).astype(jnp.float32))


def _conv_w_to_kernel_layout(w_oihw, kc_p, cout_p):
    # (O, I, Kh, Kw) -> (Kh*Kw*I, O); contraction index = (dh*Kw + dw)*I + c,
    # zero-padded so both K and the output lane dim are 128-aligned.
    o, i, kh, kw = w_oihw.shape
    w = jnp.transpose(w_oihw, (2, 3, 1, 0)).reshape(kh * kw * i, o)
    w = jnp.pad(w, ((0, kc_p - kh * kw * i), (0, cout_p - o)))
    return w.astype(jnp.bfloat16)


def prepare_params(p):
    """One-time offline conversion of torch-layout params to kernel layouts."""
    kp = {}
    kc1 = _round_up(5 * 5 * 3, LANE)       # 75  -> 128
    kc2 = _round_up(5 * 5 * 32, LANE)      # 800 -> 896
    kp["conv1_w"] = _conv_w_to_kernel_layout(p["conv1_w"], kc1, LANE)
    kp["bn1_scale"], kp["bn1_shift"] = _fold_bn(
        p["conv1_b"], p["bn1_gamma"], p["bn1_beta"], p["bn1_mean"],
        p["bn1_var"], LANE)
    kp["conv2_w"] = _conv_w_to_kernel_layout(p["conv2_w"], kc2, LANE)
    kp["bn2_scale"], kp["bn2_shift"] = _fold_bn(
        p["conv2_b"], p["bn2_gamma"], p["bn2_beta"], p["bn2_mean"],
        p["bn2_var"], LANE)

    # fc1: torch columns are (c, h, w); permute to (h, w, c) so the NHWC conv
    # output feeds fc1 with no runtime transpose; pad out-features 1000 -> 1024.
    out_f, in_f = p["fc1_w"].shape                       # (1000, 4096)
    m1p = _round_up(out_f, LANE)                         # 1024
    w1 = p["fc1_w"].reshape(out_f, 64, 8, 8)             # (out, c, h, w)
    w1 = jnp.transpose(w1, (2, 3, 1, 0)).reshape(in_f, out_f)
    kp["fc1_w"] = jnp.pad(w1, ((0, 0), (0, m1p - out_f))).astype(jnp.bfloat16)
    kp["fc1_b"] = jnp.pad(p["fc1_b"], (0, m1p - out_f)
                          ).reshape(1, -1).astype(jnp.float32)

    # fc2: pad contraction 1000 -> 1024 and outputs 10 -> 128 so the final
    # matmul and the logits store are lane-dense (padded lanes are exactly 0).
    m2p = _round_up(NUM_CLASSES, LANE)                   # 128
    w2 = jnp.transpose(p["fc2_w"])                       # (1000, 10)
    kp["fc2_w"] = jnp.pad(w2, ((0, m1p - out_f),
                               (0, m2p - NUM_CLASSES))).astype(jnp.bfloat16)
    kp["fc2_b"] = jnp.pad(p["fc2_b"], (0, m2p - NUM_CLASSES)
                          ).reshape(1, -1).astype(jnp.float32)
    return kp


# --------------------------------------------------------------------------
# Forward pass (matches CNN.forward, eval mode)
# --------------------------------------------------------------------------
def cnn_forward(x_nchw, kp):
    N = x_nchw.shape[0]
    x = jnp.transpose(x_nchw, (0, 2, 3, 1)).astype(jnp.bfloat16)  # NCHW -> NHWC
    y = conv_bn_relu_pool(x, kp["conv1_w"], kp["bn1_scale"], kp["bn1_shift"])
    y = conv_bn_relu_pool(y[..., :32], kp["conv2_w"],
                          kp["bn2_scale"], kp["bn2_shift"])
    y = y[..., :64].reshape(N, -1)          # (N, 4096) in (h, w, c) order
    logits = mlp_fc1_fc2(y, kp["fc1_w"], kp["fc1_b"], kp["fc2_w"], kp["fc2_b"])
    return logits[:, :NUM_CLASSES]


# --------------------------------------------------------------------------
# Pure-JAX f32 reference (sanity check only)
# --------------------------------------------------------------------------
def reference_forward(x_nchw, p):
    def conv(x, w, b):
        y = jax.lax.conv_general_dilated(
            x, w, (1, 1), "SAME",
            dimension_numbers=("NCHW", "OIHW", "NCHW"))
        return y + b[None, :, None, None]

    def bn(x, g, be, m, v):
        s = g / jnp.sqrt(v + BN_EPS)
        return (x - m[None, :, None, None]) * s[None, :, None, None] \
            + be[None, :, None, None]

    def pool(x):
        N, C, H, W = x.shape
        return jnp.max(x.reshape(N, C, H // 2, 2, W // 2, 2), axis=(3, 5))

    y = conv(x_nchw, p["conv1_w"], p["conv1_b"])
    y = pool(jnp.maximum(bn(y, p["bn1_gamma"], p["bn1_beta"],
                            p["bn1_mean"], p["bn1_var"]), 0.0))
    y = conv(y, p["conv2_w"], p["conv2_b"])
    y = pool(jnp.maximum(bn(y, p["bn2_gamma"], p["bn2_beta"],
                            p["bn2_mean"], p["bn2_var"]), 0.0))
    y = y.reshape(y.shape[0], -1)
    y = y @ p["fc1_w"].T + p["fc1_b"]
    y = y @ p["fc2_w"].T + p["fc2_b"]
    return y


if __name__ == "__main__":
    key = jax.random.PRNGKey(0)
    params = init_params(key)
    kparams = prepare_params(params)
    x = jax.random.normal(jax.random.fold_in(key, 123), (2, 3, 32, 32),
                          jnp.float32)

    fwd = jax.jit(cnn_forward)
    out = jax.block_until_ready(fwd(x, kparams))
    assert out.shape == (2, NUM_CLASSES), out.shape
    assert bool(jnp.all(jnp.isfinite(out)))

    ref = jax.block_until_ready(reference_forward(x, params))
    np.testing.assert_allclose(np.asarray(out), np.asarray(ref),
                               rtol=5e-2, atol=5e-2)
    print("KERNEL_OK")
</pallas_src>

<mosaic_0001>
module attributes {stable_mosaic.version = 11 : i64} {
  func.func @_conv_bn_relu_pool_kernel(%arg0: i32, %arg1: memref<1x1024x128xbf16, #tpu.memory_space<vmem>>, %arg2: memref<128x128xbf16, #tpu.memory_space<vmem>>, %arg3: memref<1x128xf32, #tpu.memory_space<vmem>>, %arg4: memref<1x128xf32, #tpu.memory_space<vmem>>, %arg5: memref<1x256x128xbf16, #tpu.memory_space<vmem>>) attributes {dimension_semantics = [#tpu.dimension_semantics<parallel>], iteration_bounds = array<i64: 2>, scalar_prefetch = 0 : i64, scratch_operands = 0 : i64, tpu.core_type = #tpu.core_type<tc>, window_params = [{transform_indices = @transform_0, window_bounds = array<i64: 1, 1024, 128>}, {pipeline_mode = #tpu.pipeline_mode<synchronous>, transform_indices = @transform_1, window_bounds = array<i64: 128, 128>}, {pipeline_mode = #tpu.pipeline_mode<synchronous>, transform_indices = @transform_2, window_bounds = array<i64: 1, 128>}, {pipeline_mode = #tpu.pipeline_mode<synchronous>, transform_indices = @transform_3, window_bounds = array<i64: 1, 128>}, {transform_indices = @transform_4, window_bounds = array<i64: 1, 256, 128>}]} {
    %c0 = arith.constant 0 : index
    %c0_0 = arith.constant 0 : index
    %c0_1 = arith.constant 0 : index
    %0 = vector.load %arg1[%c0, %c0_0, %c0_1] : memref<1x1024x128xbf16, #tpu.memory_space<vmem>>, vector<1x1024x128xbf16>
    %1 = vector.shape_cast %0 : vector<1x1024x128xbf16> to vector<1024x128xbf16>
    %c0_2 = arith.constant 0 : index
    %c0_3 = arith.constant 0 : index
    %2 = vector.load %arg2[%c0_2, %c0_3] : memref<128x128xbf16, #tpu.memory_space<vmem>>, vector<128x128xbf16>
    %cst = arith.constant dense<0.000000e+00> : vector<1024x128xf32>
    %3 = tpu.matmul %1, %2, %cst {dimension_numbers = #tpu.dot_dimension_numbers<[1], [0], [0], [1], [0, 0, 1, 1], [], []>} : vector<1024x128xbf16>, vector<128x128xbf16>, vector<1024x128xf32> -> vector<1024x128xf32>
    %c0_4 = arith.constant 0 : index
    %c0_5 = arith.constant 0 : index
    %4 = vector.load %arg3[%c0_4, %c0_5] : memref<1x128xf32, #tpu.memory_space<vmem>>, vector<1x128xf32>
    %5 = vector.broadcast %4 : vector<1x128xf32> to vector<1024x128xf32>
    %6 = arith.mulf %3, %5 : vector<1024x128xf32>
    %c0_6 = arith.constant 0 : index
    %c0_7 = arith.constant 0 : index
    %7 = vector.load %arg4[%c0_6, %c0_7] : memref<1x128xf32, #tpu.memory_space<vmem>>, vector<1x128xf32>
    %8 = vector.broadcast %7 : vector<1x128xf32> to vector<1024x128xf32>
    %9 = arith.addf %6, %8 : vector<1024x128xf32>
    %cst_8 = arith.constant 0.000000e+00 : f32
    %10 = vector.broadcast %cst_8 : f32 to vector<1024x128xf32>
    %11 = arith.maximumf %9, %10 : vector<1024x128xf32>
    %12 = vector.shape_cast %11 : vector<1024x128xf32> to vector<1x2x512x128xf32>
    %13 = vector.extract_strided_slice %12 {offsets = [0, 0, 0, 0], sizes = [1, 1, 512, 128], strides = [1, 1, 1, 1]} : vector<1x2x512x128xf32> to vector<1x1x512x128xf32>
    %14 = vector.shape_cast %13 : vector<1x1x512x128xf32> to vector<1x512x128xf32>
    %15 = vector.extract_strided_slice %12 {offsets = [0, 1, 0, 0], sizes = [1, 1, 512, 128], strides = [1, 1, 1, 1]} : vector<1x2x512x128xf32> to vector<1x1x512x128xf32>
    %16 = vector.shape_cast %15 : vector<1x1x512x128xf32> to vector<1x512x128xf32>
    %17 = arith.maximumf %14, %16 : vector<1x512x128xf32>
    %18 = vector.shape_cast %17 : vector<1x512x128xf32> to vector<1x16x2x16x128xf32>
    %19 = vector.extract_strided_slice %18 {offsets = [0, 0, 0, 0, 0], sizes = [1, 16, 1, 16, 128], strides = [1, 1, 1, 1, 1]} : vector<1x16x2x16x128xf32> to vector<1x16x1x16x128xf32>
    %20 = vector.shape_cast %19 : vector<1x16x1x16x128xf32> to vector<1x16x16x128xf32>
    %21 = vector.extract_strided_slice %18 {offsets = [0, 0, 1, 0, 0], sizes = [1, 16, 1, 16, 128], strides = [1, 1, 1, 1, 1]} : vector<1x16x2x16x128xf32> to vector<1x16x1x16x128xf32>
    %22 = vector.shape_cast %21 : vector<1x16x1x16x128xf32> to vector<1x16x16x128xf32>
    %23 = arith.maximumf %20, %22 : vector<1x16x16x128xf32>
    %24 = vector.shape_cast %23 : vector<1x16x16x128xf32> to vector<1x256x128xf32>
    %25 = arith.truncf %24 : vector<1x256x128xf32> to vector<1x256x128xbf16>
    %c0_9 = arith.constant 0 : index
    %c0_10 = arith.constant 0 : index
    %c0_11 = arith.constant 0 : index
    %26 = vector.load %arg5[%c0_9, %c0_10, %c0_11] : memref<1x256x128xbf16, #tpu.memory_space<vmem>>, vector<1x256x128xbf16>
    tpu.vector_store %arg5[%c0_9, %c0_10, %c0_11], %25 {strides = array<i32>} : memref<1x256x128xbf16, #tpu.memory_space<vmem>>, vector<1x256x128xbf16>,
    return
  }
  func.func @transform_0(%arg0: i32) -> (i32, i32, i32) {
    %c0_i32 = arith.constant 0 : i32
    %c0_i32_0 = arith.constant 0 : i32
    %c0_i32_1 = arith.constant 0 : i32
    return %arg0, %c0_i32, %c0_i32_0 : i32, i32, i32
  }
  func.func @transform_1(%arg0: i32) -> (i32, i32) {
    %c0_i32 = arith.constant 0 : i32
    %c0_i32_0 = arith.constant 0 : i32
    %c0_i32_1 = arith.constant 0 : i32
    return %c0_i32, %c0_i32_0 : i32, i32
  }
  func.func @transform_2(%arg0: i32) -> (i32, i32) {
    %c0_i32 = arith.constant 0 : i32
    %c0_i32_0 = arith.constant 0 : i32
    %c0_i32_1 = arith.constant 0 : i32
    return %c0_i32, %c0_i32_0 : i32, i32
  }
  func.func @transform_3(%arg0: i32) -> (i32, i32) {
    %c0_i32 = arith.constant 0 : i32
    %c0_i32_0 = arith.constant 0 : i32
    %c0_i32_1 = arith.constant 0 : i32
    return %c0_i32, %c0_i32_0 : i32, i32
  }
  func.func @transform_4(%arg0: i32) -> (i32, i32, i32) {
    %c0_i32 = arith.constant 0 : i32
    %c0_i32_0 = arith.constant 0 : i32
    %c0_i32_1 = arith.constant 0 : i32
    return %arg0, %c0_i32, %c0_i32_0 : i32, i32, i32
  }
}

module attributes {stable_mosaic.version = 11 : i64} {
  func.func @_conv_bn_relu_pool_kernel(%arg0: i32, %arg1: memref<1x256x896xbf16, #tpu.memory_space<vmem>>, %arg2: memref<896x128xbf16, #tpu.memory_space<vmem>>, %arg3: memref<1x128xf32, #tpu.memory_space<vmem>>, %arg4: memref<1x128xf32, #tpu.memory_space<vmem>>, %arg5: memref<1x64x128xbf16, #tpu.memory_space<vmem>>) attributes {dimension_semantics = [#tpu.dimension_semantics<parallel>], iteration_bounds = array<i64: 2>, scalar_prefetch = 0 : i64, scratch_operands = 0 : i64, tpu.core_type = #tpu.core_type<tc>, window_params = [{transform_indices = @transform_0, window_bounds = array<i64: 1, 256, 896>}, {pipeline_mode = #tpu.pipeline_mode<synchronous>, transform_indices = @transform_1, window_bounds = array<i64: 896, 128>}, {pipeline_mode = #tpu.pipeline_mode<synchronous>, transform_indices = @transform_2, window_bounds = array<i64: 1, 128>}, {pipeline_mode = #tpu.pipeline_mode<synchronous>, transform_indices = @transform_3, window_bounds = array<i64: 1, 128>}, {transform_indices = @transform_4, window_bounds = array<i64: 1, 64, 128>}]} {
    %c0 = arith.constant 0 : index
    %c0_0 = arith.constant 0 : index
    %c0_1 = arith.constant 0 : index
    %0 = vector.load %arg1[%c0, %c0_0, %c0_1] : memref<1x256x896xbf16, #tpu.memory_space<vmem>>, vector<1x256x896xbf16>
    %1 = vector.shape_cast %0 : vector<1x256x896xbf16> to vector<256x896xbf16>
    %c0_2 = arith.constant 0 : index
    %c0_3 = arith.constant 0 : index
    %2 = vector.load %arg2[%c0_2, %c0_3] : memref<896x128xbf16, #tpu.memory_space<vmem>>, vector<896x128xbf16>
    %cst = arith.constant dense<0.000000e+00> : vector<256x128xf32>
    %3 = tpu.matmul %1, %2, %cst {dimension_numbers = #tpu.dot_dimension_numbers<[1], [0], [0], [1], [0, 0, 1, 1], [], []>} : vector<256x896xbf16>, vector<896x128xbf16>, vector<256x128xf32> -> vector<256x128xf32>
    %c0_4 = arith.constant 0 : index
    %c0_5 = arith.constant 0 : index
    %4 = vector.load %arg3[%c0_4, %c0_5] : memref<1x128xf32, #tpu.memory_space<vmem>>, vector<1x128xf32>
    %5 = vector.broadcast %4 : vector<1x128xf32> to vector<256x128xf32>
    %6 = arith.mulf %3, %5 : vector<256x128xf32>
    %c0_6 = arith.constant 0 : index
    %c0_7 = arith.constant 0 : index
    %7 = vector.load %arg4[%c0_6, %c0_7] : memref<1x128xf32, #tpu.memory_space<vmem>>, vector<1x128xf32>
    %8 = vector.broadcast %7 : vector<1x128xf32> to vector<256x128xf32>
    %9 = arith.addf %6, %8 : vector<256x128xf32>
    %cst_8 = arith.constant 0.000000e+00 : f32
    %10 = vector.broadcast %cst_8 : f32 to vector<256x128xf32>
    %11 = arith.maximumf %9, %10 : vector<256x128xf32>
    %12 = vector.shape_cast %11 : vector<256x128xf32> to vector<1x2x128x128xf32>
    %13 = vector.extract_strided_slice %12 {offsets = [0, 0, 0, 0], sizes = [1, 1, 128, 128], strides = [1, 1, 1, 1]} : vector<1x2x128x128xf32> to vector<1x1x128x128xf32>
    %14 = vector.shape_cast %13 : vector<1x1x128x128xf32> to vector<1x128x128xf32>
    %15 = vector.extract_strided_slice %12 {offsets = [0, 1, 0, 0], sizes = [1, 1, 128, 128], strides = [1, 1, 1, 1]} : vector<1x2x128x128xf32> to vector<1x1x128x128xf32>
    %16 = vector.shape_cast %15 : vector<1x1x128x128xf32> to vector<1x128x128xf32>
    %17 = arith.maximumf %14, %16 : vector<1x128x128xf32>
    %18 = vector.shape_cast %17 : vector<1x128x128xf32> to vector<1x8x2x8x128xf32>
    %19 = vector.extract_strided_slice %18 {offsets = [0, 0, 0, 0, 0], sizes = [1, 8, 1, 8, 128], strides = [1, 1, 1, 1, 1]} : vector<1x8x2x8x128xf32> to vector<1x8x1x8x128xf32>
    %20 = vector.shape_cast %19 : vector<1x8x1x8x128xf32> to vector<1x8x8x128xf32>
    %21 = vector.extract_strided_slice %18 {offsets = [0, 0, 1, 0, 0], sizes = [1, 8, 1, 8, 128], strides = [1, 1, 1, 1, 1]} : vector<1x8x2x8x128xf32> to vector<1x8x1x8x128xf32>
    %22 = vector.shape_cast %21 : vector<1x8x1x8x128xf32> to vector<1x8x8x128xf32>
    %23 = arith.maximumf %20, %22 : vector<1x8x8x128xf32>
    %24 = vector.shape_cast %23 : vector<1x8x8x128xf32> to vector<1x64x128xf32>
    %25 = arith.truncf %24 : vector<1x64x128xf32> to vector<1x64x128xbf16>
    %c0_9 = arith.constant 0 : index
    %c0_10 = arith.constant 0 : index
    %c0_11 = arith.constant 0 : index
    %26 = vector.load %arg5[%c0_9, %c0_10, %c0_11] : memref<1x64x128xbf16, #tpu.memory_space<vmem>>, vector<1x64x128xbf16>
    tpu.vector_store %arg5[%c0_9, %c0_10, %c0_11], %25 {strides = array<i32>} : memref<1x64x128xbf16, #tpu.memory_space<vmem>>, vector<1x64x128xbf16>,
    return
  }
  func.func @transform_0(%arg0: i32) -> (i32, i32, i32) {
    %c0_i32 = arith.constant 0 : i32
    %c0_i32_0 = arith.constant 0 : i32
    %c0_i32_1 = arith.constant 0 : i32
    return %arg0, %c0_i32, %c0_i32_0 : i32, i32, i32
  }
  func.func @transform_1(%arg0: i32) -> (i32, i32) {
    %c0_i32 = arith.constant 0 : i32
    %c0_i32_0 = arith.constant 0 : i32
    %c0_i32_1 = arith.constant 0 : i32
    return %c0_i32, %c0_i32_0 : i32, i32
  }
  func.func @transform_2(%arg0: i32) -> (i32, i32) {
    %c0_i32 = arith.constant 0 : i32
    %c0_i32_0 = arith.constant 0 : i32
    %c0_i32_1 = arith.constant 0 : i32
    return %c0_i32, %c0_i32_0 : i32, i32
  }
  func.func @transform_3(%arg0: i32) -> (i32, i32) {
    %c0_i32 = arith.constant 0 : i32
    %c0_i32_0 = arith.constant 0 : i32
    %c0_i32_1 = arith.constant 0 : i32
    return %c0_i32, %c0_i32_0 : i32, i32
  }
  func.func @transform_4(%arg0: i32) -> (i32, i32, i32) {
    %c0_i32 = arith.constant 0 : i32
    %c0_i32_0 = arith.constant 0 : i32
    %c0_i32_1 = arith.constant 0 : i32
    return %arg0, %c0_i32, %c0_i32_0 : i32, i32, i32
  }
}

module attributes {stable_mosaic.version = 11 : i64} {
  func.func @_mlp_kernel(%arg0: i32, %arg1: i32, %arg2: memref<2x2048xbf16, #tpu.memory_space<vmem>>, %arg3: memref<2048x1024xbf16, #tpu.memory_space<vmem>>, %arg4: memref<1x1024xf32, #tpu.memory_space<vmem>>, %arg5: memref<1024x128xbf16, #tpu.memory_space<vmem>>, %arg6: memref<1x128xf32, #tpu.memory_space<vmem>>, %arg7: memref<2x128xf32, #tpu.memory_space<vmem>>, %arg8: memref<2x1024xf32, #tpu.memory_space<vmem>>) attributes {dimension_semantics = [#tpu.dimension_semantics<parallel>, #tpu.dimension_semantics<arbitrary>], iteration_bounds = array<i64: 1, 2>, scalar_prefetch = 0 : i64, scratch_operands = 1 : i64, tpu.core_type = #tpu.core_type<tc>, window_params = [{transform_indices = @transform_0, window_bounds = array<i64: 2, 2048>}, {transform_indices = @transform_1, window_bounds = array<i64: 2048, 1024>}, {pipeline_mode = #tpu.pipeline_mode<synchronous>, transform_indices = @transform_2, window_bounds = array<i64: 1, 1024>}, {pipeline_mode = #tpu.pipeline_mode<synchronous>, transform_indices = @transform_3, window_bounds = array<i64: 1024, 128>}, {pipeline_mode = #tpu.pipeline_mode<synchronous>, transform_indices = @transform_4, window_bounds = array<i64: 1, 128>}, {transform_indices = @transform_5, window_bounds = array<i64: 2, 128>}]} {
    %c0_i32 = arith.constant 0 : i32
    %0 = arith.cmpi eq, %arg1, %c0_i32 : i32
    %1 = arith.extui %0 : i1 to i32
    %c0_i32_0 = arith.constant 0 : i32
    %2 = arith.cmpi ne, %1, %c0_i32_0 : i32
    scf.if %2 {
      %cst_9 = arith.constant 0.000000e+00 : f32
      %12 = vector.broadcast %cst_9 : f32 to vector<2x1024xf32>
      %c0_10 = arith.constant 0 : index
      %c0_11 = arith.constant 0 : index
      %13 = vector.load %arg8[%c0_10, %c0_11] : memref<2x1024xf32, #tpu.memory_space<vmem>>, vector<2x1024xf32>
      tpu.vector_store %arg8[%c0_10, %c0_11], %12 {strides = array<i32>} : memref<2x1024xf32, #tpu.memory_space<vmem>>, vector<2x1024xf32>,
    } else {
    }
    %c0 = arith.constant 0 : index
    %c0_1 = arith.constant 0 : index
    %3 = vector.load %arg8[%c0, %c0_1] : memref<2x1024xf32, #tpu.memory_space<vmem>>, vector<2x1024xf32>
    %c0_2 = arith.constant 0 : index
    %c0_3 = arith.constant 0 : index
    %4 = vector.load %arg2[%c0_2, %c0_3] : memref<2x2048xbf16, #tpu.memory_space<vmem>>, vector<2x2048xbf16>
    %c0_4 = arith.constant 0 : index
    %c0_5 = arith.constant 0 : index
    %5 = vector.load %arg3[%c0_4, %c0_5] : memref<2048x1024xbf16, #tpu.memory_space<vmem>>, vector<2048x1024xbf16>
    %cst = arith.constant dense<0.000000e+00> : vector<2x1024xf32>
    %6 = tpu.matmul %4, %5, %cst {dimension_numbers = #tpu.dot_dimension_numbers<[1], [0], [0], [1], [0, 0, 1, 1], [], []>} : vector<2x2048xbf16>, vector<2048x1024xbf16>, vector<2x1024xf32> -> vector<2x1024xf32>
    %7 = arith.addf %3, %6 : vector<2x1024xf32>
    %c0_6 = arith.constant 0 : index
    %c0_7 = arith.constant 0 : index
    %8 = vector.load %arg8[%c0_6, %c0_7] : memref<2x1024xf32, #tpu.memory_space<vmem>>, vector<2x1024xf32>
    tpu.vector_store %arg8[%c0_6, %c0_7], %7 {strides = array<i32>} : memref<2x1024xf32, #tpu.memory_space<vmem>>, vector<2x1024xf32>,
    %c1_i32 = arith.constant 1 : i32
    %9 = arith.cmpi eq, %arg1, %c1_i32 : i32
    %10 = arith.extui %9 : i1 to i32
    %c0_i32_8 = arith.constant 0 : i32
    %11 = arith.cmpi ne, %10, %c0_i32_8 : i32
    scf.if %11 {
      %c0_9 = arith.constant 0 : index
      %c0_10 = arith.constant 0 : index
      %12 = vector.load %arg8[%c0_9, %c0_10] : memref<2x1024xf32, #tpu.memory_space<vmem>>, vector<2x1024xf32>
      %c0_11 = arith.constant 0 : index
      %c0_12 = arith.constant 0 : index
      %13 = vector.load %arg4[%c0_11, %c0_12] : memref<1x1024xf32, #tpu.memory_space<vmem>>, vector<1x1024xf32>
      %14 = vector.broadcast %13 : vector<1x1024xf32> to vector<2x1024xf32>
      %15 = arith.addf %12, %14 : vector<2x1024xf32>
      %16 = arith.truncf %15 : vector<2x1024xf32> to vector<2x1024xbf16>
      %c0_13 = arith.constant 0 : index
      %c0_14 = arith.constant 0 : index
      %17 = vector.load %arg5[%c0_13, %c0_14] : memref<1024x128xbf16, #tpu.memory_space<vmem>>, vector<1024x128xbf16>
      %cst_15 = arith.constant dense<0.000000e+00> : vector<2x128xf32>
      %18 = tpu.matmul %16, %17, %cst_15 {dimension_numbers = #tpu.dot_dimension_numbers<[1], [0], [0], [1], [0, 0, 1, 1], [], []>} : vector<2x1024xbf16>, vector<1024x128xbf16>, vector<2x128xf32> -> vector<2x128xf32>
      %c0_16 = arith.constant 0 : index
      %c0_17 = arith.constant 0 : index
      %19 = vector.load %arg6[%c0_16, %c0_17] : memref<1x128xf32, #tpu.memory_space<vmem>>, vector<1x128xf32>
      %20 = vector.broadcast %19 : vector<1x128xf32> to vector<2x128xf32>
      %21 = arith.addf %18, %20 : vector<2x128xf32>
      %c0_18 = arith.constant 0 : index
      %c0_19 = arith.constant 0 : index
      %22 = vector.load %arg7[%c0_18, %c0_19] : memref<2x128xf32, #tpu.memory_space<vmem>>, vector<2x128xf32>
      tpu.vector_store %arg7[%c0_18, %c0_19], %21 {strides = array<i32>} : memref<2x128xf32, #tpu.memory_space<vmem>>, vector<2x128xf32>,
    } else {
    }
    return
  }
  func.func @transform_0(%arg0: i32, %arg1: i32) -> (i32, i32) {
    %c0_i32 = arith.constant 0 : i32
    return %arg0, %arg1 : i32, i32
  }
  func.func @transform_1(%arg0: i32, %arg1: i32) -> (i32, i32) {
    %c0_i32 = arith.constant 0 : i32
    %c0_i32_0 = arith.constant 0 : i32
    return %arg1, %c0_i32 : i32, i32
  }
  func.func @transform_2(%arg0: i32, %arg1: i32) -> (i32, i32) {
    %c0_i32 = arith.constant 0 : i32
    %c0_i32_0 = arith.constant 0 : i32
    %c0_i32_1 = arith.constant 0 : i32
    return %c0_i32, %c0_i32_0 : i32, i32
  }
  func.func @transform_3(%arg0: i32, %arg1: i32) -> (i32, i32) {
    %c0_i32 = arith.constant 0 : i32
    %c0_i32_0 = arith.constant 0 : i32
    %c0_i32_1 = arith.constant 0 : i32
    return %c0_i32, %c0_i32_0 : i32, i32
  }
  func.func @transform_4(%arg0: i32, %arg1: i32) -> (i32, i32) {
    %c0_i32 = arith.constant 0 : i32
    %c0_i32_0 = arith.constant 0 : i32
    %c0_i32_1 = arith.constant 0 : i32
    return %c0_i32, %c0_i32_0 : i32, i32
  }
  func.func @transform_5(%arg0: i32, %arg1: i32) -> (i32, i32) {
    %c0_i32 = arith.constant 0 : i32
    %c0_i32_0 = arith.constant 0 : i32
    return %arg0, %c0_i32 : i32, i32
  }
}

</mosaic_0001>

<bundles_post_ra>
// kernel: cnn_forward.3
= control target key start
LH: loop header
LB: loop body
LE: loop exit
PB: predicated region body
PF: predicated region fallthrough
CT: control target
= control target key end

     0   :  { %s2622_s15 = smov 0   ;;  %s3027_s0 = inlined_call_operand.vmem [shape: bf16[2,1024,128], index: 0, kind: input, shape index: {}]   ;;  %s3028_s1 = inlined_call_operand.vmem [shape: bf16[128,128], index: 1, kind: input, shape index: {}]   ;;  %s3029_s2 = inlined_call_operand.vmem [shape: f32[1,128], index: 2, kind: input, shape index: {}]   ;;  %s3030_s3 = inlined_call_operand.vmem [shape: f32[1,128], index: 3, kind: input, shape index: {}]   ;;  %s3031_s4 = inlined_call_operand.vmem [shape: bf16[2,256,128], index: 4, kind: output, shape index: {}]  }
   0x1 LB: > { %s2029_s16 = sadd.s32 4294967295, %s2595_s15   ;;  %p2033_p0 = scmp.ge.s32.totalorder %s2595_s15, 1  ;;  %s2595_s15 = sphi %s2622_s15, %s14_s15  }
   0x2   : > { %p162_p1 = scmp.lt.s32.totalorder %s2595_s15, 3 }
   0x4   : > { %p163_p2 = pnand %p2033_p0, %p162_p1 }
   0x5   : > { %p188_p3 = scmp.lt.s32.totalorder (!%p163_p2), %s2029_s16, 1 }
   0x6   : > { %166 = sbr.rel (%p163_p2) target bundleno = 377 (0x179), region = 36 }
   0xb   : > { %v2515_v0 = vld [vmem:[%s3028_s1 + $0x38] sm:$0xff]   ;;  %v2516_v1 = vld [vmem:[%s3028_s1 + $0x30] sm:$0xff]   ;;  %s3033_s16 = smov (!%p188_p3, %s2029_s16), 1  ;;  %v2517_v2 = vld [vmem:[%s3028_s1 + $0x28] sm:$0xff]  }
   0xc   : > { %2347 = vmatprep.subr.bf16.mxu0 %v2515_v0  ;;  %2491 = vmatprep.subr.bf16.mxu1 %v2515_v0  ;;  %s2146_s23 = sshll.u32 %s3033_s16, 9  ;;  %v2518_v3 = vld [vmem:[%s3028_s1 + $0x20] sm:$0xff]   ;;  %v2519_v6 = vld [vmem:[%s3028_s1 + $0x18] sm:$0xff]   ;;  %v2520_v7 = vld [vmem:[%s3028_s1 + $0x10] sm:$0xff]   ;;  %s2147_s17 = sshll.u32 %s3033_s16, 7 }
   0xd   : > { %2348 = vmatpush3.bf16.msra.mxu0 %v2515_v0  ;;  %2499 = vmatpush3.bf16.msra.mxu1 %v2515_v0  ;;  %s2645_s26 = scalar_lea.vmem %s3027_s0, %s2146_s23  ;;  %v2521_v8 = vld [vmem:[%s3028_s1 + $0x8] sm:$0xff]   ;;  %v2522_v9 = vld [vmem:[%s3028_s1] sm:$0xff]   ;;  %s2770_s19 = scalar_lea.vmem %s3031_s4, %s2147_s17 }
   0xe   : > { %2349 = vmatprep.subr.bf16.mxu0 %v2516_v1  ;;  %2492 = vmatprep.subr.bf16.mxu1 %v2516_v1  ;;  %v2523_v4 = vld [vmem:[%s2645_s26] sm:$0xff]   ;;  %v2525_v10 = vld [vmem:[%s2645_s26 + $0x8] sm:$0xff]   ;;  %v2527_v12 = vld [vmem:[%s2645_s26 + $0x10] sm:$0xff]  }
   0xf   : > { %v2524_v5 = vld [vmem:[%s2645_s26 + $0x100] sm:$0xff]   ;;  %2363 = vmatprep.mubr.bf16.mxu0 %v2523_v4  ;;  %v2526_v11 = vld [vmem:[%s2645_s26 + $0x108] sm:$0xff]   ;;  %v2528_v13 = vld [vmem:[%s2645_s26 + $0x110] sm:$0xff]  }
  0x10   : > { %2427 = vmatprep.mubr.bf16.mxu1 %v2524_v5  ;;  %v2529_v14 = vld [vmem:[%s2645_s26 + $0x18] sm:$0xff]   ;;  %v2531_v16 = vld [vmem:[%s2645_s26 + $0x20] sm:$0xff]   ;;  %v2533_v18 = vld [vmem:[%s2645_s26 + $0x28] sm:$0xff]  }
  0x11   : > { %2350 = vmatpush3.bf16.msra.mxu0 %v2516_v1  ;;  %2500 = vmatpush3.bf16.msra.mxu1 %v2516_v1  ;;  %v2530_v15 = vld [vmem:[%s2645_s26 + $0x118] sm:$0xff]   ;;  %v2532_v17 = vld [vmem:[%s2645_s26 + $0x120] sm:$0xff]   ;;  %v2534_v19 = vld [vmem:[%s2645_s26 + $0x128] sm:$0xff]  }
  0x12   : > { %2351 = vmatprep.subr.bf16.mxu0 %v2517_v2  ;;  %2493 = vmatprep.subr.bf16.mxu1 %v2517_v2  ;;  %v2535_v20 = vld [vmem:[%s2645_s26 + $0x30] sm:$0xff]   ;;  %v2537_v22 = vld [vmem:[%s2645_s26 + $0x38] sm:$0xff]   ;;  %v2539_v24 = vld [vmem:[%s2645_s26 + $0x40] sm:$0xff]  }
  0x13   : > { %v2536_v21 = vld [vmem:[%s2645_s26 + $0x130] sm:$0xff]   ;;  %v2538_v23 = vld [vmem:[%s2645_s26 + $0x138] sm:$0xff]   ;;  %v2540_v25 = vld [vmem:[%s2645_s26 + $0x140] sm:$0xff]  }
  0x14   : > { %v2541_v26 = vld [vmem:[%s2645_s26 + $0x48] sm:$0xff]   ;;  %v2543_v28 = vld [vmem:[%s2645_s26 + $0x50] sm:$0xff]   ;;  %v2545_v30 = vld [vmem:[%s2645_s26 + $0x58] sm:$0xff]  }
  0x15   : > { %2352 = vmatpush3.bf16.msra.mxu0 %v2517_v2  ;;  %2501 = vmatpush3.bf16.msra.mxu1 %v2517_v2  ;;  %v2542_v27 = vld [vmem:[%s2645_s26 + $0x148] sm:$0xff]   ;;  %v2544_v29 = vld [vmem:[%s2645_s26 + $0x150] sm:$0xff]   ;;  %v2546_v31 = vld [vmem:[%s2645_s26 + $0x158] sm:$0xff]  }
  0x16   : > { %2353 = vmatprep.subr.bf16.mxu0 %v2518_v3  ;;  %2494 = vmatprep.subr.bf16.mxu1 %v2518_v3  ;;  %v2547_v32 = vld [vmem:[%s2645_s26 + $0x60] sm:$0xff]   ;;  %v2549_v34 = vld [vmem:[%s2645_s26 + $0x68] sm:$0xff]   ;;  %v2551_v36 = vld [vmem:[%s2645_s26 + $0x70] sm:$0xff]  }
  0x17   : > { %v2548_v33 = vld [vmem:[%s2645_s26 + $0x160] sm:$0xff]   ;;  %v2550_v35 = vld [vmem:[%s2645_s26 + $0x168] sm:$0xff]   ;;  %v2552_v37 = vld [vmem:[%s2645_s26 + $0x170] sm:$0xff]  }
  0x18   : > { %v2553_v38 = vld [vmem:[%s2645_s26 + $0x78] sm:$0xff]   ;;  %v2555_v40 = vld [vmem:[%s2645_s26 + $0x80] sm:$0xff]   ;;  %v2557_v42 = vld [vmem:[%s2645_s26 + $0x88] sm:$0xff]  }
  0x19   : > { %2354 = vmatpush3.bf16.msra.mxu0 %v2518_v3  ;;  %2502 = vmatpush3.bf16.msra.mxu1 %v2518_v3  ;;  %v2554_v39 = vld [vmem:[%s2645_s26 + $0x178] sm:$0xff]   ;;  %v2556_v41 = vld [vmem:[%s2645_s26 + $0x180] sm:$0xff]   ;;  %v2558_v43 = vld [vmem:[%s2645_s26 + $0x188] sm:$0xff]  }
  0x1a   : > { %2355 = vmatprep.subr.bf16.mxu0 %v2519_v6  ;;  %2495 = vmatprep.subr.bf16.mxu1 %v2519_v6  ;;  %v2559_v44 = vld [vmem:[%s2645_s26 + $0x90] sm:$0xff]   ;;  %v2561_v46 = vld [vmem:[%s2645_s26 + $0x98] sm:$0xff]   ;;  %v2563_v48 = vld [vmem:[%s2645_s26 + $0xa0] sm:$0xff]  }
  0x1b   : > { %v2560_v45 = vld [vmem:[%s2645_s26 + $0x190] sm:$0xff]   ;;  %v2562_v47 = vld [vmem:[%s2645_s26 + $0x198] sm:$0xff]   ;;  %v2564_v49 = vld [vmem:[%s2645_s26 + $0x1a0] sm:$0xff]  }
  0x1c   : > { %v2565_v50 = vld [vmem:[%s2645_s26 + $0xa8] sm:$0xff]   ;;  %v2567_v52 = vld [vmem:[%s2645_s26 + $0xb0] sm:$0xff]   ;;  %v2569_v54 = vld [vmem:[%s2645_s26 + $0xb8] sm:$0xff]  }
  0x1d   : > { %2356 = vmatpush3.bf16.msra.mxu0 %v2519_v6  ;;  %2503 = vmatpush3.bf16.msra.mxu1 %v2519_v6  ;;  %v2566_v51 = vld [vmem:[%s2645_s26 + $0x1a8] sm:$0xff]   ;;  %v2568_v53 = vld [vmem:[%s2645_s26 + $0x1b0] sm:$0xff]   ;;  %v2570_v55 = vld [vmem:[%s2645_s26 + $0x1b8] sm:$0xff]  }
  0x1e   : > { %2357 = vmatprep.subr.bf16.mxu0 %v2520_v7  ;;  %2496 = vmatprep.subr.bf16.mxu1 %v2520_v7  ;;  %v2571_v56 = vld [vmem:[%s2645_s26 + $0xc0] sm:$0xff]   ;;  %v2573_v58 = vld [vmem:[%s2645_s26 + $0xc8] sm:$0xff]   ;;  %v2575_v60 = vld [vmem:[%s2645_s26 + $0xd0] sm:$0xff]  }
  0x1f   : > { %v2572_v57 = vld [vmem:[%s2645_s26 + $0x1c0] sm:$0xff]   ;;  %v2574_v59 = vld [vmem:[%s2645_s26 + $0x1c8] sm:$0xff]   ;;  %v2576_v61 = vld [vmem:[%s2645_s26 + $0x1d0] sm:$0xff]  }
  0x20   : > { %v2577_v62 = vld [vmem:[%s2645_s26 + $0xd8] sm:$0xff]   ;;  %v2579_v0 = vld [vmem:[%s2645_s26 + $0xe0] sm:$0xff]   ;;  %v2581_v2 = vld [vmem:[%s2645_s26 + $0xe8] sm:$0xff]  }
  0x21   : > { %2358 = vmatpush3.bf16.msra.mxu0 %v2520_v7  ;;  %2504 = vmatpush3.bf16.msra.mxu1 %v2520_v7  ;;  %v2578_v63 = vld [vmem:[%s2645_s26 + $0x1d8] sm:$0xff]   ;;  %v2580_v1 = vld [vmem:[%s2645_s26 + $0x1e0] sm:$0xff]   ;;  %v2582_v3 = vld [vmem:[%s2645_s26 + $0x1e8] sm:$0xff]  }
  0x22   : > { %2359 = vmatprep.subr.bf16.mxu0 %v2521_v8  ;;  %2497 = vmatprep.subr.bf16.mxu1 %v2521_v8  ;;  %v2583_v4 = vld [vmem:[%s2645_s26 + $0xf0] sm:$0xff]   ;;  %v2585_v6 = vld [vmem:[%s2645_s26 + $0xf8] sm:$0xff]  }
  0x23   : > { %v2584_v5 = vld [vmem:[%s2645_s26 + $0x1f0] sm:$0xff]   ;;  %v2586_v7 = vld [vmem:[%s2645_s26 + $0x1f8] sm:$0xff]  }
  0x25   : > { %2360 = vmatpush3.bf16.msra.mxu0 %v2521_v8  ;;  %2505 = vmatpush3.bf16.msra.mxu1 %v2521_v8  ;;  %v2729_v8 = vld [vmem:[%s3029_s2] ss:$0 sm:$0xff] }
  0x26   : > { %2361 = vmatprep.subr.bf16.mxu0 %v2522_v9  ;;  %2498 = vmatprep.subr.bf16.mxu1 %v2522_v9 }
  0x29   : > { %2362 = vmatpush3.bf16.msra.mxu0 %v2522_v9  ;;  %2506 = vmatpush3.bf16.msra.mxu1 %v2522_v9 }
  0x2c   : > { %2364 = vmatmul.mubr.bf16.vlgmr.msra.gmra.mxu0 %v2525_v10  ;;  %2428 = vmatmul.mubr.bf16.vlgmr.msra.gmra.mxu1 %v2526_v11  ;;  %v2734_v10 = vld [vmem:[%s3030_s3] ss:$0 sm:$0xff] }
  0x2d   : > { %2367 = vmatprep.mubr.bf16.mxu0 %v2527_v12  ;;  %2431 = vmatprep.mubr.bf16.mxu1 %v2528_v13 }
  0x34   : > { %2368 = vmatmul.mubr.bf16.gmra.mxu0 %v2529_v14  ;;  %2432 = vmatmul.mubr.bf16.gmra.mxu1 %v2530_v15 }
  0x35   : > { %2371 = vmatprep.mubr.bf16.mxu0 %v2531_v16  ;;  %2435 = vmatprep.mubr.bf16.mxu1 %v2532_v17 }
  0x3c   : > { %2372 = vmatmul.mubr.bf16.gmra.mxu0 %v2533_v18  ;;  %2436 = vmatmul.mubr.bf16.gmra.mxu1 %v2534_v19 }
  0x3d   : > { %2375 = vmatprep.mubr.bf16.mxu0 %v2535_v20  ;;  %2439 = vmatprep.mubr.bf16.mxu1 %v2536_v21 }
  0x44   : > { %2376 = vmatmul.mubr.bf16.gmra.mxu0 %v2537_v22  ;;  %2440 = vmatmul.mubr.bf16.gmra.mxu1 %v2538_v23 }
  0x45   : > { %2379 = vmatprep.mubr.bf16.mxu0 %v2539_v24  ;;  %2443 = vmatprep.mubr.bf16.mxu1 %v2540_v25 }
  0x4c   : > { %2380 = vmatmul.mubr.bf16.gmra.mxu0 %v2541_v26  ;;  %2444 = vmatmul.mubr.bf16.gmra.mxu1 %v2542_v27 }
  0x4d   : > { %2383 = vmatprep.mubr.bf16.mxu0 %v2543_v28  ;;  %2447 = vmatprep.mubr.bf16.mxu1 %v2544_v29 }
  0x54   : > { %2384 = vmatmul.mubr.bf16.gmra.mxu0 %v2545_v30  ;;  %2448 = vmatmul.mubr.bf16.gmra.mxu1 %v2546_v31 }
  0x55   : > { %2387 = vmatprep.mubr.bf16.mxu0 %v2547_v32  ;;  %2451 = vmatprep.mubr.bf16.mxu1 %v2548_v33 }
  0x5c   : > { %2388 = vmatmul.mubr.bf16.gmra.mxu0 %v2549_v34  ;;  %2452 = vmatmul.mubr.bf16.gmra.mxu1 %v2550_v35 }
  0x5d   : > { %2391 = vmatprep.mubr.bf16.mxu0 %v2551_v36  ;;  %2455 = vmatprep.mubr.bf16.mxu1 %v2552_v37 }
  0x64   : > { %2392 = vmatmul.mubr.bf16.gmra.mxu0 %v2553_v38  ;;  %2456 = vmatmul.mubr.bf16.gmra.mxu1 %v2554_v39 }
  0x65   : > { %2395 = vmatprep.mubr.bf16.mxu0 %v2555_v40  ;;  %2459 = vmatprep.mubr.bf16.mxu1 %v2556_v41 }
  0x6c   : > { %2396 = vmatmul.mubr.bf16.gmra.mxu0 %v2557_v42  ;;  %2460 = vmatmul.mubr.bf16.gmra.mxu1 %v2558_v43 }
  0x6d   : > { %2399 = vmatprep.mubr.bf16.mxu0 %v2559_v44  ;;  %2463 = vmatprep.mubr.bf16.mxu1 %v2560_v45 }
  0x74   : > { %2400 = vmatmul.mubr.bf16.gmra.mxu0 %v2561_v46  ;;  %2464 = vmatmul.mubr.bf16.gmra.mxu1 %v2562_v47 }
  0x75   : > { %2403 = vmatprep.mubr.bf16.mxu0 %v2563_v48  ;;  %2467 = vmatprep.mubr.bf16.mxu1 %v2564_v49 }
  0x7c   : > { %2404 = vmatmul.mubr.bf16.gmra.mxu0 %v2565_v50  ;;  %2468 = vmatmul.mubr.bf16.gmra.mxu1 %v2566_v51 }
  0x7d   : > { %2407 = vmatprep.mubr.bf16.mxu0 %v2567_v52  ;;  %2471 = vmatprep.mubr.bf16.mxu1 %v2568_v53 }
  0x84   : > { %2408 = vmatmul.mubr.bf16.gmra.mxu0 %v2569_v54  ;;  %2472 = vmatmul.mubr.bf16.gmra.mxu1 %v2570_v55 }
  0x85   : > { %2411 = vmatprep.mubr.bf16.mxu0 %v2571_v56  ;;  %2475 = vmatprep.mubr.bf16.mxu1 %v2572_v57 }
  0x8c   : > { %2412 = vmatmul.mubr.bf16.gmra.mxu0 %v2573_v58  ;;  %2476 = vmatmul.mubr.bf16.gmra.mxu1 %v2574_v59 }
  0x8d   : > { %2415 = vmatprep.mubr.bf16.mxu0 %v2575_v60  ;;  %2479 = vmatprep.mubr.bf16.mxu1 %v2576_v61 }
  0x94   : > { %2416 = vmatmul.mubr.bf16.gmra.mxu0 %v2577_v62  ;;  %2480 = vmatmul.mubr.bf16.gmra.mxu1 %v2578_v63 }
  0x95   : > { %2419 = vmatprep.mubr.bf16.mxu0 %v2579_v0  ;;  %2483 = vmatprep.mubr.bf16.mxu1 %v2580_v1 }
  0x9c   : > { %2420 = vmatmul.mubr.bf16.gmra.mxu0 %v2581_v2  ;;  %2484 = vmatmul.mubr.bf16.gmra.mxu1 %v2582_v3 }
  0x9d   : > { %2423 = vmatprep.mubr.bf16.mxu0 %v2583_v4  ;;  %2487 = vmatprep.mubr.bf16.mxu1 %v2584_v5 }
  0xa4   : > { %2424 = vmatmul.mubr.bf16.gmra.mxu0 %v2585_v6  ;;  %2488 = vmatmul.mubr.bf16.gmra.mxu1 %v2586_v7 }
  0xec   : > { %v2365_v9 = vpop.f32.mrf.mxu0  ;;  %v2429_v11 = vpop.f32.mrf.mxu1 }
  0xed   : > { %v1329_v12 = vmul.f32 %v2365_v9, %v2729_v8  ;;  %v1393_v13 = vmul.f32 %v2429_v11, %v2729_v8 }
  0xee   : > { %v809_v14 = vpop.f32.mrf.mxu0  ;;  %v1065_v15 = vpop.f32.mrf.mxu1 }
  0xef   : > { %v1464_v16 = vadd.f32 %v2734_v10, %v1329_v12  ;;  %v1528_v17 = vadd.f32 %v2734_v10, %v1393_v13  ;;  %v1327_v18 = vmul.f32 %v2729_v8, %v809_v14  ;;  %v1391_v19 = vmul.f32 %v2729_v8, %v1065_v15 }
  0xf0   : > { %v2366_v20 = vpop.f32.mrf.mxu0  ;;  %v2430_v21 = vpop.f32.mrf.mxu1 }
  0xf1   : > { %v1462_v22 = vadd.f32 %v2734_v10, %v1327_v18  ;;  %v1526_v23 = vadd.f32 %v2734_v10, %v1391_v19  ;;  %v1592_v24 = vmax.f32 %v1464_v16, 0.0  ;;  %v1330_v25 = vmul.f32 %v2366_v20, %v2729_v8 }
  0xf2   : > { %v1394_v26 = vmul.f32 %v2430_v21, %v2729_v8  ;;  %v812_v27 = vpop.f32.mrf.mxu0  ;;  %v1068_v28 = vpop.f32.mrf.mxu1  ;;  %v1656_v29 = vmax.f32 %v1528_v17, 0.0 }
  0xf3   : > { %v1590_v30 = vmax.f32 %v1462_v22, 0.0  ;;  %v1654_v31 = vmax.f32 %v1526_v23, 0.0  ;;  %v1328_v32 = vmul.f32 %v2729_v8, %v812_v27  ;;  %v1465_v33 = vadd.f32 %v2734_v10, %v1330_v25 }
  0xf4   : > { %v1529_v34 = vadd.f32 %v2734_v10, %v1394_v26  ;;  %v1392_v35 = vmul.f32 %v2729_v8, %v1068_v28  ;;  %v2369_v36 = vpop.f32.mrf.mxu0  ;;  %v2433_v37 = vpop.f32.mrf.mxu1  ;;  %v1720_v47 = vmax.f32 %v1592_v24, %v1656_v29 }
  0xf5   : > { %v1718_v38 = vmax.f32 %v1590_v30, %v1654_v31  ;;  %v1463_v39 = vadd.f32 %v2734_v10, %v1328_v32  ;;  %v1333_v40 = vmul.f32 %v2369_v36, %v2729_v8  ;;  %v1397_v41 = vmul.f32 %v2433_v37, %v2729_v8 }
  0xf6   : > { %v1593_v42 = vmax.f32 %v1465_v33, 0.0  ;;  %v1657_v43 = vmax.f32 %v1529_v34, 0.0  ;;  %v1527_v44 = vadd.f32 %v2734_v10, %v1392_v35  ;;  %v825_v45 = vpop.f32.mrf.mxu0  ;;  %v1081_v46 = vpop.f32.mrf.mxu1 }
  0xf7   : > { %v1591_v48 = vmax.f32 %v1463_v39, 0.0  ;;  %v1468_v49 = vadd.f32 %v2734_v10, %v1333_v40  ;;  %v1532_v50 = vadd.f32 %v2734_v10, %v1397_v41  ;;  %v1331_v52 = vmul.f32 %v2729_v8, %v825_v45 }
  0xf8   : > { %v1655_v51 = vmax.f32 %v1527_v44, 0.0  ;;  %v1395_v53 = vmul.f32 %v2729_v8, %v1081_v46  ;;  %v2370_v54 = vpop.f32.mrf.mxu0  ;;  %v2434_v55 = vpop.f32.mrf.mxu1  ;;  %v1782_v56 = vmax.f32 %v1718_v38, %v1720_v47  ;;  %v1721_v57 = vmax.f32 %v1593_v42, %v1657_v43 }
  0xf9   : > { %v1334_v58 = vmul.f32 %v2370_v54, %v2729_v8  ;;  %v1398_v59 = vmul.f32 %v2434_v55, %v2729_v8  ;;  %v1596_v61 = vmax.f32 %v1468_v49, 0.0  ;;  %v1466_v62 = vadd.f32 %v2734_v10, %v1331_v52 }
  0xfa   : > { %v1719_v60 = vmax.f32 %v1591_v48, %v1655_v51  ;;  %v1530_v63 = vadd.f32 %v2734_v10, %v1395_v53  ;;  %v828_v0 = vpop.f32.mrf.mxu0  ;;  %v1084_v1 = vpop.f32.mrf.mxu1  ;;  %v1660_v2 = vmax.f32 %v1532_v50, 0.0 }
  0xfb   : > { %v1469_v3 = vadd.f32 %v2734_v10, %v1334_v58  ;;  %v1533_v4 = vadd.f32 %v2734_v10, %v1398_v59  ;;  %v1332_v5 = vmul.f32 %v2729_v8, %v828_v0  ;;  %v1594_v7 = vmax.f32 %v1466_v62, 0.0 }
  0xfc   : > { %v1783_v6 = vmax.f32 %v1719_v60, %v1721_v57  ;;  %v1658_v9 = vmax.f32 %v1530_v63, 0.0  ;;  %v1396_v11 = vmul.f32 %v2729_v8, %v1084_v1  ;;  %v2373_v12 = vpop.f32.mrf.mxu0  ;;  %v2437_v13 = vpop.f32.mrf.mxu1  ;;  %v1724_v27 = vmax.f32 %v1596_v61, %v1660_v2 }
  0xfd   : > { %v1597_v14 = vmax.f32 %v1469_v3, 0.0  ;;  %v1661_v15 = vmax.f32 %v1533_v4, 0.0  ;;  %v1467_v16 = vadd.f32 %v2734_v10, %v1332_v5  ;;  %v1337_v17 = vmul.f32 %v2373_v12, %v2729_v8 }
  0xfe   : > { %v2183_v18 = vpack.c.bf16 %v1783_v6, %v1782_v56  ;;  %v1722_v19 = vmax.f32 %v1594_v7, %v1658_v9  ;;  %v1531_v20 = vadd.f32 %v2734_v10, %v1396_v11  ;;  %v1401_v21 = vmul.f32 %v2437_v13, %v2729_v8  ;;  %v841_v22 = vpop.f32.mrf.mxu0  ;;  %v1097_v23 = vpop.f32.mrf.mxu1 }
  0xff   : > { %v1595_v24 = vmax.f32 %v1467_v16, 0.0  ;;  %v1472_v25 = vadd.f32 %v2734_v10, %v1337_v17  ;;  %v1335_v26 = vmul.f32 %v2729_v8, %v841_v22  ;;  %v1399_v30 = vmul.f32 %v2729_v8, %v1097_v23 }
 0x100   : > { %2184 = vst [vmem:[%s2770_s19] sm:$0xff] %v2183_v18   ;;  %v1659_v28 = vmax.f32 %v1531_v20, 0.0  ;;  %v1536_v29 = vadd.f32 %v2734_v10, %v1401_v21  ;;  %v2374_v31 = vpop.f32.mrf.mxu0  ;;  %v2438_v32 = vpop.f32.mrf.mxu1  ;;  %v1725_v33 = vmax.f32 %v1597_v14, %v1661_v15  ;;  %v1784_v37 = vmax.f32 %v1722_v19, %v1724_v27 }
 0x101   : > { %v1470_v34 = vadd.f32 %v2734_v10, %v1335_v26  ;;  %v1338_v35 = vmul.f32 %v2374_v31, %v2729_v8  ;;  %v1402_v36 = vmul.f32 %v2438_v32, %v2729_v8  ;;  %v1600_v39 = vmax.f32 %v1472_v25, 0.0 }
 0x102   : > { %v1723_v38 = vmax.f32 %v1595_v24, %v1659_v28  ;;  %v1534_v40 = vadd.f32 %v2734_v10, %v1399_v30  ;;  %v844_v41 = vpop.f32.mrf.mxu0  ;;  %v1100_v42 = vpop.f32.mrf.mxu1  ;;  %v1664_v48 = vmax.f32 %v1536_v29, 0.0 }
 0x103   : > { %v1598_v43 = vmax.f32 %v1470_v34, 0.0  ;;  %v1473_v44 = vadd.f32 %v2734_v10, %v1338_v35  ;;  %v1537_v45 = vadd.f32 %v2734_v10, %v1402_v36  ;;  %v1336_v46 = vmul.f32 %v2729_v8, %v844_v41 }
 0x104   : > { %v1785_v47 = vmax.f32 %v1723_v38, %v1725_v33  ;;  %v1662_v49 = vmax.f32 %v1534_v40, 0.0  ;;  %v1400_v50 = vmul.f32 %v2729_v8, %v1100_v42  ;;  %v2377_v51 = vpop.f32.mrf.mxu0  ;;  %v2441_v52 = vpop.f32.mrf.mxu1  ;;  %v1728_v2 = vmax.f32 %v1600_v39, %v1664_v48 }
 0x105   : > { %v1601_v53 = vmax.f32 %v1473_v44, 0.0  ;;  %v1665_v54 = vmax.f32 %v1537_v45, 0.0  ;;  %v1471_v55 = vadd.f32 %v2734_v10, %v1336_v46  ;;  %v1341_v56 = vmul.f32 %v2377_v51, %v2729_v8 }
 0x106   : > { %v2188_v57 = vpack.c.bf16 %v1785_v47, %v1784_v37  ;;  %v1726_v58 = vmax.f32 %v1598_v43, %v1662_v49  ;;  %v1535_v59 = vadd.f32 %v2734_v10, %v1400_v50  ;;  %v1405_v60 = vmul.f32 %v2441_v52, %v2729_v8  ;;  %v857_v61 = vpop.f32.mrf.mxu0  ;;  %v1113_v62 = vpop.f32.mrf.mxu1 }
 0x107   : > { %v1599_v63 = vmax.f32 %v1471_v55, 0.0  ;;  %v1476_v0 = vadd.f32 %v2734_v10, %v1341_v56  ;;  %v1339_v1 = vmul.f32 %v2729_v8, %v857_v61  ;;  %v1403_v5 = vmul.f32 %v2729_v8, %v1113_v62 }
 0x108   : > { %2260 = vst [vmem:[%s2770_s19 + $0x8] sm:$0xff] %v2188_v57   ;;  %v1663_v3 = vmax.f32 %v1535_v59, 0.0  ;;  %v1540_v4 = vadd.f32 %v2734_v10, %v1405_v60  ;;  %v2378_v6 = vpop.f32.mrf.mxu0  ;;  %v2442_v7 = vpop.f32.mrf.mxu1  ;;  %v1729_v9 = vmax.f32 %v1601_v53, %v1665_v54  ;;  %v1786_v14 = vmax.f32 %v1726_v58, %v1728_v2 }
 0x109   : > { %v1474_v11 = vadd.f32 %v2734_v10, %v1339_v1  ;;  %v1342_v12 = vmul.f32 %v2378_v6, %v2729_v8  ;;  %v1406_v13 = vmul.f32 %v2442_v7, %v2729_v8  ;;  %v1604_v16 = vmax.f32 %v1476_v0, 0.0 }
 0x10a   : > { %v1727_v15 = vmax.f32 %v1599_v63, %v1663_v3  ;;  %v1538_v17 = vadd.f32 %v2734_v10, %v1403_v5  ;;  %v860_v18 = vpop.f32.mrf.mxu0  ;;  %v1116_v19 = vpop.f32.mrf.mxu1  ;;  %v1668_v25 = vmax.f32 %v1540_v4, 0.0 }
 0x10b   : > { %v1602_v20 = vmax.f32 %v1474_v11, 0.0  ;;  %v1477_v21 = vadd.f32 %v2734_v10, %v1342_v12  ;;  %v1541_v22 = vadd.f32 %v2734_v10, %v1406_v13  ;;  %v1340_v23 = vmul.f32 %v2729_v8, %v860_v18 }
 0x10c   : > { %v1787_v24 = vmax.f32 %v1727_v15, %v1729_v9  ;;  %v1666_v26 = vmax.f32 %v1538_v17, 0.0  ;;  %v1404_v27 = vmul.f32 %v2729_v8, %v1116_v19  ;;  %v2381_v28 = vpop.f32.mrf.mxu0  ;;  %v2445_v29 = vpop.f32.mrf.mxu1  ;;  %v1732_v43 = vmax.f32 %v1604_v16, %v1668_v25 }
 0x10d   : > { %v1605_v30 = vmax.f32 %v1477_v21, 0.0  ;;  %v1669_v31 = vmax.f32 %v1541_v22, 0.0  ;;  %v1475_v32 = vadd.f32 %v2734_v10, %v1340_v23  ;;  %v1345_v33 = vmul.f32 %v2381_v28, %v2729_v8 }
 0x10e   : > { %v2193_v34 = vpack.c.bf16 %v1787_v24, %v1786_v14  ;;  %v1730_v35 = vmax.f32 %v1602_v20, %v1666_v26  ;;  %v1539_v36 = vadd.f32 %v2734_v10, %v1404_v27  ;;  %v1409_v37 = vmul.f32 %v2445_v29, %v2729_v8  ;;  %v873_v38 = vpop.f32.mrf.mxu0  ;;  %v1129_v39 = vpop.f32.mrf.mxu1 }
 0x10f   : > { %v1603_v40 = vmax.f32 %v1475_v32, 0.0  ;;  %v1480_v41 = vadd.f32 %v2734_v10, %v1345_v33  ;;  %v1343_v42 = vmul.f32 %v2729_v8, %v873_v38  ;;  %v1407_v46 = vmul.f32 %v2729_v8, %v1129_v39 }
 0x110   : > { %2261 = vst [vmem:[%s2770_s19 + $0x10] sm:$0xff] %v2193_v34   ;;  %v1667_v44 = vmax.f32 %v1539_v36, 0.0  ;;  %v1544_v45 = vadd.f32 %v2734_v10, %v1409_v37  ;;  %v2382_v47 = vpop.f32.mrf.mxu0  ;;  %v2446_v48 = vpop.f32.mrf.mxu1  ;;  %v1733_v49 = vmax.f32 %v1605_v30, %v1669_v31  ;;  %v1788_v53 = vmax.f32 %v1730_v35, %v1732_v43 }
 0x111   : > { %v1478_v50 = vadd.f32 %v2734_v10, %v1343_v42  ;;  %v1346_v51 = vmul.f32 %v2382_v47, %v2729_v8  ;;  %v1410_v52 = vmul.f32 %v2446_v48, %v2729_v8  ;;  %v1608_v55 = vmax.f32 %v1480_v41, 0.0 }
 0x112   : > { %v1731_v54 = vmax.f32 %v1603_v40, %v1667_v44  ;;  %v1542_v56 = vadd.f32 %v2734_v10, %v1407_v46  ;;  %v876_v57 = vpop.f32.mrf.mxu0  ;;  %v1132_v58 = vpop.f32.mrf.mxu1  ;;  %v1672_v0 = vmax.f32 %v1544_v45, 0.0 }
 0x113   : > { %v1606_v59 = vmax.f32 %v1478_v50, 0.0  ;;  %v1481_v60 = vadd.f32 %v2734_v10, %v1346_v51  ;;  %v1545_v61 = vadd.f32 %v2734_v10, %v1410_v52  ;;  %v1344_v62 = vmul.f32 %v2729_v8, %v876_v57 }
 0x114   : > { %v1789_v63 = vmax.f32 %v1731_v54, %v1733_v49  ;;  %v1670_v1 = vmax.f32 %v1542_v56, 0.0  ;;  %v1408_v2 = vmul.f32 %v2729_v8, %v1132_v58  ;;  %v2385_v3 = vpop.f32.mrf.mxu0  ;;  %v2449_v4 = vpop.f32.mrf.mxu1  ;;  %v1736_v20 = vmax.f32 %v1608_v55, %v1672_v0 }
 0x115   : > { %v1609_v5 = vmax.f32 %v1481_v60, 0.0  ;;  %v1673_v6 = vmax.f32 %v1545_v61, 0.0  ;;  %v1479_v7 = vadd.f32 %v2734_v10, %v1344_v62  ;;  %v1349_v9 = vmul.f32 %v2385_v3, %v2729_v8 }
 0x116   : > { %v2198_v11 = vpack.c.bf16 %v1789_v63, %v1788_v53  ;;  %v1734_v12 = vmax.f32 %v1606_v59, %v1670_v1  ;;  %v1543_v13 = vadd.f32 %v2734_v10, %v1408_v2  ;;  %v1413_v14 = vmul.f32 %v2449_v4, %v2729_v8  ;;  %v889_v15 = vpop.f32.mrf.mxu0  ;;  %v1145_v16 = vpop.f32.mrf.mxu1 }
 0x117   : > { %v1607_v17 = vmax.f32 %v1479_v7, 0.0  ;;  %v1484_v18 = vadd.f32 %v2734_v10, %v1349_v9  ;;  %v1347_v19 = vmul.f32 %v2729_v8, %v889_v15  ;;  %v1411_v23 = vmul.f32 %v2729_v8, %v1145_v16 }
 0x118   : > { %2262 = vst [vmem:[%s2770_s19 + $0x18] sm:$0xff] %v2198_v11   ;;  %v1671_v21 = vmax.f32 %v1543_v13, 0.0  ;;  %v1548_v22 = vadd.f32 %v2734_v10, %v1413_v14  ;;  %v2386_v24 = vpop.f32.mrf.mxu0  ;;  %v2450_v25 = vpop.f32.mrf.mxu1  ;;  %v1737_v26 = vmax.f32 %v1609_v5, %v1673_v6  ;;  %v1790_v30 = vmax.f32 %v1734_v12, %v1736_v20 }
 0x119   : > { %v1482_v27 = vadd.f32 %v2734_v10, %v1347_v19  ;;  %v1350_v28 = vmul.f32 %v2386_v24, %v2729_v8  ;;  %v1414_v29 = vmul.f32 %v2450_v25, %v2729_v8  ;;  %v1612_v32 = vmax.f32 %v1484_v18, 0.0 }
 0x11a   : > { %v1735_v31 = vmax.f32 %v1607_v17, %v1671_v21  ;;  %v1546_v33 = vadd.f32 %v2734_v10, %v1411_v23  ;;  %v892_v34 = vpop.f32.mrf.mxu0  ;;  %v1148_v35 = vpop.f32.mrf.mxu1  ;;  %v1676_v41 = vmax.f32 %v1548_v22, 0.0 }
 0x11b   : > { %v1610_v36 = vmax.f32 %v1482_v27, 0.0  ;;  %v1485_v37 = vadd.f32 %v2734_v10, %v1350_v28  ;;  %v1549_v38 = vadd.f32 %v2734_v10, %v1414_v29  ;;  %v1348_v39 = vmul.f32 %v2729_v8, %v892_v34 }
 0x11c   : > { %v1791_v40 = vmax.f32 %v1735_v31, %v1737_v26  ;;  %v1674_v42 = vmax.f32 %v1546_v33, 0.0  ;;  %v1412_v43 = vmul.f32 %v2729_v8, %v1148_v35  ;;  %v2389_v44 = vpop.f32.mrf.mxu0  ;;  %v2453_v45 = vpop.f32.mrf.mxu1  ;;  %v1740_v59 = vmax.f32 %v1612_v32, %v1676_v41 }
 0x11d   : > { %v1613_v46 = vmax.f32 %v1485_v37, 0.0  ;;  %v1677_v47 = vmax.f32 %v1549_v38, 0.0  ;;  %v1483_v48 = vadd.f32 %v2734_v10, %v1348_v39  ;;  %v1353_v49 = vmul.f32 %v2389_v44, %v2729_v8 }
 0x11e   : > { %v2203_v50 = vpack.c.bf16 %v1791_v40, %v1790_v30  ;;  %v1738_v51 = vmax.f32 %v1610_v36, %v1674_v42  ;;  %v1547_v52 = vadd.f32 %v2734_v10, %v1412_v43  ;;  %v1417_v53 = vmul.f32 %v2453_v45, %v2729_v8  ;;  %v905_v54 = vpop.f32.mrf.mxu0  ;;  %v1161_v55 = vpop.f32.mrf.mxu1 }
 0x11f   : > { %v1611_v56 = vmax.f32 %v1483_v48, 0.0  ;;  %v1488_v57 = vadd.f32 %v2734_v10, %v1353_v49  ;;  %v1351_v58 = vmul.f32 %v2729_v8, %v905_v54  ;;  %v1415_v62 = vmul.f32 %v2729_v8, %v1161_v55 }
 0x120   : > { %2263 = vst [vmem:[%s2770_s19 + $0x20] sm:$0xff] %v2203_v50   ;;  %v1675_v60 = vmax.f32 %v1547_v52, 0.0  ;;  %v1552_v61 = vadd.f32 %v2734_v10, %v1417_v53  ;;  %v2390_v63 = vpop.f32.mrf.mxu0  ;;  %v2454_v0 = vpop.f32.mrf.mxu1  ;;  %v1741_v1 = vmax.f32 %v1613_v46, %v1677_v47  ;;  %v1792_v5 = vmax.f32 %v1738_v51, %v1740_v59 }
 0x121   : > { %v1486_v2 = vadd.f32 %v2734_v10, %v1351_v58  ;;  %v1354_v3 = vmul.f32 %v2390_v63, %v2729_v8  ;;  %v1418_v4 = vmul.f32 %v2454_v0, %v2729_v8  ;;  %v1616_v7 = vmax.f32 %v1488_v57, 0.0 }
 0x122   : > { %v1739_v6 = vmax.f32 %v1611_v56, %v1675_v60  ;;  %v1550_v9 = vadd.f32 %v2734_v10, %v1415_v62  ;;  %v908_v11 = vpop.f32.mrf.mxu0  ;;  %v1164_v12 = vpop.f32.mrf.mxu1  ;;  %v1680_v18 = vmax.f32 %v1552_v61, 0.0 }
 0x123   : > { %v1614_v13 = vmax.f32 %v1486_v2, 0.0  ;;  %v1489_v14 = vadd.f32 %v2734_v10, %v1354_v3  ;;  %v1553_v15 = vadd.f32 %v2734_v10, %v1418_v4  ;;  %v1352_v16 = vmul.f32 %v2729_v8, %v908_v11 }
 0x124   : > { %v1793_v17 = vmax.f32 %v1739_v6, %v1741_v1  ;;  %v1678_v19 = vmax.f32 %v1550_v9, 0.0  ;;  %v1416_v20 = vmul.f32 %v2729_v8, %v1164_v12  ;;  %v2393_v21 = vpop.f32.mrf.mxu0  ;;  %v2457_v22 = vpop.f32.mrf.mxu1  ;;  %v1744_v36 = vmax.f32 %v1616_v7, %v1680_v18 }
 0x125   : > { %v1617_v23 = vmax.f32 %v1489_v14, 0.0  ;;  %v1681_v24 = vmax.f32 %v1553_v15, 0.0  ;;  %v1487_v25 = vadd.f32 %v2734_v10, %v1352_v16  ;;  %v1357_v26 = vmul.f32 %v2393_v21, %v2729_v8 }
 0x126   : > { %v2208_v27 = vpack.c.bf16 %v1793_v17, %v1792_v5  ;;  %v1742_v28 = vmax.f32 %v1614_v13, %v1678_v19  ;;  %v1551_v29 = vadd.f32 %v2734_v10, %v1416_v20  ;;  %v1421_v30 = vmul.f32 %v2457_v22, %v2729_v8  ;;  %v921_v31 = vpop.f32.mrf.mxu0  ;;  %v1177_v32 = vpop.f32.mrf.mxu1 }
 0x127   : > { %v1615_v33 = vmax.f32 %v1487_v25, 0.0  ;;  %v1492_v34 = vadd.f32 %v2734_v10, %v1357_v26  ;;  %v1355_v35 = vmul.f32 %v2729_v8, %v921_v31  ;;  %v1419_v39 = vmul.f32 %v2729_v8, %v1177_v32 }
 0x128   : > { %2264 = vst [vmem:[%s2770_s19 + $0x28] sm:$0xff] %v2208_v27   ;;  %v1679_v37 = vmax.f32 %v1551_v29, 0.0  ;;  %v1556_v38 = vadd.f32 %v2734_v10, %v1421_v30  ;;  %v2394_v40 = vpop.f32.mrf.mxu0  ;;  %v2458_v41 = vpop.f32.mrf.mxu1  ;;  %v1745_v42 = vmax.f32 %v1617_v23, %v1681_v24  ;;  %v1794_v46 = vmax.f32 %v1742_v28, %v1744_v36 }
 0x129   : > { %v1490_v43 = vadd.f32 %v2734_v10, %v1355_v35  ;;  %v1358_v44 = vmul.f32 %v2394_v40, %v2729_v8  ;;  %v1422_v45 = vmul.f32 %v2458_v41, %v2729_v8  ;;  %v1620_v48 = vmax.f32 %v1492_v34, 0.0 }
 0x12a   : > { %v1743_v47 = vmax.f32 %v1615_v33, %v1679_v37  ;;  %v1554_v49 = vadd.f32 %v2734_v10, %v1419_v39  ;;  %v924_v50 = vpop.f32.mrf.mxu0  ;;  %v1180_v51 = vpop.f32.mrf.mxu1  ;;  %v1684_v57 = vmax.f32 %v1556_v38, 0.0 }
 0x12b   : > { %v1618_v52 = vmax.f32 %v1490_v43, 0.0  ;;  %v1493_v53 = vadd.f32 %v2734_v10, %v1358_v44  ;;  %v1557_v54 = vadd.f32 %v2734_v10, %v1422_v45  ;;  %v1356_v55 = vmul.f32 %v2729_v8, %v924_v50 }
 0x12c   : > { %v1795_v56 = vmax.f32 %v1743_v47, %v1745_v42  ;;  %v1682_v58 = vmax.f32 %v1554_v49, 0.0  ;;  %v1420_v59 = vmul.f32 %v2729_v8, %v1180_v51  ;;  %v2397_v60 = vpop.f32.mrf.mxu0  ;;  %v2461_v61 = vpop.f32.mrf.mxu1  ;;  %v1748_v13 = vmax.f32 %v1620_v48, %v1684_v57 }
 0x12d   : > { %v1621_v62 = vmax.f32 %v1493_v53, 0.0  ;;  %v1685_v63 = vmax.f32 %v1557_v54, 0.0  ;;  %v1491_v0 = vadd.f32 %v2734_v10, %v1356_v55  ;;  %v1361_v1 = vmul.f32 %v2397_v60, %v2729_v8 }
 0x12e   : > { %v2213_v2 = vpack.c.bf16 %v1795_v56, %v1794_v46  ;;  %v1746_v3 = vmax.f32 %v1618_v52, %v1682_v58  ;;  %v1555_v4 = vadd.f32 %v2734_v10, %v1420_v59  ;;  %v1425_v5 = vmul.f32 %v2461_v61, %v2729_v8  ;;  %v937_v6 = vpop.f32.mrf.mxu0  ;;  %v1193_v7 = vpop.f32.mrf.mxu1 }
 0x12f   : > { %v1619_v9 = vmax.f32 %v1491_v0, 0.0  ;;  %v1496_v11 = vadd.f32 %v2734_v10, %v1361_v1  ;;  %v1359_v12 = vmul.f32 %v2729_v8, %v937_v6  ;;  %v1423_v16 = vmul.f32 %v2729_v8, %v1193_v7 }
 0x130   : > { %2265 = vst [vmem:[%s2770_s19 + $0x30] sm:$0xff] %v2213_v2   ;;  %v1683_v14 = vmax.f32 %v1555_v4, 0.0  ;;  %v1560_v15 = vadd.f32 %v2734_v10, %v1425_v5  ;;  %v2398_v17 = vpop.f32.mrf.mxu0  ;;  %v2462_v18 = vpop.f32.mrf.mxu1  ;;  %v1749_v19 = vmax.f32 %v1621_v62, %v1685_v63  ;;  %v1796_v23 = vmax.f32 %v1746_v3, %v1748_v13 }
 0x131   : > { %v1494_v20 = vadd.f32 %v2734_v10, %v1359_v12  ;;  %v1362_v21 = vmul.f32 %v2398_v17, %v2729_v8  ;;  %v1426_v22 = vmul.f32 %v2462_v18, %v2729_v8  ;;  %v1624_v25 = vmax.f32 %v1496_v11, 0.0 }
 0x132   : > { %v1747_v24 = vmax.f32 %v1619_v9, %v1683_v14  ;;  %v1558_v26 = vadd.f32 %v2734_v10, %v1423_v16  ;;  %v940_v27 = vpop.f32.mrf.mxu0  ;;  %v1196_v28 = vpop.f32.mrf.mxu1  ;;  %v1688_v34 = vmax.f32 %v1560_v15, 0.0 }
 0x133   : > { %v1622_v29 = vmax.f32 %v1494_v20, 0.0  ;;  %v1497_v30 = vadd.f32 %v2734_v10, %v1362_v21  ;;  %v1561_v31 = vadd.f32 %v2734_v10, %v1426_v22  ;;  %v1360_v32 = vmul.f32 %v2729_v8, %v940_v27 }
 0x134   : > { %v1797_v33 = vmax.f32 %v1747_v24, %v1749_v19  ;;  %v1686_v35 = vmax.f32 %v1558_v26, 0.0  ;;  %v1424_v36 = vmul.f32 %v2729_v8, %v1196_v28  ;;  %v2401_v37 = vpop.f32.mrf.mxu0  ;;  %v2465_v38 = vpop.f32.mrf.mxu1  ;;  %v1752_v52 = vmax.f32 %v1624_v25, %v1688_v34 }
 0x135   : > { %v1625_v39 = vmax.f32 %v1497_v30, 0.0  ;;  %v1689_v40 = vmax.f32 %v1561_v31, 0.0  ;;  %v1495_v41 = vadd.f32 %v2734_v10, %v1360_v32  ;;  %v1365_v42 = vmul.f32 %v2401_v37, %v2729_v8 }
 0x136   : > { %v2218_v43 = vpack.c.bf16 %v1797_v33, %v1796_v23  ;;  %v1750_v44 = vmax.f32 %v1622_v29, %v1686_v35  ;;  %v1559_v45 = vadd.f32 %v2734_v10, %v1424_v36  ;;  %v1429_v46 = vmul.f32 %v2465_v38, %v2729_v8  ;;  %v953_v47 = vpop.f32.mrf.mxu0  ;;  %v1209_v48 = vpop.f32.mrf.mxu1 }
 0x137   : > { %v1623_v49 = vmax.f32 %v1495_v41, 0.0  ;;  %v1500_v50 = vadd.f32 %v2734_v10, %v1365_v42  ;;  %v1363_v51 = vmul.f32 %v2729_v8, %v953_v47  ;;  %v1427_v55 = vmul.f32 %v2729_v8, %v1209_v48 }
 0x138   : > { %2266 = vst [vmem:[%s2770_s19 + $0x38] sm:$0xff] %v2218_v43   ;;  %v1687_v53 = vmax.f32 %v1559_v45, 0.0  ;;  %v1564_v54 = vadd.f32 %v2734_v10, %v1429_v46  ;;  %v2402_v56 = vpop.f32.mrf.mxu0  ;;  %v2466_v57 = vpop.f32.mrf.mxu1  ;;  %v1753_v58 = vmax.f32 %v1625_v39, %v1689_v40  ;;  %v1798_v62 = vmax.f32 %v1750_v44, %v1752_v52 }
 0x139   : > { %v1498_v59 = vadd.f32 %v2734_v10, %v1363_v51  ;;  %v1366_v60 = vmul.f32 %v2402_v56, %v2729_v8  ;;  %v1430_v61 = vmul.f32 %v2466_v57, %v2729_v8  ;;  %v1628_v0 = vmax.f32 %v1500_v50, 0.0 }
 0x13a   : > { %v1751_v63 = vmax.f32 %v1623_v49, %v1687_v53  ;;  %v1562_v1 = vadd.f32 %v2734_v10, %v1427_v55  ;;  %v956_v2 = vpop.f32.mrf.mxu0  ;;  %v1212_v3 = vpop.f32.mrf.mxu1  ;;  %v1692_v11 = vmax.f32 %v1564_v54, 0.0 }
 0x13b   : > { %v1626_v4 = vmax.f32 %v1498_v59, 0.0  ;;  %v1501_v5 = vadd.f32 %v2734_v10, %v1366_v60  ;;  %v1565_v6 = vadd.f32 %v2734_v10, %v1430_v61  ;;  %v1364_v7 = vmul.f32 %v2729_v8, %v956_v2 }
 0x13c   : > { %v1799_v9 = vmax.f32 %v1751_v63, %v1753_v58  ;;  %v1690_v12 = vmax.f32 %v1562_v1, 0.0  ;;  %v1428_v13 = vmul.f32 %v2729_v8, %v1212_v3  ;;  %v2405_v14 = vpop.f32.mrf.mxu0  ;;  %v2469_v15 = vpop.f32.mrf.mxu1  ;;  %v1756_v29 = vmax.f32 %v1628_v0, %v1692_v11 }
 0x13d   : > { %v1629_v16 = vmax.f32 %v1501_v5, 0.0  ;;  %v1693_v17 = vmax.f32 %v1565_v6, 0.0  ;;  %v1499_v18 = vadd.f32 %v2734_v10, %v1364_v7  ;;  %v1369_v19 = vmul.f32 %v2405_v14, %v2729_v8 }
 0x13e   : > { %v2223_v20 = vpack.c.bf16 %v1799_v9, %v1798_v62  ;;  %v1754_v21 = vmax.f32 %v1626_v4, %v1690_v12  ;;  %v1563_v22 = vadd.f32 %v2734_v10, %v1428_v13  ;;  %v1433_v23 = vmul.f32 %v2469_v15, %v2729_v8  ;;  %v969_v24 = vpop.f32.mrf.mxu0  ;;  %v1225_v25 = vpop.f32.mrf.mxu1 }
 0x13f   : > { %v1627_v26 = vmax.f32 %v1499_v18, 0.0  ;;  %v1504_v27 = vadd.f32 %v2734_v10, %v1369_v19  ;;  %v1367_v28 = vmul.f32 %v2729_v8, %v969_v24  ;;  %v1431_v32 = vmul.f32 %v2729_v8, %v1225_v25 }
 0x140   : > { %2267 = vst [vmem:[%s2770_s19 + $0x40] sm:$0xff] %v2223_v20   ;;  %v1691_v30 = vmax.f32 %v1563_v22, 0.0  ;;  %v1568_v31 = vadd.f32 %v2734_v10, %v1433_v23  ;;  %v2406_v33 = vpop.f32.mrf.mxu0  ;;  %v2470_v34 = vpop.f32.mrf.mxu1  ;;  %v1757_v35 = vmax.f32 %v1629_v16, %v1693_v17  ;;  %v1800_v39 = vmax.f32 %v1754_v21, %v1756_v29 }
 0x141   : > { %v1502_v36 = vadd.f32 %v2734_v10, %v1367_v28  ;;  %v1370_v37 = vmul.f32 %v2406_v33, %v2729_v8  ;;  %v1434_v38 = vmul.f32 %v2470_v34, %v2729_v8  ;;  %v1632_v41 = vmax.f32 %v1504_v27, 0.0 }
 0x142   : > { %v1755_v40 = vmax.f32 %v1627_v26, %v1691_v30  ;;  %v1566_v42 = vadd.f32 %v2734_v10, %v1431_v32  ;;  %v972_v43 = vpop.f32.mrf.mxu0  ;;  %v1228_v44 = vpop.f32.mrf.mxu1  ;;  %v1696_v50 = vmax.f32 %v1568_v31, 0.0 }
 0x143   : > { %v1630_v45 = vmax.f32 %v1502_v36, 0.0  ;;  %v1505_v46 = vadd.f32 %v2734_v10, %v1370_v37  ;;  %v1569_v47 = vadd.f32 %v2734_v10, %v1434_v38  ;;  %v1368_v48 = vmul.f32 %v2729_v8, %v972_v43 }
 0x144   : > { %v1801_v49 = vmax.f32 %v1755_v40, %v1757_v35  ;;  %v1694_v51 = vmax.f32 %v1566_v42, 0.0  ;;  %v1432_v52 = vmul.f32 %v2729_v8, %v1228_v44  ;;  %v2409_v53 = vpop.f32.mrf.mxu0  ;;  %v2473_v54 = vpop.f32.mrf.mxu1  ;;  %v1760_v4 = vmax.f32 %v1632_v41, %v1696_v50 }
 0x145   : > { %v1633_v55 = vmax.f32 %v1505_v46, 0.0  ;;  %v1697_v56 = vmax.f32 %v1569_v47, 0.0  ;;  %v1503_v57 = vadd.f32 %v2734_v10, %v1368_v48  ;;  %v1373_v58 = vmul.f32 %v2409_v53, %v2729_v8 }
 0x146   : > { %v2228_v59 = vpack.c.bf16 %v1801_v49, %v1800_v39  ;;  %v1758_v60 = vmax.f32 %v1630_v45, %v1694_v51  ;;  %v1567_v61 = vadd.f32 %v2734_v10, %v1432_v52  ;;  %v1437_v62 = vmul.f32 %v2473_v54, %v2729_v8  ;;  %v985_v63 = vpop.f32.mrf.mxu0  ;;  %v1241_v0 = vpop.f32.mrf.mxu1 }
 0x147   : > { %v1631_v1 = vmax.f32 %v1503_v57, 0.0  ;;  %v1508_v2 = vadd.f32 %v2734_v10, %v1373_v58  ;;  %v1371_v3 = vmul.f32 %v2729_v8, %v985_v63  ;;  %v1435_v7 = vmul.f32 %v2729_v8, %v1241_v0 }
 0x148   : > { %2268 = vst [vmem:[%s2770_s19 + $0x48] sm:$0xff] %v2228_v59   ;;  %v1695_v5 = vmax.f32 %v1567_v61, 0.0  ;;  %v1572_v6 = vadd.f32 %v2734_v10, %v1437_v62  ;;  %v2410_v9 = vpop.f32.mrf.mxu0  ;;  %v2474_v11 = vpop.f32.mrf.mxu1  ;;  %v1761_v12 = vmax.f32 %v1633_v55, %v1697_v56  ;;  %v1802_v16 = vmax.f32 %v1758_v60, %v1760_v4 }
 0x149   : > { %v1506_v13 = vadd.f32 %v2734_v10, %v1371_v3  ;;  %v1374_v14 = vmul.f32 %v2410_v9, %v2729_v8  ;;  %v1438_v15 = vmul.f32 %v2474_v11, %v2729_v8  ;;  %v1636_v18 = vmax.f32 %v1508_v2, 0.0 }
 0x14a   : > { %v1759_v17 = vmax.f32 %v1631_v1, %v1695_v5  ;;  %v1570_v19 = vadd.f32 %v2734_v10, %v1435_v7  ;;  %v988_v20 = vpop.f32.mrf.mxu0  ;;  %v1244_v21 = vpop.f32.mrf.mxu1  ;;  %v1700_v27 = vmax.f32 %v1572_v6, 0.0 }
 0x14b   : > { %v1634_v22 = vmax.f32 %v1506_v13, 0.0  ;;  %v1509_v23 = vadd.f32 %v2734_v10, %v1374_v14  ;;  %v1573_v24 = vadd.f32 %v2734_v10, %v1438_v15  ;;  %v1372_v25 = vmul.f32 %v2729_v8, %v988_v20 }
 0x14c   : > { %v1803_v26 = vmax.f32 %v1759_v17, %v1761_v12  ;;  %v1698_v28 = vmax.f32 %v1570_v19, 0.0  ;;  %v1436_v29 = vmul.f32 %v2729_v8, %v1244_v21  ;;  %v2413_v30 = vpop.f32.mrf.mxu0  ;;  %v2477_v31 = vpop.f32.mrf.mxu1  ;;  %v1764_v45 = vmax.f32 %v1636_v18, %v1700_v27  ;;  %v2963_v12 = vld [vmem:[%s3029_s2] ss:$0 sm:$0xff] }
 0x14d   : > { %v1637_v32 = vmax.f32 %v1509_v23, 0.0  ;;  %v1701_v33 = vmax.f32 %v1573_v24, 0.0  ;;  %v1507_v34 = vadd.f32 %v2734_v10, %v1372_v25  ;;  %v1377_v35 = vmul.f32 %v2413_v30, %v2729_v8 }
 0x14e   : > { %v2233_v36 = vpack.c.bf16 %v1803_v26, %v1802_v16  ;;  %v1762_v37 = vmax.f32 %v1634_v22, %v1698_v28  ;;  %v1571_v38 = vadd.f32 %v2734_v10, %v1436_v29  ;;  %v1441_v39 = vmul.f32 %v2477_v31, %v2729_v8  ;;  %v1001_v40 = vpop.f32.mrf.mxu0  ;;  %v1257_v41 = vpop.f32.mrf.mxu1 }
 0x14f   : > { %v1635_v42 = vmax.f32 %v1507_v34, 0.0  ;;  %v1512_v43 = vadd.f32 %v2734_v10, %v1377_v35  ;;  %v1375_v44 = vmul.f32 %v2729_v8, %v1001_v40  ;;  %v1439_v48 = vmul.f32 %v2729_v8, %v1257_v41 }
 0x150   : > { %2269 = vst [vmem:[%s2770_s19 + $0x50] sm:$0xff] %v2233_v36   ;;  %v1699_v46 = vmax.f32 %v1571_v38, 0.0  ;;  %v1576_v47 = vadd.f32 %v2734_v10, %v1441_v39  ;;  %v2414_v49 = vpop.f32.mrf.mxu0  ;;  %v2478_v50 = vpop.f32.mrf.mxu1  ;;  %v1765_v51 = vmax.f32 %v1637_v32, %v1701_v33  ;;  %v1804_v55 = vmax.f32 %v1762_v37, %v1764_v45 }
 0x151   : > { %v1510_v52 = vadd.f32 %v2734_v10, %v1375_v44  ;;  %v1378_v53 = vmul.f32 %v2414_v49, %v2729_v8  ;;  %v1442_v54 = vmul.f32 %v2478_v50, %v2729_v8  ;;  %v1640_v57 = vmax.f32 %v1512_v43, 0.0 }
 0x152   : > { %v1763_v56 = vmax.f32 %v1635_v42, %v1699_v46  ;;  %v1574_v58 = vadd.f32 %v2734_v10, %v1439_v48  ;;  %v1004_v59 = vpop.f32.mrf.mxu0  ;;  %v1260_v60 = vpop.f32.mrf.mxu1  ;;  %v1704_v2 = vmax.f32 %v1576_v47, 0.0 }
 0x153   : > { %v1638_v61 = vmax.f32 %v1510_v52, 0.0  ;;  %v1513_v62 = vadd.f32 %v2734_v10, %v1378_v53  ;;  %v1577_v63 = vadd.f32 %v2734_v10, %v1442_v54  ;;  %v1376_v0 = vmul.f32 %v2729_v8, %v1004_v59 }
 0x154   : > { %v1805_v1 = vmax.f32 %v1763_v56, %v1765_v51  ;;  %v1702_v3 = vmax.f32 %v1574_v58, 0.0  ;;  %v1440_v4 = vmul.f32 %v2729_v8, %v1260_v60  ;;  %v2417_v5 = vpop.f32.mrf.mxu0  ;;  %v2481_v6 = vpop.f32.mrf.mxu1  ;;  %v2969_v8 = vld [vmem:[%s3030_s3] ss:$0 sm:$0xff]  ;;  %v1768_v22 = vmax.f32 %v1640_v57, %v1704_v2 }
 0x155   : > { %v1641_v7 = vmax.f32 %v1513_v62, 0.0  ;;  %v1705_v9 = vmax.f32 %v1577_v63, 0.0  ;;  %v1511_v11 = vadd.f32 %v2734_v10, %v1376_v0  ;;  %v1381_v13 = vmul.f32 %v2963_v12, %v2417_v5 }
 0x156   : > { %v2238_v14 = vpack.c.bf16 %v1805_v1, %v1804_v55  ;;  %v1766_v15 = vmax.f32 %v1638_v61, %v1702_v3  ;;  %v1575_v16 = vadd.f32 %v2969_v8, %v1440_v4  ;;  %v1445_v17 = vmul.f32 %v2963_v12, %v2481_v6  ;;  %v1017_v18 = vpop.f32.mrf.mxu0  ;;  %v1273_v10 = vpop.f32.mrf.mxu1 }
 0x157   : > { %v1639_v19 = vmax.f32 %v1511_v11, 0.0  ;;  %v1516_v20 = vadd.f32 %v2969_v8, %v1381_v13  ;;  %v1379_v21 = vmul.f32 %v2963_v12, %v1017_v18  ;;  %v1443_v25 = vmul.f32 %v2963_v12, %v1273_v10 }
 0x158   : > { %2270 = vst [vmem:[%s2770_s19 + $0x58] sm:$0xff] %v2238_v14   ;;  %v1703_v23 = vmax.f32 %v1575_v16, 0.0  ;;  %v1580_v24 = vadd.f32 %v2969_v8, %v1445_v17  ;;  %v2418_v26 = vpop.f32.mrf.mxu0  ;;  %v2482_v27 = vpop.f32.mrf.mxu1  ;;  %v1769_v28 = vmax.f32 %v1641_v7, %v1705_v9  ;;  %v1806_v32 = vmax.f32 %v1766_v15, %v1768_v22 }
 0x159   : > { %v1514_v29 = vadd.f32 %v2969_v8, %v1379_v21  ;;  %v1382_v30 = vmul.f32 %v2963_v12, %v2418_v26  ;;  %v1446_v31 = vmul.f32 %v2963_v12, %v2482_v27  ;;  %v1644_v34 = vmax.f32 %v1516_v20, 0.0 }
 0x15a   : > { %v1767_v33 = vmax.f32 %v1639_v19, %v1703_v23  ;;  %v1578_v35 = vadd.f32 %v2969_v8, %v1443_v25  ;;  %v1020_v36 = vpop.f32.mrf.mxu0  ;;  %v1276_v37 = vpop.f32.mrf.mxu1  ;;  %v1708_v43 = vmax.f32 %v1580_v24, 0.0 }
 0x15b   : > { %v1642_v38 = vmax.f32 %v1514_v29, 0.0  ;;  %v1517_v39 = vadd.f32 %v2969_v8, %v1382_v30  ;;  %v1581_v40 = vadd.f32 %v2969_v8, %v1446_v31  ;;  %v1380_v41 = vmul.f32 %v2963_v12, %v1020_v36 }
 0x15c   : > { %v1807_v42 = vmax.f32 %v1767_v33, %v1769_v28  ;;  %v1706_v44 = vmax.f32 %v1578_v35, 0.0  ;;  %v1444_v45 = vmul.f32 %v2963_v12, %v1276_v37  ;;  %v2421_v46 = vpop.f32.mrf.mxu0  ;;  %v2485_v47 = vpop.f32.mrf.mxu1  ;;  %v1772_v61 = vmax.f32 %v1644_v34, %v1708_v43 }
 0x15d   : > { %v1645_v48 = vmax.f32 %v1517_v39, 0.0  ;;  %v1709_v49 = vmax.f32 %v1581_v40, 0.0  ;;  %v1515_v50 = vadd.f32 %v2969_v8, %v1380_v41  ;;  %v1385_v51 = vmul.f32 %v2963_v12, %v2421_v46 }
 0x15e   : > { %v2243_v52 = vpack.c.bf16 %v1807_v42, %v1806_v32  ;;  %v1770_v53 = vmax.f32 %v1642_v38, %v1706_v44  ;;  %v1579_v54 = vadd.f32 %v2969_v8, %v1444_v45  ;;  %v1449_v55 = vmul.f32 %v2963_v12, %v2485_v47  ;;  %v1033_v56 = vpop.f32.mrf.mxu0  ;;  %v1289_v57 = vpop.f32.mrf.mxu1 }
 0x15f   : > { %v1643_v58 = vmax.f32 %v1515_v50, 0.0  ;;  %v1520_v59 = vadd.f32 %v2969_v8, %v1385_v51  ;;  %v1383_v60 = vmul.f32 %v2963_v12, %v1033_v56  ;;  %v1447_v0 = vmul.f32 %v2963_v12, %v1289_v57 }
 0x160   : > { %2271 = vst [vmem:[%s2770_s19 + $0x60] sm:$0xff] %v2243_v52   ;;  %v1707_v62 = vmax.f32 %v1579_v54, 0.0  ;;  %v1584_v63 = vadd.f32 %v2969_v8, %v1449_v55  ;;  %v2422_v1 = vpop.f32.mrf.mxu0  ;;  %v2486_v2 = vpop.f32.mrf.mxu1  ;;  %v1773_v3 = vmax.f32 %v1645_v48, %v1709_v49  ;;  %v1808_v7 = vmax.f32 %v1770_v53, %v1772_v61 }
 0x161   : > { %v1518_v4 = vadd.f32 %v2969_v8, %v1383_v60  ;;  %v1386_v5 = vmul.f32 %v2963_v12, %v2422_v1  ;;  %v1450_v6 = vmul.f32 %v2963_v12, %v2486_v2  ;;  %v1648_v11 = vmax.f32 %v1520_v59, 0.0 }
 0x162   : > { %v1771_v9 = vmax.f32 %v1643_v58, %v1707_v62  ;;  %v1582_v13 = vadd.f32 %v2969_v8, %v1447_v0  ;;  %v1036_v14 = vpop.f32.mrf.mxu0  ;;  %v1292_v15 = vpop.f32.mrf.mxu1  ;;  %v1712_v20 = vmax.f32 %v1584_v63, 0.0 }
 0x163   : > { %v1646_v16 = vmax.f32 %v1518_v4, 0.0  ;;  %v1521_v17 = vadd.f32 %v2969_v8, %v1386_v5  ;;  %v1585_v18 = vadd.f32 %v2969_v8, %v1450_v6  ;;  %v1384_v10 = vmul.f32 %v2963_v12, %v1036_v14 }
 0x164   : > { %v1809_v19 = vmax.f32 %v1771_v9, %v1773_v3  ;;  %v1710_v21 = vmax.f32 %v1582_v13, 0.0  ;;  %v1448_v22 = vmul.f32 %v2963_v12, %v1292_v15  ;;  %v2425_v23 = vpop.f32.mrf.mxu0  ;;  %v2489_v24 = vpop.f32.mrf.mxu1  ;;  %v1776_v37 = vmax.f32 %v1648_v11, %v1712_v20 }
 0x165   : > { %v1649_v25 = vmax.f32 %v1521_v17, 0.0  ;;  %v1519_v26 = vadd.f32 %v2969_v8, %v1384_v10  ;;  %v1389_v27 = vmul.f32 %v2963_v12, %v2425_v23  ;;  %v1713_v29 = vmax.f32 %v1585_v18, 0.0 }
 0x166   : > { %v2248_v28 = vpack.c.bf16 %v1809_v19, %v1808_v7  ;;  %v1583_v30 = vadd.f32 %v2969_v8, %v1448_v22  ;;  %v1453_v31 = vmul.f32 %v2963_v12, %v2489_v24  ;;  %v1049_v32 = vpop.f32.mrf.mxu0  ;;  %v1305_v33 = vpop.f32.mrf.mxu1  ;;  %v1774_v34 = vmax.f32 %v1646_v16, %v1710_v21 }
 0x167   : > { %v1647_v35 = vmax.f32 %v1519_v26, 0.0  ;;  %v1387_v36 = vmul.f32 %v2963_v12, %v1049_v32  ;;  %v1524_v39 = vadd.f32 %v2969_v8, %v1389_v27  ;;  %v1451_v40 = vmul.f32 %v2963_v12, %v1305_v33 }
 0x168   : > { %2272 = vst [vmem:[%s2770_s19 + $0x68] sm:$0xff] %v2248_v28   ;;  %v1711_v38 = vmax.f32 %v1583_v30, 0.0  ;;  %v2426_v41 = vpop.f32.mrf.mxu0  ;;  %v2490_v42 = vpop.f32.mrf.mxu1  ;;  %v1588_v43 = vadd.f32 %v2969_v8, %v1453_v31  ;;  %v1777_v47 = vmax.f32 %v1649_v25, %v1713_v29  ;;  %v1810_v52 = vmax.f32 %v1774_v34, %v1776_v37 }
 0x169   : > { %v1522_v44 = vadd.f32 %v2969_v8, %v1387_v36  ;;  %v1390_v45 = vmul.f32 %v2963_v12, %v2426_v41  ;;  %v1454_v46 = vmul.f32 %v2963_v12, %v2490_v42  ;;  %v1586_v49 = vadd.f32 %v2969_v8, %v1451_v40 }
 0x16a   : > { %v1775_v48 = vmax.f32 %v1647_v35, %v1711_v38  ;;  %v1052_v50 = vpop.f32.mrf.mxu0  ;;  %v1308_v51 = vpop.f32.mrf.mxu1  ;;  %v1652_v60 = vmax.f32 %v1524_v39, 0.0  ;;  %v1716_v61 = vmax.f32 %v1588_v43, 0.0 }
 0x16b   : > { %v1525_v53 = vadd.f32 %v2969_v8, %v1390_v45  ;;  %v1589_v54 = vadd.f32 %v2969_v8, %v1454_v46  ;;  %v1388_v55 = vmul.f32 %v2963_v12, %v1052_v50  ;;  %v1650_v57 = vmax.f32 %v1522_v44, 0.0 }
 0x16c   : > { %v1811_v56 = vmax.f32 %v1775_v48, %v1777_v47  ;;  %v1714_v58 = vmax.f32 %v1586_v49, 0.0  ;;  %v1452_v59 = vmul.f32 %v2963_v12, %v1308_v51  ;;  %v1780_v6 = vmax.f32 %v1652_v60, %v1716_v61 }
 0x16d   : > { %v1523_v62 = vadd.f32 %v2969_v8, %v1388_v55  ;;  %v1653_v0 = vmax.f32 %v1525_v53, 0.0  ;;  %v1717_v1 = vmax.f32 %v1589_v54, 0.0 }
 0x16e   : > { %v2253_v63 = vpack.c.bf16 %v1811_v56, %v1810_v52  ;;  %v1587_v2 = vadd.f32 %v2969_v8, %v1452_v59  ;;  %v1778_v4 = vmax.f32 %v1650_v57, %v1714_v58 }
 0x16f   : > { %v1651_v3 = vmax.f32 %v1523_v62, 0.0  ;;  %v1781_v7 = vmax.f32 %v1653_v0, %v1717_v1 }
 0x170   : > { %2273 = vst [vmem:[%s2770_s19 + $0x70] sm:$0xff] %v2253_v63   ;;  %v1715_v5 = vmax.f32 %v1587_v2, 0.0  ;;  %v1812_v11 = vmax.f32 %v1778_v4, %v1780_v6 }
 0x172   : > { %v1779_v9 = vmax.f32 %v1651_v3, %v1715_v5 }
 0x174   : > { %v1813_v13 = vmax.f32 %v1779_v9, %v1781_v7 }
 0x176   : > { %v2258_v12 = vpack.c.bf16 %v1813_v13, %v1812_v11 }
 0x178   : > { %2274 = vst [vmem:[%s2770_s19 + $0x78] sm:$0xff] %v2258_v12  }
 0x179 PF: > { %s14_s15 = sadd.s32 1, %s2595_s15  }
 0x17a   : > { %p11_p4 = scmp.ge.s32.totalorder %s14_s15, 4  }
 0x17c   :  { %13 = sbr.rel (!%p11_p4) target bundleno = 1 (0x1), region = 66 }

// kernel: cnn_forward.4
= control target key start
LH: loop header
LB: loop body
LE: loop exit
PB: predicated region body
PF: predicated region fallthrough
CT: control target
= control target key end

     0   :  { %s3126_s15 = smov 0   ;;  %s3778_s0 = inlined_call_operand.vmem [shape: bf16[2,256,896], index: 0, kind: input, shape index: {}]   ;;  %s3779_s1 = inlined_call_operand.vmem [shape: bf16[896,128], index: 1, kind: input, shape index: {}]   ;;  %s3780_s2 = inlined_call_operand.vmem [shape: f32[1,128], index: 2, kind: input, shape index: {}]   ;;  %s3781_s3 = inlined_call_operand.vmem [shape: f32[1,128], index: 3, kind: input, shape index: {}]   ;;  %s3782_s4 = inlined_call_operand.vmem [shape: bf16[2,64,128], index: 4, kind: output, shape index: {}]  }
   0x1 LB: > { %s2224_s16 = sadd.s32 4294967295, %s3099_s15   ;;  %p2228_p0 = scmp.ge.s32.totalorder %s3099_s15, 1  ;;  %s3099_s15 = sphi %s3126_s15, %s14_s15  }
   0x2   : > { %p162_p1 = scmp.lt.s32.totalorder %s3099_s15, 3 }
   0x4   : > { %p163_p2 = pnand %p2228_p0, %p162_p1 }
   0x6   : > { %166 = sbr.rel (%p163_p2) target bundleno = 478 (0x1de), region = 36 }
   0xb   : > { %v2877_v0 = vld [vmem:[%s3779_s1 + $0x78] sm:$0xff]   ;;  %v2879_v2 = vld [vmem:[%s3779_s1 + $0x70] sm:$0xff]   ;;  %p188_p3 = scmp.lt.s32.totalorder %s2224_s16, 1  ;;  %v2881_v4 = vld [vmem:[%s3779_s1 + $0x68] sm:$0xff]  }
   0xc   : > { %v2878_v1 = vld [vmem:[%s3779_s1 + $0x38] sm:$0xff]   ;;  %2444 = vmatprep.subr.bf16.mxu0 %v2877_v0  ;;  %2852 = vmatprep.subr.bf16.mxu1 %v2877_v0  ;;  %v2880_v3 = vld [vmem:[%s3779_s1 + $0x30] sm:$0xff]   ;;  %v2882_v5 = vld [vmem:[%s3779_s1 + $0x28] sm:$0xff]  }
   0xd   : > { %2445 = vmatpush3.bf16.msra.mxu0 %v2878_v1  ;;  %2860 = vmatpush3.bf16.msra.mxu1 %v2878_v1  ;;  %s3792_s16 = smov (!%p188_p3, %s2224_s16), 1  ;;  %v2883_v6 = vld [vmem:[%s3779_s1 + $0x60] sm:$0xff]   ;;  %v2885_v8 = vld [vmem:[%s3779_s1 + $0x58] sm:$0xff]   ;;  %v2887_v10 = vld [vmem:[%s3779_s1 + $0x50] sm:$0xff]  }
   0xe   : > { %2446 = vmatprep.subr.bf16.mxu0 %v2879_v2  ;;  %2853 = vmatprep.subr.bf16.mxu1 %v2879_v2  ;;  %s2868_s5 = smul.u32 896, %s3792_s16  ;;  %v2884_v7 = vld [vmem:[%s3779_s1 + $0x20] sm:$0xff]   ;;  %v2886_v9 = vld [vmem:[%s3779_s1 + $0x18] sm:$0xff]   ;;  %v2888_v13 = vld [vmem:[%s3779_s1 + $0x10] sm:$0xff]   ;;  %s2412_s20 = sshll.u32 %s3792_s16, 5 }
   0xf   : > { %v2889_v14 = vld [vmem:[%s3779_s1 + $0x48] sm:$0xff]   ;;  %v2891_v16 = vld [vmem:[%s3779_s1 + $0x40] sm:$0xff]   ;;  %v2899_v18 = vld [vmem:[%s3779_s1 + $0xf8] sm:$0xff]   ;;  %s3720_s22 = scalar_lea.vmem %s3782_s4, %s2412_s20 }
  0x10   : > { %s3167_s12 = scalar_lea.vmem %s3778_s0, %s2868_s5  ;;  %v2890_v15 = vld [vmem:[%s3779_s1 + $0x8] sm:$0xff]   ;;  %v2892_v17 = vld [vmem:[%s3779_s1] sm:$0xff]   ;;  %v2900_v21 = vld [vmem:[%s3779_s1 + $0x178] sm:$0xff]  }
  0x11   : > { %2447 = vmatpush3.bf16.msra.mxu0 %v2880_v3  ;;  %2861 = vmatpush3.bf16.msra.mxu1 %v2880_v3  ;;  %v2895_v11 = vld [vmem:[%s3167_s12 + $0x4] ss:$28 sps:$4 sm:$0xff]   ;;  %v2901_v22 = vld [vmem:[%s3779_s1 + $0xb8] sm:$0xff]   ;;  %v2903_v24 = vld [vmem:[%s3779_s1 + $0xf0] sm:$0xff]  }
  0x12   : > { %2448 = vmatprep.subr.bf16.mxu0 %v2881_v4  ;;  %2854 = vmatprep.subr.bf16.mxu1 %v2881_v4  ;;  %v2898_v12 = vld [vmem:[%s3167_s12 + $0x2a4] ss:$28 sps:$4 sm:$0xff]   ;;  %v2902_v23 = vld [vmem:[%s3779_s1 + $0x138] sm:$0xff]   ;;  %v2914_v27 = vld [vmem:[%s3779_s1 + $0x170] sm:$0xff]  }
  0x13   : > { %1383 = vmatprep.mubr.bf16.mxu0 %v2895_v11  ;;  %1479 = vmatprep.mubr.bf16.mxu1 %v2898_v12  ;;  %v2893_v19 = vld [vmem:[%s3167_s12] ss:$28 sps:$4 sm:$0xff]   ;;  %v2904_v28 = vld [vmem:[%s3779_s1 + $0xb0] sm:$0xff]   ;;  %v2911_v32 = vld [vmem:[%s3779_s1 + $0xe8] sm:$0xff]  }
  0x14   : > { %v2896_v20 = vld [vmem:[%s3167_s12 + $0x2a0] ss:$28 sps:$4 sm:$0xff]   ;;  %v2916_v29 = vld [vmem:[%s3779_s1 + $0x130] sm:$0xff]   ;;  %v2912_v33 = vld [vmem:[%s3779_s1 + $0xa8] sm:$0xff]  }
  0x15   : > { %2449 = vmatpush3.bf16.msra.mxu0 %v2882_v5  ;;  %2862 = vmatpush3.bf16.msra.mxu1 %v2882_v5  ;;  %v2905_v25 = vld [vmem:[%s3167_s12 + $0x3c] ss:$28 sps:$4 sm:$0xff]   ;;  %v2913_v34 = vld [vmem:[%s3779_s1 + $0xe0] sm:$0xff]   ;;  %v2917_v35 = vld [vmem:[%s3167_s12 + $0x74] ss:$28 sps:$4 sm:$0xff]  }
  0x16   : > { %2450 = vmatprep.subr.bf16.mxu0 %v2883_v6  ;;  %2855 = vmatprep.subr.bf16.mxu1 %v2883_v6  ;;  %v2907_v26 = vld [vmem:[%s3167_s12 + $0x2dc] ss:$28 sps:$4 sm:$0xff]   ;;  %v2919_v36 = vld [vmem:[%s3167_s12 + $0x314] ss:$28 sps:$4 sm:$0xff]   ;;  %v2915_v37 = vld [vmem:[%s3779_s1 + $0xa0] sm:$0xff]  }
  0x17   : > { %v2909_v30 = vld [vmem:[%s3167_s12 + $0x38] ss:$28 sps:$4 sm:$0xff]   ;;  %v2921_v39 = vld [vmem:[%s3167_s12 + $0x70] ss:$28 sps:$4 sm:$0xff]   ;;  %v2931_v49 = vld [vmem:[%s3167_s12 + $0xa8] ss:$28 sps:$4 sm:$0xff]  }
  0x18   : > { %v2910_v31 = vld [vmem:[%s3167_s12 + $0x2d8] ss:$28 sps:$4 sm:$0xff]   ;;  %v2922_v40 = vld [vmem:[%s3167_s12 + $0x310] ss:$28 sps:$4 sm:$0xff]   ;;  %v2932_v50 = vld [vmem:[%s3167_s12 + $0x348] ss:$28 sps:$4 sm:$0xff]  }
  0x19   : > { %2451 = vmatpush3.bf16.msra.mxu0 %v2884_v7  ;;  %2863 = vmatpush3.bf16.msra.mxu1 %v2884_v7  ;;  %v2923_v38 = vld [vmem:[%s3779_s1 + $0xd8] sm:$0xff]   ;;  %v2934_v41 = vld [vmem:[%s3779_s1 + $0x168] sm:$0xff]   ;;  %v2925_v43 = vld [vmem:[%s3779_s1 + $0xd0] sm:$0xff]  }
  0x1a   : > { %2452 = vmatprep.subr.bf16.mxu0 %v2885_v8  ;;  %2856 = vmatprep.subr.bf16.mxu1 %v2885_v8  ;;  %v2924_v42 = vld [vmem:[%s3779_s1 + $0x98] sm:$0xff]   ;;  %v2936_v44 = vld [vmem:[%s3779_s1 + $0x128] sm:$0xff]   ;;  %v2926_v47 = vld [vmem:[%s3779_s1 + $0x90] sm:$0xff]  }
  0x1b   : > { %v2927_v45 = vld [vmem:[%s3167_s12 + $0xac] ss:$28 sps:$4 sm:$0xff]   ;;  %v2945_v51 = vld [vmem:[%s3779_s1 + $0x160] sm:$0xff]   ;;  %v2946_v58 = vld [vmem:[%s3779_s1 + $0x1b8] sm:$0xff]  }
  0x1c   : > { %v2929_v46 = vld [vmem:[%s3167_s12 + $0x34c] ss:$28 sps:$4 sm:$0xff]   ;;  %v2947_v53 = vld [vmem:[%s3779_s1 + $0x120] sm:$0xff]   ;;  %v2960_v60 = vld [vmem:[%s3779_s1 + $0x158] sm:$0xff]  }
  0x1d   : > { %2453 = vmatpush3.bf16.msra.mxu0 %v2886_v9  ;;  %2864 = vmatpush3.bf16.msra.mxu1 %v2886_v9  ;;  %v2933_v48 = vld [vmem:[%s3779_s1 + $0xc8] sm:$0xff]   ;;  %v2939_v54 = vld [vmem:[%s3167_s12 + $0xe4] ss:$28 sps:$4 sm:$0xff]   ;;  %v2961_v61 = vld [vmem:[%s3779_s1 + $0x118] sm:$0xff]  }
  0x1e   : > { %2454 = vmatprep.subr.bf16.mxu0 %v2887_v10  ;;  %2857 = vmatprep.subr.bf16.mxu1 %v2887_v10  ;;  %v2935_v52 = vld [vmem:[%s3779_s1 + $0x88] sm:$0xff]   ;;  %v2937_v55 = vld [vmem:[%s3779_s1 + $0xc0] sm:$0xff]   ;;  %v2948_v63 = vld [vmem:[%s3167_s12 + $0x11c] ss:$28 sps:$4 sm:$0xff]  }
  0x1f   : > { %v2943_v56 = vld [vmem:[%s3167_s12 + $0xc] ss:$28 sps:$4 sm:$0xff]   ;;  %v2938_v57 = vld [vmem:[%s3779_s1 + $0x80] sm:$0xff]   ;;  %v2962_v1 = vld [vmem:[%s3779_s1 + $0x1b0] sm:$0xff]  }
  0x20   : > { %v2941_v59 = vld [vmem:[%s3167_s12 + $0x8] ss:$28 sps:$4 sm:$0xff]   ;;  %v2944_v62 = vld [vmem:[%s3167_s12 + $0xe0] ss:$28 sps:$4 sm:$0xff]   ;;  %v2969_v2 = vld [vmem:[%s3779_s1 + $0x150] sm:$0xff]  }
  0x21   : > { %2455 = vmatpush3.bf16.msra.mxu0 %v2888_v13  ;;  %2865 = vmatpush3.bf16.msra.mxu1 %v2888_v13  ;;  %v2950_v0 = vld [vmem:[%s3167_s12 + $0x44] ss:$28 sps:$4 sm:$0xff]   ;;  %v2970_v3 = vld [vmem:[%s3779_s1 + $0x110] sm:$0xff]   ;;  %v2977_v7 = vld [vmem:[%s3779_s1 + $0x1a8] sm:$0xff]  }
  0x22   : > { %2456 = vmatprep.subr.bf16.mxu0 %v2889_v14  ;;  %2858 = vmatprep.subr.bf16.mxu1 %v2889_v14  ;;  %v2952_v4 = vld [vmem:[%s3167_s12 + $0x118] ss:$28 sps:$4 sm:$0xff]   ;;  %v2953_v5 = vld [vmem:[%s3167_s12 + $0x40] ss:$28 sps:$4 sm:$0xff]   ;;  %v2984_v9 = vld [vmem:[%s3779_s1 + $0x148] sm:$0xff]  }
  0x23   : > { %v2954_v6 = vld [vmem:[%s3167_s12 + $0x154] ss:$28 sps:$4 sm:$0xff]   ;;  %v2956_v8 = vld [vmem:[%s3167_s12 + $0x7c] ss:$28 sps:$4 sm:$0xff]   ;;  %v2985_v10 = vld [vmem:[%s3779_s1 + $0x108] sm:$0xff]  }
  0x24   : > { %v2958_v11 = vld [vmem:[%s3167_s12 + $0x150] ss:$28 sps:$4 sm:$0xff]   ;;  %v2959_v12 = vld [vmem:[%s3167_s12 + $0x78] ss:$28 sps:$4 sm:$0xff]  }
  0x25   : > { %2457 = vmatpush3.bf16.msra.mxu0 %v2890_v15  ;;  %2866 = vmatpush3.bf16.msra.mxu1 %v2890_v15  ;;  %v2963_v13 = vld [vmem:[%s3167_s12 + $0x18c] ss:$28 sps:$4 sm:$0xff]   ;;  %v2965_v14 = vld [vmem:[%s3167_s12 + $0xb4] ss:$28 sps:$4 sm:$0xff]   ;;  %v2992_v15 = vld [vmem:[%s3779_s1 + $0x140] sm:$0xff]  }
  0x26   : > { %2458 = vmatprep.subr.bf16.mxu0 %v2891_v16  ;;  %2859 = vmatprep.subr.bf16.mxu1 %v2891_v16  ;;  %v2993_v16 = vld [vmem:[%s3779_s1 + $0x1a0] sm:$0xff]  }
  0x29   : > { %2459 = vmatpush3.bf16.msra.mxu0 %v2892_v17  ;;  %2867 = vmatpush3.bf16.msra.mxu1 %v2892_v17  ;;  %v2994_v17 = vld [vmem:[%s3779_s1 + $0x100] sm:$0xff]  }
  0x2a   : > { %2556 = vmatprep.subr.bf16.mxu1 %v2899_v18  ;;  %2668 = vmatprep.subr.bf16.mxu0 %v2900_v21  ;;  %v2967_v18 = vld [vmem:[%s3167_s12 + $0x188] ss:$28 sps:$4 sm:$0xff]  }
  0x2b   : > { %v2973_v21 = vld [vmem:[%s3167_s12 + $0xec] ss:$28 sps:$4 sm:$0xff]  }
  0x2c   : > { %1384 = vmatmul.mubr.bf16.vlgmr.msra.gmra.mxu0 %v2893_v19  ;;  %1480 = vmatmul.mubr.bf16.vlgmr.msra.gmra.mxu1 %v2896_v20  ;;  %v2968_v19 = vld [vmem:[%s3167_s12 + $0xb0] ss:$28 sps:$4 sm:$0xff]   ;;  %v2971_v20 = vld [vmem:[%s3167_s12 + $0x1c4] ss:$28 sps:$4 sm:$0xff]  }
  0x2d   : > { %2557 = vmatpush3.bf16.msra.mxu1 %v2901_v22  ;;  %2669 = vmatpush3.bf16.msra.mxu0 %v2902_v23  ;;  %v3007_v22 = vld [vmem:[%s3779_s1 + $0x198] sm:$0xff]  }
  0x2e   : > { %2558 = vmatprep.subr.bf16.mxu1 %v2903_v24  ;;  %1391 = vmatprep.mubr.bf16.mxu0 %v2905_v25  ;;  %v2975_v23 = vld [vmem:[%s3167_s12 + $0x1c0] ss:$28 sps:$4 sm:$0xff]   ;;  %v2976_v24 = vld [vmem:[%s3167_s12 + $0xe8] ss:$28 sps:$4 sm:$0xff]   ;;  %v3020_v25 = vld [vmem:[%s3779_s1 + $0x190] sm:$0xff]  }
  0x2f   : > { %1487 = vmatprep.mubr.bf16.mxu1 %v2907_v26  ;;  %2670 = vmatprep.subr.bf16.mxu0 %v2914_v27  ;;  %v2978_v26 = vld [vmem:[%s3167_s12 + $0x1fc] ss:$28 sps:$4 sm:$0xff]   ;;  %v2980_v27 = vld [vmem:[%s3167_s12 + $0x124] ss:$28 sps:$4 sm:$0xff]  }
  0x31   : > { %2559 = vmatpush3.bf16.msra.mxu1 %v2904_v28  ;;  %2671 = vmatpush3.bf16.msra.mxu0 %v2916_v29  ;;  %v3033_v28 = vld [vmem:[%s3779_s1 + $0x188] sm:$0xff]   ;;  %v2982_v29 = vld [vmem:[%s3167_s12 + $0x1f8] ss:$28 sps:$4 sm:$0xff]  }
  0x32   : > { %2560 = vmatprep.subr.bf16.mxu1 %v2911_v32  ;;  %2672 = vmatprep.subr.bf16.mxu0 %v2934_v41  ;;  %v2988_v32 = vld [vmem:[%s3167_s12 + $0x15c] ss:$28 sps:$4 sm:$0xff]   ;;  %v3005_v41 = vld [vmem:[%s3167_s12 + $0x14] ss:$28 sps:$4 sm:$0xff]  }
  0x34   : > { %1392 = vmatmul.mubr.bf16.gmra.mxu0 %v2909_v30  ;;  %1488 = vmatmul.mubr.bf16.gmra.mxu1 %v2910_v31  ;;  %v2983_v30 = vld [vmem:[%s3167_s12 + $0x120] ss:$28 sps:$4 sm:$0xff]   ;;  %v2986_v31 = vld [vmem:[%s3167_s12 + $0x234] ss:$28 sps:$4 sm:$0xff]  }
  0x35   : > { %2561 = vmatpush3.bf16.msra.mxu1 %v2912_v33  ;;  %1399 = vmatprep.mubr.bf16.mxu0 %v2917_v35  ;;  %v3046_v33 = vld [vmem:[%s3779_s1 + $0x180] sm:$0xff]   ;;  %v2991_v35 = vld [vmem:[%s3167_s12 + $0x158] ss:$28 sps:$4 sm:$0xff]  }
  0x36   : > { %2562 = vmatprep.subr.bf16.mxu1 %v2913_v34  ;;  %1495 = vmatprep.mubr.bf16.mxu1 %v2919_v36  ;;  %v2990_v34 = vld [vmem:[%s3167_s12 + $0x230] ss:$28 sps:$4 sm:$0xff]  }
  0x37   : > { %2673 = vmatpush3.bf16.msra.mxu0 %v2936_v44  ;;  %v2995_v36 = vld [vmem:[%s3167_s12 + $0x26c] ss:$28 sps:$4 sm:$0xff]   ;;  %v3008_v44 = vld [vmem:[%s3167_s12 + $0x204] ss:$28 sps:$4 sm:$0xff]  }
  0x38   : > { %2674 = vmatprep.subr.bf16.mxu0 %v2945_v51  ;;  %v3019_v51 = vld [vmem:[%s3167_s12 + $0x80] ss:$28 sps:$4 sm:$0xff]  }
  0x39   : > { %2563 = vmatpush3.bf16.msra.mxu1 %v2915_v37  ;;  %v2997_v37 = vld [vmem:[%s3167_s12 + $0x194] ss:$28 sps:$4 sm:$0xff]  }
  0x3a   : > { %2564 = vmatprep.subr.bf16.mxu1 %v2923_v38  ;;  %v2999_v38 = vld [vmem:[%s3167_s12 + $0x268] ss:$28 sps:$4 sm:$0xff]  }
  0x3b   : > { %2675 = vmatpush3.bf16.msra.mxu0 %v2947_v53  ;;  %v3023_v53 = vld [vmem:[%s3167_s12 + $0xbc] ss:$28 sps:$4 sm:$0xff]  }
  0x3c   : > { %1400 = vmatmul.mubr.bf16.gmra.mxu0 %v2921_v39  ;;  %1496 = vmatmul.mubr.bf16.gmra.mxu1 %v2922_v40  ;;  %v3000_v39 = vld [vmem:[%s3167_s12 + $0x190] ss:$28 sps:$4 sm:$0xff]  }
  0x3d   : > { %2565 = vmatpush3.bf16.msra.mxu1 %v2924_v42  ;;  %1407 = vmatprep.mubr.bf16.mxu0 %v2927_v45  ;;  %v3001_v40 = vld [vmem:[%s3167_s12 + $0x1cc] ss:$28 sps:$4 sm:$0xff]  }
  0x3e   : > { %2566 = vmatprep.subr.bf16.mxu1 %v2925_v43  ;;  %1503 = vmatprep.mubr.bf16.mxu1 %v2929_v46  ;;  %v3003_v42 = vld [vmem:[%s3167_s12 + $0x10] ss:$28 sps:$4 sm:$0xff]   ;;  %v3006_v43 = vld [vmem:[%s3167_s12 + $0x1c8] ss:$28 sps:$4 sm:$0xff]   ;;  %v3012_v46 = vld [vmem:[%s3167_s12 + $0x200] ss:$28 sps:$4 sm:$0xff]  }
  0x3f   : > { %2676 = vmatprep.subr.bf16.mxu0 %v2960_v60  ;;  %v3010_v45 = vld [vmem:[%s3167_s12 + $0x4c] ss:$28 sps:$4 sm:$0xff]   ;;  %v3034_v60 = vld [vmem:[%s3167_s12 + $0x2e4] ss:$28 sps:$4 sm:$0xff]  }
  0x40   : > { %2677 = vmatpush3.bf16.msra.mxu0 %v2961_v61  ;;  %v3036_v61 = vld [vmem:[%s3167_s12 + $0x12c] ss:$28 sps:$4 sm:$0xff]  }
  0x41   : > { %2567 = vmatpush3.bf16.msra.mxu1 %v2926_v47  ;;  %2678 = vmatprep.subr.bf16.mxu0 %v2969_v2  ;;  %v3013_v47 = vld [vmem:[%s3167_s12 + $0x48] ss:$28 sps:$4 sm:$0xff]   ;;  %v3044_v2 = vld [vmem:[%s3167_s12 + $0x318] ss:$28 sps:$4 sm:$0xff]  }
  0x42   : > { %2568 = vmatprep.subr.bf16.mxu1 %v2933_v48  ;;  %v3014_v48 = vld [vmem:[%s3167_s12 + $0x23c] ss:$28 sps:$4 sm:$0xff]  }
  0x44   : > { %1408 = vmatmul.mubr.bf16.gmra.mxu0 %v2931_v49  ;;  %1504 = vmatmul.mubr.bf16.gmra.mxu1 %v2932_v50  ;;  %v3016_v49 = vld [vmem:[%s3167_s12 + $0x84] ss:$28 sps:$4 sm:$0xff]   ;;  %v3018_v50 = vld [vmem:[%s3167_s12 + $0x238] ss:$28 sps:$4 sm:$0xff]  }
  0x45   : > { %2569 = vmatpush3.bf16.msra.mxu1 %v2935_v52  ;;  %1415 = vmatprep.mubr.bf16.mxu0 %v2939_v54  ;;  %v3021_v52 = vld [vmem:[%s3167_s12 + $0x274] ss:$28 sps:$4 sm:$0xff]  }
  0x46   : > { %2570 = vmatprep.subr.bf16.mxu1 %v2937_v55  ;;  %1544 = vmatprep.mubr.bf16.mxu1 %v2943_v56  ;;  %v3025_v54 = vld [vmem:[%s3167_s12 + $0x270] ss:$28 sps:$4 sm:$0xff]   ;;  %v3026_v55 = vld [vmem:[%s3167_s12 + $0xb8] ss:$28 sps:$4 sm:$0xff]  }
  0x47   : > { %2679 = vmatpush3.bf16.msra.mxu0 %v2970_v3  ;;  %v3027_v56 = vld [vmem:[%s3167_s12 + $0x2ac] ss:$28 sps:$4 sm:$0xff]   ;;  %v3045_v3 = vld [vmem:[%s3167_s12 + $0x160] ss:$28 sps:$4 sm:$0xff]  }
  0x48   : > { %2680 = vmatprep.subr.bf16.mxu0 %v2984_v9  ;;  %v3055_v9 = vld [vmem:[%s3167_s12 + $0x18] ss:$28 sps:$4 sm:$0xff]  }
  0x49   : > { %2571 = vmatpush3.bf16.msra.mxu1 %v2938_v57  ;;  %v3029_v57 = vld [vmem:[%s3167_s12 + $0xf4] ss:$28 sps:$4 sm:$0xff]  }
  0x4a   : > { %2804 = vmatprep.subr.bf16.mxu1 %v2946_v58 }
  0x4b   : > { %2681 = vmatpush3.bf16.msra.mxu0 %v2985_v10  ;;  %v3056_v10 = vld [vmem:[%s3167_s12 + $0x1d0] ss:$28 sps:$4 sm:$0xff]  }
  0x4c   : > { %1416 = vmatmul.mubr.bf16.gmra.mxu0 %v2944_v62  ;;  %1545 = vmatmul.mubr.bf16.vlgmr.msra.gmra.mxu1 %v2941_v59  ;;  %v3032_v59 = vld [vmem:[%s3167_s12 + $0xf0] ss:$28 sps:$4 sm:$0xff]   ;;  %v3038_v62 = vld [vmem:[%s3167_s12 + $0x2e0] ss:$28 sps:$4 sm:$0xff]  }
  0x4d   : > { %2805 = vmatpush3.bf16.msra.mxu1 %v2946_v58  ;;  %1423 = vmatprep.mubr.bf16.mxu0 %v2948_v63  ;;  %v3031_v58 = vld [vmem:[%s3167_s12 + $0x2a8] ss:$28 sps:$4 sm:$0xff]  }
  0x4e   : > { %1552 = vmatprep.mubr.bf16.mxu1 %v2950_v0  ;;  %2806 = vmatprep.subr.bf16.mxu1 %v2962_v1  ;;  %v3039_v63 = vld [vmem:[%s3167_s12 + $0x128] ss:$28 sps:$4 sm:$0xff]   ;;  %v3040_v0 = vld [vmem:[%s3167_s12 + $0x31c] ss:$28 sps:$4 sm:$0xff]  }
  0x4f   : > { %2682 = vmatprep.subr.bf16.mxu0 %v2992_v15  ;;  %v3062_v15 = vld [vmem:[%s3167_s12 + $0xc0] ss:$28 sps:$4 sm:$0xff]  }
  0x50   : > { %2683 = vmatpush3.bf16.msra.mxu0 %v2994_v17  ;;  %v3065_v17 = vld [vmem:[%s3167_s12 + $0xf8] ss:$28 sps:$4 sm:$0xff]  }
  0x51   : > { %2807 = vmatpush3.bf16.msra.mxu1 %v2962_v1  ;;  %v3042_v1 = vld [vmem:[%s3167_s12 + $0x164] ss:$28 sps:$4 sm:$0xff]  }
  0x52   : > { %2808 = vmatprep.subr.bf16.mxu1 %v2977_v7 }
  0x54   : > { %1424 = vmatmul.mubr.bf16.gmra.mxu0 %v2952_v4  ;;  %1553 = vmatmul.mubr.bf16.gmra.mxu1 %v2953_v5  ;;  %v3047_v4 = vld [vmem:[%s3167_s12 + $0x354] ss:$28 sps:$4 sm:$0xff]   ;;  %v3049_v5 = vld [vmem:[%s3167_s12 + $0x19c] ss:$28 sps:$4 sm:$0xff]  }
  0x55   : > { %1431 = vmatprep.mubr.bf16.mxu0 %v2954_v6  ;;  %1560 = vmatprep.mubr.bf16.mxu1 %v2956_v8  ;;  %v3051_v6 = vld [vmem:[%s3167_s12 + $0x350] ss:$28 sps:$4 sm:$0xff]  }
  0x56   : > { %2809 = vmatpush3.bf16.msra.mxu1 %v2977_v7  ;;  %v3052_v7 = vld [vmem:[%s3167_s12 + $0x198] ss:$28 sps:$4 sm:$0xff]  }
  0x57   : > { %2810 = vmatprep.subr.bf16.mxu1 %v2993_v16  ;;  %v3053_v8 = vld [vmem:[%s3167_s12 + $0x1d4] ss:$28 sps:$4 sm:$0xff]  }
  0x5a   : > { %2811 = vmatpush3.bf16.msra.mxu1 %v2993_v16  ;;  %v3063_v16 = vld [vmem:[%s3167_s12 + $0x244] ss:$28 sps:$4 sm:$0xff]  }
  0x5b   : > { %2812 = vmatprep.subr.bf16.mxu1 %v3007_v22 }
  0x5c   : > { %1432 = vmatmul.mubr.bf16.gmra.mxu0 %v2958_v11  ;;  %1561 = vmatmul.mubr.bf16.gmra.mxu1 %v2959_v12  ;;  %v3057_v11 = vld [vmem:[%s3167_s12 + $0x50] ss:$28 sps:$4 sm:$0xff]  }
  0x5d   : > { %1439 = vmatprep.mubr.bf16.mxu0 %v2963_v13  ;;  %1568 = vmatprep.mubr.bf16.mxu1 %v2965_v14  ;;  %v3058_v12 = vld [vmem:[%s3167_s12 + $0x20c] ss:$28 sps:$4 sm:$0xff]  }
  0x5e   : > { %2813 = vmatpush3.bf16.msra.mxu1 %v3007_v22  ;;  %v3060_v13 = vld [vmem:[%s3167_s12 + $0x88] ss:$28 sps:$4 sm:$0xff]   ;;  %v3071_v22 = vld [vmem:[%s3167_s12 + $0x278] ss:$28 sps:$4 sm:$0xff]  }
  0x5f   : > { %2814 = vmatprep.subr.bf16.mxu1 %v3020_v25  ;;  %v3061_v14 = vld [vmem:[%s3167_s12 + $0x208] ss:$28 sps:$4 sm:$0xff]  }
  0x62   : > { %2815 = vmatpush3.bf16.msra.mxu1 %v3020_v25  ;;  %v3075_v25 = vld [vmem:[%s3167_s12 + $0x1d8] ss:$28 sps:$4 sm:$0xff]  }
  0x63   : > { %2816 = vmatprep.subr.bf16.mxu1 %v3033_v28 }
  0x64   : > { %1440 = vmatmul.mubr.bf16.gmra.mxu0 %v2967_v18  ;;  %1569 = vmatmul.mubr.bf16.gmra.mxu1 %v2968_v19  ;;  %v3066_v18 = vld [vmem:[%s3167_s12 + $0x240] ss:$28 sps:$4 sm:$0xff]   ;;  %v3067_v19 = vld [vmem:[%s3167_s12 + $0x130] ss:$28 sps:$4 sm:$0xff]  }
  0x65   : > { %1447 = vmatprep.mubr.bf16.mxu0 %v2971_v20  ;;  %1576 = vmatprep.mubr.bf16.mxu1 %v2973_v21  ;;  %v3068_v20 = vld [vmem:[%s3167_s12 + $0x27c] ss:$28 sps:$4 sm:$0xff]   ;;  %v3070_v21 = vld [vmem:[%s3167_s12 + $0x168] ss:$28 sps:$4 sm:$0xff]  }
  0x66   : > { %2817 = vmatpush3.bf16.msra.mxu1 %v3033_v28  ;;  %v3078_v28 = vld [vmem:[%s3167_s12 + $0x2ec] ss:$28 sps:$4 sm:$0xff]  }
  0x67   : > { %2818 = vmatprep.subr.bf16.mxu1 %v3046_v33 }
  0x6a   : > { %2819 = vmatpush3.bf16.msra.mxu1 %v3046_v33 }
  0x6c   : > { %1448 = vmatmul.mubr.bf16.gmra.mxu0 %v2975_v23  ;;  %1577 = vmatmul.mubr.bf16.gmra.mxu1 %v2976_v24  ;;  %v3072_v23 = vld [vmem:[%s3167_s12 + $0x1a0] ss:$28 sps:$4 sm:$0xff]   ;;  %v3073_v24 = vld [vmem:[%s3167_s12 + $0x2b4] ss:$28 sps:$4 sm:$0xff]  }
  0x6d   : > { %1455 = vmatprep.mubr.bf16.mxu0 %v2978_v26  ;;  %1584 = vmatprep.mubr.bf16.mxu1 %v2980_v27  ;;  %v3076_v26 = vld [vmem:[%s3167_s12 + $0x2b0] ss:$28 sps:$4 sm:$0xff]  }
  0x6e   : > { %v3077_v27 = vld [vmem:[%s3167_s12 + $0x210] ss:$28 sps:$4 sm:$0xff]  }
  0x74   : > { %1456 = vmatmul.mubr.bf16.gmra.mxu0 %v2982_v29  ;;  %1585 = vmatmul.mubr.bf16.gmra.mxu1 %v2983_v30  ;;  %v3080_v29 = vld [vmem:[%s3167_s12 + $0x248] ss:$28 sps:$4 sm:$0xff]  }
  0x75   : > { %1463 = vmatprep.mubr.bf16.mxu0 %v2986_v31  ;;  %1592 = vmatprep.mubr.bf16.mxu1 %v2988_v32 }
  0x7c   : > { %1464 = vmatmul.mubr.bf16.gmra.mxu0 %v2990_v34  ;;  %1593 = vmatmul.mubr.bf16.gmra.mxu1 %v2991_v35 }
  0x7d   : > { %1471 = vmatprep.mubr.bf16.mxu0 %v2995_v36  ;;  %1600 = vmatprep.mubr.bf16.mxu1 %v2997_v37 }
  0x84   : > { %1472 = vmatmul.mubr.bf16.gmra.mxu0 %v2999_v38  ;;  %1601 = vmatmul.mubr.bf16.gmra.mxu1 %v3000_v39  ;;  %v3081_v38 = vld [vmem:[%s3167_s12 + $0x2e8] ss:$28 sps:$4 sm:$0xff]   ;;  %v3082_v39 = vld [vmem:[%s3167_s12 + $0x280] ss:$28 sps:$4 sm:$0xff]  }
  0x85   : > { %1608 = vmatprep.mubr.bf16.mxu1 %v3001_v40  ;;  %1705 = vmatprep.mubr.bf16.mxu0 %v3005_v41  ;;  %v3083_v40 = vld [vmem:[%s3167_s12 + $0x324] ss:$28 sps:$4 sm:$0xff]   ;;  %v3085_v41 = vld [vmem:[%s3167_s12 + $0x2b8] ss:$28 sps:$4 sm:$0xff]  }
  0x8c   : > { %1609 = vmatmul.mubr.bf16.gmra.mxu1 %v3006_v43  ;;  %1706 = vmatmul.mubr.bf16.vlgmr.msra.gmra.mxu0 %v3003_v42 }
  0x8d   : > { %1616 = vmatprep.mubr.bf16.mxu1 %v3008_v44  ;;  %1713 = vmatprep.mubr.bf16.mxu0 %v3010_v45 }
  0x94   : > { %1617 = vmatmul.mubr.bf16.gmra.mxu1 %v3012_v46  ;;  %1714 = vmatmul.mubr.bf16.gmra.mxu0 %v3013_v47 }
  0x95   : > { %1624 = vmatprep.mubr.bf16.mxu1 %v3014_v48  ;;  %1721 = vmatprep.mubr.bf16.mxu0 %v3016_v49 }
  0x9c   : > { %1625 = vmatmul.mubr.bf16.gmra.mxu1 %v3018_v50  ;;  %1722 = vmatmul.mubr.bf16.gmra.mxu0 %v3019_v51 }
  0x9d   : > { %1632 = vmatprep.mubr.bf16.mxu1 %v3021_v52  ;;  %1729 = vmatprep.mubr.bf16.mxu0 %v3023_v53 }
  0xa4   : > { %1633 = vmatmul.mubr.bf16.gmra.mxu1 %v3025_v54  ;;  %1730 = vmatmul.mubr.bf16.gmra.mxu0 %v3026_v55  ;;  %v3086_v54 = vld [vmem:[%s3167_s12 + $0x320] ss:$28 sps:$4 sm:$0xff]   ;;  %v3087_v55 = vld [vmem:[%s3167_s12 + $0x2f0] ss:$28 sps:$4 sm:$0xff]  }
  0xa5   : > { %1640 = vmatprep.mubr.bf16.mxu1 %v3027_v56  ;;  %1737 = vmatprep.mubr.bf16.mxu0 %v3029_v57  ;;  %v3088_v56 = vld [vmem:[%s3167_s12 + $0x35c] ss:$28 sps:$4 sm:$0xff]   ;;  %v3090_v57 = vld [vmem:[%s3167_s12 + $0x328] ss:$28 sps:$4 sm:$0xff]  }
  0xac   : > { %1641 = vmatmul.mubr.bf16.gmra.mxu1 %v3031_v58  ;;  %1738 = vmatmul.mubr.bf16.gmra.mxu0 %v3032_v59 }
  0xad   : > { %1648 = vmatprep.mubr.bf16.mxu1 %v3034_v60  ;;  %1745 = vmatprep.mubr.bf16.mxu0 %v3036_v61 }
  0xb4   : > { %1649 = vmatmul.mubr.bf16.gmra.mxu1 %v3038_v62  ;;  %1746 = vmatmul.mubr.bf16.gmra.mxu0 %v3039_v63 }
  0xb5   : > { %1656 = vmatprep.mubr.bf16.mxu1 %v3040_v0  ;;  %1753 = vmatprep.mubr.bf16.mxu0 %v3042_v1 }
  0xbc   : > { %1657 = vmatmul.mubr.bf16.gmra.mxu1 %v3044_v2  ;;  %1754 = vmatmul.mubr.bf16.gmra.mxu0 %v3045_v3 }
  0xbd   : > { %1664 = vmatprep.mubr.bf16.mxu1 %v3047_v4  ;;  %1761 = vmatprep.mubr.bf16.mxu0 %v3049_v5 }
  0xc4   : > { %1665 = vmatmul.mubr.bf16.gmra.mxu1 %v3051_v6  ;;  %1762 = vmatmul.mubr.bf16.gmra.mxu0 %v3052_v7  ;;  %v3091_v6 = vld [vmem:[%s3167_s12 + $0x358] ss:$28 sps:$4 sm:$0xff]   ;;  %v3092_v7 = vld [vmem:[%s3167_s12 + $0x360] ss:$28 sps:$4 sm:$0xff]  }
  0xc5   : > { %1769 = vmatprep.mubr.bf16.mxu0 %v3053_v8  ;;  %2820 = vmatprep.mubr.bf16.mxu1 %v3055_v9 }
  0xcc   : > { %1770 = vmatmul.mubr.bf16.gmra.mxu0 %v3056_v10  ;;  %2821 = vmatmul.mubr.bf16.vlgmr.msra.gmra.mxu1 %v3057_v11 }
  0xcd   : > { %1777 = vmatprep.mubr.bf16.mxu0 %v3058_v12  ;;  %2824 = vmatprep.mubr.bf16.mxu1 %v3060_v13 }
  0xd4   : > { %1778 = vmatmul.mubr.bf16.gmra.mxu0 %v3061_v14  ;;  %2825 = vmatmul.mubr.bf16.gmra.mxu1 %v3062_v15 }
  0xd5   : > { %1785 = vmatprep.mubr.bf16.mxu0 %v3063_v16  ;;  %2828 = vmatprep.mubr.bf16.mxu1 %v3065_v17 }
  0xdc   : > { %1786 = vmatmul.mubr.bf16.gmra.mxu0 %v3066_v18  ;;  %2829 = vmatmul.mubr.bf16.gmra.mxu1 %v3067_v19 }
  0xdd   : > { %1793 = vmatprep.mubr.bf16.mxu0 %v3068_v20  ;;  %2832 = vmatprep.mubr.bf16.mxu1 %v3070_v21 }
  0xe4   : > { %1794 = vmatmul.mubr.bf16.gmra.mxu0 %v3071_v22  ;;  %2833 = vmatmul.mubr.bf16.gmra.mxu1 %v3072_v23 }
  0xe5   : > { %1801 = vmatprep.mubr.bf16.mxu0 %v3073_v24  ;;  %2836 = vmatprep.mubr.bf16.mxu1 %v3075_v25 }
  0xec   : > { %v2460_v30 = vpop.f32.mrf.mxu0  ;;  %v2532_v31 = vpop.f32.mrf.mxu1  ;;  %1802 = vmatmul.mubr.bf16.gmra.mxu0 %v3076_v26  ;;  %2837 = vmatmul.mubr.bf16.gmra.mxu1 %v3077_v27 }
  0xed   : > { %1809 = vmatprep.mubr.bf16.mxu0 %v3078_v28  ;;  %2840 = vmatprep.mubr.bf16.mxu1 %v3080_v29 }
  0xee   : > { %v2461_v32 = vpop.f32.mrf.mxu0  ;;  %v2533_v33 = vpop.f32.mrf.mxu1 }
  0xef   : > { %v3412_v34 = vadd.f32 %v2461_v32, %v2460_v30  ;;  %v3414_v35 = vadd.f32 %v2533_v33, %v2532_v31 }
  0xf0   : > { %v2463_v36 = vpop.f32.mrf.mxu0  ;;  %v2535_v37 = vpop.f32.mrf.mxu1 }
  0xf2   : > { %v2464_v42 = vpop.f32.mrf.mxu0  ;;  %v2536_v43 = vpop.f32.mrf.mxu1 }
  0xf3   : > { %v3420_v44 = vadd.f32 %v2464_v42, %v2463_v36  ;;  %v3422_v45 = vadd.f32 %v2536_v43, %v2535_v37 }
  0xf4   : > { %v2466_v46 = vpop.f32.mrf.mxu0  ;;  %v2538_v47 = vpop.f32.mrf.mxu1  ;;  %1810 = vmatmul.mubr.bf16.gmra.mxu0 %v3081_v38  ;;  %2841 = vmatmul.mubr.bf16.gmra.mxu1 %v3082_v39 }
  0xf5   : > { %1817 = vmatprep.mubr.bf16.mxu0 %v3083_v40  ;;  %2844 = vmatprep.mubr.bf16.mxu1 %v3085_v41 }
  0xf6   : > { %v2467_v48 = vpop.f32.mrf.mxu0  ;;  %v2539_v49 = vpop.f32.mrf.mxu1 }
  0xf7   : > { %v3424_v50 = vadd.f32 %v2467_v48, %v2466_v46  ;;  %v3426_v51 = vadd.f32 %v2539_v49, %v2538_v47 }
  0xf8   : > { %v2469_v52 = vpop.f32.mrf.mxu0  ;;  %v2541_v53 = vpop.f32.mrf.mxu1 }
  0xfa   : > { %v2470_v58 = vpop.f32.mrf.mxu0  ;;  %v2542_v59 = vpop.f32.mrf.mxu1 }
  0xfb   : > { %v3432_v60 = vadd.f32 %v2470_v58, %v2469_v52  ;;  %v3434_v61 = vadd.f32 %v2542_v59, %v2541_v53 }
  0xfc   : > { %v2472_v62 = vpop.f32.mrf.mxu0  ;;  %v2544_v63 = vpop.f32.mrf.mxu1  ;;  %1818 = vmatmul.mubr.bf16.gmra.mxu0 %v3086_v54  ;;  %2845 = vmatmul.mubr.bf16.gmra.mxu1 %v3087_v55 }
  0xfd   : > { %1825 = vmatprep.mubr.bf16.mxu0 %v3088_v56  ;;  %2848 = vmatprep.mubr.bf16.mxu1 %v3090_v57 }
  0xfe   : > { %v2473_v0 = vpop.f32.mrf.mxu0  ;;  %v2545_v1 = vpop.f32.mrf.mxu1 }
  0xff   : > { %v2474_v2 = vadd.f32 %v2473_v0, %v2472_v62  ;;  %v3436_v3 = vadd.f32 %v2545_v1, %v2544_v63 }
 0x100   : > { %v2475_v4 = vpop.f32.mrf.mxu0  ;;  %v2547_v5 = vpop.f32.mrf.mxu1 }
 0x102   : > { %v2476_v8 = vpop.f32.mrf.mxu0  ;;  %v2548_v9 = vpop.f32.mrf.mxu1 }
 0x103   : > { %v2477_v10 = vadd.f32 %v2476_v8, %v2475_v4  ;;  %v3440_v11 = vadd.f32 %v2548_v9, %v2547_v5 }
 0x104   : > { %v2478_v12 = vpop.f32.mrf.mxu0  ;;  %v2550_v13 = vpop.f32.mrf.mxu1  ;;  %1826 = vmatmul.mubr.bf16.gmra.mxu0 %v3091_v6  ;;  %2849 = vmatmul.mubr.bf16.gmra.mxu1 %v3092_v7 }
 0x106   : > { %v2479_v14 = vpop.f32.mrf.mxu0  ;;  %v2551_v15 = vpop.f32.mrf.mxu1 }
 0x107   : > { %v2480_v16 = vadd.f32 %v2479_v14, %v2478_v12  ;;  %v3442_v17 = vadd.f32 %v2551_v15, %v2550_v13 }
 0x108   : > { %v2481_v18 = vpop.f32.mrf.mxu0  ;;  %v2553_v19 = vpop.f32.mrf.mxu1 }
 0x10a   : > { %v2482_v20 = vpop.f32.mrf.mxu0  ;;  %v2554_v21 = vpop.f32.mrf.mxu1 }
 0x10b   : > { %v2483_v22 = vadd.f32 %v2482_v20, %v2481_v18  ;;  %v3444_v23 = vadd.f32 %v2554_v21, %v2553_v19 }
 0x10c   : > { %v2484_v24 = vpop.f32.mrf.mxu0  ;;  %v2572_v25 = vpop.f32.mrf.mxu1 }
 0x10e   : > { %v2485_v26 = vpop.f32.mrf.mxu0  ;;  %v2573_v27 = vpop.f32.mrf.mxu1 }
 0x10f   : > { %v2486_v28 = vadd.f32 %v2485_v26, %v2484_v24  ;;  %v2574_v29 = vadd.f32 %v2573_v27, %v2572_v25 }
 0x110   : > { %v2487_v30 = vpop.f32.mrf.mxu0  ;;  %v2575_v31 = vpop.f32.mrf.mxu1 }
 0x111   : > { %v3447_v32 = vadd.f32 %v2574_v29, %v3412_v34 }
 0x112   : > { %v2488_v33 = vpop.f32.mrf.mxu0  ;;  %v2576_v36 = vpop.f32.mrf.mxu1 }
 0x113   : > { %v2489_v37 = vadd.f32 %v2488_v33, %v2487_v30  ;;  %v2577_v38 = vadd.f32 %v2576_v36, %v2575_v31 }
 0x114   : > { %v2490_v39 = vpop.f32.mrf.mxu0  ;;  %v2578_v40 = vpop.f32.mrf.mxu1 }
 0x115   : > { %v3450_v41 = vadd.f32 %v2577_v38, %v3420_v44 }
 0x116   : > { %v2491_v42 = vpop.f32.mrf.mxu0  ;;  %v2579_v43 = vpop.f32.mrf.mxu1 }
 0x117   : > { %v2492_v46 = vadd.f32 %v2491_v42, %v2490_v39  ;;  %v2580_v47 = vadd.f32 %v2579_v43, %v2578_v40 }
 0x118   : > { %v2493_v48 = vpop.f32.mrf.mxu0  ;;  %v2581_v49 = vpop.f32.mrf.mxu1 }
 0x119   : > { %v3453_v52 = vadd.f32 %v2580_v47, %v3424_v50 }
 0x11a   : > { %v2494_v34 = vpop.f32.mrf.mxu0  ;;  %v2582_v53 = vpop.f32.mrf.mxu1 }
 0x11b   : > { %v2495_v54 = vadd.f32 %v2494_v34, %v2493_v48  ;;  %v2583_v55 = vadd.f32 %v2582_v53, %v2581_v49 }
 0x11c   : > { %v2496_v56 = vpop.f32.mrf.mxu0  ;;  %v2584_v57 = vpop.f32.mrf.mxu1 }
 0x11d   : > { %v3456_v58 = vadd.f32 %v2583_v55, %v3432_v60 }
 0x11e   : > { %v2497_v44 = vpop.f32.mrf.mxu0  ;;  %v2585_v59 = vpop.f32.mrf.mxu1 }
 0x11f   : > { %v2498_v62 = vadd.f32 %v2497_v44, %v2496_v56  ;;  %v2586_v63 = vadd.f32 %v2585_v59, %v2584_v57 }
 0x120   : > { %v2499_v0 = vpop.f32.mrf.mxu0  ;;  %v2587_v1 = vpop.f32.mrf.mxu1 }
 0x121   : > { %v3458_v4 = vadd.f32 %v2586_v63, %v2474_v2 }
 0x122   : > { %v2500_v5 = vpop.f32.mrf.mxu0  ;;  %v2588_v50 = vpop.f32.mrf.mxu1 }
 0x123   : > { %v2501_v6 = vadd.f32 %v2500_v5, %v2499_v0  ;;  %v2589_v7 = vadd.f32 %v2588_v50, %v2587_v1 }
 0x124   : > { %v2502_v8 = vpop.f32.mrf.mxu0  ;;  %v2590_v9 = vpop.f32.mrf.mxu1 }
 0x125   : > { %v3460_v12 = vadd.f32 %v2589_v7, %v2477_v10 }
 0x126   : > { %v2503_v13 = vpop.f32.mrf.mxu0  ;;  %v2591_v14 = vpop.f32.mrf.mxu1 }
 0x127   : > { %v2504_v60 = vadd.f32 %v2503_v13, %v2502_v8  ;;  %v2592_v15 = vadd.f32 %v2591_v14, %v2590_v9 }
 0x128   : > { %v2505_v18 = vpop.f32.mrf.mxu0  ;;  %v2593_v19 = vpop.f32.mrf.mxu1 }
 0x129   : > { %v3462_v20 = vadd.f32 %v2592_v15, %v2480_v16 }
 0x12a   : > { %v2506_v21 = vpop.f32.mrf.mxu0  ;;  %v2594_v24 = vpop.f32.mrf.mxu1 }
 0x12b   : > { %v2507_v2 = vadd.f32 %v2506_v21, %v2505_v18  ;;  %v2595_v25 = vadd.f32 %v2594_v24, %v2593_v19 }
 0x12c   : > { %v2508_v26 = vpop.f32.mrf.mxu0  ;;  %v2596_v27 = vpop.f32.mrf.mxu1 }
 0x12d   : > { %v3464_v29 = vadd.f32 %v2595_v25, %v2483_v22 }
 0x12e   : > { %v2509_v30 = vpop.f32.mrf.mxu0  ;;  %v2597_v31 = vpop.f32.mrf.mxu1 }
 0x12f   : > { %v2510_v10 = vadd.f32 %v2509_v30, %v2508_v26  ;;  %v2598_v33 = vadd.f32 %v2597_v31, %v2596_v27 }
 0x130   : > { %v2511_v36 = vpop.f32.mrf.mxu0  ;;  %v2599_v38 = vpop.f32.mrf.mxu1 }
 0x131   : > { %v3466_v39 = vadd.f32 %v2598_v33, %v2486_v28 }
 0x132   : > { %v2512_v40 = vpop.f32.mrf.mxu0  ;;  %v2600_v42 = vpop.f32.mrf.mxu1 }
 0x133   : > { %v2513_v16 = vadd.f32 %v2512_v40, %v2511_v36  ;;  %v2601_v43 = vadd.f32 %v2600_v42, %v2599_v38 }
 0x134   : > { %v2514_v47 = vpop.f32.mrf.mxu0  ;;  %v2602_v48 = vpop.f32.mrf.mxu1 }
 0x135   : > { %v3468_v49 = vadd.f32 %v2601_v43, %v2489_v37 }
 0x136   : > { %v2515_v34 = vpop.f32.mrf.mxu0  ;;  %v2603_v53 = vpop.f32.mrf.mxu1 }
 0x137   : > { %v2516_v22 = vadd.f32 %v2515_v34, %v2514_v47  ;;  %v2604_v55 = vadd.f32 %v2603_v53, %v2602_v48 }
 0x138   : > { %v2517_v56 = vpop.f32.mrf.mxu0  ;;  %v2605_v57 = vpop.f32.mrf.mxu1 }
 0x139   : > { %v3470_v44 = vadd.f32 %v2604_v55, %v2492_v46 }
 0x13a   : > { %v2518_v59 = vpop.f32.mrf.mxu0  ;;  %v2606_v63 = vpop.f32.mrf.mxu1 }
 0x13b   : > { %v3472_v28 = vadd.f32 %v2518_v59, %v2517_v56  ;;  %v2607_v0 = vadd.f32 %v2606_v63, %v2605_v57 }
 0x13c   : > { %v2520_v1 = vpop.f32.mrf.mxu0  ;;  %v2608_v5 = vpop.f32.mrf.mxu1 }
 0x13d   : > { %v3474_v50 = vadd.f32 %v2607_v0, %v2495_v54 }
 0x13e   : > { %v2521_v7 = vpop.f32.mrf.mxu0  ;;  %v2609_v37 = vpop.f32.mrf.mxu1 }
 0x13f   : > { %v3476_v8 = vadd.f32 %v2521_v7, %v2520_v1  ;;  %v2610_v9 = vadd.f32 %v2609_v37, %v2608_v5 }
 0x140   : > { %v2523_v13 = vpop.f32.mrf.mxu0  ;;  %v2611_v14 = vpop.f32.mrf.mxu1 }
 0x141   : > { %v3478_v15 = vadd.f32 %v2610_v9, %v2498_v62 }
 0x142   : > { %v2524_v46 = vpop.f32.mrf.mxu0  ;;  %v2612_v18 = vpop.f32.mrf.mxu1 }
 0x143   : > { %v3480_v19 = vadd.f32 %v2524_v46, %v2523_v13  ;;  %v2613_v21 = vadd.f32 %v2612_v18, %v2611_v14 }
 0x144   : > { %v2526_v24 = vpop.f32.mrf.mxu0  ;;  %v2614_v25 = vpop.f32.mrf.mxu1 }
 0x145   : > { %v3482_v26 = vadd.f32 %v2613_v21, %v2501_v6 }
 0x146   : > { %v2527_v54 = vpop.f32.mrf.mxu0  ;;  %v2615_v27 = vpop.f32.mrf.mxu1 }
 0x147   : > { %v3484_v30 = vadd.f32 %v2527_v54, %v2526_v24  ;;  %v2616_v31 = vadd.f32 %v2615_v27, %v2614_v25 }
 0x148   : > { %v2529_v33 = vpop.f32.mrf.mxu0  ;;  %v2617_v36 = vpop.f32.mrf.mxu1 }
 0x149   : > { %v3486_v38 = vadd.f32 %v2616_v31, %v2504_v60 }
 0x14a   : > { %v2530_v62 = vpop.f32.mrf.mxu0  ;;  %v2618_v40 = vpop.f32.mrf.mxu1 }
 0x14b   : > { %v3488_v42 = vadd.f32 %v2530_v62, %v2529_v33  ;;  %v2619_v43 = vadd.f32 %v2618_v40, %v2617_v36 }
 0x14c   : > { %v2620_v47 = vpop.f32.mrf.mxu1  ;;  %v2684_v48 = vpop.f32.mrf.mxu0 }
 0x14d   : > { %v3490_v34 = vadd.f32 %v2619_v43, %v2507_v2 }
 0x14e   : > { %v2621_v6 = vpop.f32.mrf.mxu1  ;;  %v2685_v53 = vpop.f32.mrf.mxu0 }
 0x14f   : > { %v2622_v55 = vadd.f32 %v2621_v6, %v2620_v47  ;;  %v2686_v56 = vadd.f32 %v2685_v53, %v2684_v48 }
 0x150   : > { %v2623_v57 = vpop.f32.mrf.mxu1  ;;  %v2687_v59 = vpop.f32.mrf.mxu0 }
 0x151   : > { %v3492_v63 = vadd.f32 %v2622_v55, %v2510_v10  ;;  %v3495_v60 = vadd.f32 %v2686_v56, %v3447_v32 }
 0x152   : > { %v2624_v0 = vpop.f32.mrf.mxu1  ;;  %v2688_v1 = vpop.f32.mrf.mxu0 }
 0x153   : > { %v2625_v5 = vadd.f32 %v2624_v0, %v2623_v57  ;;  %v2689_v7 = vadd.f32 %v2688_v1, %v2687_v59 }
 0x154   : > { %v2626_v37 = vpop.f32.mrf.mxu1  ;;  %v2690_v9 = vpop.f32.mrf.mxu0 }
 0x155   : > { %v3497_v13 = vadd.f32 %v2625_v5, %v2513_v16  ;;  %v3500_v2 = vadd.f32 %v2689_v7, %v3450_v41 }
 0x156   : > { %v2627_v14 = vpop.f32.mrf.mxu1  ;;  %v2691_v46 = vpop.f32.mrf.mxu0 }
 0x157   : > { %v2628_v18 = vadd.f32 %v2627_v14, %v2626_v37  ;;  %v2692_v21 = vadd.f32 %v2691_v46, %v2690_v9 }
 0x158   : > { %v2629_v10 = vpop.f32.mrf.mxu1  ;;  %v2693_v24 = vpop.f32.mrf.mxu0 }
 0x159   : > { %v3502_v25 = vadd.f32 %v2628_v18, %v2516_v22  ;;  %v3505_v32 = vadd.f32 %v2692_v21, %v3453_v52 }
 0x15a   : > { %v2630_v54 = vpop.f32.mrf.mxu1  ;;  %v2694_v27 = vpop.f32.mrf.mxu0 }
 0x15b   : > { %v2631_v31 = vadd.f32 %v2630_v54, %v2629_v10  ;;  %v2695_v33 = vadd.f32 %v2694_v27, %v2693_v24 }
 0x15c   : > { %v2632_v16 = vpop.f32.mrf.mxu1  ;;  %v2696_v36 = vpop.f32.mrf.mxu0 }
 0x15d   : > { %v3508_v41 = vadd.f32 %v2631_v31, %v3472_v28  ;;  %v3511_v62 = vadd.f32 %v2695_v33, %v3456_v58 }
 0x15e   : > { %v2633_v40 = vpop.f32.mrf.mxu1  ;;  %v2697_v43 = vpop.f32.mrf.mxu0 }
 0x15f   : > { %v2634_v47 = vadd.f32 %v2633_v40, %v2632_v16  ;;  %v2698_v22 = vadd.f32 %v2697_v43, %v2696_v36 }
 0x160   : > { %v2635_v48 = vpop.f32.mrf.mxu1  ;;  %v2699_v6 = vpop.f32.mrf.mxu0 }
 0x161   : > { %v3514_v52 = vadd.f32 %v2634_v47, %v3476_v8  ;;  %v3517_v53 = vadd.f32 %v2698_v22, %v3458_v4 }
 0x162   : > { %v2636_v55 = vpop.f32.mrf.mxu1  ;;  %v2700_v56 = vpop.f32.mrf.mxu0 }
 0x163   : > { %v2637_v57 = vadd.f32 %v2636_v55, %v2635_v48  ;;  %v2701_v28 = vadd.f32 %v2700_v56, %v2699_v6 }
 0x164   : > { %v2638_v59 = vpop.f32.mrf.mxu1  ;;  %v2702_v0 = vpop.f32.mrf.mxu0 }
 0x165   : > { %v3520_v58 = vadd.f32 %v2637_v57, %v3480_v19  ;;  %v3523_v1 = vadd.f32 %v2701_v28, %v3460_v12 }
 0x166   : > { %v2639_v5 = vpop.f32.mrf.mxu1  ;;  %v2703_v7 = vpop.f32.mrf.mxu0 }
 0x167   : > { %v2640_v37 = vadd.f32 %v2639_v5, %v2638_v59  ;;  %v2704_v8 = vadd.f32 %v2703_v7, %v2702_v0 }
 0x168   : > { %v2641_v9 = vpop.f32.mrf.mxu1  ;;  %v2705_v14 = vpop.f32.mrf.mxu0 }
 0x169   : > { %v3526_v4 = vadd.f32 %v2640_v37, %v3484_v30  ;;  %v3529_v46 = vadd.f32 %v2704_v8, %v3462_v20 }
 0x16a   : > { %v2642_v18 = vpop.f32.mrf.mxu1  ;;  %v2706_v21 = vpop.f32.mrf.mxu0 }
 0x16b   : > { %v2643_v10 = vadd.f32 %v2642_v18, %v2641_v9  ;;  %v2707_v19 = vadd.f32 %v2706_v21, %v2705_v14 }
 0x16c   : > { %v2644_v24 = vpop.f32.mrf.mxu1  ;;  %v2708_v54 = vpop.f32.mrf.mxu0 }
 0x16d   : > { %v3532_v12 = vadd.f32 %v2643_v10, %v3488_v42  ;;  %v3535_v27 = vadd.f32 %v2707_v19, %v3464_v29 }
 0x16e   : > { %v2645_v31 = vpop.f32.mrf.mxu1  ;;  %v2709_v33 = vpop.f32.mrf.mxu0 }
 0x16f   : > { %v2646_v16 = vadd.f32 %v2645_v31, %v2644_v24  ;;  %v2710_v30 = vadd.f32 %v2709_v33, %v2708_v54 }
 0x170   : > { %v2647_v36 = vpop.f32.mrf.mxu1  ;;  %v2711_v40 = vpop.f32.mrf.mxu0 }
 0x171   : > { %v3538_v20 = vadd.f32 %v2646_v16, %v3414_v35  ;;  %v3541_v43 = vadd.f32 %v2710_v30, %v3466_v39 }
 0x172   : > { %v2648_v47 = vpop.f32.mrf.mxu1  ;;  %v2712_v22 = vpop.f32.mrf.mxu0 }
 0x173   : > { %v2649_v48 = vadd.f32 %v2648_v47, %v2647_v36  ;;  %v2713_v42 = vadd.f32 %v2712_v22, %v2711_v40 }
 0x174   : > { %v2650_v6 = vpop.f32.mrf.mxu1  ;;  %v2714_v55 = vpop.f32.mrf.mxu0 }
 0x175   : > { %v3544_v29 = vadd.f32 %v2649_v48, %v3422_v45  ;;  %v3547_v56 = vadd.f32 %v2713_v42, %v3468_v49 }
 0x176   : > { %v2651_v57 = vpop.f32.mrf.mxu1  ;;  %v2715_v28 = vpop.f32.mrf.mxu0 }
 0x177   : > { %v2652_v59 = vadd.f32 %v2651_v57, %v2650_v6  ;;  %v2716_v35 = vadd.f32 %v2715_v28, %v2714_v55 }
 0x178   : > { %v2653_v0 = vpop.f32.mrf.mxu1  ;;  %v2717_v5 = vpop.f32.mrf.mxu0 }
 0x179   : > { %v3550_v39 = vadd.f32 %v2652_v59, %v3426_v51  ;;  %v3553_v7 = vadd.f32 %v2716_v35, %v3470_v44 }
 0x17a   : > { %v2654_v37 = vpop.f32.mrf.mxu1  ;;  %v2718_v8 = vpop.f32.mrf.mxu0 }
 0x17b   : > { %v2655_v9 = vadd.f32 %v2654_v37, %v2653_v0  ;;  %v2719_v45 = vadd.f32 %v2718_v8, %v2717_v5 }
 0x17c   : > { %v2656_v14 = vpop.f32.mrf.mxu1  ;;  %v2720_v18 = vpop.f32.mrf.mxu0 }
 0x17d   : > { %v3556_v49 = vadd.f32 %v2655_v9, %v3434_v61  ;;  %v3559_v21 = vadd.f32 %v2719_v45, %v3474_v50 }
 0x17e   : > { %v2657_v10 = vpop.f32.mrf.mxu1  ;;  %v2721_v19 = vpop.f32.mrf.mxu0 }
 0x17f   : > { %v2658_v24 = vadd.f32 %v2657_v10, %v2656_v14  ;;  %v2722_v51 = vadd.f32 %v2721_v19, %v2720_v18 }
 0x180   : > { %v2659_v54 = vpop.f32.mrf.mxu1  ;;  %v2723_v31 = vpop.f32.mrf.mxu0 }
 0x181   : > { %v3562_v44 = vadd.f32 %v2658_v24, %v3436_v3  ;;  %v3565_v33 = vadd.f32 %v2722_v51, %v3478_v15 }
 0x182   : > { %v2660_v16 = vpop.f32.mrf.mxu1  ;;  %v2724_v30 = vpop.f32.mrf.mxu0 }
 0x183   : > { %v2661_v36 = vadd.f32 %v2660_v16, %v2659_v54  ;;  %v2725_v61 = vadd.f32 %v2724_v30, %v2723_v31 }
 0x184   : > { %v2662_v40 = vpop.f32.mrf.mxu1  ;;  %v2726_v47 = vpop.f32.mrf.mxu0 }
 0x185   : > { %v3568_v50 = vadd.f32 %v2661_v36, %v3440_v11  ;;  %v3571_v22 = vadd.f32 %v2725_v61, %v3482_v26 }
 0x186   : > { %v2663_v48 = vpop.f32.mrf.mxu1  ;;  %v2727_v42 = vpop.f32.mrf.mxu0 }
 0x187   : > { %3783 = vst [vmem:[#allocation2_spill] sm:$0xff] %v3568_v50  ;;  %3784 = vst [vmem:[#allocation3_spill] sm:$0xff] %v3571_v22  ;;  %v2664_v6 = vadd.f32 %v2663_v48, %v2662_v40  ;;  %v2728_v3 = vadd.f32 %v2727_v42, %v2726_v47  ;;  %v3586_v40 = vld [vmem:[%s3780_s2] ss:$0 sm:$0xff] }
 0x188   : > { %v2665_v55 = vpop.f32.mrf.mxu1  ;;  %v2729_v57 = vpop.f32.mrf.mxu0 }
 0x189   : > { %v3574_v15 = vadd.f32 %v2664_v6, %v3442_v17  ;;  %v3577_v28 = vadd.f32 %v2728_v3, %v3486_v38 }
 0x18a   : > { %v2666_v59 = vpop.f32.mrf.mxu1  ;;  %v2730_v35 = vpop.f32.mrf.mxu0 }
 0x18b   : > { %3785 = vst [vmem:[#allocation4_spill] sm:$0xff] %v3574_v15  ;;  %v2731_v0 = vadd.f32 %v2730_v35, %v2729_v57  ;;  %v2667_v50 = vadd.f32 %v2666_v59, %v2665_v55 }
 0x18c   : > { %v2732_v11 = vpop.f32.mrf.mxu0  ;;  %v2822_v5 = vpop.f32.mrf.mxu1 }
 0x18d   : > { %v3580_v26 = vadd.f32 %v2731_v0, %v3490_v34  ;;  %v1877_v34 = vadd.f32 %v2822_v5, %v3505_v32  ;;  %v3603_v0 = vld [vmem:[%s3781_s3] ss:$0 sm:$0xff] }
 0x18e   : > { %v2733_v37 = vpop.f32.mrf.mxu0  ;;  %v1868_v8 = vpop.f32.mrf.mxu1 }
 0x18f   : > { %3786 = vst [vmem:[#allocation5_spill] sm:$0xff] %v3580_v26  ;;  %v1869_v47 = vadd.f32 %v1868_v8, %v3495_v60  ;;  %v2004_v32 = vmul.f32 %v3586_v40, %v1877_v34 }
 0x190   : > { %v2735_v9 = vpop.f32.mrf.mxu0  ;;  %v2823_v45 = vpop.f32.mrf.mxu1 }
 0x191   : > { %v1880_v6 = vadd.f32 %v2823_v45, %v3511_v62  ;;  %v2002_v60 = vmul.f32 %v3586_v40, %v1869_v47  ;;  %v3617_v47 = vadd.f32 %v3603_v0, %v2004_v32 }
 0x192   : > { %v2736_v14 = vpop.f32.mrf.mxu0  ;;  %v1871_v18 = vpop.f32.mrf.mxu1 }
 0x193   : > { %v1872_v3 = vadd.f32 %v1871_v18, %v3500_v2  ;;  %v2005_v2 = vmul.f32 %v3586_v40, %v1880_v6 }
 0x194   : > { %v2738_v10 = vpop.f32.mrf.mxu0  ;;  %v2826_v17 = vpop.f32.mrf.mxu1 }
 0x195   : > { %v1893_v5 = vadd.f32 %v2826_v17, %v3529_v46  ;;  %v2003_v34 = vmul.f32 %v3586_v40, %v1872_v3  ;;  %v2734_v46 = vadd.f32 %v2733_v37, %v2732_v11  ;;  %v3620_v17 = vadd.f32 %v3603_v0, %v2002_v60 }
 0x196   : > { %v2739_v19 = vpop.f32.mrf.mxu0  ;;  %v1884_v24 = vpop.f32.mrf.mxu1  ;;  %v3632_v11 = vadd.f32 %v2667_v50, %v3444_v23  ;;  %v2075_v3 = vmax.f32 %v3617_v47, 0.0 }
 0x197   : > { %v1885_v8 = vadd.f32 %v1884_v24, %v3517_v53  ;;  %v2740_v53 = vadd.f32 %v2739_v19, %v2738_v10  ;;  %v2008_v24 = vmul.f32 %v3586_v40, %v1893_v5  ;;  %v3635_v37 = vadd.f32 %v3603_v0, %v2003_v34 }
 0x198   : > { %v2741_v38 = vpop.f32.mrf.mxu0  ;;  %v2827_v51 = vpop.f32.mrf.mxu1  ;;  %v2073_v23 = vmax.f32 %v3620_v17, 0.0 }
 0x199   : > { %v1896_v18 = vadd.f32 %v2827_v51, %v3535_v27  ;;  %v2006_v27 = vmul.f32 %v3586_v40, %v1885_v8  ;;  %v3646_v50 = vadd.f32 %v3603_v0, %v2008_v24 }
 0x19a   : > { %v2742_v54 = vpop.f32.mrf.mxu0  ;;  %v1887_v31 = vpop.f32.mrf.mxu1 }
 0x19b   : > { %v1888_v15 = vadd.f32 %v1887_v31, %v3523_v1  ;;  %v3628_v1 = vadd.f32 %v3603_v0, %v2005_v2  ;;  %v2737_v31 = vadd.f32 %v2736_v14, %v2735_v9  ;;  %v2009_v6 = vmul.f32 %v3586_v40, %v1896_v18 }
 0x19c   : > { %v2744_v16 = vpop.f32.mrf.mxu0  ;;  %v2830_v30 = vpop.f32.mrf.mxu1  ;;  %v2743_v32 = vadd.f32 %v2742_v54, %v2741_v38  ;;  %v1780_v9 = vadd.f32 %v2740_v53, %v3502_v25  ;;  %v1772_v14 = vadd.f32 %v2734_v46, %v3492_v63  ;;  %v3649_v60 = vadd.f32 %v3603_v0, %v2006_v27 }
 0x19d   : > { %v1909_v55 = vadd.f32 %v2830_v30, %v3553_v7  ;;  %v2007_v10 = vmul.f32 %v3586_v40, %v1888_v15  ;;  %v2076_v5 = vmax.f32 %v3628_v1, 0.0  ;;  %v3654_v38 = vadd.f32 %v3603_v0, %v2009_v6 }
 0x19e   : > { %v2745_v36 = vpop.f32.mrf.mxu0  ;;  %v1900_v61 = vpop.f32.mrf.mxu1  ;;  %v1775_v63 = vadd.f32 %v2737_v31, %v3497_v13  ;;  %v2074_v54 = vmax.f32 %v3635_v37, 0.0  ;;  %v1783_v24 = vadd.f32 %v2743_v32, %v3508_v41  ;;  %v2079_v27 = vmax.f32 %v3646_v50, 0.0 }
 0x19f   : > { %v1901_v19 = vadd.f32 %v1900_v61, %v3541_v43  ;;  %v2012_v43 = vmul.f32 %v3586_v40, %v1909_v55  ;;  %v3659_v8 = vadd.f32 %v3603_v0, %v2007_v10  ;;  %v2746_v2 = vadd.f32 %v2745_v36, %v2744_v16 }
 0x1a0   : > { %v3589_v48 = vpop.f32.mrf.mxu0  ;;  %v3591_v42 = vpop.f32.mrf.mxu1  ;;  %v2077_v13 = vmax.f32 %v3649_v60, 0.0 }
 0x1a1   : > { %v2010_v18 = vmul.f32 %v3586_v40, %v1901_v19  ;;  %v3667_v55 = vadd.f32 %v3603_v0, %v2012_v43  ;;  %v1912_v16 = vadd.f32 %v3591_v42, %v3559_v21  ;;  %v2078_v6 = vmax.f32 %v3659_v8, 0.0 }
 0x1a2   : > { %v3595_v57 = vpop.f32.mrf.mxu0  ;;  %v3597_v35 = vpop.f32.mrf.mxu1  ;;  %v1788_v21 = vadd.f32 %v2746_v2, %v3514_v52 }
 0x1a3   : > { %v3678_v10 = vadd.f32 %v3603_v0, %v2010_v18  ;;  %v2749_v18 = vadd.f32 %v3595_v57, %v3589_v48 }
 0x1a4   : > { %v2750_v62 = vpop.f32.mrf.mxu0  ;;  %v3608_v45 = vpop.f32.mrf.mxu1 }
 0x1a6   : > { %v2751_v26 = vpop.f32.mrf.mxu0  ;;  %v3614_v22 = vpop.f32.mrf.mxu1 }
 0x1a7   : > { %v2752_v46 = vadd.f32 %v2751_v26, %v2750_v62  ;;  %v2080_v26 = vmax.f32 %v3654_v38, 0.0 }
 0x1a8   : > { %v2753_v59 = vpop.f32.mrf.mxu0  ;;  %v3625_v51 = vpop.f32.mrf.mxu1 }
 0x1aa   : > { %v2754_v7 = vpop.f32.mrf.mxu0  ;;  %v3639_v30 = vpop.f32.mrf.mxu1 }
 0x1ab   : > { %v2755_v19 = vadd.f32 %v2754_v7, %v2753_v59 }
 0x1ac   : > { %v2756_v15 = vpop.f32.mrf.mxu0  ;;  %v2838_v61 = vpop.f32.mrf.mxu1 }
 0x1ad   : > { %v1941_v25 = vadd.f32 %v2838_v61, %v1780_v9  ;;  %v1796_v61 = vadd.f32 %v2752_v46, %v3526_v4  ;;  %v1904_v4 = vadd.f32 %v3597_v35, %v3547_v56  ;;  %v1791_v56 = vadd.f32 %v2749_v18, %v3520_v58 }
 0x1ae   : > { %v2757_v34 = vpop.f32.mrf.mxu0  ;;  %v1932_v47 = vpop.f32.mrf.mxu1 }
 0x1af   : > { %v2020_v53 = vmul.f32 %v3586_v40, %v1941_v25  ;;  %v1933_v17 = vadd.f32 %v1932_v47, %v1772_v14  ;;  %v2083_v25 = vmax.f32 %v3667_v55, 0.0  ;;  %v2013_v47 = vmul.f32 %v3586_v40, %v1912_v16 }
 0x1b0   : > { %v3671_v36 = vpop.f32.mrf.mxu0  ;;  %v2839_v1 = vpop.f32.mrf.mxu1  ;;  %v2758_v35 = vadd.f32 %v2757_v34, %v2756_v15  ;;  %v1917_v15 = vadd.f32 %v3614_v22, %v3565_v33 }
 0x1b1   : > { %v2059_v62 = vadd.f32 %v3603_v0, %v2020_v53  ;;  %v2018_v31 = vmul.f32 %v3586_v40, %v1933_v17  ;;  %v1944_v41 = vadd.f32 %v2839_v1, %v1783_v24  ;;  %v2081_v1 = vmax.f32 %v3678_v10, 0.0 }
 0x1b2   : > { %v2760_v32 = vpop.f32.mrf.mxu0  ;;  %v1935_v9 = vpop.f32.mrf.mxu1 }
 0x1b3   : > { %v2091_v42 = vmax.f32 %v2059_v62, 0.0  ;;  %v2057_v14 = vadd.f32 %v3603_v0, %v2018_v31  ;;  %v2021_v43 = vmul.f32 %v3586_v40, %v1944_v41  ;;  %v1936_v53 = vadd.f32 %v1935_v9, %v1775_v63 }
 0x1b4   : > { %v2762_v59 = vpop.f32.mrf.mxu0  ;;  %v2842_v7 = vpop.f32.mrf.mxu1  ;;  %v1799_v31 = vadd.f32 %v2755_v19, %v3532_v12  ;;  %v3696_v41 = vadd.f32 %v3603_v0, %v2013_v47  ;;  %v2011_v19 = vmul.f32 %v3586_v40, %v1904_v4 }
 0x1b5   : > { %v2107_v17 = vmax.f32 %v2075_v3, %v2091_v42  ;;  %v2089_v24 = vmax.f32 %v2057_v14, 0.0  ;;  %v2060_v52 = vadd.f32 %v3603_v0, %v2021_v43  ;;  %v1957_v2 = vadd.f32 %v2842_v7, %v1796_v61 }
 0x1b6   : > { %v2019_v46 = vmul.f32 %v3586_v40, %v1936_v53  ;;  %v2763_v62 = vpop.f32.mrf.mxu0  ;;  %v1948_v16 = vpop.f32.mrf.mxu1 }
 0x1b7   : > { %v2105_v48 = vmax.f32 %v2073_v23, %v2089_v24  ;;  %v2092_v57 = vmax.f32 %v2060_v52, 0.0  ;;  %v2024_v63 = vmul.f32 %v3586_v40, %v1957_v2  ;;  %v2764_v3 = vadd.f32 %v2763_v62, %v2762_v59 }
 0x1b8   : > { %v2058_v9 = vadd.f32 %v3603_v0, %v2019_v46  ;;  %v1949_v42 = vadd.f32 %v1948_v16, %v1788_v21  ;;  %v2765_v14 = vpop.f32.mrf.mxu0  ;;  %v2843_v43 = vpop.f32.mrf.mxu1  ;;  %v1804_v16 = vadd.f32 %v2758_v35, %v3538_v20 }
 0x1b9   : > { %v2108_v61 = vmax.f32 %v2076_v5, %v2092_v57  ;;  %v2063_v12 = vadd.f32 %v3603_v0, %v2024_v63  ;;  %v1960_v23 = vadd.f32 %v2843_v43, %v1799_v31  ;;  %v1812_v24 = vadd.f32 %v2764_v3, %v3550_v39 }
 0x1ba   : > { %v2090_v53 = vmax.f32 %v2058_v9, 0.0  ;;  %v2022_v59 = vmul.f32 %v3586_v40, %v1949_v42  ;;  %v2766_v47 = vpop.f32.mrf.mxu0  ;;  %v1951_v7 = vpop.f32.mrf.mxu1  ;;  %v2761_v31 = vadd.f32 %v2760_v32, %v3671_v36 }
 0x1bb   : > { %v2122_v21 = vmax.f32 %v2107_v17, %v2108_v61  ;;  %v2095_v52 = vmax.f32 %v2063_v12, 0.0  ;;  %v2025_v2 = vmul.f32 %v3586_v40, %v1960_v23  ;;  %v2767_v58 = vadd.f32 %v2766_v47, %v2765_v14 }
 0x1bc   : > { %v2106_v5 = vmax.f32 %v2074_v54, %v2090_v53  ;;  %v2061_v34 = vadd.f32 %v3603_v0, %v2022_v59  ;;  %v1952_v18 = vadd.f32 %v1951_v7, %v1791_v56  ;;  %v2768_v4 = vpop.f32.mrf.mxu0  ;;  %v2846_v46 = vpop.f32.mrf.mxu1  ;;  %v2084_v61 = vmax.f32 %v3696_v41, 0.0 }
 0x1bd   : > { %v2111_v39 = vmax.f32 %v2079_v27, %v2095_v52  ;;  %v2064_v17 = vadd.f32 %v3603_v0, %v2025_v2  ;;  %v1973_v62 = vadd.f32 %v2846_v46, %v1812_v24  ;;  %v1815_v20 = vadd.f32 %v2767_v58, %v3556_v49  ;;  %v3787_v58 = vld [vmem:[#allocation3_spill] sm:$0xff] }
 0x1be   : > { %v2121_v33 = vmax.f32 %v2105_v48, %v2106_v5  ;;  %v2093_v22 = vmax.f32 %v2061_v34, 0.0  ;;  %v2023_v37 = vmul.f32 %v3586_v40, %v1952_v18  ;;  %v2769_v54 = vpop.f32.mrf.mxu0  ;;  %v1964_v57 = vpop.f32.mrf.mxu1  ;;  %v1925_v49 = vadd.f32 %v3608_v45, %v3577_v28 }
 0x1bf   : > { %v2096_v50 = vmax.f32 %v2064_v17, 0.0  ;;  %v2028_v27 = vmul.f32 %v3586_v40, %v1973_v62  ;;  %v1965_v63 = vadd.f32 %v1964_v57, %v1804_v16  ;;  %v2770_v48 = vadd.f32 %v2769_v54, %v2768_v4 }
 0x1c0   : > { %v2424_v3 = vpack.c.bf16 %v2122_v21, %v2121_v33  ;;  %v2109_v36 = vmax.f32 %v2077_v13, %v2093_v22  ;;  %v2062_v32 = vadd.f32 %v3603_v0, %v2023_v37  ;;  %v2771_v9 = vpop.f32.mrf.mxu0  ;;  %v2847_v42 = vpop.f32.mrf.mxu1  ;;  %v1807_v12 = vadd.f32 %v2761_v31, %v3544_v29  ;;  %v3789_v22 = vld [vmem:[#allocation4_spill] sm:$0xff] }
 0x1c1   : > { %v2112_v14 = vmax.f32 %v2080_v26, %v2096_v50  ;;  %v2067_v43 = vadd.f32 %v3603_v0, %v2028_v27  ;;  %v2026_v56 = vmul.f32 %v3586_v40, %v1965_v63  ;;  %v1976_v35 = vadd.f32 %v2847_v42, %v1815_v20  ;;  %v3790_v27 = vld [vmem:[#allocation2_spill] sm:$0xff] }
 0x1c2   : > { %2425 = vst [vmem:[%s3720_s22] sm:$0xff] %v2424_v3   ;;  %v2094_v60 = vmax.f32 %v2062_v32, 0.0  ;;  %v2772_v13 = vpop.f32.mrf.mxu0  ;;  %v1967_v23 = vpop.f32.mrf.mxu1  ;;  %v2050_v47 = vadd.f32 %v3603_v0, %v2011_v19  ;;  %v2014_v7 = vmul.f32 %v3586_v40, %v1917_v15  ;;  %v1820_v2 = vadd.f32 %v2770_v48, %v3562_v44 }
 0x1c3   : > { %v2124_v53 = vmax.f32 %v2111_v39, %v2112_v14  ;;  %v2099_v59 = vmax.f32 %v2067_v43, 0.0  ;;  %v2065_v38 = vadd.f32 %v3603_v0, %v2026_v56  ;;  %v2029_v26 = vmul.f32 %v3586_v40, %v1976_v35  ;;  %v3788_v39 = vld [vmem:[#allocation5_spill] sm:$0xff] }
 0x1c4   : > { %v2110_v41 = vmax.f32 %v2078_v6, %v2094_v60  ;;  %v1968_v28 = vadd.f32 %v1967_v23, %v1807_v12  ;;  %v2774_v45 = vpop.f32.mrf.mxu0  ;;  %v2850_v24 = vpop.f32.mrf.mxu1  ;;  %v1920_v5 = vadd.f32 %v3639_v30, %v3787_v58  ;;  %v2773_v34 = vadd.f32 %v2772_v13, %v2771_v9 }
 0x1c5   : > { %v2115_v29 = vmax.f32 %v2083_v25, %v2099_v59  ;;  %v2097_v21 = vmax.f32 %v2065_v38, 0.0  ;;  %v2068_v52 = vadd.f32 %v3603_v0, %v2029_v26  ;;  %v2016_v46 = vmul.f32 %v3586_v40, %v1925_v49 }
 0x1c6   : > { %v2123_v19 = vmax.f32 %v2109_v36, %v2110_v41  ;;  %v2027_v15 = vmul.f32 %v3586_v40, %v1968_v28  ;;  %v2775_v8 = vpop.f32.mrf.mxu0  ;;  %v1980_v6 = vpop.f32.mrf.mxu1  ;;  %v1928_v44 = vadd.f32 %v3625_v51, %v3788_v39  ;;  %v2053_v31 = vadd.f32 %v3603_v0, %v2014_v7 }
 0x1c7   : > { %v2113_v18 = vmax.f32 %v2081_v1, %v2097_v21  ;;  %v2100_v55 = vmax.f32 %v2068_v52, 0.0  ;;  %v2776_v25 = vadd.f32 %v2775_v8, %v2774_v45  ;;  %v1981_v4 = vadd.f32 %v1980_v6, %v1820_v2 }
 0x1c8   : > { %v2429_v17 = vpack.c.bf16 %v2124_v53, %v2123_v19  ;;  %v2066_v30 = vadd.f32 %v3603_v0, %v2027_v15  ;;  %v2777_v62 = vpop.f32.mrf.mxu0  ;;  %v2851_v16 = vpop.f32.mrf.mxu1  ;;  %v2082_v37 = vmax.f32 %v2050_v47, 0.0  ;;  %v2015_v54 = vmul.f32 %v3586_v40, %v1920_v5 }
 0x1c9   : > { %v2116_v33 = vmax.f32 %v2084_v61, %v2100_v55  ;;  %v1828_v10 = vadd.f32 %v2776_v25, %v3789_v22  ;;  %v2030_v1 = vmul.f32 %v3586_v40, %v1981_v4  ;;  %v1823_v51 = vadd.f32 %v2773_v34, %v3790_v27 }
 0x1ca   : > { %2441 = vst [vmem:[%s3720_s22 + $0x8] sm:$0xff] %v2429_v17   ;;  %v2098_v57 = vmax.f32 %v2066_v30, 0.0  ;;  %v2778_v50 = vpop.f32.mrf.mxu0  ;;  %v1983_v63 = vpop.f32.mrf.mxu1  ;;  %v2055_v48 = vadd.f32 %v3603_v0, %v2016_v46  ;;  %v2017_v9 = vmul.f32 %v3586_v40, %v1928_v44  ;;  %v2085_v43 = vmax.f32 %v2053_v31, 0.0 }
 0x1cb   : > { %v2126_v20 = vmax.f32 %v2115_v29, %v2116_v33  ;;  %v1989_v3 = vadd.f32 %v2850_v24, %v1828_v10  ;;  %v2069_v36 = vadd.f32 %v3603_v0, %v2030_v1  ;;  %v2779_v32 = vadd.f32 %v2778_v50, %v2777_v62 }
 0x1cc   : > { %v2114_v42 = vmax.f32 %v2082_v37, %v2098_v57  ;;  %v1984_v14 = vadd.f32 %v1983_v63, %v1823_v51  ;;  %v2054_v49 = vadd.f32 %v3603_v0, %v2015_v54  ;;  %v2087_v26 = vmax.f32 %v2055_v48, 0.0 }
 0x1cd   : > { %v2032_v56 = vmul.f32 %v3586_v40, %v1989_v3  ;;  %v2101_v35 = vmax.f32 %v2069_v36, 0.0  ;;  %v1831_v61 = vadd.f32 %v2779_v32, %v3632_v11  ;;  %v2056_v47 = vadd.f32 %v3603_v0, %v2017_v9 }
 0x1ce   : > { %v2125_v60 = vmax.f32 %v2113_v18, %v2114_v42  ;;  %v2031_v13 = vmul.f32 %v3586_v40, %v1984_v14  ;;  %v2086_v11 = vmax.f32 %v2054_v49, 0.0 }
 0x1cf   : > { %v2071_v12 = vadd.f32 %v3603_v0, %v2032_v56  ;;  %v2117_v23 = vmax.f32 %v2085_v43, %v2101_v35  ;;  %v1992_v53 = vadd.f32 %v2851_v16, %v1831_v61  ;;  %v2088_v21 = vmax.f32 %v2056_v47, 0.0 }
 0x1d0   : > { %v2434_v59 = vpack.c.bf16 %v2126_v20, %v2125_v60  ;;  %v2070_v38 = vadd.f32 %v3603_v0, %v2031_v13 }
 0x1d1   : > { %v2103_v7 = vmax.f32 %v2071_v12, 0.0  ;;  %v2033_v41 = vmul.f32 %v3586_v40, %v1992_v53 }
 0x1d2   : > { %2442 = vst [vmem:[%s3720_s22 + $0x10] sm:$0xff] %v2434_v59   ;;  %v2102_v28 = vmax.f32 %v2070_v38, 0.0 }
 0x1d3   : > { %v2119_v45 = vmax.f32 %v2087_v26, %v2103_v7  ;;  %v2072_v24 = vadd.f32 %v3603_v0, %v2033_v41 }
 0x1d4   : > { %v2118_v29 = vmax.f32 %v2086_v11, %v2102_v28 }
 0x1d5   : > { %v2104_v52 = vmax.f32 %v2072_v24, 0.0 }
 0x1d6   : > { %v2127_v2 = vmax.f32 %v2117_v23, %v2118_v29 }
 0x1d7   : > { %v2120_v58 = vmax.f32 %v2088_v21, %v2104_v52 }
 0x1d9   : > { %v2128_v5 = vmax.f32 %v2119_v45, %v2120_v58 }
 0x1db   : > { %v2439_v19 = vpack.c.bf16 %v2128_v5, %v2127_v2 }
 0x1dd   : > { %2443 = vst [vmem:[%s3720_s22 + $0x18] sm:$0xff] %v2439_v19  }
 0x1de PF: > { %s14_s15 = sadd.s32 1, %s3099_s15  }
 0x1df   : > { %p11_p4 = scmp.ge.s32.totalorder %s14_s15, 4  }
 0x1e1   :  { %13 = sbr.rel (!%p11_p4) target bundleno = 1 (0x1), region = 66 }

// kernel: cnn_forward.5
= control target key start
LH: loop header
LB: loop body
LE: loop exit
PB: predicated region body
PF: predicated region fallthrough
CT: control target
= control target key end

     0   :  { %10 = vsyncpa [#allocation4], 0  ;;  %s10159_s18 = smov 0   ;;  %s10161_s19 = smov 0   ;;  %s11704_s0 = inlined_call_operand.vmem [shape: bf16[2,4096], index: 0, kind: input, shape index: {}]   ;;  %s11705_s1 = inlined_call_operand.vmem [shape: bf16[4096,1024], index: 1, kind: input, shape index: {}]   ;;  %s11706_s2 = inlined_call_operand.vmem [shape: f32[1,1024], index: 2, kind: input, shape index: {}]   ;;  %s11707_s3 = inlined_call_operand.vmem [shape: bf16[1024,128], index: 3, kind: input, shape index: {}]   ;;  %s11708_s4 = inlined_call_operand.vmem [shape: f32[1,128], index: 4, kind: input, shape index: {}]   ;;  %s11709_s5 = inlined_call_operand.hbm [shape: f32[2,128], index: 5, kind: output, shape index: {}]  }
   0x1   :  { %s10163_s20 = smov 0  }
   0x2 LB: > { %s8781_s21 = sadd.s32 4294967295, %s10123_s20   ;;  %s25_s22 = sadd.s32 1, %s10119_s19  ;;  %s10123_s20 = sphi %s10163_s20, %s16_s20   ;;  %s10119_s19 = sphi %s10161_s19, %s11712_s19   ;;  %s10115_s18 = sphi %s10159_s18, %s11711_s18  }
   0x3   : > { %p26_p0 = scmp.ge.s32.totalorder %s25_s22, 2  ;;  %p8784_p1 = scmp.ge.s32.totalorder %s10123_s20, 1 }
   0x4   : > { %p218_p2 = scmp.lt.s32.totalorder %s10123_s20, 3 }
   0x5   : > { %s11714_s22 = smov (%p26_p0, %s25_s22), 0 }
   0x6   : > { %p219_p3 = pnand %p8784_p1, %p218_p2 }
   0x7   : > { %s8785_s23 = sshll.u32 (!%p219_p3), %s10115_s18, 4  ;;  %s8786_s24 = sshll.u32 (!%p219_p3), %s10115_s18, 8 }
   0x8   : > { %222 = sbr.rel (%p219_p3) target bundleno = 1542 (0x606), region = 40  ;;  %p253_p4 = scmp.lt.s32.totalorder (!%p219_p3), %s8785_s23, 31 }
   0x9   : > { %p260_p5 = scmp.lt.s32.totalorder (!%p219_p3), %s8786_s24, 511  ;;  %p8789_p6 = scmp.ne.s32.totalorder (!%p219_p3), %s10115_s18, 0 }
   0xd   : > { %s11716_s23 = smov (!%p253_p4, %s8785_s23), 31  ;;  %s11718_s24 = smov (!%p260_p5, %s8786_s24), 511 }
   0xe   : > { %s10185_s27 = scalar_lea.vmem %s11704_s0, %s11716_s23  ;;  %s9884_s28 = sshll.u32 %s11718_s24, 5 }
   0xf   : > { %s10190_s6 = scalar_lea.vmem %s11705_s1, %s9884_s28  ;;  %270 = sbr.rel (%p8789_p6) target bundleno = 22 (0x16), region = 44 }
  0x14   : > { %v10125_v0 = vmov 0.0  }
  0x15   : > { %271 = vst [vmem:[#allocation2] sm:$0xff] %v10125_v0  ;;  %272 = vst [vmem:[#allocation2 + $0x8] sm:$0xff] %v10125_v0 }
  0x16 PF: > { %v333_v1 = vld [vmem:[%s10190_s6 + $0x1c0] sm:$0xff]  ;;  %v10126_v33 = vmov 1966171168   ;;  %v1307_v35 = vlaneseq  ;;  %p9814_p7 = scmp.ne.s32.totalorder %s10115_s18, 1 }
  0x17   : > { %v337_v2 = vld [vmem:[%s10190_s6 + $0x1e0] sm:$0xff]  ;;  %v1305_v34 = vunpack.c.l.s4 %v10126_v33 }
  0x18   : > { %v461_v3 = vld [vmem:[%s10190_s6 + $0x5c0] sm:$0xff]  ;;  %v8847_v4 = vcombine.high %v333_v1, %v337_v2  ;;  %v8846_v6 = vcombine.low %v333_v1, %v337_v2  ;;  %v10215_v45 = vshrl.u32 %v1307_v35, 7 }
  0x19   : > { %v465_v5 = vld [vmem:[%s10190_s6 + $0x5e0] sm:$0xff]  ;;  %v1306_v44 = vunpack.c.0.s8 %v1305_v34 }
  0x1a   : > { %v325_v7 = vld [vmem:[%s10190_s6 + $0x180] sm:$0xff]  ;;  %v8975_v9 = vcombine.high %v461_v3, %v465_v5  ;;  %v8974_v10 = vcombine.low %v461_v3, %v465_v5  ;;  %6537 = vmatprep.subr.bf16.mxu0 %v8847_v4 }
  0x1b   : > { %v329_v8 = vld [vmem:[%s10190_s6 + $0x1a0] sm:$0xff]  ;;  %6538 = vmatpush1.bf16.msra.mxu0 %v8846_v6  ;;  %v10222_v54 = vsub.s32 %v1306_v44, %v10215_v45 }
  0x1c   : > { %v8839_v11 = vcombine.high %v325_v7, %v329_v8  ;;  %v453_v12 = vld [vmem:[%s10190_s6 + $0x580] sm:$0xff]  ;;  %6578 = vmatprep.subr.bf16.mxu1 %v8975_v9  ;;  %v8838_v19 = vcombine.low %v325_v7, %v329_v8 }
  0x1d   : > { %v457_v13 = vld [vmem:[%s10190_s6 + $0x5a0] sm:$0xff]  ;;  %6579 = vmatpush1.bf16.msra.mxu1 %v8974_v10 }
  0x1e   : > { %v317_v14 = vld [vmem:[%s10190_s6 + $0x140] sm:$0xff]  ;;  %v8967_v15 = vcombine.high %v453_v12, %v457_v13  ;;  %6539 = vmatprep.subr.bf16.mxu0 %v8839_v11  ;;  %v8966_v20 = vcombine.low %v453_v12, %v457_v13 }
  0x1f   : > { %v321_v16 = vld [vmem:[%s10190_s6 + $0x160] sm:$0xff]  ;;  %6540 = vmatpush1.bf16.msra.mxu0 %v8838_v19 }
  0x20   : > { %v445_v17 = vld [vmem:[%s10190_s6 + $0x540] sm:$0xff]  ;;  %v8831_v21 = vcombine.high %v317_v14, %v321_v16  ;;  %6580 = vmatprep.subr.bf16.mxu1 %v8967_v15  ;;  %v8830_v27 = vcombine.low %v317_v14, %v321_v16 }
  0x21   : > { %v449_v18 = vld [vmem:[%s10190_s6 + $0x560] sm:$0xff]  ;;  %6581 = vmatpush1.bf16.msra.mxu1 %v8966_v20 }
  0x22   : > { %v8959_v22 = vcombine.high %v445_v17, %v449_v18  ;;  %v309_v23 = vld [vmem:[%s10190_s6 + $0x100] sm:$0xff]  ;;  %6541 = vmatprep.subr.bf16.mxu0 %v8831_v21  ;;  %v8958_v28 = vcombine.low %v445_v17, %v449_v18 }
  0x23   : > { %v313_v24 = vld [vmem:[%s10190_s6 + $0x120] sm:$0xff]  ;;  %6542 = vmatpush1.bf16.msra.mxu0 %v8830_v27 }
  0x24   : > { %v437_v25 = vld [vmem:[%s10190_s6 + $0x500] sm:$0xff]  ;;  %v8823_v29 = vcombine.high %v309_v23, %v313_v24  ;;  %6582 = vmatprep.subr.bf16.mxu1 %v8959_v22  ;;  %v8822_v38 = vcombine.low %v309_v23, %v313_v24 }
  0x25   : > { %v441_v26 = vld [vmem:[%s10190_s6 + $0x520] sm:$0xff]  ;;  %6583 = vmatpush1.bf16.msra.mxu1 %v8958_v28 }
  0x26   : > { %v8951_v30 = vcombine.high %v437_v25, %v441_v26  ;;  %v301_v31 = vld [vmem:[%s10190_s6 + $0xc0] sm:$0xff]  ;;  %6543 = vmatprep.subr.bf16.mxu0 %v8823_v29  ;;  %v8950_v39 = vcombine.low %v437_v25, %v441_v26 }
  0x27   : > { %v305_v32 = vld [vmem:[%s10190_s6 + $0xe0] sm:$0xff]  ;;  %6544 = vmatpush1.bf16.msra.mxu0 %v8822_v38 }
  0x28   : > { %v429_v36 = vld [vmem:[%s10190_s6 + $0x4c0] sm:$0xff]  ;;  %v8815_v40 = vcombine.high %v301_v31, %v305_v32  ;;  %6584 = vmatprep.subr.bf16.mxu1 %v8951_v30  ;;  %v8814_v48 = vcombine.low %v301_v31, %v305_v32 }
  0x29   : > { %v433_v37 = vld [vmem:[%s10190_s6 + $0x4e0] sm:$0xff]  ;;  %6585 = vmatpush1.bf16.msra.mxu1 %v8950_v39 }
  0x2a   : > { %v8943_v41 = vcombine.high %v429_v36, %v433_v37  ;;  %v293_v42 = vld [vmem:[%s10190_s6 + $0x80] sm:$0xff]  ;;  %6545 = vmatprep.subr.bf16.mxu0 %v8815_v40  ;;  %v8942_v49 = vcombine.low %v429_v36, %v433_v37 }
  0x2b   : > { %v297_v43 = vld [vmem:[%s10190_s6 + $0xa0] sm:$0xff]  ;;  %6546 = vmatpush1.bf16.msra.mxu0 %v8814_v48 }
  0x2c   : > { %v421_v46 = vld [vmem:[%s10190_s6 + $0x480] sm:$0xff]  ;;  %v8807_v50 = vcombine.high %v293_v42, %v297_v43  ;;  %6586 = vmatprep.subr.bf16.mxu1 %v8943_v41  ;;  %v8806_v57 = vcombine.low %v293_v42, %v297_v43 }
  0x2d   : > { %v425_v47 = vld [vmem:[%s10190_s6 + $0x4a0] sm:$0xff]  ;;  %6587 = vmatpush1.bf16.msra.mxu1 %v8942_v49 }
  0x2e   : > { %v8935_v51 = vcombine.high %v421_v46, %v425_v47  ;;  %v285_v52 = vld [vmem:[%s10190_s6 + $0x40] sm:$0xff]  ;;  %6547 = vmatprep.subr.bf16.mxu0 %v8807_v50  ;;  %v8934_v58 = vcombine.low %v421_v46, %v425_v47 }
  0x2f   : > { %v289_v53 = vld [vmem:[%s10190_s6 + $0x60] sm:$0xff]  ;;  %6548 = vmatpush1.bf16.msra.mxu0 %v8806_v57 }
  0x30   : > { %v413_v55 = vld [vmem:[%s10190_s6 + $0x440] sm:$0xff]  ;;  %v8799_v59 = vcombine.high %v285_v52, %v289_v53  ;;  %6588 = vmatprep.subr.bf16.mxu1 %v8935_v51  ;;  %v8798_v3 = vcombine.low %v285_v52, %v289_v53 }
  0x31   : > { %v417_v56 = vld [vmem:[%s10190_s6 + $0x460] sm:$0xff]  ;;  %6589 = vmatpush1.bf16.msra.mxu1 %v8934_v58 }
  0x32   : > { %v10227_v60 = vld [vmem:[%s10185_s27] sm:$0xff]  ;;  %v8927_v61 = vcombine.high %v413_v55, %v417_v56  ;;  %6549 = vmatprep.subr.bf16.mxu0 %v8799_v59  ;;  %v8926_v5 = vcombine.low %v413_v55, %v417_v56 }
  0x33   : > { %v277_v62 = vld [vmem:[%s10190_s6] sm:$0xff]  ;;  %v10233_v0 = vrot.slane %v10227_v60, %v10222_v54  ;;  %6550 = vmatpush1.bf16.msra.mxu0 %v8798_v3 }
  0x34   : > { %v281_v63 = vld [vmem:[%s10190_s6 + $0x20] sm:$0xff]  ;;  %6590 = vmatprep.subr.bf16.mxu1 %v8927_v61 }
  0x35   : > { %v405_v1 = vld [vmem:[%s10190_s6 + $0x400] sm:$0xff]  ;;  %v1318_v4 = vcombine.high %v10233_v0, %v10233_v0  ;;  %v8791_v6 = vcombine.high %v277_v62, %v281_v63  ;;  %v8790_v13 = vcombine.low %v277_v62, %v281_v63  ;;  %6591 = vmatpush1.bf16.msra.mxu1 %v8926_v5 }
  0x36   : > { %v409_v2 = vld [vmem:[%s10190_s6 + $0x420] sm:$0xff] }
  0x37   : > { %v8919_v7 = vcombine.high %v405_v1, %v409_v2  ;;  %v397_v8 = vld [vmem:[%s10190_s6 + $0x3c0] sm:$0xff]  ;;  %v10242_v10 = vrot.slane %v1318_v4, %v10222_v54  ;;  %6551 = vmatprep.subr.bf16.mxu0 %v8791_v6  ;;  %v8918_v15 = vcombine.low %v405_v1, %v409_v2  ;;  %v1303_v2 = vcombine.high %v10227_v60, %v10227_v60 }
  0x38   : > { %v401_v9 = vld [vmem:[%s10190_s6 + $0x3e0] sm:$0xff]  ;;  %6552 = vmatpush1.bf16.msra.mxu0 %v8790_v13 }
  0x39   : > { %v525_v11 = vld [vmem:[%s10190_s6 + $0x7c0] sm:$0xff]  ;;  %6569 = vmatprep.mubr.bf16.mxu0 %v10242_v10  ;;  %v10249_v14 = vcombine.high %v10242_v10, %v10242_v10  ;;  %v8911_v16 = vcombine.high %v397_v8, %v401_v9  ;;  %6592 = vmatprep.subr.bf16.mxu1 %v8919_v7  ;;  %v8910_v22 = vcombine.low %v397_v8, %v401_v9 }
  0x3a   : > { %v529_v12 = vld [vmem:[%s10190_s6 + $0x7e0] sm:$0xff]  ;;  %6593 = vmatpush1.bf16.msra.mxu1 %v8918_v15 }
  0x3b   : > { %v9039_v17 = vcombine.high %v525_v11, %v529_v12  ;;  %v389_v18 = vld [vmem:[%s10190_s6 + $0x380] sm:$0xff]  ;;  %6610 = vmatprep.mubr.bf16.mxu1 %v10249_v14  ;;  %6553 = vmatprep.subr.bf16.mxu0 %v8911_v16  ;;  %v9038_v23 = vcombine.low %v525_v11, %v529_v12  ;;  %v10283_v12 = vrot.slane %v1303_v2, %v10222_v54 }
  0x3c   : > { %v393_v19 = vld [vmem:[%s10190_s6 + $0x3a0] sm:$0xff]  ;;  %6554 = vmatpush2.bf16.msra.mxu0 %v8910_v22 }
  0x3d   : > { %v517_v20 = vld [vmem:[%s10190_s6 + $0x780] sm:$0xff]  ;;  %v8903_v24 = vcombine.high %v389_v18, %v393_v19  ;;  %6594 = vmatprep.subr.bf16.mxu1 %v9039_v17  ;;  %v8902_v30 = vcombine.low %v389_v18, %v393_v19 }
  0x3e   : > { %v521_v21 = vld [vmem:[%s10190_s6 + $0x7a0] sm:$0xff]  ;;  %6595 = vmatpush2.bf16.msra.mxu1 %v9038_v23  ;;  %v10293_v23 = vrot.slane %v10233_v0, %v10222_v54 }
  0x3f   : > { %v9031_v25 = vcombine.high %v517_v20, %v521_v21  ;;  %v381_v26 = vld [vmem:[%s10190_s6 + $0x340] sm:$0xff]  ;;  %6555 = vmatprep.subr.bf16.mxu0 %v8903_v24  ;;  %v9030_v31 = vcombine.low %v517_v20, %v521_v21  ;;  %v1319_v21 = vcombine.high %v10283_v12, %v10283_v12 }
  0x40   : > { %v385_v27 = vld [vmem:[%s10190_s6 + $0x360] sm:$0xff]  ;;  %6556 = vmatpush2.bf16.msra.mxu0 %v8902_v30  ;;  %v10304_v0 = vcombine.high %v10293_v23, %v10293_v23 }
  0x41   : > { %v509_v28 = vld [vmem:[%s10190_s6 + $0x740] sm:$0xff]  ;;  %v8895_v32 = vcombine.high %v381_v26, %v385_v27  ;;  %6596 = vmatprep.subr.bf16.mxu1 %v9031_v25  ;;  %v8894_v38 = vcombine.low %v381_v26, %v385_v27 }
  0x42   : > { %v513_v29 = vld [vmem:[%s10190_s6 + $0x760] sm:$0xff]  ;;  %6597 = vmatpush2.bf16.msra.mxu1 %v9030_v31  ;;  %v10300_v31 = vrot.slane %v1319_v21, %v10222_v54 }
  0x43   : > { %v9023_v33 = vcombine.high %v509_v28, %v513_v29  ;;  %v373_v34 = vld [vmem:[%s10190_s6 + $0x300] sm:$0xff]  ;;  %6557 = vmatprep.subr.bf16.mxu0 %v8895_v32  ;;  %v9022_v39 = vcombine.low %v509_v28, %v513_v29 }
  0x44   : > { %v377_v35 = vld [vmem:[%s10190_s6 + $0x320] sm:$0xff]  ;;  %6558 = vmatpush2.bf16.msra.mxu0 %v8894_v38 }
  0x45   : > { %v501_v36 = vld [vmem:[%s10190_s6 + $0x700] sm:$0xff]  ;;  %v8887_v40 = vcombine.high %v373_v34, %v377_v35  ;;  %6598 = vmatprep.subr.bf16.mxu1 %v9023_v33  ;;  %v8886_v47 = vcombine.low %v373_v34, %v377_v35 }
  0x46   : > { %v505_v37 = vld [vmem:[%s10190_s6 + $0x720] sm:$0xff]  ;;  %6599 = vmatpush2.bf16.msra.mxu1 %v9022_v39 }
  0x47   : > { %v9015_v41 = vcombine.high %v501_v36, %v505_v37  ;;  %v365_v42 = vld [vmem:[%s10190_s6 + $0x2c0] sm:$0xff]  ;;  %6559 = vmatprep.subr.bf16.mxu0 %v8887_v40  ;;  %v9014_v48 = vcombine.low %v501_v36, %v505_v37  ;;  %v10313_v40 = vcombine.high %v10300_v31, %v10300_v31 }
  0x48   : > { %v369_v43 = vld [vmem:[%s10190_s6 + $0x2e0] sm:$0xff]  ;;  %6560 = vmatpush2.bf16.msra.mxu0 %v8886_v47 }
  0x49   : > { %v493_v44 = vld [vmem:[%s10190_s6 + $0x6c0] sm:$0xff]  ;;  %v8879_v49 = vcombine.high %v365_v42, %v369_v43  ;;  %6600 = vmatprep.subr.bf16.mxu1 %v9015_v41  ;;  %v8878_v56 = vcombine.low %v365_v42, %v369_v43 }
  0x4a   : > { %v497_v46 = vld [vmem:[%s10190_s6 + $0x6e0] sm:$0xff]  ;;  %6601 = vmatpush2.bf16.msra.mxu1 %v9014_v48 }
  0x4b   : > { %v9007_v50 = vcombine.high %v493_v44, %v497_v46  ;;  %v357_v51 = vld [vmem:[%s10190_s6 + $0x280] sm:$0xff]  ;;  %6561 = vmatprep.subr.bf16.mxu0 %v8879_v49  ;;  %v9006_v57 = vcombine.low %v493_v44, %v497_v46 }
  0x4c   : > { %v361_v52 = vld [vmem:[%s10190_s6 + $0x2a0] sm:$0xff]  ;;  %6562 = vmatpush2.bf16.msra.mxu0 %v8878_v56 }
  0x4d   : > { %v485_v53 = vld [vmem:[%s10190_s6 + $0x680] sm:$0xff]  ;;  %v8871_v58 = vcombine.high %v357_v51, %v361_v52  ;;  %6602 = vmatprep.subr.bf16.mxu1 %v9007_v50  ;;  %v8870_v3 = vcombine.low %v357_v51, %v361_v52 }
  0x4e   : > { %v489_v55 = vld [vmem:[%s10190_s6 + $0x6a0] sm:$0xff]  ;;  %6603 = vmatpush2.bf16.msra.mxu1 %v9006_v57 }
  0x4f   : > { %v8999_v59 = vcombine.high %v485_v53, %v489_v55  ;;  %v349_v61 = vld [vmem:[%s10190_s6 + $0x240] sm:$0xff]  ;;  %6563 = vmatprep.subr.bf16.mxu0 %v8871_v58  ;;  %v8998_v4 = vcombine.low %v485_v53, %v489_v55 }
  0x50   : > { %v353_v62 = vld [vmem:[%s10190_s6 + $0x260] sm:$0xff]  ;;  %6564 = vmatpush2.bf16.msra.mxu0 %v8870_v3 }
  0x51   : > { %v477_v63 = vld [vmem:[%s10190_s6 + $0x640] sm:$0xff]  ;;  %v8863_v5 = vcombine.high %v349_v61, %v353_v62  ;;  %6604 = vmatprep.subr.bf16.mxu1 %v8999_v59  ;;  %v8862_v60 = vcombine.low %v349_v61, %v353_v62 }
  0x52   : > { %v481_v1 = vld [vmem:[%s10190_s6 + $0x660] sm:$0xff]  ;;  %6605 = vmatpush2.bf16.msra.mxu1 %v8998_v4 }
  0x53   : > { %v8991_v6 = vcombine.high %v477_v63, %v481_v1  ;;  %v341_v7 = vld [vmem:[%s10190_s6 + $0x200] sm:$0xff]  ;;  %6565 = vmatprep.subr.bf16.mxu0 %v8863_v5  ;;  %v8990_v13 = vcombine.low %v477_v63, %v481_v1 }
  0x54   : > { %v345_v8 = vld [vmem:[%s10190_s6 + $0x220] sm:$0xff]  ;;  %6566 = vmatpush2.bf16.msra.mxu0 %v8862_v60 }
  0x55   : > { %v469_v9 = vld [vmem:[%s10190_s6 + $0x600] sm:$0xff]  ;;  %v8855_v15 = vcombine.high %v341_v7, %v345_v8  ;;  %6606 = vmatprep.subr.bf16.mxu1 %v8991_v6  ;;  %v8854_v22 = vcombine.low %v341_v7, %v345_v8 }
  0x56   : > { %v473_v11 = vld [vmem:[%s10190_s6 + $0x620] sm:$0xff]  ;;  %6607 = vmatpush2.bf16.msra.mxu1 %v8990_v13 }
  0x57   : > { %v8983_v16 = vcombine.high %v469_v9, %v473_v11  ;;  %v589_v17 = vld [vmem:[%s10190_s6 + $0x9c0] sm:$0xff]  ;;  %6567 = vmatprep.subr.bf16.mxu0 %v8855_v15  ;;  %v8982_v24 = vcombine.low %v469_v9, %v473_v11 }
  0x58   : > { %v593_v18 = vld [vmem:[%s10190_s6 + $0x9e0] sm:$0xff]  ;;  %6568 = vmatpush2.bf16.msra.mxu0 %v8854_v22 }
  0x59   : > { %v717_v19 = vld [vmem:[%s10190_s6 + $0xdc0] sm:$0xff]  ;;  %v9103_v25 = vcombine.high %v589_v17, %v593_v18  ;;  %6608 = vmatprep.subr.bf16.mxu1 %v8983_v16  ;;  %v9102_v32 = vcombine.low %v589_v17, %v593_v18 }
  0x5a   : > { %v721_v20 = vld [vmem:[%s10190_s6 + $0xde0] sm:$0xff]  ;;  %6609 = vmatpush2.bf16.msra.mxu1 %v8982_v24 }
  0x5b   : > { %v9231_v26 = vcombine.high %v717_v19, %v721_v20  ;;  %v581_v27 = vld [vmem:[%s10190_s6 + $0x980] sm:$0xff]  ;;  %6619 = vmatprep.subr.bf16.mxu0 %v9103_v25  ;;  %v9230_v33 = vcombine.low %v717_v19, %v721_v20  ;;  %6570 = vmatmul.mubr.bf16.vlgmr.msra.gmra.mxu0 %v10293_v23 }
  0x5c   : > { %v585_v28 = vld [vmem:[%s10190_s6 + $0x9a0] sm:$0xff]  ;;  %6620 = vmatpush1.bf16.msra.mxu0 %v9102_v32  ;;  %6651 = vmatprep.mubr.bf16.mxu0 %v10300_v31 }
  0x5d   : > { %v709_v29 = vld [vmem:[%s10190_s6 + $0xd80] sm:$0xff]  ;;  %v9095_v34 = vcombine.high %v581_v27, %v585_v28  ;;  %6660 = vmatprep.subr.bf16.mxu1 %v9231_v26  ;;  %6611 = vmatmul.mubr.bf16.vlgmr.msra.gmra.mxu1 %v10304_v0  ;;  %v9094_v41 = vcombine.low %v581_v27, %v585_v28 }
  0x5e   : > { %v713_v30 = vld [vmem:[%s10190_s6 + $0xda0] sm:$0xff]  ;;  %6661 = vmatpush1.bf16.msra.mxu1 %v9230_v33  ;;  %6692 = vmatprep.mubr.bf16.mxu1 %v10313_v40 }
  0x5f   : > { %v9223_v35 = vcombine.high %v709_v29, %v713_v30  ;;  %v573_v36 = vld [vmem:[%s10190_s6 + $0x940] sm:$0xff]  ;;  %6621 = vmatprep.subr.bf16.mxu0 %v9095_v34  ;;  %v9222_v42 = vcombine.low %v709_v29, %v713_v30 }
  0x60   : > { %v577_v37 = vld [vmem:[%s10190_s6 + $0x960] sm:$0xff]  ;;  %6622 = vmatpush1.bf16.msra.mxu0 %v9094_v41 }
  0x61   : > { %v701_v38 = vld [vmem:[%s10190_s6 + $0xd40] sm:$0xff]  ;;  %v9087_v43 = vcombine.high %v573_v36, %v577_v37  ;;  %6662 = vmatprep.subr.bf16.mxu1 %v9223_v35  ;;  %v9086_v50 = vcombine.low %v573_v36, %v577_v37 }
  0x62   : > { %v705_v39 = vld [vmem:[%s10190_s6 + $0xd60] sm:$0xff]  ;;  %6663 = vmatpush1.bf16.msra.mxu1 %v9222_v42 }
  0x63   : > { %v9215_v44 = vcombine.high %v701_v38, %v705_v39  ;;  %v565_v46 = vld [vmem:[%s10190_s6 + $0x900] sm:$0xff]  ;;  %6623 = vmatprep.subr.bf16.mxu0 %v9087_v43  ;;  %v9214_v51 = vcombine.low %v701_v38, %v705_v39 }
  0x64   : > { %v569_v47 = vld [vmem:[%s10190_s6 + $0x920] sm:$0xff]  ;;  %6624 = vmatpush1.bf16.msra.mxu0 %v9086_v50 }
  0x65   : > { %v693_v48 = vld [vmem:[%s10190_s6 + $0xd00] sm:$0xff]  ;;  %v9079_v52 = vcombine.high %v565_v46, %v569_v47  ;;  %6664 = vmatprep.subr.bf16.mxu1 %v9215_v44  ;;  %v9078_v59 = vcombine.low %v565_v46, %v569_v47 }
  0x66   : > { %v697_v49 = vld [vmem:[%s10190_s6 + $0xd20] sm:$0xff]  ;;  %6665 = vmatpush1.bf16.msra.mxu1 %v9214_v51 }
  0x67   : > { %v9207_v53 = vcombine.high %v693_v48, %v697_v49  ;;  %v557_v55 = vld [vmem:[%s10190_s6 + $0x8c0] sm:$0xff]  ;;  %6625 = vmatprep.subr.bf16.mxu0 %v9079_v52  ;;  %v9206_v61 = vcombine.low %v693_v48, %v697_v49 }
  0x68   : > { %v561_v56 = vld [vmem:[%s10190_s6 + $0x8e0] sm:$0xff]  ;;  %6626 = vmatpush1.bf16.msra.mxu0 %v9078_v59 }
  0x69   : > { %v685_v57 = vld [vmem:[%s10190_s6 + $0xcc0] sm:$0xff]  ;;  %v9071_v62 = vcombine.high %v557_v55, %v561_v56  ;;  %6666 = vmatprep.subr.bf16.mxu1 %v9207_v53  ;;  %v9070_v5 = vcombine.low %v557_v55, %v561_v56 }
  0x6a   : > { %v689_v58 = vld [vmem:[%s10190_s6 + $0xce0] sm:$0xff]  ;;  %6667 = vmatpush1.bf16.msra.mxu1 %v9206_v61 }
  0x6b   : > { %v9199_v63 = vcombine.high %v685_v57, %v689_v58  ;;  %v549_v1 = vld [vmem:[%s10190_s6 + $0x880] sm:$0xff]  ;;  %6627 = vmatprep.subr.bf16.mxu0 %v9071_v62  ;;  %v9198_v6 = vcombine.low %v685_v57, %v689_v58 }
  0x6c   : > { %v553_v2 = vld [vmem:[%s10190_s6 + $0x8a0] sm:$0xff]  ;;  %6628 = vmatpush1.bf16.msra.mxu0 %v9070_v5 }
  0x6d   : > { %v677_v3 = vld [vmem:[%s10190_s6 + $0xc80] sm:$0xff]  ;;  %v9063_v7 = vcombine.high %v549_v1, %v553_v2  ;;  %6668 = vmatprep.subr.bf16.mxu1 %v9199_v63  ;;  %v9062_v15 = vcombine.low %v549_v1, %v553_v2 }
  0x6e   : > { %v681_v4 = vld [vmem:[%s10190_s6 + $0xca0] sm:$0xff]  ;;  %6669 = vmatpush1.bf16.msra.mxu1 %v9198_v6 }
  0x6f   : > { %v9191_v8 = vcombine.high %v677_v3, %v681_v4  ;;  %v541_v9 = vld [vmem:[%s10190_s6 + $0x840] sm:$0xff]  ;;  %6629 = vmatprep.subr.bf16.mxu0 %v9063_v7  ;;  %v9190_v16 = vcombine.low %v677_v3, %v681_v4 }
  0x70   : > { %v545_v11 = vld [vmem:[%s10190_s6 + $0x860] sm:$0xff]  ;;  %6630 = vmatpush1.bf16.msra.mxu0 %v9062_v15 }
  0x71   : > { %v669_v60 = vld [vmem:[%s10190_s6 + $0xc40] sm:$0xff]  ;;  %v9055_v17 = vcombine.high %v541_v9, %v545_v11  ;;  %6670 = vmatprep.subr.bf16.mxu1 %v9191_v8  ;;  %v9054_v24 = vcombine.low %v541_v9, %v545_v11 }
  0x72   : > { %v673_v13 = vld [vmem:[%s10190_s6 + $0xc60] sm:$0xff]  ;;  %6671 = vmatpush1.bf16.msra.mxu1 %v9190_v16 }
  0x73   : > { %v9183_v18 = vcombine.high %v669_v60, %v673_v13  ;;  %v533_v19 = vld [vmem:[%s10190_s6 + $0x800] sm:$0xff]  ;;  %6631 = vmatprep.subr.bf16.mxu0 %v9055_v17  ;;  %v9182_v25 = vcombine.low %v669_v60, %v673_v13 }
  0x74   : > { %v537_v20 = vld [vmem:[%s10190_s6 + $0x820] sm:$0xff]  ;;  %6632 = vmatpush1.bf16.msra.mxu0 %v9054_v24 }
  0x75   : > { %v661_v21 = vld [vmem:[%s10190_s6 + $0xc00] sm:$0xff]  ;;  %v9047_v26 = vcombine.high %v533_v19, %v537_v20  ;;  %6672 = vmatprep.subr.bf16.mxu1 %v9183_v18  ;;  %v9046_v33 = vcombine.low %v533_v19, %v537_v20 }
  0x76   : > { %v665_v22 = vld [vmem:[%s10190_s6 + $0xc20] sm:$0xff]  ;;  %6673 = vmatpush1.bf16.msra.mxu1 %v9182_v25 }
  0x77   : > { %v9175_v27 = vcombine.high %v661_v21, %v665_v22  ;;  %v653_v28 = vld [vmem:[%s10190_s6 + $0xbc0] sm:$0xff]  ;;  %6633 = vmatprep.subr.bf16.mxu0 %v9047_v26  ;;  %v9174_v34 = vcombine.low %v661_v21, %v665_v22  ;;  %v10367_v26 = vld [vmem:[%s10185_s27 + $0x8] sm:$0xff] }
  0x78   : > { %v657_v29 = vld [vmem:[%s10190_s6 + $0xbe0] sm:$0xff]  ;;  %6634 = vmatpush1.bf16.msra.mxu0 %v9046_v33 }
  0x79   : > { %v781_v30 = vld [vmem:[%s10190_s6 + $0xfc0] sm:$0xff]  ;;  %v9167_v35 = vcombine.high %v653_v28, %v657_v29  ;;  %6674 = vmatprep.subr.bf16.mxu1 %v9175_v27  ;;  %v9166_v42 = vcombine.low %v653_v28, %v657_v29 }
  0x7a   : > { %v785_v32 = vld [vmem:[%s10190_s6 + $0xfe0] sm:$0xff]  ;;  %6675 = vmatpush1.bf16.msra.mxu1 %v9174_v34 }
  0x7b   : > { %v9295_v36 = vcombine.high %v781_v30, %v785_v32  ;;  %v645_v37 = vld [vmem:[%s10190_s6 + $0xb80] sm:$0xff]  ;;  %6635 = vmatprep.subr.bf16.mxu0 %v9167_v35  ;;  %v9294_v43 = vcombine.low %v781_v30, %v785_v32  ;;  %v10375_v35 = vrot.slane %v10367_v26, %v10222_v54 }
  0x7c   : > { %v649_v38 = vld [vmem:[%s10190_s6 + $0xba0] sm:$0xff]  ;;  %6636 = vmatpush2.bf16.msra.mxu0 %v9166_v42 }
  0x7d   : > { %v773_v39 = vld [vmem:[%s10190_s6 + $0xf80] sm:$0xff]  ;;  %v9159_v44 = vcombine.high %v645_v37, %v649_v38  ;;  %6676 = vmatprep.subr.bf16.mxu1 %v9295_v36  ;;  %v9158_v51 = vcombine.low %v645_v37, %v649_v38 }
  0x7e   : > { %v777_v41 = vld [vmem:[%s10190_s6 + $0xfa0] sm:$0xff]  ;;  %6677 = vmatpush2.bf16.msra.mxu1 %v9294_v43 }
  0x7f   : > { %v9287_v46 = vcombine.high %v773_v39, %v777_v41  ;;  %v637_v47 = vld [vmem:[%s10190_s6 + $0xb40] sm:$0xff]  ;;  %6637 = vmatprep.subr.bf16.mxu0 %v9159_v44  ;;  %v9286_v52 = vcombine.low %v773_v39, %v777_v41 }
  0x80   : > { %v641_v48 = vld [vmem:[%s10190_s6 + $0xb60] sm:$0xff]  ;;  %6638 = vmatpush2.bf16.msra.mxu0 %v9158_v51 }
  0x81   : > { %v765_v49 = vld [vmem:[%s10190_s6 + $0xf40] sm:$0xff]  ;;  %v9151_v53 = vcombine.high %v637_v47, %v641_v48  ;;  %6678 = vmatprep.subr.bf16.mxu1 %v9287_v46  ;;  %v9150_v61 = vcombine.low %v637_v47, %v641_v48  ;;  %v1367_v46 = vcombine.high %v10375_v35, %v10375_v35  ;;  %v10385_v48 = vrot.slane %v10283_v12, %v10222_v54 }
  0x82   : > { %v769_v50 = vld [vmem:[%s10190_s6 + $0xf60] sm:$0xff]  ;;  %6679 = vmatpush2.bf16.msra.mxu1 %v9286_v52 }
  0x83   : > { %v9279_v55 = vcombine.high %v765_v49, %v769_v50  ;;  %v629_v56 = vld [vmem:[%s10190_s6 + $0xb00] sm:$0xff]  ;;  %6639 = vmatprep.subr.bf16.mxu0 %v9151_v53  ;;  %v9278_v62 = vcombine.low %v765_v49, %v769_v50  ;;  %v10396_v12 = vcombine.high %v10385_v48, %v10385_v48 }
  0x84   : > { %v633_v57 = vld [vmem:[%s10190_s6 + $0xb20] sm:$0xff]  ;;  %6640 = vmatpush2.bf16.msra.mxu0 %v9150_v61 }
  0x85   : > { %v757_v58 = vld [vmem:[%s10190_s6 + $0xf00] sm:$0xff]  ;;  %v9143_v63 = vcombine.high %v629_v56, %v633_v57  ;;  %6680 = vmatprep.subr.bf16.mxu1 %v9279_v55  ;;  %v9142_v6 = vcombine.low %v629_v56, %v633_v57  ;;  %v10392_v57 = vrot.slane %v1367_v46, %v10222_v54 }
  0x86   : > { %v761_v59 = vld [vmem:[%s10190_s6 + $0xf20] sm:$0xff]  ;;  %6681 = vmatpush2.bf16.msra.mxu1 %v9278_v62 }
  0x87   : > { %v9271_v1 = vcombine.high %v757_v58, %v761_v59  ;;  %v621_v2 = vld [vmem:[%s10190_s6 + $0xac0] sm:$0xff]  ;;  %6641 = vmatprep.subr.bf16.mxu0 %v9143_v63  ;;  %v9270_v7 = vcombine.low %v757_v58, %v761_v59 }
  0x88   : > { %v625_v3 = vld [vmem:[%s10190_s6 + $0xae0] sm:$0xff]  ;;  %6642 = vmatpush2.bf16.msra.mxu0 %v9142_v6 }
  0x89   : > { %v749_v4 = vld [vmem:[%s10190_s6 + $0xec0] sm:$0xff]  ;;  %v9135_v8 = vcombine.high %v621_v2, %v625_v3  ;;  %6682 = vmatprep.subr.bf16.mxu1 %v9271_v1  ;;  %v9134_v16 = vcombine.low %v621_v2, %v625_v3 }
  0x8a   : > { %v753_v5 = vld [vmem:[%s10190_s6 + $0xee0] sm:$0xff]  ;;  %6683 = vmatpush2.bf16.msra.mxu1 %v9270_v7 }
  0x8b   : > { %v9263_v9 = vcombine.high %v749_v4, %v753_v5  ;;  %v613_v11 = vld [vmem:[%s10190_s6 + $0xa80] sm:$0xff]  ;;  %6643 = vmatprep.subr.bf16.mxu0 %v9135_v8  ;;  %v9262_v17 = vcombine.low %v749_v4, %v753_v5  ;;  %v10405_v4 = vcombine.high %v10392_v57, %v10392_v57 }
  0x8c   : > { %v617_v60 = vld [vmem:[%s10190_s6 + $0xaa0] sm:$0xff]  ;;  %6644 = vmatpush2.bf16.msra.mxu0 %v9134_v16 }
  0x8d   : > { %v741_v13 = vld [vmem:[%s10190_s6 + $0xe80] sm:$0xff]  ;;  %v9127_v18 = vcombine.high %v613_v11, %v617_v60  ;;  %6684 = vmatprep.subr.bf16.mxu1 %v9263_v9  ;;  %v9126_v25 = vcombine.low %v613_v11, %v617_v60 }
  0x8e   : > { %v745_v15 = vld [vmem:[%s10190_s6 + $0xea0] sm:$0xff]  ;;  %6685 = vmatpush2.bf16.msra.mxu1 %v9262_v17 }
  0x8f   : > { %v9255_v19 = vcombine.high %v741_v13, %v745_v15  ;;  %v605_v20 = vld [vmem:[%s10190_s6 + $0xa40] sm:$0xff]  ;;  %6645 = vmatprep.subr.bf16.mxu0 %v9127_v18  ;;  %v9254_v27 = vcombine.low %v741_v13, %v745_v15 }
  0x90   : > { %v609_v21 = vld [vmem:[%s10190_s6 + $0xa60] sm:$0xff]  ;;  %6646 = vmatpush2.bf16.msra.mxu0 %v9126_v25 }
  0x91   : > { %v733_v22 = vld [vmem:[%s10190_s6 + $0xe40] sm:$0xff]  ;;  %v9119_v28 = vcombine.high %v605_v20, %v609_v21  ;;  %6686 = vmatprep.subr.bf16.mxu1 %v9255_v19  ;;  %v9118_v36 = vcombine.low %v605_v20, %v609_v21 }
  0x92   : > { %v737_v24 = vld [vmem:[%s10190_s6 + $0xe60] sm:$0xff]  ;;  %6687 = vmatpush2.bf16.msra.mxu1 %v9254_v27 }
  0x93   : > { %v9247_v29 = vcombine.high %v733_v22, %v737_v24  ;;  %v597_v30 = vld [vmem:[%s10190_s6 + $0xa00] sm:$0xff]  ;;  %6647 = vmatprep.subr.bf16.mxu0 %v9119_v28  ;;  %v9246_v37 = vcombine.low %v733_v22, %v737_v24 }
  0x94   : > { %v601_v32 = vld [vmem:[%s10190_s6 + $0xa20] sm:$0xff]  ;;  %6648 = vmatpush2.bf16.msra.mxu0 %v9118_v36 }
  0x95   : > { %v725_v33 = vld [vmem:[%s10190_s6 + $0xe00] sm:$0xff]  ;;  %v9111_v38 = vcombine.high %v597_v30, %v601_v32  ;;  %6688 = vmatprep.subr.bf16.mxu1 %v9247_v29  ;;  %v9110_v47 = vcombine.low %v597_v30, %v601_v32 }
  0x96   : > { %v729_v34 = vld [vmem:[%s10190_s6 + $0xe20] sm:$0xff]  ;;  %6689 = vmatpush2.bf16.msra.mxu1 %v9246_v37 }
  0x97   : > { %v9239_v39 = vcombine.high %v725_v33, %v729_v34  ;;  %v845_v41 = vld [vmem:[%s10190_s6 + $0x11c0] sm:$0xff]  ;;  %6649 = vmatprep.subr.bf16.mxu0 %v9111_v38  ;;  %v9238_v49 = vcombine.low %v725_v33, %v729_v34 }
  0x98   : > { %v849_v42 = vld [vmem:[%s10190_s6 + $0x11e0] sm:$0xff]  ;;  %6650 = vmatpush2.bf16.msra.mxu0 %v9110_v47 }
  0x99   : > { %v973_v43 = vld [vmem:[%s10190_s6 + $0x15c0] sm:$0xff]  ;;  %v9359_v50 = vcombine.high %v845_v41, %v849_v42  ;;  %6690 = vmatprep.subr.bf16.mxu1 %v9239_v39  ;;  %v9358_v58 = vcombine.low %v845_v41, %v849_v42 }
  0x9a   : > { %v977_v44 = vld [vmem:[%s10190_s6 + $0x15e0] sm:$0xff]  ;;  %6691 = vmatpush2.bf16.msra.mxu1 %v9238_v49 }
  0x9b   : > { %v9487_v51 = vcombine.high %v973_v43, %v977_v44  ;;  %v837_v52 = vld [vmem:[%s10190_s6 + $0x1180] sm:$0xff]  ;;  %6701 = vmatprep.subr.bf16.mxu0 %v9359_v50  ;;  %v9486_v59 = vcombine.low %v973_v43, %v977_v44  ;;  %6652 = vmatmul.mubr.bf16.vlgmr.msra.gmra.mxu0 %v10385_v48 }
  0x9c   : > { %v841_v53 = vld [vmem:[%s10190_s6 + $0x11a0] sm:$0xff]  ;;  %6702 = vmatpush1.bf16.msra.mxu0 %v9358_v58  ;;  %6733 = vmatprep.mubr.bf16.mxu0 %v10392_v57 }
  0x9d   : > { %v965_v55 = vld [vmem:[%s10190_s6 + $0x1580] sm:$0xff]  ;;  %v9351_v61 = vcombine.high %v837_v52, %v841_v53  ;;  %6742 = vmatprep.subr.bf16.mxu1 %v9487_v51  ;;  %6693 = vmatmul.mubr.bf16.vlgmr.msra.gmra.mxu1 %v10396_v12  ;;  %v9350_v5 = vcombine.low %v837_v52, %v841_v53 }
  0x9e   : > { %v969_v56 = vld [vmem:[%s10190_s6 + $0x15a0] sm:$0xff]  ;;  %6743 = vmatpush1.bf16.msra.mxu1 %v9486_v59  ;;  %6774 = vmatprep.mubr.bf16.mxu1 %v10405_v4 }
  0x9f   : > { %v9479_v62 = vcombine.high %v965_v55, %v969_v56  ;;  %v829_v63 = vld [vmem:[%s10190_s6 + $0x1140] sm:$0xff]  ;;  %6703 = vmatprep.subr.bf16.mxu0 %v9351_v61  ;;  %v9478_v6 = vcombine.low %v965_v55, %v969_v56 }
  0xa0   : > { %v833_v1 = vld [vmem:[%s10190_s6 + $0x1160] sm:$0xff]  ;;  %6704 = vmatpush1.bf16.msra.mxu0 %v9350_v5 }
  0xa1   : > { %v957_v2 = vld [vmem:[%s10190_s6 + $0x1540] sm:$0xff]  ;;  %v9343_v7 = vcombine.high %v829_v63, %v833_v1  ;;  %6744 = vmatprep.subr.bf16.mxu1 %v9479_v62  ;;  %v9342_v15 = vcombine.low %v829_v63, %v833_v1 }
  0xa2   : > { %v961_v3 = vld [vmem:[%s10190_s6 + $0x1560] sm:$0xff]  ;;  %6745 = vmatpush1.bf16.msra.mxu1 %v9478_v6 }
  0xa3   : > { %v9471_v8 = vcombine.high %v957_v2, %v961_v3  ;;  %v821_v9 = vld [vmem:[%s10190_s6 + $0x1100] sm:$0xff]  ;;  %6705 = vmatprep.subr.bf16.mxu0 %v9343_v7  ;;  %v9470_v16 = vcombine.low %v957_v2, %v961_v3 }
  0xa4   : > { %v825_v11 = vld [vmem:[%s10190_s6 + $0x1120] sm:$0xff]  ;;  %6706 = vmatpush1.bf16.msra.mxu0 %v9342_v15 }
  0xa5   : > { %v949_v60 = vld [vmem:[%s10190_s6 + $0x1500] sm:$0xff]  ;;  %v9335_v17 = vcombine.high %v821_v9, %v825_v11  ;;  %6746 = vmatprep.subr.bf16.mxu1 %v9471_v8  ;;  %v9334_v24 = vcombine.low %v821_v9, %v825_v11 }
  0xa6   : > { %v953_v13 = vld [vmem:[%s10190_s6 + $0x1520] sm:$0xff]  ;;  %6747 = vmatpush1.bf16.msra.mxu1 %v9470_v16 }
  0xa7   : > { %v9463_v18 = vcombine.high %v949_v60, %v953_v13  ;;  %v813_v19 = vld [vmem:[%s10190_s6 + $0x10c0] sm:$0xff]  ;;  %6707 = vmatprep.subr.bf16.mxu0 %v9335_v17  ;;  %v9462_v25 = vcombine.low %v949_v60, %v953_v13 }
  0xa8   : > { %v817_v20 = vld [vmem:[%s10190_s6 + $0x10e0] sm:$0xff]  ;;  %6708 = vmatpush1.bf16.msra.mxu0 %v9334_v24 }
  0xa9   : > { %v941_v21 = vld [vmem:[%s10190_s6 + $0x14c0] sm:$0xff]  ;;  %v9327_v27 = vcombine.high %v813_v19, %v817_v20  ;;  %6748 = vmatprep.subr.bf16.mxu1 %v9463_v18  ;;  %v9326_v34 = vcombine.low %v813_v19, %v817_v20 }
  0xaa   : > { %v945_v22 = vld [vmem:[%s10190_s6 + $0x14e0] sm:$0xff]  ;;  %6749 = vmatpush1.bf16.msra.mxu1 %v9462_v25 }
  0xab   : > { %v9455_v28 = vcombine.high %v941_v21, %v945_v22  ;;  %v805_v29 = vld [vmem:[%s10190_s6 + $0x1080] sm:$0xff]  ;;  %6709 = vmatprep.subr.bf16.mxu0 %v9327_v27  ;;  %v9454_v36 = vcombine.low %v941_v21, %v945_v22 }
  0xac   : > { %v809_v30 = vld [vmem:[%s10190_s6 + $0x10a0] sm:$0xff]  ;;  %6710 = vmatpush1.bf16.msra.mxu0 %v9326_v34 }
  0xad   : > { %v933_v32 = vld [vmem:[%s10190_s6 + $0x1480] sm:$0xff]  ;;  %v9319_v37 = vcombine.high %v805_v29, %v809_v30  ;;  %6750 = vmatprep.subr.bf16.mxu1 %v9455_v28  ;;  %v9318_v44 = vcombine.low %v805_v29, %v809_v30 }
  0xae   : > { %v937_v33 = vld [vmem:[%s10190_s6 + $0x14a0] sm:$0xff]  ;;  %6751 = vmatpush1.bf16.msra.mxu1 %v9454_v36 }
  0xaf   : > { %v9447_v38 = vcombine.high %v933_v32, %v937_v33  ;;  %v797_v39 = vld [vmem:[%s10190_s6 + $0x1040] sm:$0xff]  ;;  %6711 = vmatprep.subr.bf16.mxu0 %v9319_v37  ;;  %v9446_v46 = vcombine.low %v933_v32, %v937_v33 }
  0xb0   : > { %v801_v41 = vld [vmem:[%s10190_s6 + $0x1060] sm:$0xff]  ;;  %6712 = vmatpush1.bf16.msra.mxu0 %v9318_v44 }
  0xb1   : > { %v925_v42 = vld [vmem:[%s10190_s6 + $0x1440] sm:$0xff]  ;;  %v9311_v47 = vcombine.high %v797_v39, %v801_v41  ;;  %6752 = vmatprep.subr.bf16.mxu1 %v9447_v38  ;;  %v9310_v55 = vcombine.low %v797_v39, %v801_v41 }
  0xb2   : > { %v929_v43 = vld [vmem:[%s10190_s6 + $0x1460] sm:$0xff]  ;;  %6753 = vmatpush1.bf16.msra.mxu1 %v9446_v46 }
  0xb3   : > { %v9439_v49 = vcombine.high %v925_v42, %v929_v43  ;;  %v789_v50 = vld [vmem:[%s10190_s6 + $0x1000] sm:$0xff]  ;;  %6713 = vmatprep.subr.bf16.mxu0 %v9311_v47  ;;  %v9438_v56 = vcombine.low %v925_v42, %v929_v43 }
  0xb4   : > { %v793_v51 = vld [vmem:[%s10190_s6 + $0x1020] sm:$0xff]  ;;  %6714 = vmatpush1.bf16.msra.mxu0 %v9310_v55 }
  0xb5   : > { %v917_v52 = vld [vmem:[%s10190_s6 + $0x1400] sm:$0xff]  ;;  %v9303_v58 = vcombine.high %v789_v50, %v793_v51  ;;  %6754 = vmatprep.subr.bf16.mxu1 %v9439_v49  ;;  %v9302_v2 = vcombine.low %v789_v50, %v793_v51 }
  0xb6   : > { %v921_v53 = vld [vmem:[%s10190_s6 + $0x1420] sm:$0xff]  ;;  %6755 = vmatpush1.bf16.msra.mxu1 %v9438_v56 }
  0xb7   : > { %v9431_v59 = vcombine.high %v917_v52, %v921_v53  ;;  %v909_v61 = vld [vmem:[%s10190_s6 + $0x13c0] sm:$0xff]  ;;  %6715 = vmatprep.subr.bf16.mxu0 %v9303_v58  ;;  %v9430_v3 = vcombine.low %v917_v52, %v921_v53 }
  0xb8   : > { %v913_v62 = vld [vmem:[%s10190_s6 + $0x13e0] sm:$0xff]  ;;  %6716 = vmatpush1.bf16.msra.mxu0 %v9302_v2 }
  0xb9   : > { %v1037_v63 = vld [vmem:[%s10190_s6 + $0x17c0] sm:$0xff]  ;;  %v9423_v5 = vcombine.high %v909_v61, %v913_v62  ;;  %6756 = vmatprep.subr.bf16.mxu1 %v9431_v59  ;;  %v9422_v60 = vcombine.low %v909_v61, %v913_v62 }
  0xba   : > { %v1041_v1 = vld [vmem:[%s10190_s6 + $0x17e0] sm:$0xff]  ;;  %6757 = vmatpush1.bf16.msra.mxu1 %v9430_v3 }
  0xbb   : > { %v9551_v6 = vcombine.high %v1037_v63, %v1041_v1  ;;  %v901_v7 = vld [vmem:[%s10190_s6 + $0x1380] sm:$0xff]  ;;  %6717 = vmatprep.subr.bf16.mxu0 %v9423_v5  ;;  %v9550_v13 = vcombine.low %v1037_v63, %v1041_v1  ;;  %v1352_v63 = vcombine.high %v10367_v26, %v10367_v26 }
  0xbc   : > { %v905_v8 = vld [vmem:[%s10190_s6 + $0x13a0] sm:$0xff]  ;;  %6718 = vmatpush2.bf16.msra.mxu0 %v9422_v60 }
  0xbd   : > { %v1029_v9 = vld [vmem:[%s10190_s6 + $0x1780] sm:$0xff]  ;;  %v9415_v15 = vcombine.high %v901_v7, %v905_v8  ;;  %6758 = vmatprep.subr.bf16.mxu1 %v9551_v6  ;;  %v9414_v21 = vcombine.low %v901_v7, %v905_v8 }
  0xbe   : > { %v1033_v11 = vld [vmem:[%s10190_s6 + $0x17a0] sm:$0xff]  ;;  %6759 = vmatpush2.bf16.msra.mxu1 %v9550_v13 }
  0xbf   : > { %v9543_v16 = vcombine.high %v1029_v9, %v1033_v11  ;;  %v893_v17 = vld [vmem:[%s10190_s6 + $0x1340] sm:$0xff]  ;;  %6719 = vmatprep.subr.bf16.mxu0 %v9415_v15  ;;  %v9542_v22 = vcombine.low %v1029_v9, %v1033_v11  ;;  %v10465_v11 = vrot.slane %v1352_v63, %v10222_v54 }
  0xc0   : > { %v897_v18 = vld [vmem:[%s10190_s6 + $0x1360] sm:$0xff]  ;;  %6720 = vmatpush2.bf16.msra.mxu0 %v9414_v21 }
  0xc1   : > { %v1021_v19 = vld [vmem:[%s10190_s6 + $0x1740] sm:$0xff]  ;;  %v9407_v24 = vcombine.high %v893_v17, %v897_v18  ;;  %6760 = vmatprep.subr.bf16.mxu1 %v9543_v16  ;;  %v9406_v32 = vcombine.low %v893_v17, %v897_v18 }
  0xc2   : > { %v1025_v20 = vld [vmem:[%s10190_s6 + $0x1760] sm:$0xff]  ;;  %6761 = vmatpush2.bf16.msra.mxu1 %v9542_v22  ;;  %v10475_v22 = vrot.slane %v10375_v35, %v10222_v54 }
  0xc3   : > { %v9535_v25 = vcombine.high %v1021_v19, %v1025_v20  ;;  %v885_v27 = vld [vmem:[%s10190_s6 + $0x1300] sm:$0xff]  ;;  %6721 = vmatprep.subr.bf16.mxu0 %v9407_v24  ;;  %v9534_v33 = vcombine.low %v1021_v19, %v1025_v20  ;;  %v1368_v20 = vcombine.high %v10465_v11, %v10465_v11 }
  0xc4   : > { %v889_v28 = vld [vmem:[%s10190_s6 + $0x1320] sm:$0xff]  ;;  %6722 = vmatpush2.bf16.msra.mxu0 %v9406_v32  ;;  %v10486_v35 = vcombine.high %v10475_v22, %v10475_v22 }
  0xc5   : > { %v1013_v29 = vld [vmem:[%s10190_s6 + $0x1700] sm:$0xff]  ;;  %v9399_v34 = vcombine.high %v885_v27, %v889_v28  ;;  %6762 = vmatprep.subr.bf16.mxu1 %v9535_v25  ;;  %v9398_v42 = vcombine.low %v885_v27, %v889_v28 }
  0xc6   : > { %v1017_v30 = vld [vmem:[%s10190_s6 + $0x1720] sm:$0xff]  ;;  %6763 = vmatpush2.bf16.msra.mxu1 %v9534_v33  ;;  %v10482_v33 = vrot.slane %v1368_v20, %v10222_v54 }
  0xc7   : > { %v9527_v36 = vcombine.high %v1013_v29, %v1017_v30  ;;  %v877_v37 = vld [vmem:[%s10190_s6 + $0x12c0] sm:$0xff]  ;;  %6723 = vmatprep.subr.bf16.mxu0 %v9399_v34  ;;  %v9526_v43 = vcombine.low %v1013_v29, %v1017_v30 }
  0xc8   : > { %v881_v38 = vld [vmem:[%s10190_s6 + $0x12e0] sm:$0xff]  ;;  %6724 = vmatpush2.bf16.msra.mxu0 %v9398_v42 }
  0xc9   : > { %v1005_v39 = vld [vmem:[%s10190_s6 + $0x16c0] sm:$0xff]  ;;  %v9391_v44 = vcombine.high %v877_v37, %v881_v38  ;;  %6764 = vmatprep.subr.bf16.mxu1 %v9527_v36  ;;  %v9390_v52 = vcombine.low %v877_v37, %v881_v38 }
  0xca   : > { %v1009_v41 = vld [vmem:[%s10190_s6 + $0x16e0] sm:$0xff]  ;;  %6765 = vmatpush2.bf16.msra.mxu1 %v9526_v43 }
  0xcb   : > { %v9519_v46 = vcombine.high %v1005_v39, %v1009_v41  ;;  %v869_v47 = vld [vmem:[%s10190_s6 + $0x1280] sm:$0xff]  ;;  %6725 = vmatprep.subr.bf16.mxu0 %v9391_v44  ;;  %v9518_v53 = vcombine.low %v1005_v39, %v1009_v41  ;;  %v10495_v44 = vcombine.high %v10482_v33, %v10482_v33 }
  0xcc   : > { %v873_v49 = vld [vmem:[%s10190_s6 + $0x12a0] sm:$0xff]  ;;  %6726 = vmatpush2.bf16.msra.mxu0 %v9390_v52 }
  0xcd   : > { %v997_v50 = vld [vmem:[%s10190_s6 + $0x1680] sm:$0xff]  ;;  %v9383_v55 = vcombine.high %v869_v47, %v873_v49  ;;  %6766 = vmatprep.subr.bf16.mxu1 %v9519_v46  ;;  %v9382_v1 = vcombine.low %v869_v47, %v873_v49 }
  0xce   : > { %v1001_v51 = vld [vmem:[%s10190_s6 + $0x16a0] sm:$0xff]  ;;  %6767 = vmatpush2.bf16.msra.mxu1 %v9518_v53 }
  0xcf   : > { %v9511_v56 = vcombine.high %v997_v50, %v1001_v51  ;;  %v861_v58 = vld [vmem:[%s10190_s6 + $0x1240] sm:$0xff]  ;;  %6727 = vmatprep.subr.bf16.mxu0 %v9383_v55  ;;  %v9510_v2 = vcombine.low %v997_v50, %v1001_v51 }
  0xd0   : > { %v865_v59 = vld [vmem:[%s10190_s6 + $0x1260] sm:$0xff]  ;;  %6728 = vmatpush2.bf16.msra.mxu0 %v9382_v1 }
  0xd1   : > { %v989_v61 = vld [vmem:[%s10190_s6 + $0x1640] sm:$0xff]  ;;  %v9375_v3 = vcombine.high %v861_v58, %v865_v59  ;;  %6768 = vmatprep.subr.bf16.mxu1 %v9511_v56  ;;  %v9374_v26 = vcombine.low %v861_v58, %v865_v59 }
  0xd2   : > { %v993_v62 = vld [vmem:[%s10190_s6 + $0x1660] sm:$0xff]  ;;  %6769 = vmatpush2.bf16.msra.mxu1 %v9510_v2 }
  0xd3   : > { %v9503_v5 = vcombine.high %v989_v61, %v993_v62  ;;  %v853_v6 = vld [vmem:[%s10190_s6 + $0x1200] sm:$0xff]  ;;  %6729 = vmatprep.subr.bf16.mxu0 %v9375_v3  ;;  %v9502_v60 = vcombine.low %v989_v61, %v993_v62 }
  0xd4   : > { %v857_v7 = vld [vmem:[%s10190_s6 + $0x1220] sm:$0xff]  ;;  %6730 = vmatpush2.bf16.msra.mxu0 %v9374_v26 }
  0xd5   : > { %v981_v8 = vld [vmem:[%s10190_s6 + $0x1600] sm:$0xff]  ;;  %v9367_v13 = vcombine.high %v853_v6, %v857_v7  ;;  %6770 = vmatprep.subr.bf16.mxu1 %v9503_v5  ;;  %v9366_v21 = vcombine.low %v853_v6, %v857_v7 }
  0xd6   : > { %v985_v9 = vld [vmem:[%s10190_s6 + $0x1620] sm:$0xff]  ;;  %6771 = vmatpush2.bf16.msra.mxu1 %v9502_v60 }
  0xd7   : > { %v9495_v15 = vcombine.high %v981_v8, %v985_v9  ;;  %v1101_v16 = vld [vmem:[%s10190_s6 + $0x19c0] sm:$0xff]  ;;  %6731 = vmatprep.subr.bf16.mxu0 %v9367_v13  ;;  %v9494_v24 = vcombine.low %v981_v8, %v985_v9 }
  0xd8   : > { %v1105_v17 = vld [vmem:[%s10190_s6 + $0x19e0] sm:$0xff]  ;;  %6732 = vmatpush2.bf16.msra.mxu0 %v9366_v21 }
  0xd9   : > { %v1229_v18 = vld [vmem:[%s10190_s6 + $0x1dc0] sm:$0xff]  ;;  %v9615_v25 = vcombine.high %v1101_v16, %v1105_v17  ;;  %6772 = vmatprep.subr.bf16.mxu1 %v9495_v15  ;;  %v9614_v34 = vcombine.low %v1101_v16, %v1105_v17 }
  0xda   : > { %v1233_v19 = vld [vmem:[%s10190_s6 + $0x1de0] sm:$0xff]  ;;  %6773 = vmatpush2.bf16.msra.mxu1 %v9494_v24 }
  0xdb   : > { %v9743_v27 = vcombine.high %v1229_v18, %v1233_v19  ;;  %v1093_v28 = vld [vmem:[%s10190_s6 + $0x1980] sm:$0xff]  ;;  %6783 = vmatprep.subr.bf16.mxu0 %v9615_v25  ;;  %v9742_v36 = vcombine.low %v1229_v18, %v1233_v19  ;;  %6734 = vmatmul.mubr.bf16.vlgmr.msra.gmra.mxu0 %v10475_v22 }
  0xdc   : > { %v1097_v29 = vld [vmem:[%s10190_s6 + $0x19a0] sm:$0xff]  ;;  %6784 = vmatpush1.bf16.msra.mxu0 %v9614_v34  ;;  %6815 = vmatprep.mubr.bf16.mxu0 %v10482_v33 }
  0xdd   : > { %v1221_v30 = vld [vmem:[%s10190_s6 + $0x1d80] sm:$0xff]  ;;  %v9607_v37 = vcombine.high %v1093_v28, %v1097_v29  ;;  %6824 = vmatprep.subr.bf16.mxu1 %v9743_v27  ;;  %6775 = vmatmul.mubr.bf16.vlgmr.msra.gmra.mxu1 %v10486_v35  ;;  %v9606_v46 = vcombine.low %v1093_v28, %v1097_v29 }
  0xde   : > { %v1225_v32 = vld [vmem:[%s10190_s6 + $0x1da0] sm:$0xff]  ;;  %6825 = vmatpush1.bf16.msra.mxu1 %v9742_v36  ;;  %6856 = vmatprep.mubr.bf16.mxu1 %v10495_v44 }
  0xdf   : > { %v9735_v38 = vcombine.high %v1221_v30, %v1225_v32  ;;  %v1085_v39 = vld [vmem:[%s10190_s6 + $0x1940] sm:$0xff]  ;;  %6785 = vmatprep.subr.bf16.mxu0 %v9607_v37  ;;  %v9734_v47 = vcombine.low %v1221_v30, %v1225_v32 }
  0xe0   : > { %v1089_v41 = vld [vmem:[%s10190_s6 + $0x1960] sm:$0xff]  ;;  %6786 = vmatpush1.bf16.msra.mxu0 %v9606_v46 }
  0xe1   : > { %v1213_v42 = vld [vmem:[%s10190_s6 + $0x1d40] sm:$0xff]  ;;  %v9599_v49 = vcombine.high %v1085_v39, %v1089_v41  ;;  %6826 = vmatprep.subr.bf16.mxu1 %v9735_v38  ;;  %v9598_v56 = vcombine.low %v1085_v39, %v1089_v41 }
  0xe2   : > { %v1217_v43 = vld [vmem:[%s10190_s6 + $0x1d60] sm:$0xff]  ;;  %6827 = vmatpush1.bf16.msra.mxu1 %v9734_v47 }
  0xe3   : > { %v9727_v50 = vcombine.high %v1213_v42, %v1217_v43  ;;  %v1077_v51 = vld [vmem:[%s10190_s6 + $0x1900] sm:$0xff]  ;;  %6787 = vmatprep.subr.bf16.mxu0 %v9599_v49  ;;  %v9726_v58 = vcombine.low %v1213_v42, %v1217_v43 }
  0xe4   : > { %v1081_v52 = vld [vmem:[%s10190_s6 + $0x1920] sm:$0xff]  ;;  %6788 = vmatpush1.bf16.msra.mxu0 %v9598_v56 }
  0xe5   : > { %v1205_v53 = vld [vmem:[%s10190_s6 + $0x1d00] sm:$0xff]  ;;  %v9591_v59 = vcombine.high %v1077_v51, %v1081_v52  ;;  %6828 = vmatprep.subr.bf16.mxu1 %v9727_v50  ;;  %v9590_v3 = vcombine.low %v1077_v51, %v1081_v52 }
  0xe6   : > { %v1209_v55 = vld [vmem:[%s10190_s6 + $0x1d20] sm:$0xff]  ;;  %6829 = vmatpush1.bf16.msra.mxu1 %v9726_v58 }
  0xe7   : > { %v9719_v61 = vcombine.high %v1205_v53, %v1209_v55  ;;  %v1069_v62 = vld [vmem:[%s10190_s6 + $0x18c0] sm:$0xff]  ;;  %6789 = vmatprep.subr.bf16.mxu0 %v9591_v59  ;;  %v9718_v5 = vcombine.low %v1205_v53, %v1209_v55 }
  0xe8   : > { %v1073_v63 = vld [vmem:[%s10190_s6 + $0x18e0] sm:$0xff]  ;;  %6790 = vmatpush1.bf16.msra.mxu0 %v9590_v3 }
  0xe9   : > { %v1197_v1 = vld [vmem:[%s10190_s6 + $0x1cc0] sm:$0xff]  ;;  %v9583_v6 = vcombine.high %v1069_v62, %v1073_v63  ;;  %6830 = vmatprep.subr.bf16.mxu1 %v9719_v61  ;;  %v9582_v13 = vcombine.low %v1069_v62, %v1073_v63 }
  0xea   : > { %v1201_v2 = vld [vmem:[%s10190_s6 + $0x1ce0] sm:$0xff]  ;;  %6831 = vmatpush1.bf16.msra.mxu1 %v9718_v5 }
  0xeb   : > { %v9711_v7 = vcombine.high %v1197_v1, %v1201_v2  ;;  %v1061_v8 = vld [vmem:[%s10190_s6 + $0x1880] sm:$0xff]  ;;  %6791 = vmatprep.subr.bf16.mxu0 %v9583_v6  ;;  %v9710_v15 = vcombine.low %v1197_v1, %v1201_v2 }
  0xec   : > { %v1065_v9 = vld [vmem:[%s10190_s6 + $0x18a0] sm:$0xff]  ;;  %6792 = vmatpush1.bf16.msra.mxu0 %v9582_v13 }
  0xed   : > { %v1189_v26 = vld [vmem:[%s10190_s6 + $0x1c80] sm:$0xff]  ;;  %v9575_v16 = vcombine.high %v1061_v8, %v1065_v9  ;;  %6832 = vmatprep.subr.bf16.mxu1 %v9711_v7  ;;  %v9574_v24 = vcombine.low %v1061_v8, %v1065_v9 }
  0xee   : > { %v1193_v60 = vld [vmem:[%s10190_s6 + $0x1ca0] sm:$0xff]  ;;  %6833 = vmatpush1.bf16.msra.mxu1 %v9710_v15 }
  0xef   : > { %v9703_v17 = vcombine.high %v1189_v26, %v1193_v60  ;;  %v1053_v18 = vld [vmem:[%s10190_s6 + $0x1840] sm:$0xff]  ;;  %6793 = vmatprep.subr.bf16.mxu0 %v9575_v16  ;;  %v9702_v25 = vcombine.low %v1189_v26, %v1193_v60 }
  0xf0   : > { %v1057_v19 = vld [vmem:[%s10190_s6 + $0x1860] sm:$0xff]  ;;  %6794 = vmatpush1.bf16.msra.mxu0 %v9574_v24 }
  0xf1   : > { %v1181_v20 = vld [vmem:[%s10190_s6 + $0x1c40] sm:$0xff]  ;;  %v9567_v27 = vcombine.high %v1053_v18, %v1057_v19  ;;  %6834 = vmatprep.subr.bf16.mxu1 %v9703_v17  ;;  %v9566_v36 = vcombine.low %v1053_v18, %v1057_v19 }
  0xf2   : > { %v1185_v21 = vld [vmem:[%s10190_s6 + $0x1c60] sm:$0xff]  ;;  %6835 = vmatpush1.bf16.msra.mxu1 %v9702_v25 }
  0xf3   : > { %v9695_v28 = vcombine.high %v1181_v20, %v1185_v21  ;;  %v1045_v29 = vld [vmem:[%s10190_s6 + $0x1800] sm:$0xff]  ;;  %6795 = vmatprep.subr.bf16.mxu0 %v9567_v27  ;;  %v9694_v37 = vcombine.low %v1181_v20, %v1185_v21 }
  0xf4   : > { %v1049_v30 = vld [vmem:[%s10190_s6 + $0x1820] sm:$0xff]  ;;  %6796 = vmatpush1.bf16.msra.mxu0 %v9566_v36 }
  0xf5   : > { %v1173_v32 = vld [vmem:[%s10190_s6 + $0x1c00] sm:$0xff]  ;;  %v9559_v38 = vcombine.high %v1045_v29, %v1049_v30  ;;  %6836 = vmatprep.subr.bf16.mxu1 %v9695_v28  ;;  %v9558_v47 = vcombine.low %v1045_v29, %v1049_v30 }
  0xf6   : > { %v1177_v34 = vld [vmem:[%s10190_s6 + $0x1c20] sm:$0xff]  ;;  %6837 = vmatpush1.bf16.msra.mxu1 %v9694_v37 }
  0xf7   : > { %v9687_v39 = vcombine.high %v1173_v32, %v1177_v34  ;;  %v1165_v41 = vld [vmem:[%s10190_s6 + $0x1bc0] sm:$0xff]  ;;  %6797 = vmatprep.subr.bf16.mxu0 %v9559_v38  ;;  %v9686_v49 = vcombine.low %v1173_v32, %v1177_v34 }
  0xf8   : > { %v1169_v42 = vld [vmem:[%s10190_s6 + $0x1be0] sm:$0xff]  ;;  %6798 = vmatpush1.bf16.msra.mxu0 %v9558_v47 }
  0xf9   : > { %v1293_v43 = vld [vmem:[%s10190_s6 + $0x1fc0] sm:$0xff]  ;;  %v9679_v50 = vcombine.high %v1165_v41, %v1169_v42  ;;  %6838 = vmatprep.subr.bf16.mxu1 %v9687_v39  ;;  %v9678_v58 = vcombine.low %v1165_v41, %v1169_v42 }
  0xfa   : > { %v1297_v46 = vld [vmem:[%s10190_s6 + $0x1fe0] sm:$0xff]  ;;  %6839 = vmatpush1.bf16.msra.mxu1 %v9686_v49 }
  0xfb   : > { %v9807_v51 = vcombine.high %v1293_v43, %v1297_v46  ;;  %v1157_v52 = vld [vmem:[%s10190_s6 + $0x1b80] sm:$0xff]  ;;  %6799 = vmatprep.subr.bf16.mxu0 %v9679_v50  ;;  %v9806_v59 = vcombine.low %v1293_v43, %v1297_v46 }
  0xfc   : > { %v1161_v53 = vld [vmem:[%s10190_s6 + $0x1ba0] sm:$0xff]  ;;  %6800 = vmatpush2.bf16.msra.mxu0 %v9678_v58 }
  0xfd   : > { %v1285_v55 = vld [vmem:[%s10190_s6 + $0x1f80] sm:$0xff]  ;;  %v9671_v61 = vcombine.high %v1157_v52, %v1161_v53  ;;  %6840 = vmatprep.subr.bf16.mxu1 %v9807_v51  ;;  %v9670_v5 = vcombine.low %v1157_v52, %v1161_v53 }
  0xfe   : > { %v1289_v56 = vld [vmem:[%s10190_s6 + $0x1fa0] sm:$0xff]  ;;  %6841 = vmatpush2.bf16.msra.mxu1 %v9806_v59 }
  0xff   : > { %v9799_v62 = vcombine.high %v1285_v55, %v1289_v56  ;;  %v1149_v63 = vld [vmem:[%s10190_s6 + $0x1b40] sm:$0xff]  ;;  %6801 = vmatprep.subr.bf16.mxu0 %v9671_v61  ;;  %v9798_v6 = vcombine.low %v1285_v55, %v1289_v56 }
 0x100   : > { %v1153_v1 = vld [vmem:[%s10190_s6 + $0x1b60] sm:$0xff]  ;;  %6802 = vmatpush2.bf16.msra.mxu0 %v9670_v5  ;;  %v466_v5 = vld [vmem:[%s10190_s6 + $0x5e8] sm:$0xff] }
 0x101   : > { %v1277_v2 = vld [vmem:[%s10190_s6 + $0x1f40] sm:$0xff]  ;;  %v9663_v7 = vcombine.high %v1149_v63, %v1153_v1  ;;  %6842 = vmatprep.subr.bf16.mxu1 %v9799_v62  ;;  %v9662_v15 = vcombine.low %v1149_v63, %v1153_v1  ;;  %v334_v1 = vld [vmem:[%s10190_s6 + $0x1c8] sm:$0xff] }
 0x102   : > { %v1281_v3 = vld [vmem:[%s10190_s6 + $0x1f60] sm:$0xff]  ;;  %6843 = vmatpush2.bf16.msra.mxu1 %v9798_v6 }
 0x103   : > { %v9791_v8 = vcombine.high %v1277_v2, %v1281_v3  ;;  %v1141_v9 = vld [vmem:[%s10190_s6 + $0x1b00] sm:$0xff]  ;;  %6803 = vmatprep.subr.bf16.mxu0 %v9663_v7  ;;  %v9790_v16 = vcombine.low %v1277_v2, %v1281_v3  ;;  %v338_v2 = vld [vmem:[%s10190_s6 + $0x1e8] sm:$0xff]  ;;  %v10558_v7 = vrot.slane %v10465_v11, %v10222_v54 }
 0x104   : > { %v1145_v26 = vld [vmem:[%s10190_s6 + $0x1b20] sm:$0xff]  ;;  %6804 = vmatpush2.bf16.msra.mxu0 %v9662_v15  ;;  %v462_v3 = vld [vmem:[%s10190_s6 + $0x5c8] sm:$0xff]  ;;  %v8848_v54 = vcombine.low %v334_v1, %v338_v2 }
 0x105   : > { %v1269_v60 = vld [vmem:[%s10190_s6 + $0x1f00] sm:$0xff]  ;;  %v9655_v17 = vcombine.high %v1141_v9, %v1145_v26  ;;  %6844 = vmatprep.subr.bf16.mxu1 %v9791_v8  ;;  %v9654_v25 = vcombine.low %v1141_v9, %v1145_v26  ;;  %v8849_v9 = vcombine.high %v334_v1, %v338_v2  ;;  %v8977_v26 = vcombine.high %v462_v3, %v466_v5  ;;  %v454_v15 = vld [vmem:[%s10190_s6 + $0x588] sm:$0xff] }
 0x106   : > { %v1273_v13 = vld [vmem:[%s10190_s6 + $0x1f20] sm:$0xff]  ;;  %6845 = vmatpush2.bf16.msra.mxu1 %v9790_v16  ;;  %v458_v16 = vld [vmem:[%s10190_s6 + $0x5a8] sm:$0xff]  ;;  %v8976_v11 = vcombine.low %v462_v3, %v466_v5 }
 0x107   : > { %v9783_v18 = vcombine.high %v1269_v60, %v1273_v13  ;;  %v1133_v19 = vld [vmem:[%s10190_s6 + $0x1ac0] sm:$0xff]  ;;  %6805 = vmatprep.subr.bf16.mxu0 %v9655_v17  ;;  %v9782_v27 = vcombine.low %v1269_v60, %v1273_v13  ;;  %v326_v60 = vld [vmem:[%s10190_s6 + $0x188] sm:$0xff]  ;;  %v10566_v17 = vcombine.high %v10558_v7, %v10558_v7 }
 0x108   : > { %v1137_v20 = vld [vmem:[%s10190_s6 + $0x1ae0] sm:$0xff]  ;;  %6806 = vmatpush2.bf16.msra.mxu0 %v9654_v25  ;;  %v330_v13 = vld [vmem:[%s10190_s6 + $0x1a8] sm:$0xff] }
 0x109   : > { %v1261_v21 = vld [vmem:[%s10190_s6 + $0x1ec0] sm:$0xff]  ;;  %v9647_v28 = vcombine.high %v1133_v19, %v1137_v20  ;;  %6846 = vmatprep.subr.bf16.mxu1 %v9783_v18  ;;  %v9646_v37 = vcombine.low %v1133_v19, %v1137_v20  ;;  %v8841_v18 = vcombine.high %v326_v60, %v330_v13  ;;  %v8969_v19 = vcombine.high %v454_v15, %v458_v16  ;;  %v318_v20 = vld [vmem:[%s10190_s6 + $0x148] sm:$0xff] }
 0x10a   : > { %v1265_v24 = vld [vmem:[%s10190_s6 + $0x1ee0] sm:$0xff]  ;;  %6847 = vmatpush2.bf16.msra.mxu1 %v9782_v27  ;;  %v446_v25 = vld [vmem:[%s10190_s6 + $0x548] sm:$0xff] }
 0x10b   : > { %v9775_v29 = vcombine.high %v1261_v21, %v1265_v24  ;;  %v1125_v30 = vld [vmem:[%s10190_s6 + $0x1a80] sm:$0xff]  ;;  %6807 = vmatprep.subr.bf16.mxu0 %v9647_v28  ;;  %v9774_v38 = vcombine.low %v1261_v21, %v1265_v24  ;;  %v322_v21 = vld [vmem:[%s10190_s6 + $0x168] sm:$0xff] }
 0x10c   : > { %v1129_v32 = vld [vmem:[%s10190_s6 + $0x1aa0] sm:$0xff]  ;;  %6808 = vmatpush2.bf16.msra.mxu0 %v9646_v37  ;;  %v450_v27 = vld [vmem:[%s10190_s6 + $0x568] sm:$0xff] }
 0x10d   : > { %v1253_v34 = vld [vmem:[%s10190_s6 + $0x1e80] sm:$0xff]  ;;  %v9639_v39 = vcombine.high %v1125_v30, %v1129_v32  ;;  %6848 = vmatprep.subr.bf16.mxu1 %v9775_v29  ;;  %v9638_v49 = vcombine.low %v1125_v30, %v1129_v32  ;;  %v8840_v29 = vcombine.low %v326_v60, %v330_v13  ;;  %v294_v5 = vld [vmem:[%s10190_s6 + $0x88] sm:$0xff] }
 0x10e   : > { %v1257_v36 = vld [vmem:[%s10190_s6 + $0x1ea0] sm:$0xff]  ;;  %6849 = vmatpush2.bf16.msra.mxu1 %v9774_v38  ;;  %v8961_v38 = vcombine.high %v446_v25, %v450_v27 }
 0x10f   : > { %v9767_v41 = vcombine.high %v1253_v34, %v1257_v36  ;;  %v1117_v42 = vld [vmem:[%s10190_s6 + $0x1a40] sm:$0xff]  ;;  %6809 = vmatprep.subr.bf16.mxu0 %v9639_v39  ;;  %v9766_v50 = vcombine.low %v1253_v34, %v1257_v36  ;;  %v8968_v34 = vcombine.low %v454_v15, %v458_v16  ;;  %v8833_v36 = vcombine.high %v318_v20, %v322_v21  ;;  %v310_v39 = vld [vmem:[%s10190_s6 + $0x108] sm:$0xff] }
 0x110   : > { %v1121_v43 = vld [vmem:[%s10190_s6 + $0x1a60] sm:$0xff]  ;;  %6810 = vmatpush2.bf16.msra.mxu0 %v9638_v49  ;;  %v286_v16 = vld [vmem:[%s10190_s6 + $0x48] sm:$0xff] }
 0x111   : > { %v1245_v46 = vld [vmem:[%s10190_s6 + $0x1e40] sm:$0xff]  ;;  %v9631_v51 = vcombine.high %v1117_v42, %v1121_v43  ;;  %6850 = vmatprep.subr.bf16.mxu1 %v9767_v41  ;;  %v9630_v59 = vcombine.low %v1117_v42, %v1121_v43  ;;  %v314_v41 = vld [vmem:[%s10190_s6 + $0x128] sm:$0xff] }
 0x112   : > { %v1249_v47 = vld [vmem:[%s10190_s6 + $0x1e60] sm:$0xff]  ;;  %6851 = vmatpush2.bf16.msra.mxu1 %v9766_v50  ;;  %v8832_v50 = vcombine.low %v318_v20, %v322_v21 }
 0x113   : > { %v9759_v52 = vcombine.high %v1245_v46, %v1249_v47  ;;  %v1109_v53 = vld [vmem:[%s10190_s6 + $0x1a00] sm:$0xff]  ;;  %6811 = vmatprep.subr.bf16.mxu0 %v9631_v51  ;;  %v9758_v61 = vcombine.low %v1245_v46, %v1249_v47  ;;  %v438_v46 = vld [vmem:[%s10190_s6 + $0x508] sm:$0xff] }
 0x114   : > { %v1113_v55 = vld [vmem:[%s10190_s6 + $0x1a20] sm:$0xff]  ;;  %6812 = vmatpush2.bf16.msra.mxu0 %v9630_v59  ;;  %v442_v47 = vld [vmem:[%s10190_s6 + $0x528] sm:$0xff] }
 0x115   : > { %v1237_v56 = vld [vmem:[%s10190_s6 + $0x1e00] sm:$0xff]  ;;  %v9623_v62 = vcombine.high %v1109_v53, %v1113_v55  ;;  %6852 = vmatprep.subr.bf16.mxu1 %v9759_v52  ;;  %v9622_v6 = vcombine.low %v1109_v53, %v1113_v55  ;;  %v8960_v52 = vcombine.low %v446_v25, %v450_v27  ;;  %v8825_v53 = vcombine.high %v310_v39, %v314_v41  ;;  %v306_v59 = vld [vmem:[%s10190_s6 + $0xe8] sm:$0xff] }
 0x116   : > { %v1241_v58 = vld [vmem:[%s10190_s6 + $0x1e20] sm:$0xff]  ;;  %6853 = vmatpush2.bf16.msra.mxu1 %v9758_v61  ;;  %v430_v61 = vld [vmem:[%s10190_s6 + $0x4c8] sm:$0xff]  ;;  %v8952_v1 = vcombine.low %v438_v46, %v442_v47 }
 0x117   : > { %v9751_v63 = vcombine.high %v1237_v56, %v1241_v58  ;;  %6813 = vmatprep.subr.bf16.mxu0 %v9623_v62  ;;  %v9750_v8 = vcombine.low %v1237_v56, %v1241_v58  ;;  %v8953_v56 = vcombine.high %v438_v46, %v442_v47  ;;  %v302_v58 = vld [vmem:[%s10190_s6 + $0xc8] sm:$0xff] }
 0x118   : > { %6814 = vmatpush2.bf16.msra.mxu0 %v9622_v6  ;;  %v434_v62 = vld [vmem:[%s10190_s6 + $0x4e8] sm:$0xff]  ;;  %v8817_v2 = vcombine.high %v302_v58, %v306_v59 }
 0x119   : > { %6854 = vmatprep.subr.bf16.mxu1 %v9751_v63  ;;  %6865 = vmatprep.subr.bf16.mxu0 %v8849_v9  ;;  %v8824_v63 = vcombine.low %v310_v39, %v314_v41  ;;  %v8945_v3 = vcombine.high %v430_v61, %v434_v62  ;;  %v298_v6 = vld [vmem:[%s10190_s6 + $0xa8] sm:$0xff]  ;;  %v8944_v60 = vcombine.low %v430_v61, %v434_v62 }
 0x11a   : > { %6855 = vmatpush2.bf16.msra.mxu1 %v9750_v8  ;;  %v422_v8 = vld [vmem:[%s10190_s6 + $0x488] sm:$0xff]  ;;  %v8809_v13 = vcombine.high %v294_v5, %v298_v6 }
 0x11b   : > { %6906 = vmatprep.subr.bf16.mxu1 %v8977_v26  ;;  %v6571_v24 = vpop.f32.mrf.mxu0  ;;  %6816 = vmatmul.mubr.bf16.vlgmr.msra.gmra.mxu0 %v10558_v7  ;;  %v426_v9 = vld [vmem:[%s10190_s6 + $0x4a8] sm:$0xff]  ;;  %v8816_v26 = vcombine.low %v302_v58, %v306_v59 }
 0x11c   : > { %6866 = vmatpush1.bf16.msra.mxu0 %v8848_v54  ;;  %6897 = vmatprep.mubr.bf16.mxu0 %v10242_v10  ;;  %v8937_v15 = vcombine.high %v422_v8, %v426_v9  ;;  %v290_v54 = vld [vmem:[%s10190_s6 + $0x68] sm:$0xff]  ;;  %v8936_v20 = vcombine.low %v422_v8, %v426_v9 }
 0x11d   : > { %v6612_v28 = vpop.f32.mrf.mxu1  ;;  %6857 = vmatmul.mubr.bf16.vlgmr.msra.gmra.mxu1 %v10566_v17  ;;  %v6573_v32 = vpop.f32.mrf.mxu0  ;;  %6867 = vmatprep.subr.bf16.mxu0 %v8841_v18  ;;  %v418_v18 = vld [vmem:[%s10190_s6 + $0x468] sm:$0xff]  ;;  %v8801_v21 = vcombine.high %v286_v16, %v290_v54 }
 0x11e   : > { %v10574_v30 = vadd.f32 %v6612_v28, %v6571_v24  ;;  %6907 = vmatpush1.bf16.msra.mxu1 %v8976_v11  ;;  %6938 = vmatprep.mubr.bf16.mxu1 %v10249_v14  ;;  %v414_v11 = vld [vmem:[%s10190_s6 + $0x448] sm:$0xff] }
 0x11f   : > { %v6614_v37 = vpop.f32.mrf.mxu1  ;;  %6908 = vmatprep.subr.bf16.mxu1 %v8969_v19  ;;  %v6575_v43 = vpop.f32.mrf.mxu0  ;;  %v8808_v19 = vcombine.low %v294_v5, %v298_v6  ;;  %v8929_v24 = vcombine.high %v414_v11, %v418_v18  ;;  %v278_v25 = vld [vmem:[%s10190_s6 + $0x8] sm:$0xff] }
 0x120   : > { %v10579_v42 = vadd.f32 %v6614_v37, %v6573_v32  ;;  %6868 = vmatpush1.bf16.msra.mxu0 %v8840_v29  ;;  %v282_v27 = vld [vmem:[%s10190_s6 + $0x28] sm:$0xff]  ;;  %v8800_v32 = vcombine.low %v286_v16, %v290_v54 }
 0x121   : > { %v6616_v49 = vpop.f32.mrf.mxu1  ;;  %v6576_v51 = vpop.f32.mrf.mxu0  ;;  %6869 = vmatprep.subr.bf16.mxu0 %v8833_v36  ;;  %v406_v28 = vld [vmem:[%s10190_s6 + $0x408] sm:$0xff]  ;;  %v8793_v36 = vcombine.high %v278_v25, %v282_v27  ;;  %v8792_v46 = vcombine.low %v278_v25, %v282_v27 }
 0x122   : > { %6909 = vmatpush1.bf16.msra.mxu1 %v8968_v34  ;;  %v410_v29 = vld [vmem:[%s10190_s6 + $0x428] sm:$0xff]  ;;  %v8928_v34 = vcombine.low %v414_v11, %v418_v18 }
 0x123   : > { %v6617_v55 = vpop.f32.mrf.mxu1  ;;  %6910 = vmatprep.subr.bf16.mxu1 %v8961_v38  ;;  %v8921_v37 = vcombine.high %v406_v28, %v410_v29  ;;  %v398_v38 = vld [vmem:[%s10190_s6 + $0x3c8] sm:$0xff]  ;;  %v8920_v47 = vcombine.low %v406_v28, %v410_v29 }
 0x124   : > { %6870 = vmatpush1.bf16.msra.mxu0 %v8832_v50  ;;  %v402_v39 = vld [vmem:[%s10190_s6 + $0x3e8] sm:$0xff] }
 0x125   : > { %6871 = vmatprep.subr.bf16.mxu0 %v8825_v53  ;;  %v526_v41 = vld [vmem:[%s10190_s6 + $0x7c8] sm:$0xff]  ;;  %v8913_v49 = vcombine.high %v398_v38, %v402_v39 }
 0x126   : > { %6911 = vmatpush1.bf16.msra.mxu1 %v8960_v52  ;;  %v530_v43 = vld [vmem:[%s10190_s6 + $0x7e8] sm:$0xff] }
 0x127   : > { %6912 = vmatprep.subr.bf16.mxu1 %v8953_v56  ;;  %v9041_v50 = vcombine.high %v526_v41, %v530_v43  ;;  %v390_v51 = vld [vmem:[%s10190_s6 + $0x388] sm:$0xff]  ;;  %v8912_v56 = vcombine.low %v398_v38, %v402_v39  ;;  %v9040_v58 = vcombine.low %v526_v41, %v530_v43 }
 0x128   : > { %6872 = vmatpush1.bf16.msra.mxu0 %v8824_v63  ;;  %v394_v52 = vld [vmem:[%s10190_s6 + $0x3a8] sm:$0xff] }
 0x129   : > { %6873 = vmatprep.subr.bf16.mxu0 %v8817_v2  ;;  %v518_v53 = vld [vmem:[%s10190_s6 + $0x788] sm:$0xff]  ;;  %v8905_v59 = vcombine.high %v390_v51, %v394_v52 }
 0x12a   : > { %6913 = vmatpush1.bf16.msra.mxu1 %v8952_v1  ;;  %v522_v55 = vld [vmem:[%s10190_s6 + $0x7a8] sm:$0xff] }
 0x12b   : > { %6914 = vmatprep.subr.bf16.mxu1 %v8945_v3  ;;  %v9033_v61 = vcombine.high %v518_v53, %v522_v55  ;;  %v382_v62 = vld [vmem:[%s10190_s6 + $0x348] sm:$0xff]  ;;  %v8904_v3 = vcombine.low %v390_v51, %v394_v52  ;;  %v9032_v5 = vcombine.low %v518_v53, %v522_v55 }
 0x12c   : > { %6874 = vmatpush1.bf16.msra.mxu0 %v8816_v26  ;;  %v386_v63 = vld [vmem:[%s10190_s6 + $0x368] sm:$0xff] }
 0x12d   : > { %6875 = vmatprep.subr.bf16.mxu0 %v8809_v13  ;;  %v510_v1 = vld [vmem:[%s10190_s6 + $0x748] sm:$0xff]  ;;  %v8897_v6 = vcombine.high %v382_v62, %v386_v63 }
 0x12e   : > { %6915 = vmatpush1.bf16.msra.mxu1 %v8944_v60  ;;  %v514_v2 = vld [vmem:[%s10190_s6 + $0x768] sm:$0xff] }
 0x12f   : > { %6916 = vmatprep.subr.bf16.mxu1 %v8937_v15  ;;  %v9025_v8 = vcombine.high %v510_v1, %v514_v2  ;;  %v374_v9 = vld [vmem:[%s10190_s6 + $0x308] sm:$0xff]  ;;  %v8896_v15 = vcombine.low %v382_v62, %v386_v63  ;;  %v9024_v16 = vcombine.low %v510_v1, %v514_v2 }
 0x130   : > { %6876 = vmatpush1.bf16.msra.mxu0 %v8808_v19  ;;  %v378_v26 = vld [vmem:[%s10190_s6 + $0x328] sm:$0xff] }
 0x131   : > { %6877 = vmatprep.subr.bf16.mxu0 %v8801_v21  ;;  %v502_v60 = vld [vmem:[%s10190_s6 + $0x708] sm:$0xff]  ;;  %v8889_v54 = vcombine.high %v374_v9, %v378_v26 }
 0x132   : > { %6917 = vmatpush1.bf16.msra.mxu1 %v8936_v20  ;;  %v506_v13 = vld [vmem:[%s10190_s6 + $0x728] sm:$0xff] }
 0x133   : > { %6918 = vmatprep.subr.bf16.mxu1 %v8929_v24  ;;  %v9017_v11 = vcombine.high %v502_v60, %v506_v13  ;;  %v366_v18 = vld [vmem:[%s10190_s6 + $0x2c8] sm:$0xff]  ;;  %v8888_v24 = vcombine.low %v374_v9, %v378_v26  ;;  %v9016_v25 = vcombine.low %v502_v60, %v506_v13 }
 0x134   : > { %6878 = vmatpush1.bf16.msra.mxu0 %v8800_v32  ;;  %v370_v19 = vld [vmem:[%s10190_s6 + $0x2e8] sm:$0xff] }
 0x135   : > { %6879 = vmatprep.subr.bf16.mxu0 %v8793_v36  ;;  %v494_v20 = vld [vmem:[%s10190_s6 + $0x6c8] sm:$0xff]  ;;  %v8881_v27 = vcombine.high %v366_v18, %v370_v19 }
 0x136   : > { %6919 = vmatpush1.bf16.msra.mxu1 %v8928_v34  ;;  %v498_v21 = vld [vmem:[%s10190_s6 + $0x6e8] sm:$0xff] }
 0x137   : > { %6920 = vmatprep.subr.bf16.mxu1 %v8921_v37  ;;  %v9009_v28 = vcombine.high %v494_v20, %v498_v21  ;;  %v358_v29 = vld [vmem:[%s10190_s6 + $0x288] sm:$0xff]  ;;  %v8880_v37 = vcombine.low %v366_v18, %v370_v19  ;;  %v9008_v38 = vcombine.low %v494_v20, %v498_v21 }
 0x138   : > { %6880 = vmatpush1.bf16.msra.mxu0 %v8792_v46  ;;  %v362_v32 = vld [vmem:[%s10190_s6 + $0x2a8] sm:$0xff] }
 0x139   : > { %6881 = vmatprep.subr.bf16.mxu0 %v8913_v49  ;;  %v486_v34 = vld [vmem:[%s10190_s6 + $0x688] sm:$0xff]  ;;  %v8873_v39 = vcombine.high %v358_v29, %v362_v32 }
 0x13a   : > { %6921 = vmatpush1.bf16.msra.mxu1 %v8920_v47  ;;  %v490_v36 = vld [vmem:[%s10190_s6 + $0x6a8] sm:$0xff] }
 0x13b   : > { %6922 = vmatprep.subr.bf16.mxu1 %v9041_v50  ;;  %v9001_v41 = vcombine.high %v486_v34, %v490_v36  ;;  %v350_v43 = vld [vmem:[%s10190_s6 + $0x248] sm:$0xff]  ;;  %v8872_v50 = vcombine.low %v358_v29, %v362_v32  ;;  %v9000_v51 = vcombine.low %v486_v34, %v490_v36 }
 0x13c   : > { %6882 = vmatpush2.bf16.msra.mxu0 %v8912_v56  ;;  %v354_v46 = vld [vmem:[%s10190_s6 + $0x268] sm:$0xff] }
 0x13d   : > { %6883 = vmatprep.subr.bf16.mxu0 %v8905_v59  ;;  %v478_v47 = vld [vmem:[%s10190_s6 + $0x648] sm:$0xff]  ;;  %v8865_v52 = vcombine.high %v350_v43, %v354_v46 }
 0x13e   : > { %6923 = vmatpush2.bf16.msra.mxu1 %v9040_v58  ;;  %v482_v49 = vld [vmem:[%s10190_s6 + $0x668] sm:$0xff] }
 0x13f   : > { %6924 = vmatprep.subr.bf16.mxu1 %v9033_v61  ;;  %v8993_v53 = vcombine.high %v478_v47, %v482_v49  ;;  %v342_v55 = vld [vmem:[%s10190_s6 + $0x208] sm:$0xff]  ;;  %v8864_v61 = vcombine.low %v350_v43, %v354_v46  ;;  %v8992_v62 = vcombine.low %v478_v47, %v482_v49 }
 0x140   : > { %6884 = vmatpush2.bf16.msra.mxu0 %v8904_v3  ;;  %v346_v56 = vld [vmem:[%s10190_s6 + $0x228] sm:$0xff] }
 0x141   : > { %6885 = vmatprep.subr.bf16.mxu0 %v8897_v6  ;;  %v470_v58 = vld [vmem:[%s10190_s6 + $0x608] sm:$0xff]  ;;  %v8857_v63 = vcombine.high %v342_v55, %v346_v56 }
 0x142   : > { %6925 = vmatpush2.bf16.msra.mxu1 %v9032_v5  ;;  %v474_v59 = vld [vmem:[%s10190_s6 + $0x628] sm:$0xff] }
 0x143   : > { %6926 = vmatprep.subr.bf16.mxu1 %v9025_v8  ;;  %v8985_v1 = vcombine.high %v470_v58, %v474_v59  ;;  %v590_v2 = vld [vmem:[%s10190_s6 + $0x9c8] sm:$0xff]  ;;  %v8856_v8 = vcombine.low %v342_v55, %v346_v56  ;;  %v8984_v9 = vcombine.low %v470_v58, %v474_v59 }
 0x144   : > { %6886 = vmatpush2.bf16.msra.mxu0 %v8896_v15  ;;  %v594_v3 = vld [vmem:[%s10190_s6 + $0x9e8] sm:$0xff] }
 0x145   : > { %6887 = vmatprep.subr.bf16.mxu0 %v8889_v54  ;;  %v718_v5 = vld [vmem:[%s10190_s6 + $0xdc8] sm:$0xff]  ;;  %v9105_v26 = vcombine.high %v590_v2, %v594_v3 }
 0x146   : > { %6927 = vmatpush2.bf16.msra.mxu1 %v9024_v16  ;;  %v722_v6 = vld [vmem:[%s10190_s6 + $0xde8] sm:$0xff] }
 0x147   : > { %6928 = vmatprep.subr.bf16.mxu1 %v9017_v11  ;;  %v9233_v60 = vcombine.high %v718_v5, %v722_v6  ;;  %v582_v13 = vld [vmem:[%s10190_s6 + $0x988] sm:$0xff]  ;;  %v9104_v11 = vcombine.low %v590_v2, %v594_v3  ;;  %v9232_v18 = vcombine.low %v718_v5, %v722_v6 }
 0x148   : > { %6888 = vmatpush2.bf16.msra.mxu0 %v8888_v24  ;;  %v586_v15 = vld [vmem:[%s10190_s6 + $0x9a8] sm:$0xff] }
 0x149   : > { %6889 = vmatprep.subr.bf16.mxu0 %v8881_v27  ;;  %v710_v16 = vld [vmem:[%s10190_s6 + $0xd88] sm:$0xff]  ;;  %v9097_v19 = vcombine.high %v582_v13, %v586_v15  ;;  %v9096_v34 = vcombine.low %v582_v13, %v586_v15 }
 0x14a   : > { %6929 = vmatpush2.bf16.msra.mxu1 %v9016_v25  ;;  %v714_v54 = vld [vmem:[%s10190_s6 + $0xda8] sm:$0xff] }
 0x14b   : > { %6930 = vmatprep.subr.bf16.mxu1 %v9009_v28  ;;  %v9225_v20 = vcombine.high %v710_v16, %v714_v54  ;;  %v574_v21 = vld [vmem:[%s10190_s6 + $0x948] sm:$0xff] }
 0x14c   : > { %6890 = vmatpush2.bf16.msra.mxu0 %v8880_v37  ;;  %v578_v24 = vld [vmem:[%s10190_s6 + $0x968] sm:$0xff]  ;;  %v9224_v37 = vcombine.low %v710_v16, %v714_v54 }
 0x14d   : > { %6891 = vmatprep.subr.bf16.mxu0 %v8873_v39  ;;  %v702_v27 = vld [vmem:[%s10190_s6 + $0xd48] sm:$0xff] }
 0x14e   : > { %6931 = vmatpush2.bf16.msra.mxu1 %v9008_v38  ;;  %v706_v28 = vld [vmem:[%s10190_s6 + $0xd68] sm:$0xff]  ;;  %v9089_v38 = vcombine.high %v574_v21, %v578_v24 }
 0x14f   : > { %6932 = vmatprep.subr.bf16.mxu1 %v9001_v41  ;;  %v566_v46 = vld [vmem:[%s10190_s6 + $0x908] sm:$0xff]  ;;  %v9216_v56 = vcombine.low %v702_v27, %v706_v28 }
 0x150   : > { %6892 = vmatpush2.bf16.msra.mxu0 %v8872_v50  ;;  %v570_v47 = vld [vmem:[%s10190_s6 + $0x928] sm:$0xff] }
 0x151   : > { %6893 = vmatprep.subr.bf16.mxu0 %v8865_v52  ;;  %v694_v50 = vld [vmem:[%s10190_s6 + $0xd08] sm:$0xff]  ;;  %v9081_v58 = vcombine.high %v566_v46, %v570_v47  ;;  %v9080_v3 = vcombine.low %v566_v46, %v570_v47 }
 0x152   : > { %6933 = vmatpush2.bf16.msra.mxu1 %v9000_v51  ;;  %v698_v51 = vld [vmem:[%s10190_s6 + $0xd28] sm:$0xff] }
 0x153   : > { %6934 = vmatprep.subr.bf16.mxu1 %v8993_v53  ;;  %v690_v2 = vld [vmem:[%s10190_s6 + $0xce8] sm:$0xff]  ;;  %v9208_v5 = vcombine.low %v694_v50, %v698_v51 }
 0x154   : > { %6894 = vmatpush2.bf16.msra.mxu0 %v8864_v61  ;;  %v9209_v61 = vcombine.high %v694_v50, %v698_v51  ;;  %v682_v13 = vld [vmem:[%s10190_s6 + $0xca8] sm:$0xff] }
 0x155   : > { %6895 = vmatprep.subr.bf16.mxu0 %v8857_v63  ;;  %v562_v63 = vld [vmem:[%s10190_s6 + $0x8e8] sm:$0xff] }
 0x156   : > { %6935 = vmatpush2.bf16.msra.mxu1 %v8992_v62  ;;  %v558_v62 = vld [vmem:[%s10190_s6 + $0x8c8] sm:$0xff] }
 0x157   : > { %6936 = vmatprep.subr.bf16.mxu1 %v8985_v1  ;;  %v686_v1 = vld [vmem:[%s10190_s6 + $0xcc8] sm:$0xff]  ;;  %v9073_v6 = vcombine.high %v558_v62, %v562_v63  ;;  %v9072_v15 = vcombine.low %v558_v62, %v562_v63 }
 0x158   : > { %6896 = vmatpush2.bf16.msra.mxu0 %v8856_v8  ;;  %v9201_v8 = vcombine.high %v686_v1, %v690_v2  ;;  %v9200_v16 = vcombine.low %v686_v1, %v690_v2  ;;  %v658_v46 = vld [vmem:[%s10190_s6 + $0xbe8] sm:$0xff] }
 0x159   : > { %6947 = vmatprep.subr.bf16.mxu0 %v9105_v26  ;;  %v554_v26 = vld [vmem:[%s10190_s6 + $0x8a8] sm:$0xff] }
 0x15a   : > { %6937 = vmatpush2.bf16.msra.mxu1 %v8984_v9  ;;  %v550_v9 = vld [vmem:[%s10190_s6 + $0x888] sm:$0xff] }
 0x15b   : > { %6988 = vmatprep.subr.bf16.mxu1 %v9233_v60  ;;  %v6653_v25 = vpop.f32.mrf.mxu0  ;;  %6898 = vmatmul.mubr.bf16.vlgmr.msra.gmra.mxu0 %v10293_v23  ;;  %v678_v60 = vld [vmem:[%s10190_s6 + $0xc88] sm:$0xff]  ;;  %v9065_v54 = vcombine.high %v550_v9, %v554_v26 }
 0x15c   : > { %v6654_v29 = vadd.f32 %v6653_v25, %v10574_v30  ;;  %6948 = vmatpush1.bf16.msra.mxu0 %v9104_v11  ;;  %v9217_v30 = vcombine.high %v702_v27, %v706_v28  ;;  %6979 = vmatprep.mubr.bf16.mxu0 %v10300_v31  ;;  %v9193_v11 = vcombine.high %v678_v60, %v682_v13  ;;  %v782_v47 = vld [vmem:[%s10190_s6 + $0xfc8] sm:$0xff] }
 0x15d   : > { %v6694_v32 = vpop.f32.mrf.mxu1  ;;  %6939 = vmatmul.mubr.bf16.vlgmr.msra.gmra.mxu1 %v10304_v0  ;;  %v6655_v36 = vpop.f32.mrf.mxu0  ;;  %6949 = vmatprep.subr.bf16.mxu0 %v9097_v19  ;;  %v546_v19 = vld [vmem:[%s10190_s6 + $0x868] sm:$0xff]  ;;  %v9192_v25 = vcombine.low %v678_v60, %v682_v13 }
 0x15e   : > { %6989 = vmatpush1.bf16.msra.mxu1 %v9232_v18  ;;  %v10647_v39 = vadd.f32 %v6694_v32, %v6654_v29  ;;  %v6656_v41 = vadd.f32 %v6655_v36, %v10579_v42  ;;  %7020 = vmatprep.mubr.bf16.mxu1 %v10313_v40  ;;  %v9088_v42 = vcombine.low %v574_v21, %v578_v24  ;;  %v542_v18 = vld [vmem:[%s10190_s6 + $0x848] sm:$0xff] }
 0x15f   : > { %v6696_v43 = vpop.f32.mrf.mxu1  ;;  %6990 = vmatprep.subr.bf16.mxu1 %v9225_v20  ;;  %v6657_v49 = vpop.f32.mrf.mxu0  ;;  %v670_v20 = vld [vmem:[%s10190_s6 + $0xc48] sm:$0xff]  ;;  %v9064_v24 = vcombine.low %v550_v9, %v554_v26  ;;  %v9057_v27 = vcombine.high %v542_v18, %v546_v19 }
 0x160   : > { %v10656_v52 = vadd.f32 %v6696_v43, %v6656_v41  ;;  %6950 = vmatpush1.bf16.msra.mxu0 %v9096_v34  ;;  %v674_v21 = vld [vmem:[%s10190_s6 + $0xc68] sm:$0xff] }
 0x161   : > { %v6698_v53 = vpop.f32.mrf.mxu1  ;;  %v6658_v55 = vpop.f32.mrf.mxu0  ;;  %6951 = vmatprep.subr.bf16.mxu0 %v9089_v38  ;;  %v9185_v28 = vcombine.high %v670_v20, %v674_v21  ;;  %v534_v29 = vld [vmem:[%s10190_s6 + $0x808] sm:$0xff]  ;;  %v9184_v38 = vcombine.low %v670_v20, %v674_v21 }
 0x162   : > { %6991 = vmatpush1.bf16.msra.mxu1 %v9224_v37  ;;  %v538_v32 = vld [vmem:[%s10190_s6 + $0x828] sm:$0xff]  ;;  %v9056_v37 = vcombine.low %v542_v18, %v546_v19 }
 0x163   : > { %v6699_v59 = vpop.f32.mrf.mxu1  ;;  %6992 = vmatprep.subr.bf16.mxu1 %v9217_v30  ;;  %v662_v34 = vld [vmem:[%s10190_s6 + $0xc08] sm:$0xff]  ;;  %v9049_v41 = vcombine.high %v534_v29, %v538_v32  ;;  %v9048_v50 = vcombine.low %v534_v29, %v538_v32 }
 0x164   : > { %6952 = vmatpush1.bf16.msra.mxu0 %v9088_v42  ;;  %v666_v36 = vld [vmem:[%s10190_s6 + $0xc28] sm:$0xff] }
 0x165   : > { %6953 = vmatprep.subr.bf16.mxu0 %v9081_v58  ;;  %v9177_v43 = vcombine.high %v662_v34, %v666_v36  ;;  %v654_v30 = vld [vmem:[%s10190_s6 + $0xbc8] sm:$0xff]  ;;  %v9176_v51 = vcombine.low %v662_v34, %v666_v36 }
 0x166   : > { %6993 = vmatpush1.bf16.msra.mxu1 %v9216_v56  ;;  %v786_v49 = vld [vmem:[%s10190_s6 + $0xfe8] sm:$0xff]  ;;  %v9169_v53 = vcombine.high %v654_v30, %v658_v46 }
 0x167   : > { %6994 = vmatprep.subr.bf16.mxu1 %v9209_v61  ;;  %v9297_v42 = vcombine.high %v782_v47, %v786_v49  ;;  %v646_v55 = vld [vmem:[%s10190_s6 + $0xb88] sm:$0xff]  ;;  %v9168_v61 = vcombine.low %v654_v30, %v658_v46  ;;  %v9296_v62 = vcombine.low %v782_v47, %v786_v49 }
 0x168   : > { %6954 = vmatpush1.bf16.msra.mxu0 %v9080_v3  ;;  %v650_v56 = vld [vmem:[%s10190_s6 + $0xba8] sm:$0xff] }
 0x169   : > { %6955 = vmatprep.subr.bf16.mxu0 %v9073_v6  ;;  %v774_v58 = vld [vmem:[%s10190_s6 + $0xf88] sm:$0xff]  ;;  %v9161_v63 = vcombine.high %v646_v55, %v650_v56 }
 0x16a   : > { %6995 = vmatpush1.bf16.msra.mxu1 %v9208_v5  ;;  %v778_v59 = vld [vmem:[%s10190_s6 + $0xfa8] sm:$0xff] }
 0x16b   : > { %6996 = vmatprep.subr.bf16.mxu1 %v9201_v8  ;;  %v9289_v1 = vcombine.high %v774_v58, %v778_v59  ;;  %v638_v2 = vld [vmem:[%s10190_s6 + $0xb48] sm:$0xff]  ;;  %v9160_v8 = vcombine.low %v646_v55, %v650_v56  ;;  %v9288_v9 = vcombine.low %v774_v58, %v778_v59 }
 0x16c   : > { %6956 = vmatpush1.bf16.msra.mxu0 %v9072_v15  ;;  %v642_v3 = vld [vmem:[%s10190_s6 + $0xb68] sm:$0xff] }
 0x16d   : > { %6957 = vmatprep.subr.bf16.mxu0 %v9065_v54  ;;  %v766_v5 = vld [vmem:[%s10190_s6 + $0xf48] sm:$0xff]  ;;  %v9153_v26 = vcombine.high %v638_v2, %v642_v3 }
 0x16e   : > { %6997 = vmatpush1.bf16.msra.mxu1 %v9200_v16  ;;  %v770_v6 = vld [vmem:[%s10190_s6 + $0xf68] sm:$0xff] }
 0x16f   : > { %6998 = vmatprep.subr.bf16.mxu1 %v9193_v11  ;;  %v9281_v60 = vcombine.high %v766_v5, %v770_v6  ;;  %v630_v13 = vld [vmem:[%s10190_s6 + $0xb08] sm:$0xff]  ;;  %v9152_v11 = vcombine.low %v638_v2, %v642_v3  ;;  %v9280_v18 = vcombine.low %v766_v5, %v770_v6 }
 0x170   : > { %6958 = vmatpush1.bf16.msra.mxu0 %v9064_v24  ;;  %v634_v15 = vld [vmem:[%s10190_s6 + $0xb28] sm:$0xff] }
 0x171   : > { %6959 = vmatprep.subr.bf16.mxu0 %v9057_v27  ;;  %v758_v16 = vld [vmem:[%s10190_s6 + $0xf08] sm:$0xff]  ;;  %v9145_v19 = vcombine.high %v630_v13, %v634_v15 }
 0x172   : > { %6999 = vmatpush1.bf16.msra.mxu1 %v9192_v25  ;;  %v762_v54 = vld [vmem:[%s10190_s6 + $0xf28] sm:$0xff] }
 0x173   : > { %7000 = vmatprep.subr.bf16.mxu1 %v9185_v28  ;;  %v9273_v20 = vcombine.high %v758_v16, %v762_v54  ;;  %v622_v21 = vld [vmem:[%s10190_s6 + $0xac8] sm:$0xff]  ;;  %v9144_v28 = vcombine.low %v630_v13, %v634_v15  ;;  %v9272_v29 = vcombine.low %v758_v16, %v762_v54 }
 0x174   : > { %6960 = vmatpush1.bf16.msra.mxu0 %v9056_v37  ;;  %v626_v24 = vld [vmem:[%s10190_s6 + $0xae8] sm:$0xff] }
 0x175   : > { %6961 = vmatprep.subr.bf16.mxu0 %v9049_v41  ;;  %v750_v25 = vld [vmem:[%s10190_s6 + $0xec8] sm:$0xff]  ;;  %v9137_v32 = vcombine.high %v622_v21, %v626_v24 }
 0x176   : > { %7001 = vmatpush1.bf16.msra.mxu1 %v9184_v38  ;;  %v754_v27 = vld [vmem:[%s10190_s6 + $0xee8] sm:$0xff] }
 0x177   : > { %7002 = vmatprep.subr.bf16.mxu1 %v9177_v43  ;;  %v9265_v34 = vcombine.high %v750_v25, %v754_v27  ;;  %v614_v36 = vld [vmem:[%s10190_s6 + $0xa88] sm:$0xff]  ;;  %v9136_v43 = vcombine.low %v622_v21, %v626_v24  ;;  %v9264_v30 = vcombine.low %v750_v25, %v754_v27 }
 0x178   : > { %6962 = vmatpush1.bf16.msra.mxu0 %v9048_v50  ;;  %v618_v37 = vld [vmem:[%s10190_s6 + $0xaa8] sm:$0xff] }
 0x179   : > { %6963 = vmatprep.subr.bf16.mxu0 %v9169_v53  ;;  %v742_v38 = vld [vmem:[%s10190_s6 + $0xe88] sm:$0xff]  ;;  %v9129_v46 = vcombine.high %v614_v36, %v618_v37 }
 0x17a   : > { %7003 = vmatpush1.bf16.msra.mxu1 %v9176_v51  ;;  %v746_v41 = vld [vmem:[%s10190_s6 + $0xea8] sm:$0xff] }
 0x17b   : > { %7004 = vmatprep.subr.bf16.mxu1 %v9297_v42  ;;  %v9257_v47 = vcombine.high %v742_v38, %v746_v41  ;;  %v606_v49 = vld [vmem:[%s10190_s6 + $0xa48] sm:$0xff]  ;;  %v9128_v42 = vcombine.low %v614_v36, %v618_v37  ;;  %v9256_v55 = vcombine.low %v742_v38, %v746_v41 }
 0x17c   : > { %6964 = vmatpush2.bf16.msra.mxu0 %v9168_v61  ;;  %v610_v50 = vld [vmem:[%s10190_s6 + $0xa68] sm:$0xff] }
 0x17d   : > { %6965 = vmatprep.subr.bf16.mxu0 %v9161_v63  ;;  %v734_v51 = vld [vmem:[%s10190_s6 + $0xe48] sm:$0xff]  ;;  %v9121_v56 = vcombine.high %v606_v49, %v610_v50 }
 0x17e   : > { %7005 = vmatpush2.bf16.msra.mxu1 %v9296_v62  ;;  %v738_v53 = vld [vmem:[%s10190_s6 + $0xe68] sm:$0xff] }
 0x17f   : > { %7006 = vmatprep.subr.bf16.mxu1 %v9289_v1  ;;  %v9249_v58 = vcombine.high %v734_v51, %v738_v53  ;;  %v598_v59 = vld [vmem:[%s10190_s6 + $0xa08] sm:$0xff]  ;;  %v9120_v1 = vcombine.low %v606_v49, %v610_v50  ;;  %v9248_v2 = vcombine.low %v734_v51, %v738_v53 }
 0x180   : > { %6966 = vmatpush2.bf16.msra.mxu0 %v9160_v8  ;;  %v602_v61 = vld [vmem:[%s10190_s6 + $0xa28] sm:$0xff] }
 0x181   : > { %6967 = vmatprep.subr.bf16.mxu0 %v9153_v26  ;;  %v726_v62 = vld [vmem:[%s10190_s6 + $0xe08] sm:$0xff]  ;;  %v9113_v3 = vcombine.high %v598_v59, %v602_v61 }
 0x182   : > { %7007 = vmatpush2.bf16.msra.mxu1 %v9288_v9  ;;  %v730_v63 = vld [vmem:[%s10190_s6 + $0xe28] sm:$0xff] }
 0x183   : > { %7008 = vmatprep.subr.bf16.mxu1 %v9281_v60  ;;  %v9241_v5 = vcombine.high %v726_v62, %v730_v63  ;;  %v846_v6 = vld [vmem:[%s10190_s6 + $0x11c8] sm:$0xff]  ;;  %v9112_v60 = vcombine.low %v598_v59, %v602_v61  ;;  %v9240_v13 = vcombine.low %v726_v62, %v730_v63 }
 0x184   : > { %6968 = vmatpush2.bf16.msra.mxu0 %v9152_v11  ;;  %v850_v8 = vld [vmem:[%s10190_s6 + $0x11e8] sm:$0xff] }
 0x185   : > { %6969 = vmatprep.subr.bf16.mxu0 %v9145_v19  ;;  %v974_v9 = vld [vmem:[%s10190_s6 + $0x15c8] sm:$0xff]  ;;  %v9361_v15 = vcombine.high %v846_v6, %v850_v8 }
 0x186   : > { %7009 = vmatpush2.bf16.msra.mxu1 %v9280_v18  ;;  %v978_v26 = vld [vmem:[%s10190_s6 + $0x15e8] sm:$0xff] }
 0x187   : > { %7010 = vmatprep.subr.bf16.mxu1 %v9273_v20  ;;  %v9489_v16 = vcombine.high %v974_v9, %v978_v26  ;;  %v838_v54 = vld [vmem:[%s10190_s6 + $0x1188] sm:$0xff]  ;;  %v9360_v20 = vcombine.low %v846_v6, %v850_v8  ;;  %v9488_v21 = vcombine.low %v974_v9, %v978_v26 }
 0x188   : > { %6970 = vmatpush2.bf16.msra.mxu0 %v9144_v28  ;;  %v842_v11 = vld [vmem:[%s10190_s6 + $0x11a8] sm:$0xff] }
 0x189   : > { %6971 = vmatprep.subr.bf16.mxu0 %v9137_v32  ;;  %v966_v18 = vld [vmem:[%s10190_s6 + $0x1588] sm:$0xff]  ;;  %v9353_v24 = vcombine.high %v838_v54, %v842_v11  ;;  %v9352_v38 = vcombine.low %v838_v54, %v842_v11 }
 0x18a   : > { %7011 = vmatpush2.bf16.msra.mxu1 %v9272_v29  ;;  %v970_v19 = vld [vmem:[%s10190_s6 + $0x15a8] sm:$0xff] }
 0x18b   : > { %7012 = vmatprep.subr.bf16.mxu1 %v9265_v34  ;;  %v9481_v25 = vcombine.high %v966_v18, %v970_v19  ;;  %v830_v27 = vld [vmem:[%s10190_s6 + $0x1148] sm:$0xff] }
 0x18c   : > { %6972 = vmatpush2.bf16.msra.mxu0 %v9136_v43  ;;  %v834_v28 = vld [vmem:[%s10190_s6 + $0x1168] sm:$0xff]  ;;  %v9480_v43 = vcombine.low %v966_v18, %v970_v19 }
 0x18d   : > { %6973 = vmatprep.subr.bf16.mxu0 %v9129_v46  ;;  %v958_v32 = vld [vmem:[%s10190_s6 + $0x1548] sm:$0xff] }
 0x18e   : > { %7013 = vmatpush2.bf16.msra.mxu1 %v9264_v30  ;;  %v962_v34 = vld [vmem:[%s10190_s6 + $0x1568] sm:$0xff]  ;;  %v9345_v30 = vcombine.high %v830_v27, %v834_v28 }
 0x18f   : > { %7014 = vmatprep.subr.bf16.mxu1 %v9257_v47  ;;  %v822_v50 = vld [vmem:[%s10190_s6 + $0x1108] sm:$0xff]  ;;  %v9472_v61 = vcombine.low %v958_v32, %v962_v34 }
 0x190   : > { %6974 = vmatpush2.bf16.msra.mxu0 %v9128_v42  ;;  %v826_v51 = vld [vmem:[%s10190_s6 + $0x1128] sm:$0xff] }
 0x191   : > { %6975 = vmatprep.subr.bf16.mxu0 %v9121_v56  ;;  %v950_v42 = vld [vmem:[%s10190_s6 + $0x1508] sm:$0xff]  ;;  %v9337_v62 = vcombine.high %v822_v50, %v826_v51  ;;  %v9336_v8 = vcombine.low %v822_v50, %v826_v51 }
 0x192   : > { %7015 = vmatpush2.bf16.msra.mxu1 %v9256_v55  ;;  %v954_v55 = vld [vmem:[%s10190_s6 + $0x1528] sm:$0xff] }
 0x193   : > { %7016 = vmatprep.subr.bf16.mxu1 %v9249_v58  ;;  %v946_v6 = vld [vmem:[%s10190_s6 + $0x14e8] sm:$0xff]  ;;  %v9464_v9 = vcombine.low %v950_v42, %v954_v55 }
 0x194   : > { %6976 = vmatpush2.bf16.msra.mxu0 %v9120_v1  ;;  %v9465_v1 = vcombine.high %v950_v42, %v954_v55  ;;  %v938_v54 = vld [vmem:[%s10190_s6 + $0x14a8] sm:$0xff] }
 0x195   : > { %6977 = vmatprep.subr.bf16.mxu0 %v9113_v3  ;;  %v818_v3 = vld [vmem:[%s10190_s6 + $0x10e8] sm:$0xff] }
 0x196   : > { %7017 = vmatpush2.bf16.msra.mxu1 %v9248_v2  ;;  %v814_v2 = vld [vmem:[%s10190_s6 + $0x10c8] sm:$0xff] }
 0x197   : > { %7018 = vmatprep.subr.bf16.mxu1 %v9241_v5  ;;  %v942_v5 = vld [vmem:[%s10190_s6 + $0x14c8] sm:$0xff]  ;;  %v9329_v26 = vcombine.high %v814_v2, %v818_v3  ;;  %v9328_v11 = vcombine.low %v814_v2, %v818_v3 }
 0x198   : > { %6978 = vmatpush2.bf16.msra.mxu0 %v9112_v60  ;;  %v9457_v60 = vcombine.high %v942_v5, %v946_v6  ;;  %v9456_v18 = vcombine.low %v942_v5, %v946_v6  ;;  %v914_v50 = vld [vmem:[%s10190_s6 + $0x13e8] sm:$0xff] }
 0x199   : > { %7029 = vmatprep.subr.bf16.mxu0 %v9361_v15  ;;  %v810_v15 = vld [vmem:[%s10190_s6 + $0x10a8] sm:$0xff] }
 0x19a   : > { %7019 = vmatpush2.bf16.msra.mxu1 %v9240_v13  ;;  %v806_v13 = vld [vmem:[%s10190_s6 + $0x1088] sm:$0xff] }
 0x19b   : > { %7070 = vmatprep.subr.bf16.mxu1 %v9489_v16  ;;  %v6735_v29 = vpop.f32.mrf.mxu0  ;;  %6980 = vmatmul.mubr.bf16.vlgmr.msra.gmra.mxu0 %v10385_v48  ;;  %v934_v16 = vld [vmem:[%s10190_s6 + $0x1488] sm:$0xff]  ;;  %v9321_v19 = vcombine.high %v806_v13, %v810_v15 }
 0x19c   : > { %v6736_v36 = vadd.f32 %v6735_v29, %v10647_v39  ;;  %7030 = vmatpush1.bf16.msra.mxu0 %v9360_v20  ;;  %v9473_v39 = vcombine.high %v958_v32, %v962_v34  ;;  %7061 = vmatprep.mubr.bf16.mxu0 %v10392_v57  ;;  %v9449_v20 = vcombine.high %v934_v16, %v938_v54  ;;  %v1038_v51 = vld [vmem:[%s10190_s6 + $0x17c8] sm:$0xff] }
 0x19d   : > { %v6776_v37 = vpop.f32.mrf.mxu1  ;;  %7021 = vmatmul.mubr.bf16.vlgmr.msra.gmra.mxu1 %v10396_v12  ;;  %v6737_v41 = vpop.f32.mrf.mxu0  ;;  %7031 = vmatprep.subr.bf16.mxu0 %v9353_v24  ;;  %v802_v24 = vld [vmem:[%s10190_s6 + $0x1068] sm:$0xff]  ;;  %v9448_v29 = vcombine.low %v934_v16, %v938_v54 }
 0x19e   : > { %7071 = vmatpush1.bf16.msra.mxu1 %v9488_v21  ;;  %v10721_v46 = vadd.f32 %v6776_v37, %v6736_v36  ;;  %v6738_v47 = vadd.f32 %v6737_v41, %v10656_v52  ;;  %7102 = vmatprep.mubr.bf16.mxu1 %v10405_v4  ;;  %v9344_v52 = vcombine.low %v830_v27, %v834_v28  ;;  %v798_v21 = vld [vmem:[%s10190_s6 + $0x1048] sm:$0xff] }
 0x19f   : > { %v6778_v49 = vpop.f32.mrf.mxu1  ;;  %7072 = vmatprep.subr.bf16.mxu1 %v9481_v25  ;;  %v6739_v53 = vpop.f32.mrf.mxu0  ;;  %v926_v25 = vld [vmem:[%s10190_s6 + $0x1448] sm:$0xff]  ;;  %v9320_v28 = vcombine.low %v806_v13, %v810_v15  ;;  %v9313_v32 = vcombine.high %v798_v21, %v802_v24 }
 0x1a0   : > { %v10730_v56 = vadd.f32 %v6778_v49, %v6738_v47  ;;  %7032 = vmatpush1.bf16.msra.mxu0 %v9352_v38  ;;  %v930_v27 = vld [vmem:[%s10190_s6 + $0x1468] sm:$0xff] }
 0x1a1   : > { %v6780_v58 = vpop.f32.mrf.mxu1  ;;  %v6740_v59 = vpop.f32.mrf.mxu0  ;;  %7033 = vmatprep.subr.bf16.mxu0 %v9345_v30  ;;  %v9441_v34 = vcombine.high %v926_v25, %v930_v27  ;;  %v790_v36 = vld [vmem:[%s10190_s6 + $0x1008] sm:$0xff]  ;;  %v9440_v30 = vcombine.low %v926_v25, %v930_v27 }
 0x1a2   : > { %7073 = vmatpush1.bf16.msra.mxu1 %v9480_v43  ;;  %v794_v37 = vld [vmem:[%s10190_s6 + $0x1028] sm:$0xff]  ;;  %v9312_v43 = vcombine.low %v798_v21, %v802_v24 }
 0x1a3   : > { %v6781_v63 = vpop.f32.mrf.mxu1  ;;  %7074 = vmatprep.subr.bf16.mxu1 %v9473_v39  ;;  %v918_v38 = vld [vmem:[%s10190_s6 + $0x1408] sm:$0xff]  ;;  %v9305_v47 = vcombine.high %v790_v36, %v794_v37  ;;  %v9304_v42 = vcombine.low %v790_v36, %v794_v37 }
 0x1a4   : > { %7034 = vmatpush1.bf16.msra.mxu0 %v9344_v52  ;;  %v922_v41 = vld [vmem:[%s10190_s6 + $0x1428] sm:$0xff] }
 0x1a5   : > { %7035 = vmatprep.subr.bf16.mxu0 %v9337_v62  ;;  %v9433_v49 = vcombine.high %v918_v38, %v922_v41  ;;  %v910_v39 = vld [vmem:[%s10190_s6 + $0x13c8] sm:$0xff]  ;;  %v9432_v55 = vcombine.low %v918_v38, %v922_v41 }
 0x1a6   : > { %7075 = vmatpush1.bf16.msra.mxu1 %v9472_v61  ;;  %v1042_v53 = vld [vmem:[%s10190_s6 + $0x17e8] sm:$0xff]  ;;  %v9425_v58 = vcombine.high %v910_v39, %v914_v50 }
 0x1a7   : > { %7076 = vmatprep.subr.bf16.mxu1 %v9465_v1  ;;  %v9553_v52 = vcombine.high %v1038_v51, %v1042_v53  ;;  %v902_v59 = vld [vmem:[%s10190_s6 + $0x1388] sm:$0xff]  ;;  %v9424_v1 = vcombine.low %v910_v39, %v914_v50  ;;  %v9552_v2 = vcombine.low %v1038_v51, %v1042_v53 }
 0x1a8   : > { %7036 = vmatpush1.bf16.msra.mxu0 %v9336_v8  ;;  %v906_v61 = vld [vmem:[%s10190_s6 + $0x13a8] sm:$0xff] }
 0x1a9   : > { %7037 = vmatprep.subr.bf16.mxu0 %v9329_v26  ;;  %v1030_v62 = vld [vmem:[%s10190_s6 + $0x1788] sm:$0xff]  ;;  %v9417_v3 = vcombine.high %v902_v59, %v906_v61 }
 0x1aa   : > { %7077 = vmatpush1.bf16.msra.mxu1 %v9464_v9  ;;  %v1034_v63 = vld [vmem:[%s10190_s6 + $0x17a8] sm:$0xff] }
 0x1ab   : > { %7078 = vmatprep.subr.bf16.mxu1 %v9457_v60  ;;  %v9545_v5 = vcombine.high %v1030_v62, %v1034_v63  ;;  %v894_v6 = vld [vmem:[%s10190_s6 + $0x1348] sm:$0xff]  ;;  %v9416_v60 = vcombine.low %v902_v59, %v906_v61  ;;  %v9544_v13 = vcombine.low %v1030_v62, %v1034_v63 }
 0x1ac   : > { %7038 = vmatpush1.bf16.msra.mxu0 %v9328_v11  ;;  %v898_v8 = vld [vmem:[%s10190_s6 + $0x1368] sm:$0xff] }
 0x1ad   : > { %7039 = vmatprep.subr.bf16.mxu0 %v9321_v19  ;;  %v1022_v9 = vld [vmem:[%s10190_s6 + $0x1748] sm:$0xff]  ;;  %v9409_v15 = vcombine.high %v894_v6, %v898_v8 }
 0x1ae   : > { %7079 = vmatpush1.bf16.msra.mxu1 %v9456_v18  ;;  %v1026_v26 = vld [vmem:[%s10190_s6 + $0x1768] sm:$0xff] }
 0x1af   : > { %7080 = vmatprep.subr.bf16.mxu1 %v9449_v20  ;;  %v9537_v16 = vcombine.high %v1022_v9, %v1026_v26  ;;  %v886_v54 = vld [vmem:[%s10190_s6 + $0x1308] sm:$0xff]  ;;  %v9408_v20 = vcombine.low %v894_v6, %v898_v8  ;;  %v9536_v21 = vcombine.low %v1022_v9, %v1026_v26 }
 0x1b0   : > { %7040 = vmatpush1.bf16.msra.mxu0 %v9320_v28  ;;  %v890_v11 = vld [vmem:[%s10190_s6 + $0x1328] sm:$0xff] }
 0x1b1   : > { %7041 = vmatprep.subr.bf16.mxu0 %v9313_v32  ;;  %v1014_v18 = vld [vmem:[%s10190_s6 + $0x1708] sm:$0xff]  ;;  %v9401_v24 = vcombine.high %v886_v54, %v890_v11 }
 0x1b2   : > { %7081 = vmatpush1.bf16.msra.mxu1 %v9448_v29  ;;  %v1018_v19 = vld [vmem:[%s10190_s6 + $0x1728] sm:$0xff] }
 0x1b3   : > { %7082 = vmatprep.subr.bf16.mxu1 %v9441_v34  ;;  %v9529_v25 = vcombine.high %v1014_v18, %v1018_v19  ;;  %v878_v27 = vld [vmem:[%s10190_s6 + $0x12c8] sm:$0xff]  ;;  %v9400_v34 = vcombine.low %v886_v54, %v890_v11  ;;  %v9528_v36 = vcombine.low %v1014_v18, %v1018_v19 }
 0x1b4   : > { %7042 = vmatpush1.bf16.msra.mxu0 %v9312_v43  ;;  %v882_v28 = vld [vmem:[%s10190_s6 + $0x12e8] sm:$0xff] }
 0x1b5   : > { %7043 = vmatprep.subr.bf16.mxu0 %v9305_v47  ;;  %v1006_v29 = vld [vmem:[%s10190_s6 + $0x16c8] sm:$0xff]  ;;  %v9393_v37 = vcombine.high %v878_v27, %v882_v28 }
 0x1b6   : > { %7083 = vmatpush1.bf16.msra.mxu1 %v9440_v30  ;;  %v1010_v32 = vld [vmem:[%s10190_s6 + $0x16e8] sm:$0xff] }
 0x1b7   : > { %7084 = vmatprep.subr.bf16.mxu1 %v9433_v49  ;;  %v9521_v38 = vcombine.high %v1006_v29, %v1010_v32  ;;  %v870_v41 = vld [vmem:[%s10190_s6 + $0x1288] sm:$0xff]  ;;  %v9392_v49 = vcombine.low %v878_v27, %v882_v28  ;;  %v9520_v39 = vcombine.low %v1006_v29, %v1010_v32 }
 0x1b8   : > { %7044 = vmatpush1.bf16.msra.mxu0 %v9304_v42  ;;  %v874_v43 = vld [vmem:[%s10190_s6 + $0x12a8] sm:$0xff] }
 0x1b9   : > { %7045 = vmatprep.subr.bf16.mxu0 %v9425_v58  ;;  %v998_v30 = vld [vmem:[%s10190_s6 + $0x1688] sm:$0xff]  ;;  %v9385_v50 = vcombine.high %v870_v41, %v874_v43 }
 0x1ba   : > { %7085 = vmatpush1.bf16.msra.mxu1 %v9432_v55  ;;  %v1002_v47 = vld [vmem:[%s10190_s6 + $0x16a8] sm:$0xff] }
 0x1bb   : > { %7086 = vmatprep.subr.bf16.mxu1 %v9553_v52  ;;  %v9513_v51 = vcombine.high %v998_v30, %v1002_v47  ;;  %v862_v53 = vld [vmem:[%s10190_s6 + $0x1248] sm:$0xff]  ;;  %v9384_v52 = vcombine.low %v870_v41, %v874_v43  ;;  %v9512_v59 = vcombine.low %v998_v30, %v1002_v47 }
 0x1bc   : > { %7046 = vmatpush2.bf16.msra.mxu0 %v9424_v1  ;;  %v866_v42 = vld [vmem:[%s10190_s6 + $0x1268] sm:$0xff] }
 0x1bd   : > { %7047 = vmatprep.subr.bf16.mxu0 %v9417_v3  ;;  %v990_v55 = vld [vmem:[%s10190_s6 + $0x1648] sm:$0xff]  ;;  %v9377_v61 = vcombine.high %v862_v53, %v866_v42 }
 0x1be   : > { %7087 = vmatpush2.bf16.msra.mxu1 %v9552_v2  ;;  %v994_v58 = vld [vmem:[%s10190_s6 + $0x1668] sm:$0xff] }
 0x1bf   : > { %7088 = vmatprep.subr.bf16.mxu1 %v9545_v5  ;;  %v9505_v62 = vcombine.high %v990_v55, %v994_v58  ;;  %v854_v63 = vld [vmem:[%s10190_s6 + $0x1208] sm:$0xff]  ;;  %v9376_v5 = vcombine.low %v862_v53, %v866_v42  ;;  %v9504_v6 = vcombine.low %v990_v55, %v994_v58 }
 0x1c0   : > { %7048 = vmatpush2.bf16.msra.mxu0 %v9416_v60  ;;  %v858_v1 = vld [vmem:[%s10190_s6 + $0x1228] sm:$0xff] }
 0x1c1   : > { %7049 = vmatprep.subr.bf16.mxu0 %v9409_v15  ;;  %v982_v2 = vld [vmem:[%s10190_s6 + $0x1608] sm:$0xff]  ;;  %v9369_v8 = vcombine.high %v854_v63, %v858_v1 }
 0x1c2   : > { %7089 = vmatpush2.bf16.msra.mxu1 %v9544_v13  ;;  %v986_v3 = vld [vmem:[%s10190_s6 + $0x1628] sm:$0xff] }
 0x1c3   : > { %7090 = vmatprep.subr.bf16.mxu1 %v9537_v16  ;;  %v9497_v9 = vcombine.high %v982_v2, %v986_v3  ;;  %v1102_v26 = vld [vmem:[%s10190_s6 + $0x19c8] sm:$0xff]  ;;  %v9368_v16 = vcombine.low %v854_v63, %v858_v1  ;;  %v9496_v54 = vcombine.low %v982_v2, %v986_v3 }
 0x1c4   : > { %7050 = vmatpush2.bf16.msra.mxu0 %v9408_v20  ;;  %v1106_v60 = vld [vmem:[%s10190_s6 + $0x19e8] sm:$0xff] }
 0x1c5   : > { %7051 = vmatprep.subr.bf16.mxu0 %v9401_v24  ;;  %v1230_v13 = vld [vmem:[%s10190_s6 + $0x1dc8] sm:$0xff]  ;;  %v9617_v11 = vcombine.high %v1102_v26, %v1106_v60 }
 0x1c6   : > { %7091 = vmatpush2.bf16.msra.mxu1 %v9536_v21  ;;  %v1234_v15 = vld [vmem:[%s10190_s6 + $0x1de8] sm:$0xff] }
 0x1c7   : > { %7092 = vmatprep.subr.bf16.mxu1 %v9529_v25  ;;  %v9745_v18 = vcombine.high %v1230_v13, %v1234_v15  ;;  %v1094_v19 = vld [vmem:[%s10190_s6 + $0x1988] sm:$0xff]  ;;  %v9616_v25 = vcombine.low %v1102_v26, %v1106_v60  ;;  %v9744_v27 = vcombine.low %v1230_v13, %v1234_v15 }
 0x1c8   : > { %7052 = vmatpush2.bf16.msra.mxu0 %v9400_v34  ;;  %v1098_v20 = vld [vmem:[%s10190_s6 + $0x19a8] sm:$0xff] }
 0x1c9   : > { %7053 = vmatprep.subr.bf16.mxu0 %v9393_v37  ;;  %v1222_v21 = vld [vmem:[%s10190_s6 + $0x1d88] sm:$0xff]  ;;  %v9609_v28 = vcombine.high %v1094_v19, %v1098_v20  ;;  %v9608_v30 = vcombine.low %v1094_v19, %v1098_v20 }
 0x1ca   : > { %7093 = vmatpush2.bf16.msra.mxu1 %v9528_v36  ;;  %v1226_v24 = vld [vmem:[%s10190_s6 + $0x1da8] sm:$0xff] }
 0x1cb   : > { %7094 = vmatprep.subr.bf16.mxu1 %v9521_v38  ;;  %v9737_v29 = vcombine.high %v1222_v21, %v1226_v24  ;;  %v1086_v32 = vld [vmem:[%s10190_s6 + $0x1948] sm:$0xff] }
 0x1cc   : > { %7054 = vmatpush2.bf16.msra.mxu0 %v9392_v49  ;;  %v1090_v34 = vld [vmem:[%s10190_s6 + $0x1968] sm:$0xff]  ;;  %v9736_v49 = vcombine.low %v1222_v21, %v1226_v24 }
 0x1cd   : > { %7055 = vmatprep.subr.bf16.mxu0 %v9385_v50  ;;  %v1214_v37 = vld [vmem:[%s10190_s6 + $0x1d48] sm:$0xff] }
 0x1ce   : > { %7095 = vmatpush2.bf16.msra.mxu1 %v9520_v39  ;;  %v1218_v38 = vld [vmem:[%s10190_s6 + $0x1d68] sm:$0xff]  ;;  %v9601_v39 = vcombine.high %v1086_v32, %v1090_v34 }
 0x1cf   : > { %7096 = vmatprep.subr.bf16.mxu1 %v9513_v51  ;;  %v1078_v42 = vld [vmem:[%s10190_s6 + $0x1908] sm:$0xff]  ;;  %v9728_v1 = vcombine.low %v1214_v37, %v1218_v38 }
 0x1d0   : > { %7056 = vmatpush2.bf16.msra.mxu0 %v9384_v52  ;;  %v1082_v55 = vld [vmem:[%s10190_s6 + $0x1928] sm:$0xff] }
 0x1d1   : > { %7057 = vmatprep.subr.bf16.mxu0 %v9377_v61  ;;  %v1206_v52 = vld [vmem:[%s10190_s6 + $0x1d08] sm:$0xff]  ;;  %v9593_v2 = vcombine.high %v1078_v42, %v1082_v55  ;;  %v9592_v13 = vcombine.low %v1078_v42, %v1082_v55 }
 0x1d2   : > { %7097 = vmatpush2.bf16.msra.mxu1 %v9512_v59  ;;  %v1210_v59 = vld [vmem:[%s10190_s6 + $0x1d28] sm:$0xff] }
 0x1d3   : > { %7098 = vmatprep.subr.bf16.mxu1 %v9505_v62  ;;  %v1198_v26 = vld [vmem:[%s10190_s6 + $0x1cc8] sm:$0xff]  ;;  %v9720_v15 = vcombine.low %v1206_v52, %v1210_v59 }
 0x1d4   : > { %7058 = vmatpush2.bf16.msra.mxu0 %v9376_v5  ;;  %v1202_v60 = vld [vmem:[%s10190_s6 + $0x1ce8] sm:$0xff] }
 0x1d5   : > { %7059 = vmatprep.subr.bf16.mxu0 %v9369_v8  ;;  %v1070_v8 = vld [vmem:[%s10190_s6 + $0x18c8] sm:$0xff]  ;;  %v9712_v24 = vcombine.low %v1198_v26, %v1202_v60 }
 0x1d6   : > { %7099 = vmatpush2.bf16.msra.mxu1 %v9504_v6  ;;  %v9721_v6 = vcombine.high %v1206_v52, %v1210_v59  ;;  %v1190_v19 = vld [vmem:[%s10190_s6 + $0x1c88] sm:$0xff] }
 0x1d7   : > { %7100 = vmatprep.subr.bf16.mxu1 %v9497_v9  ;;  %v1074_v9 = vld [vmem:[%s10190_s6 + $0x18e8] sm:$0xff] }
 0x1d8   : > { %7060 = vmatpush2.bf16.msra.mxu0 %v9368_v16  ;;  %v9585_v16 = vcombine.high %v1070_v8, %v1074_v9  ;;  %v1194_v20 = vld [vmem:[%s10190_s6 + $0x1ca8] sm:$0xff]  ;;  %v9584_v21 = vcombine.low %v1070_v8, %v1074_v9 }
 0x1d9   : > { %7111 = vmatprep.subr.bf16.mxu0 %v9617_v11  ;;  %v1062_v11 = vld [vmem:[%s10190_s6 + $0x1888] sm:$0xff] }
 0x1da   : > { %7101 = vmatpush2.bf16.msra.mxu1 %v9496_v54  ;;  %v9713_v54 = vcombine.high %v1198_v26, %v1202_v60  ;;  %v1166_v42 = vld [vmem:[%s10190_s6 + $0x1bc8] sm:$0xff] }
 0x1db   : > { %7152 = vmatprep.subr.bf16.mxu1 %v9745_v18  ;;  %v6817_v36 = vpop.f32.mrf.mxu0  ;;  %7062 = vmatmul.mubr.bf16.vlgmr.msra.gmra.mxu0 %v10475_v22  ;;  %v1066_v18 = vld [vmem:[%s10190_s6 + $0x18a8] sm:$0xff] }
 0x1dc   : > { %v6818_v41 = vadd.f32 %v6817_v36, %v10721_v46  ;;  %7112 = vmatpush1.bf16.msra.mxu0 %v9616_v25  ;;  %v9729_v46 = vcombine.high %v1214_v37, %v1218_v38  ;;  %7143 = vmatprep.mubr.bf16.mxu0 %v10482_v33  ;;  %v9577_v25 = vcombine.high %v1062_v11, %v1066_v18  ;;  %v1170_v55 = vld [vmem:[%s10190_s6 + $0x1be8] sm:$0xff] }
 0x1dd   : > { %v6858_v43 = vpop.f32.mrf.mxu1  ;;  %7103 = vmatmul.mubr.bf16.vlgmr.msra.gmra.mxu1 %v10486_v35  ;;  %v6819_v47 = vpop.f32.mrf.mxu0  ;;  %7113 = vmatprep.subr.bf16.mxu0 %v9609_v28  ;;  %v1054_v28 = vld [vmem:[%s10190_s6 + $0x1848] sm:$0xff]  ;;  %v9576_v36 = vcombine.low %v1062_v11, %v1066_v18  ;;  %v9704_v37 = vcombine.low %v1190_v19, %v1194_v20  ;;  %v9680_v8 = vcombine.low %v1166_v42, %v1170_v55 }
 0x1de   : > { %7153 = vmatpush1.bf16.msra.mxu1 %v9744_v27  ;;  %v10795_v50 = vadd.f32 %v6858_v43, %v6818_v41  ;;  %v6820_v51 = vadd.f32 %v6819_v47, %v10730_v56  ;;  %7184 = vmatprep.mubr.bf16.mxu1 %v10495_v44  ;;  %v9600_v56 = vcombine.low %v1086_v32, %v1090_v34  ;;  %v1182_v32 = vld [vmem:[%s10190_s6 + $0x1c48] sm:$0xff] }
 0x1df   : > { %v6860_v53 = vpop.f32.mrf.mxu1  ;;  %7154 = vmatprep.subr.bf16.mxu1 %v9737_v29  ;;  %v6821_v58 = vpop.f32.mrf.mxu0  ;;  %v9705_v27 = vcombine.high %v1190_v19, %v1194_v20  ;;  %v1058_v29 = vld [vmem:[%s10190_s6 + $0x1868] sm:$0xff] }
 0x1e0   : > { %v10804_v61 = vadd.f32 %v6860_v53, %v6820_v51  ;;  %7114 = vmatpush1.bf16.msra.mxu0 %v9608_v30  ;;  %v1186_v34 = vld [vmem:[%s10190_s6 + $0x1c68] sm:$0xff]  ;;  %v9569_v38 = vcombine.high %v1054_v28, %v1058_v29 }
 0x1e1   : > { %v6862_v62 = vpop.f32.mrf.mxu1  ;;  %v6822_v63 = vpop.f32.mrf.mxu0  ;;  %7115 = vmatprep.subr.bf16.mxu0 %v9601_v39  ;;  %v9697_v41 = vcombine.high %v1182_v32, %v1186_v34  ;;  %v1046_v43 = vld [vmem:[%s10190_s6 + $0x1808] sm:$0xff]  ;;  %v9568_v39 = vcombine.low %v1054_v28, %v1058_v29  ;;  %v9696_v51 = vcombine.low %v1182_v32, %v1186_v34 }
 0x1e2   : > { %7155 = vmatpush1.bf16.msra.mxu1 %v9736_v49  ;;  %v7857_v3 = vcombine.low %v10795_v50, %v10804_v61  ;;  %v1050_v30 = vld [vmem:[%s10190_s6 + $0x1828] sm:$0xff]  ;;  %v1191_v50 = vld [vmem:[%s10190_s6 + $0x1c90] sm:$0xff] }
 0x1e3   : > { %v6863_v5 = vpop.f32.mrf.mxu1  ;;  %7156 = vmatprep.subr.bf16.mxu1 %v9729_v46  ;;  %v1174_v47 = vld [vmem:[%s10190_s6 + $0x1c08] sm:$0xff]  ;;  %v9561_v53 = vcombine.high %v1046_v43, %v1050_v30  ;;  %v9560_v59 = vcombine.low %v1046_v43, %v1050_v30  ;;  %v1195_v61 = vld [vmem:[%s10190_s6 + $0x1cb0] sm:$0xff] }
 0x1e4   : > { %7116 = vmatpush1.bf16.msra.mxu0 %v9600_v56  ;;  %v1178_v49 = vld [vmem:[%s10190_s6 + $0x1c28] sm:$0xff]  ;;  %v9681_v56 = vcombine.high %v1166_v42, %v1170_v55 }
 0x1e5   : > { %7117 = vmatprep.subr.bf16.mxu0 %v9593_v2  ;;  %v9689_v46 = vcombine.high %v1174_v47, %v1178_v49  ;;  %v1294_v58 = vld [vmem:[%s10190_s6 + $0x1fc8] sm:$0xff]  ;;  %v9688_v62 = vcombine.low %v1174_v47, %v1178_v49 }
 0x1e6   : > { %7157 = vmatpush1.bf16.msra.mxu1 %v9728_v1  ;;  %v1298_v52 = vld [vmem:[%s10190_s6 + $0x1fe8] sm:$0xff] }
 0x1e7   : > { %7158 = vmatprep.subr.bf16.mxu1 %v9721_v6  ;;  %v9809_v63 = vcombine.high %v1294_v58, %v1298_v52  ;;  %v1158_v1 = vld [vmem:[%s10190_s6 + $0x1b88] sm:$0xff]  ;;  %v9808_v9 = vcombine.low %v1294_v58, %v1298_v52 }
 0x1e8   : > { %7118 = vmatpush1.bf16.msra.mxu0 %v9592_v13  ;;  %v1162_v2 = vld [vmem:[%s10190_s6 + $0x1ba8] sm:$0xff] }
 0x1e9   : > { %7119 = vmatprep.subr.bf16.mxu0 %v9585_v16  ;;  %v1286_v5 = vld [vmem:[%s10190_s6 + $0x1f88] sm:$0xff]  ;;  %v9673_v26 = vcombine.high %v1158_v1, %v1162_v2  ;;  %v9672_v11 = vcombine.low %v1158_v1, %v1162_v2 }
 0x1ea   : > { %7159 = vmatpush1.bf16.msra.mxu1 %v9720_v15  ;;  %v1290_v6 = vld [vmem:[%s10190_s6 + $0x1fa8] sm:$0xff] }
 0x1eb   : > { %7160 = vmatprep.subr.bf16.mxu1 %v9713_v54  ;;  %v9801_v60 = vcombine.high %v1286_v5, %v1290_v6  ;;  %v1150_v13 = vld [vmem:[%s10190_s6 + $0x1b48] sm:$0xff]  ;;  %v9800_v18 = vcombine.low %v1286_v5, %v1290_v6 }
 0x1ec   : > { %7120 = vmatpush1.bf16.msra.mxu0 %v9584_v21  ;;  %v1154_v15 = vld [vmem:[%s10190_s6 + $0x1b68] sm:$0xff] }
 0x1ed   : > { %7121 = vmatprep.subr.bf16.mxu0 %v9577_v25  ;;  %v1278_v16 = vld [vmem:[%s10190_s6 + $0x1f48] sm:$0xff]  ;;  %v9665_v19 = vcombine.high %v1150_v13, %v1154_v15  ;;  %v9664_v28 = vcombine.low %v1150_v13, %v1154_v15 }
 0x1ee   : > { %7161 = vmatpush1.bf16.msra.mxu1 %v9712_v24  ;;  %v1282_v54 = vld [vmem:[%s10190_s6 + $0x1f68] sm:$0xff] }
 0x1ef   : > { %7162 = vmatprep.subr.bf16.mxu1 %v9705_v27  ;;  %v9793_v20 = vcombine.high %v1278_v16, %v1282_v54  ;;  %v1142_v21 = vld [vmem:[%s10190_s6 + $0x1b08] sm:$0xff]  ;;  %v9792_v29 = vcombine.low %v1278_v16, %v1282_v54 }
 0x1f0   : > { %7122 = vmatpush1.bf16.msra.mxu0 %v9576_v36  ;;  %v1146_v24 = vld [vmem:[%s10190_s6 + $0x1b28] sm:$0xff] }
 0x1f1   : > { %7123 = vmatprep.subr.bf16.mxu0 %v9569_v38  ;;  %v1270_v25 = vld [vmem:[%s10190_s6 + $0x1f08] sm:$0xff]  ;;  %v9657_v32 = vcombine.high %v1142_v21, %v1146_v24  ;;  %v9656_v43 = vcombine.low %v1142_v21, %v1146_v24 }
 0x1f2   : > { %7163 = vmatpush1.bf16.msra.mxu1 %v9704_v37  ;;  %v1274_v27 = vld [vmem:[%s10190_s6 + $0x1f28] sm:$0xff] }
 0x1f3   : > { %7164 = vmatprep.subr.bf16.mxu1 %v9697_v41  ;;  %v9785_v34 = vcombine.high %v1270_v25, %v1274_v27  ;;  %v1134_v36 = vld [vmem:[%s10190_s6 + $0x1ac8] sm:$0xff]  ;;  %v9784_v30 = vcombine.low %v1270_v25, %v1274_v27 }
 0x1f4   : > { %7124 = vmatpush1.bf16.msra.mxu0 %v9568_v39  ;;  %v1138_v37 = vld [vmem:[%s10190_s6 + $0x1ae8] sm:$0xff] }
 0x1f5   : > { %7125 = vmatprep.subr.bf16.mxu0 %v9561_v53  ;;  %v1262_v38 = vld [vmem:[%s10190_s6 + $0x1ec8] sm:$0xff]  ;;  %v9649_v47 = vcombine.high %v1134_v36, %v1138_v37  ;;  %v9648_v42 = vcombine.low %v1134_v36, %v1138_v37 }
 0x1f6   : > { %7165 = vmatpush1.bf16.msra.mxu1 %v9696_v51  ;;  %v1266_v41 = vld [vmem:[%s10190_s6 + $0x1ee8] sm:$0xff] }
 0x1f7   : > { %7166 = vmatprep.subr.bf16.mxu1 %v9689_v46  ;;  %v9777_v49 = vcombine.high %v1262_v38, %v1266_v41  ;;  %v1126_v39 = vld [vmem:[%s10190_s6 + $0x1a88] sm:$0xff]  ;;  %v9776_v55 = vcombine.low %v1262_v38, %v1266_v41 }
 0x1f8   : > { %7126 = vmatpush1.bf16.msra.mxu0 %v9560_v59  ;;  %v1130_v51 = vld [vmem:[%s10190_s6 + $0x1aa8] sm:$0xff] }
 0x1f9   : > { %7127 = vmatprep.subr.bf16.mxu0 %v9681_v56  ;;  %v1254_v53 = vld [vmem:[%s10190_s6 + $0x1e88] sm:$0xff]  ;;  %v9641_v58 = vcombine.high %v1126_v39, %v1130_v51  ;;  %v9640_v1 = vcombine.low %v1126_v39, %v1130_v51  ;;  %v451_v39 = vld [vmem:[%s10190_s6 + $0x570] sm:$0xff] }
 0x1fa   : > { %7167 = vmatpush1.bf16.msra.mxu1 %v9688_v62  ;;  %v1258_v46 = vld [vmem:[%s10190_s6 + $0x1ea8] sm:$0xff] }
 0x1fb   : > { %7168 = vmatprep.subr.bf16.mxu1 %v9809_v63  ;;  %v9769_v52 = vcombine.high %v1254_v53, %v1258_v46  ;;  %v1118_v59 = vld [vmem:[%s10190_s6 + $0x1a48] sm:$0xff]  ;;  %v9768_v2 = vcombine.low %v1254_v53, %v1258_v46 }
 0x1fc   : > { %7128 = vmatpush2.bf16.msra.mxu0 %v9680_v8  ;;  %v1122_v62 = vld [vmem:[%s10190_s6 + $0x1a68] sm:$0xff] }
 0x1fd   : > { %7129 = vmatprep.subr.bf16.mxu0 %v9673_v26  ;;  %v1246_v56 = vld [vmem:[%s10190_s6 + $0x1e48] sm:$0xff]  ;;  %v9633_v5 = vcombine.high %v1118_v59, %v1122_v62  ;;  %v9632_v13 = vcombine.low %v1118_v59, %v1122_v62  ;;  %v311_v62 = vld [vmem:[%s10190_s6 + $0x110] sm:$0xff] }
 0x1fe   : > { %7169 = vmatpush2.bf16.msra.mxu1 %v9808_v9  ;;  %v1250_v63 = vld [vmem:[%s10190_s6 + $0x1e68] sm:$0xff] }
 0x1ff   : > { %7170 = vmatprep.subr.bf16.mxu1 %v9801_v60  ;;  %v9761_v6 = vcombine.high %v1246_v56, %v1250_v63  ;;  %v1110_v8 = vld [vmem:[%s10190_s6 + $0x1a08] sm:$0xff]  ;;  %v9760_v15 = vcombine.low %v1246_v56, %v1250_v63  ;;  %v315_v56 = vld [vmem:[%s10190_s6 + $0x130] sm:$0xff] }
 0x200   : > { %7130 = vmatpush2.bf16.msra.mxu0 %v9672_v11  ;;  %v1114_v9 = vld [vmem:[%s10190_s6 + $0x1a28] sm:$0xff]  ;;  %v335_v11 = vld [vmem:[%s10190_s6 + $0x1d0] sm:$0xff] }
 0x201   : > { %7131 = vmatprep.subr.bf16.mxu0 %v9665_v19  ;;  %v1238_v26 = vld [vmem:[%s10190_s6 + $0x1e08] sm:$0xff]  ;;  %v9625_v16 = vcombine.high %v1110_v8, %v1114_v9  ;;  %v463_v19 = vld [vmem:[%s10190_s6 + $0x5d0] sm:$0xff]  ;;  %v9624_v21 = vcombine.low %v1110_v8, %v1114_v9 }
 0x202   : > { %7171 = vmatpush2.bf16.msra.mxu1 %v9800_v18  ;;  %v1242_v60 = vld [vmem:[%s10190_s6 + $0x1e28] sm:$0xff]  ;;  %v339_v18 = vld [vmem:[%s10190_s6 + $0x1f0] sm:$0xff] }
 0x203   : > { %7172 = vmatprep.subr.bf16.mxu1 %v9793_v20  ;;  %v9753_v54 = vcombine.high %v1238_v26, %v1242_v60  ;;  %v467_v20 = vld [vmem:[%s10190_s6 + $0x5f0] sm:$0xff]  ;;  %v9752_v24 = vcombine.low %v1238_v26, %v1242_v60  ;;  %v8851_v25 = vcombine.high %v335_v11, %v339_v18  ;;  %v8850_v36 = vcombine.low %v335_v11, %v339_v18 }
 0x204   : > { %7132 = vmatpush2.bf16.msra.mxu0 %v9664_v28  ;;  %v8979_v27 = vcombine.high %v463_v19, %v467_v20  ;;  %v327_v28 = vld [vmem:[%s10190_s6 + $0x190] sm:$0xff]  ;;  %v8978_v37 = vcombine.low %v463_v19, %v467_v20  ;;  %v8827_v60 = vcombine.high %v311_v62, %v315_v56  ;;  %v8826_v19 = vcombine.low %v311_v62, %v315_v56 }
 0x205   : > { %7133 = vmatprep.subr.bf16.mxu0 %v9657_v32  ;;  %v455_v32 = vld [vmem:[%s10190_s6 + $0x590] sm:$0xff] }
 0x206   : > { %7173 = vmatpush2.bf16.msra.mxu1 %v9792_v29  ;;  %v331_v29 = vld [vmem:[%s10190_s6 + $0x1b0] sm:$0xff] }
 0x207   : > { %7174 = vmatprep.subr.bf16.mxu1 %v9785_v34  ;;  %v459_v34 = vld [vmem:[%s10190_s6 + $0x5b0] sm:$0xff]  ;;  %v8843_v38 = vcombine.high %v327_v28, %v331_v29  ;;  %v8842_v53 = vcombine.low %v327_v28, %v331_v29 }
 0x208   : > { %7134 = vmatpush2.bf16.msra.mxu0 %v9656_v43  ;;  %v8971_v41 = vcombine.high %v455_v32, %v459_v34  ;;  %v319_v43 = vld [vmem:[%s10190_s6 + $0x150] sm:$0xff] }
 0x209   : > { %7135 = vmatprep.subr.bf16.mxu0 %v9649_v47  ;;  %v431_v11 = vld [vmem:[%s10190_s6 + $0x4d0] sm:$0xff] }
 0x20a   : > { %7175 = vmatpush2.bf16.msra.mxu1 %v9784_v30  ;;  %v323_v30 = vld [vmem:[%s10190_s6 + $0x170] sm:$0xff] }
 0x20b   : > { %7176 = vmatprep.subr.bf16.mxu1 %v9777_v49  ;;  %v447_v49 = vld [vmem:[%s10190_s6 + $0x550] sm:$0xff]  ;;  %v8834_v8 = vcombine.low %v319_v43, %v323_v30 }
 0x20c   : > { %7136 = vmatpush2.bf16.msra.mxu0 %v9648_v42  ;;  %v8963_v59 = vcombine.high %v447_v49, %v451_v39  ;;  %v8962_v26 = vcombine.low %v447_v49, %v451_v39  ;;  %v435_v18 = vld [vmem:[%s10190_s6 + $0x4f0] sm:$0xff] }
 0x20d   : > { %7137 = vmatprep.subr.bf16.mxu0 %v9641_v58  ;;  %v8835_v58 = vcombine.high %v319_v43, %v323_v30  ;;  %v423_v28 = vld [vmem:[%s10190_s6 + $0x490] sm:$0xff] }
 0x20e   : > { %7177 = vmatpush2.bf16.msra.mxu1 %v9776_v55  ;;  %v8970_v55 = vcombine.low %v455_v32, %v459_v34  ;;  %v427_v29 = vld [vmem:[%s10190_s6 + $0x4b0] sm:$0xff]  ;;  %v8946_v34 = vcombine.low %v431_v11, %v435_v18 }
 0x20f   : > { %7178 = vmatprep.subr.bf16.mxu1 %v9769_v52  ;;  %v415_v43 = vld [vmem:[%s10190_s6 + $0x450] sm:$0xff]  ;;  %v8938_v49 = vcombine.low %v423_v28, %v427_v29 }
 0x210   : > { %7138 = vmatpush2.bf16.msra.mxu0 %v9640_v1  ;;  %v419_v30 = vld [vmem:[%s10190_s6 + $0x470] sm:$0xff] }
 0x211   : > { %7139 = vmatprep.subr.bf16.mxu0 %v9633_v5  ;;  %v443_v5 = vld [vmem:[%s10190_s6 + $0x530] sm:$0xff] }
 0x212   : > { %7179 = vmatpush2.bf16.msra.mxu1 %v9768_v2  ;;  %v439_v2 = vld [vmem:[%s10190_s6 + $0x510] sm:$0xff] }
 0x213   : > { %7180 = vmatprep.subr.bf16.mxu1 %v9761_v6  ;;  %v8954_v20 = vcombine.low %v439_v2, %v443_v5 }
 0x214   : > { %7140 = vmatpush2.bf16.msra.mxu0 %v9632_v13 }
 0x215   : > { %7141 = vmatprep.subr.bf16.mxu0 %v9625_v16  ;;  %v303_v16 = vld [vmem:[%s10190_s6 + $0xd0] sm:$0xff] }
 0x216   : > { %7181 = vmatpush2.bf16.msra.mxu1 %v9760_v15  ;;  %v8955_v15 = vcombine.high %v439_v2, %v443_v5  ;;  %v403_v2 = vld [vmem:[%s10190_s6 + $0x3f0] sm:$0xff] }
 0x217   : > { %7182 = vmatprep.subr.bf16.mxu1 %v9753_v54  ;;  %v307_v54 = vld [vmem:[%s10190_s6 + $0xf0] sm:$0xff] }
 0x218   : > { %7142 = vmatpush2.bf16.msra.mxu0 %v9624_v21  ;;  %v8819_v21 = vcombine.high %v303_v16, %v307_v54  ;;  %v8818_v32 = vcombine.low %v303_v16, %v307_v54  ;;  %v527_v5 = vld [vmem:[%s10190_s6 + $0x7d0] sm:$0xff] }
 0x219   : > { %7193 = vmatprep.subr.bf16.mxu0 %v8851_v25  ;;  %v295_v25 = vld [vmem:[%s10190_s6 + $0x90] sm:$0xff] }
 0x21a   : > { %7183 = vmatpush2.bf16.msra.mxu1 %v9752_v24  ;;  %v8947_v24 = vcombine.high %v431_v11, %v435_v18  ;;  %v519_v16 = vld [vmem:[%s10190_s6 + $0x790] sm:$0xff] }
 0x21b   : > { %7234 = vmatprep.subr.bf16.mxu1 %v8979_v27  ;;  %v6899_v47 = vpop.f32.mrf.mxu0  ;;  %7144 = vmatmul.mubr.bf16.vlgmr.msra.gmra.mxu0 %v10558_v7  ;;  %v299_v27 = vld [vmem:[%s10190_s6 + $0xb0] sm:$0xff] }
 0x21c   : > { %7194 = vmatpush1.bf16.msra.mxu0 %v8850_v36  ;;  %7225 = vmatprep.mubr.bf16.mxu0 %v10242_v10  ;;  %v8811_v36 = vcombine.high %v295_v25, %v299_v27  ;;  %v523_v54 = vld [vmem:[%s10190_s6 + $0x7b0] sm:$0xff] }
 0x21d   : > { %v6940_v51 = vpop.f32.mrf.mxu1  ;;  %7185 = vmatmul.mubr.bf16.vlgmr.msra.gmra.mxu1 %v10566_v17  ;;  %v6901_v42 = vpop.f32.mrf.mxu0  ;;  %7195 = vmatprep.subr.bf16.mxu0 %v8843_v38  ;;  %v287_v38 = vld [vmem:[%s10190_s6 + $0x50] sm:$0xff] }
 0x21e   : > { %v10870_v46 = vadd.f32 %v6940_v51, %v6899_v47  ;;  %7235 = vmatpush1.bf16.msra.mxu1 %v8978_v37  ;;  %7266 = vmatprep.mubr.bf16.mxu1 %v10249_v14  ;;  %v8939_v37 = vcombine.high %v423_v28, %v427_v29  ;;  %v8810_v47 = vcombine.low %v295_v25, %v299_v27  ;;  %v511_v25 = vld [vmem:[%s10190_s6 + $0x750] sm:$0xff] }
 0x21f   : > { %v6942_v52 = vpop.f32.mrf.mxu1  ;;  %7236 = vmatprep.subr.bf16.mxu1 %v8971_v41  ;;  %v6903_v1 = vpop.f32.mrf.mxu0  ;;  %v291_v41 = vld [vmem:[%s10190_s6 + $0x70] sm:$0xff]  ;;  %v8931_v51 = vcombine.high %v415_v43, %v419_v30  ;;  %v9034_v29 = vcombine.low %v519_v16, %v523_v54 }
 0x220   : > { %v10875_v63 = vadd.f32 %v6942_v52, %v6901_v42  ;;  %7196 = vmatpush1.bf16.msra.mxu0 %v8842_v53  ;;  %v8803_v39 = vcombine.high %v287_v38, %v291_v41  ;;  %v279_v53 = vld [vmem:[%s10190_s6 + $0x10] sm:$0xff]  ;;  %v8802_v52 = vcombine.low %v287_v38, %v291_v41 }
 0x221   : > { %v6944_v6 = vpop.f32.mrf.mxu1  ;;  %v6904_v9 = vpop.f32.mrf.mxu0  ;;  %7197 = vmatprep.subr.bf16.mxu0 %v8835_v58  ;;  %v283_v42 = vld [vmem:[%s10190_s6 + $0x30] sm:$0xff] }
 0x222   : > { %7237 = vmatpush1.bf16.msra.mxu1 %v8970_v55  ;;  %v407_v55 = vld [vmem:[%s10190_s6 + $0x410] sm:$0xff]  ;;  %v8795_v62 = vcombine.high %v279_v53, %v283_v42 }
 0x223   : > { %v6945_v13 = vpop.f32.mrf.mxu1  ;;  %7238 = vmatprep.subr.bf16.mxu1 %v8963_v59  ;;  %v411_v58 = vld [vmem:[%s10190_s6 + $0x430] sm:$0xff]  ;;  %v8930_v59 = vcombine.low %v415_v43, %v419_v30 }
 0x224   : > { %7198 = vmatpush1.bf16.msra.mxu0 %v8834_v8  ;;  %v8923_v56 = vcombine.high %v407_v55, %v411_v58  ;;  %v399_v1 = vld [vmem:[%s10190_s6 + $0x3d0] sm:$0xff]  ;;  %v8794_v8 = vcombine.low %v279_v53, %v283_v42  ;;  %v8922_v9 = vcombine.low %v407_v55, %v411_v58 }
 0x225   : > { %7199 = vmatprep.subr.bf16.mxu0 %v8827_v60  ;;  %v531_v6 = vld [vmem:[%s10190_s6 + $0x7f0] sm:$0xff]  ;;  %v8914_v11 = vcombine.low %v399_v1, %v403_v2 }
 0x226   : > { %7239 = vmatpush1.bf16.msra.mxu1 %v8962_v26  ;;  %v8915_v26 = vcombine.high %v399_v1, %v403_v2  ;;  %v9043_v60 = vcombine.high %v527_v5, %v531_v6  ;;  %v391_v13 = vld [vmem:[%s10190_s6 + $0x390] sm:$0xff]  ;;  %v9042_v18 = vcombine.low %v527_v5, %v531_v6 }
 0x227   : > { %7240 = vmatprep.subr.bf16.mxu1 %v8955_v15  ;;  %v395_v15 = vld [vmem:[%s10190_s6 + $0x3b0] sm:$0xff] }
 0x228   : > { %7200 = vmatpush1.bf16.msra.mxu0 %v8826_v19  ;;  %v8907_v19 = vcombine.high %v391_v13, %v395_v15  ;;  %v515_v27 = vld [vmem:[%s10190_s6 + $0x770] sm:$0xff]  ;;  %v8906_v28 = vcombine.low %v391_v13, %v395_v15 }
 0x229   : > { %7201 = vmatprep.subr.bf16.mxu0 %v8819_v21  ;;  %v383_v21 = vld [vmem:[%s10190_s6 + $0x350] sm:$0xff]  ;;  %v9026_v30 = vcombine.low %v511_v25, %v515_v27 }
 0x22a   : > { %7241 = vmatpush1.bf16.msra.mxu1 %v8954_v20  ;;  %v9035_v20 = vcombine.high %v519_v16, %v523_v54  ;;  %v503_v38 = vld [vmem:[%s10190_s6 + $0x710] sm:$0xff] }
 0x22b   : > { %7242 = vmatprep.subr.bf16.mxu1 %v8947_v24  ;;  %v387_v24 = vld [vmem:[%s10190_s6 + $0x370] sm:$0xff] }
 0x22c   : > { %7202 = vmatpush1.bf16.msra.mxu0 %v8818_v32  ;;  %v8899_v32 = vcombine.high %v383_v21, %v387_v24  ;;  %v507_v41 = vld [vmem:[%s10190_s6 + $0x730] sm:$0xff]  ;;  %v8898_v43 = vcombine.low %v383_v21, %v387_v24 }
 0x22d   : > { %7203 = vmatprep.subr.bf16.mxu0 %v8811_v36  ;;  %v375_v36 = vld [vmem:[%s10190_s6 + $0x310] sm:$0xff]  ;;  %v9018_v58 = vcombine.low %v503_v38, %v507_v41 }
 0x22e   : > { %7243 = vmatpush1.bf16.msra.mxu1 %v8946_v34  ;;  %v9027_v34 = vcombine.high %v511_v25, %v515_v27  ;;  %v495_v53 = vld [vmem:[%s10190_s6 + $0x6d0] sm:$0xff] }
 0x22f   : > { %7244 = vmatprep.subr.bf16.mxu1 %v8939_v37  ;;  %v379_v37 = vld [vmem:[%s10190_s6 + $0x330] sm:$0xff] }
 0x230   : > { %7204 = vmatpush1.bf16.msra.mxu0 %v8810_v47  ;;  %v8891_v47 = vcombine.high %v375_v36, %v379_v37  ;;  %v499_v42 = vld [vmem:[%s10190_s6 + $0x6f0] sm:$0xff]  ;;  %v8890_v55 = vcombine.low %v375_v36, %v379_v37 }
 0x231   : > { %7205 = vmatprep.subr.bf16.mxu0 %v8803_v39  ;;  %v367_v39 = vld [vmem:[%s10190_s6 + $0x2d0] sm:$0xff]  ;;  %v9010_v6 = vcombine.low %v495_v53, %v499_v42 }
 0x232   : > { %7245 = vmatpush1.bf16.msra.mxu1 %v8938_v49  ;;  %v9019_v49 = vcombine.high %v503_v38, %v507_v41  ;;  %v487_v1 = vld [vmem:[%s10190_s6 + $0x690] sm:$0xff] }
 0x233   : > { %7246 = vmatprep.subr.bf16.mxu1 %v8931_v51  ;;  %v371_v51 = vld [vmem:[%s10190_s6 + $0x2f0] sm:$0xff] }
 0x234   : > { %7206 = vmatpush1.bf16.msra.mxu0 %v8802_v52  ;;  %v8883_v52 = vcombine.high %v367_v39, %v371_v51  ;;  %v491_v2 = vld [vmem:[%s10190_s6 + $0x6b0] sm:$0xff]  ;;  %v8882_v5 = vcombine.low %v367_v39, %v371_v51 }
 0x235   : > { %7207 = vmatprep.subr.bf16.mxu0 %v8795_v62  ;;  %v359_v62 = vld [vmem:[%s10190_s6 + $0x290] sm:$0xff]  ;;  %v9002_v54 = vcombine.low %v487_v1, %v491_v2 }
 0x236   : > { %7247 = vmatpush1.bf16.msra.mxu1 %v8930_v59  ;;  %v9011_v59 = vcombine.high %v495_v53, %v499_v42  ;;  %v479_v13 = vld [vmem:[%s10190_s6 + $0x650] sm:$0xff] }
 0x237   : > { %7248 = vmatprep.subr.bf16.mxu1 %v8923_v56  ;;  %v363_v56 = vld [vmem:[%s10190_s6 + $0x2b0] sm:$0xff] }
 0x238   : > { %7208 = vmatpush1.bf16.msra.mxu0 %v8794_v8  ;;  %v8875_v8 = vcombine.high %v359_v62, %v363_v56  ;;  %v483_v15 = vld [vmem:[%s10190_s6 + $0x670] sm:$0xff]  ;;  %v8874_v16 = vcombine.low %v359_v62, %v363_v56 }
 0x239   : > { %7209 = vmatprep.subr.bf16.mxu0 %v8915_v26  ;;  %v351_v26 = vld [vmem:[%s10190_s6 + $0x250] sm:$0xff]  ;;  %v8994_v27 = vcombine.low %v479_v13, %v483_v15 }
 0x23a   : > { %7249 = vmatpush1.bf16.msra.mxu1 %v8922_v9  ;;  %v9003_v9 = vcombine.high %v487_v1, %v491_v2  ;;  %v471_v21 = vld [vmem:[%s10190_s6 + $0x610] sm:$0xff] }
 0x23b   : > { %7250 = vmatprep.subr.bf16.mxu1 %v9043_v60  ;;  %v355_v60 = vld [vmem:[%s10190_s6 + $0x270] sm:$0xff] }
 0x23c   : > { %7210 = vmatpush2.bf16.msra.mxu0 %v8914_v11  ;;  %v8867_v11 = vcombine.high %v351_v26, %v355_v60  ;;  %v475_v24 = vld [vmem:[%s10190_s6 + $0x630] sm:$0xff]  ;;  %v8866_v25 = vcombine.low %v351_v26, %v355_v60 }
 0x23d   : > { %7211 = vmatprep.subr.bf16.mxu0 %v8907_v19  ;;  %v343_v19 = vld [vmem:[%s10190_s6 + $0x210] sm:$0xff]  ;;  %v8986_v41 = vcombine.low %v471_v21, %v475_v24 }
 0x23e   : > { %7251 = vmatpush2.bf16.msra.mxu1 %v9042_v18  ;;  %v8995_v18 = vcombine.high %v479_v13, %v483_v15  ;;  %v719_v36 = vld [vmem:[%s10190_s6 + $0xdd0] sm:$0xff] }
 0x23f   : > { %7252 = vmatprep.subr.bf16.mxu1 %v9035_v20  ;;  %v347_v20 = vld [vmem:[%s10190_s6 + $0x230] sm:$0xff] }
 0x240   : > { %7212 = vmatpush2.bf16.msra.mxu0 %v8906_v28  ;;  %v8859_v28 = vcombine.high %v343_v19, %v347_v20  ;;  %v723_v37 = vld [vmem:[%s10190_s6 + $0xdf0] sm:$0xff]  ;;  %v8858_v38 = vcombine.low %v343_v19, %v347_v20 }
 0x241   : > { %7213 = vmatprep.subr.bf16.mxu0 %v8899_v32  ;;  %v591_v32 = vld [vmem:[%s10190_s6 + $0x9d0] sm:$0xff]  ;;  %v9234_v42 = vcombine.low %v719_v36, %v723_v37 }
 0x242   : > { %7253 = vmatpush2.bf16.msra.mxu1 %v9034_v29  ;;  %v8987_v29 = vcombine.high %v471_v21, %v475_v24  ;;  %v711_v39 = vld [vmem:[%s10190_s6 + $0xd90] sm:$0xff] }
 0x243   : > { %7254 = vmatprep.subr.bf16.mxu1 %v9027_v34  ;;  %v595_v34 = vld [vmem:[%s10190_s6 + $0x9f0] sm:$0xff] }
 0x244   : > { %7214 = vmatpush2.bf16.msra.mxu0 %v8898_v43  ;;  %v9107_v43 = vcombine.high %v591_v32, %v595_v34  ;;  %v715_v51 = vld [vmem:[%s10190_s6 + $0xdb0] sm:$0xff]  ;;  %v9106_v53 = vcombine.low %v591_v32, %v595_v34 }
 0x245   : > { %7215 = vmatprep.subr.bf16.mxu0 %v8891_v47  ;;  %v583_v47 = vld [vmem:[%s10190_s6 + $0x990] sm:$0xff] }
 0x246   : > { %7255 = vmatpush2.bf16.msra.mxu1 %v9026_v30  ;;  %v9235_v30 = vcombine.high %v719_v36, %v723_v37  ;;  %v703_v56 = vld [vmem:[%s10190_s6 + $0xd50] sm:$0xff] }
 0x247   : > { %7256 = vmatprep.subr.bf16.mxu1 %v9019_v49  ;;  %v587_v49 = vld [vmem:[%s10190_s6 + $0x9b0] sm:$0xff] }
 0x248   : > { %7216 = vmatpush2.bf16.msra.mxu0 %v8890_v55  ;;  %v9099_v55 = vcombine.high %v583_v47, %v587_v49  ;;  %v707_v1 = vld [vmem:[%s10190_s6 + $0xd70] sm:$0xff] }
 0x249   : > { %7217 = vmatprep.subr.bf16.mxu0 %v8883_v52  ;;  %v575_v52 = vld [vmem:[%s10190_s6 + $0x950] sm:$0xff] }
 0x24a   : > { %7257 = vmatpush2.bf16.msra.mxu1 %v9018_v58  ;;  %v9227_v58 = vcombine.high %v711_v39, %v715_v51  ;;  %v699_v19 = vld [vmem:[%s10190_s6 + $0xd30] sm:$0xff] }
 0x24b   : > { %7258 = vmatprep.subr.bf16.mxu1 %v9011_v59  ;;  %v579_v59 = vld [vmem:[%s10190_s6 + $0x970] sm:$0xff] }
 0x24c   : > { %7218 = vmatpush2.bf16.msra.mxu0 %v8882_v5  ;;  %v9091_v26 = vcombine.high %v575_v52, %v579_v59  ;;  %v559_v32 = vld [vmem:[%s10190_s6 + $0x8d0] sm:$0xff] }
 0x24d   : > { %7219 = vmatprep.subr.bf16.mxu0 %v8875_v8  ;;  %v563_v34 = vld [vmem:[%s10190_s6 + $0x8f0] sm:$0xff] }
 0x24e   : > { %7259 = vmatpush2.bf16.msra.mxu1 %v9010_v6  ;;  %v9098_v6 = vcombine.low %v583_v47, %v587_v49  ;;  %v687_v36 = vld [vmem:[%s10190_s6 + $0xcd0] sm:$0xff] }
 0x24f   : > { %7260 = vmatprep.subr.bf16.mxu1 %v9003_v9  ;;  %v9226_v9 = vcombine.low %v711_v39, %v715_v51  ;;  %v691_v37 = vld [vmem:[%s10190_s6 + $0xcf0] sm:$0xff] }
 0x250   : > { %7220 = vmatpush2.bf16.msra.mxu0 %v8874_v16  ;;  %v567_v16 = vld [vmem:[%s10190_s6 + $0x910] sm:$0xff] }
 0x251   : > { %7221 = vmatprep.subr.bf16.mxu0 %v8867_v11  ;;  %v551_v47 = vld [vmem:[%s10190_s6 + $0x890] sm:$0xff] }
 0x252   : > { %7261 = vmatpush2.bf16.msra.mxu1 %v9002_v54  ;;  %v571_v54 = vld [vmem:[%s10190_s6 + $0x930] sm:$0xff] }
 0x253   : > { %7262 = vmatprep.subr.bf16.mxu1 %v8995_v18  ;;  %v695_v18 = vld [vmem:[%s10190_s6 + $0xd10] sm:$0xff] }
 0x254   : > { %7222 = vmatpush2.bf16.msra.mxu0 %v8866_v25  ;;  %v9218_v25 = vcombine.low %v703_v56, %v707_v1  ;;  %v555_v49 = vld [vmem:[%s10190_s6 + $0x8b0] sm:$0xff] }
 0x255   : > { %7223 = vmatprep.subr.bf16.mxu0 %v8859_v28  ;;  %v679_v39 = vld [vmem:[%s10190_s6 + $0xc90] sm:$0xff] }
 0x256   : > { %7263 = vmatpush2.bf16.msra.mxu1 %v8994_v27  ;;  %v9083_v27 = vcombine.high %v567_v16, %v571_v54  ;;  %v683_v51 = vld [vmem:[%s10190_s6 + $0xcb0] sm:$0xff] }
 0x257   : > { %7264 = vmatprep.subr.bf16.mxu1 %v8987_v29  ;;  %v9211_v29 = vcombine.high %v695_v18, %v699_v19 }
 0x258   : > { %7224 = vmatpush2.bf16.msra.mxu0 %v8858_v38  ;;  %v9082_v38 = vcombine.low %v567_v16, %v571_v54 }
 0x259   : > { %7275 = vmatprep.subr.bf16.mxu0 %v9107_v43  ;;  %v9075_v43 = vcombine.high %v559_v32, %v563_v34 }
 0x25a   : > { %7265 = vmatpush2.bf16.msra.mxu1 %v8986_v41  ;;  %v9210_v41 = vcombine.low %v695_v18, %v699_v19  ;;  %v659_v18 = vld [vmem:[%s10190_s6 + $0xbf0] sm:$0xff] }
 0x25b   : > { %7316 = vmatprep.subr.bf16.mxu1 %v9235_v30  ;;  %v6981_v62 = vpop.f32.mrf.mxu0  ;;  %7226 = vmatmul.mubr.bf16.vlgmr.msra.gmra.mxu0 %v10293_v23  ;;  %v9203_v30 = vcombine.high %v687_v36, %v691_v37  ;;  %v783_v19 = vld [vmem:[%s10190_s6 + $0xfd0] sm:$0xff] }
 0x25c   : > { %v6982_v2 = vadd.f32 %v6981_v62, %v10870_v46  ;;  %7276 = vmatpush1.bf16.msra.mxu0 %v9106_v53  ;;  %v9219_v46 = vcombine.high %v703_v56, %v707_v1  ;;  %7307 = vmatprep.mubr.bf16.mxu0 %v10300_v31  ;;  %v9074_v53 = vcombine.low %v559_v32, %v563_v34  ;;  %v671_v62 = vld [vmem:[%s10190_s6 + $0xc50] sm:$0xff] }
 0x25d   : > { %v7022_v5 = vpop.f32.mrf.mxu1  ;;  %7267 = vmatmul.mubr.bf16.vlgmr.msra.gmra.mxu1 %v10304_v0  ;;  %v6983_v8 = vpop.f32.mrf.mxu0  ;;  %7277 = vmatprep.subr.bf16.mxu0 %v9099_v55  ;;  %v9067_v55 = vcombine.high %v551_v47, %v555_v49  ;;  %v675_v56 = vld [vmem:[%s10190_s6 + $0xc70] sm:$0xff]  ;;  %v9066_v1 = vcombine.low %v551_v47, %v555_v49 }
 0x25e   : > { %7317 = vmatpush1.bf16.msra.mxu1 %v9234_v42  ;;  %v10943_v60 = vadd.f32 %v7022_v5, %v6982_v2  ;;  %v6984_v13 = vadd.f32 %v6983_v8, %v10875_v63  ;;  %7348 = vmatprep.mubr.bf16.mxu1 %v10313_v40  ;;  %v9090_v63 = vcombine.low %v575_v52, %v579_v59  ;;  %v543_v52 = vld [vmem:[%s10190_s6 + $0x850] sm:$0xff] }
 0x25f   : > { %v7024_v15 = vpop.f32.mrf.mxu1  ;;  %7318 = vmatprep.subr.bf16.mxu1 %v9227_v58  ;;  %v6985_v11 = vpop.f32.mrf.mxu0  ;;  %v9202_v42 = vcombine.low %v687_v36, %v691_v37  ;;  %v9195_v58 = vcombine.high %v679_v39, %v683_v51  ;;  %v547_v59 = vld [vmem:[%s10190_s6 + $0x870] sm:$0xff]  ;;  %v9194_v2 = vcombine.low %v679_v39, %v683_v51 }
 0x260   : > { %v10952_v20 = vadd.f32 %v7024_v15, %v6984_v13  ;;  %7278 = vmatpush1.bf16.msra.mxu0 %v9098_v6  ;;  %v9059_v5 = vcombine.high %v543_v52, %v547_v59  ;;  %v9187_v6 = vcombine.high %v671_v62, %v675_v56  ;;  %v535_v8 = vld [vmem:[%s10190_s6 + $0x810] sm:$0xff]  ;;  %v9058_v15 = vcombine.low %v543_v52, %v547_v59 }
 0x261   : > { %v7026_v21 = vpop.f32.mrf.mxu1  ;;  %v6986_v24 = vpop.f32.mrf.mxu0  ;;  %7279 = vmatprep.subr.bf16.mxu0 %v9091_v26  ;;  %v663_v26 = vld [vmem:[%s10190_s6 + $0xc10] sm:$0xff] }
 0x262   : > { %7319 = vmatpush1.bf16.msra.mxu1 %v9226_v9  ;;  %v539_v9 = vld [vmem:[%s10190_s6 + $0x830] sm:$0xff] }
 0x263   : > { %v7027_v28 = vpop.f32.mrf.mxu1  ;;  %7320 = vmatprep.subr.bf16.mxu1 %v9219_v46  ;;  %v667_v13 = vld [vmem:[%s10190_s6 + $0xc30] sm:$0xff]  ;;  %v9186_v46 = vcombine.low %v671_v62, %v675_v56  ;;  %v9051_v16 = vcombine.high %v535_v8, %v539_v9 }
 0x264   : > { %7280 = vmatpush1.bf16.msra.mxu0 %v9090_v63  ;;  %v9179_v54 = vcombine.high %v663_v26, %v667_v13  ;;  %v655_v11 = vld [vmem:[%s10190_s6 + $0xbd0] sm:$0xff]  ;;  %v9050_v63 = vcombine.low %v535_v8, %v539_v9  ;;  %v9178_v24 = vcombine.low %v663_v26, %v667_v13 }
 0x265   : > { %7281 = vmatprep.subr.bf16.mxu0 %v9083_v27  ;;  %v787_v21 = vld [vmem:[%s10190_s6 + $0xff0] sm:$0xff]  ;;  %v9170_v36 = vcombine.low %v655_v11, %v659_v18 }
 0x266   : > { %7321 = vmatpush1.bf16.msra.mxu1 %v9218_v25  ;;  %v9171_v25 = vcombine.high %v655_v11, %v659_v18  ;;  %v9299_v27 = vcombine.high %v783_v19, %v787_v21  ;;  %v647_v28 = vld [vmem:[%s10190_s6 + $0xb90] sm:$0xff]  ;;  %v9298_v37 = vcombine.low %v783_v19, %v787_v21 }
 0x267   : > { %7322 = vmatprep.subr.bf16.mxu1 %v9211_v29  ;;  %v651_v29 = vld [vmem:[%s10190_s6 + $0xbb0] sm:$0xff] }
 0x268   : > { %7282 = vmatpush1.bf16.msra.mxu0 %v9082_v38  ;;  %v775_v32 = vld [vmem:[%s10190_s6 + $0xf90] sm:$0xff]  ;;  %v9163_v38 = vcombine.high %v647_v28, %v651_v29  ;;  %v9162_v39 = vcombine.low %v647_v28, %v651_v29 }
 0x269   : > { %7283 = vmatprep.subr.bf16.mxu0 %v9075_v43  ;;  %v779_v34 = vld [vmem:[%s10190_s6 + $0xfb0] sm:$0xff] }
 0x26a   : > { %7323 = vmatpush1.bf16.msra.mxu1 %v9210_v41  ;;  %v9291_v41 = vcombine.high %v775_v32, %v779_v34  ;;  %v639_v43 = vld [vmem:[%s10190_s6 + $0xb50] sm:$0xff]  ;;  %v9290_v51 = vcombine.low %v775_v32, %v779_v34 }
 0x26b   : > { %7324 = vmatprep.subr.bf16.mxu1 %v9203_v30  ;;  %v643_v30 = vld [vmem:[%s10190_s6 + $0xb70] sm:$0xff] }
 0x26c   : > { %7284 = vmatpush1.bf16.msra.mxu0 %v9074_v53  ;;  %v767_v47 = vld [vmem:[%s10190_s6 + $0xf50] sm:$0xff]  ;;  %v9155_v53 = vcombine.high %v639_v43, %v643_v30  ;;  %v9154_v62 = vcombine.low %v639_v43, %v643_v30 }
 0x26d   : > { %7285 = vmatprep.subr.bf16.mxu0 %v9067_v55  ;;  %v771_v49 = vld [vmem:[%s10190_s6 + $0xf70] sm:$0xff] }
 0x26e   : > { %7325 = vmatpush1.bf16.msra.mxu1 %v9202_v42  ;;  %v9283_v42 = vcombine.high %v767_v47, %v771_v49  ;;  %v631_v55 = vld [vmem:[%s10190_s6 + $0xb10] sm:$0xff]  ;;  %v9282_v56 = vcombine.low %v767_v47, %v771_v49 }
 0x26f   : > { %7326 = vmatprep.subr.bf16.mxu1 %v9195_v58  ;;  %v635_v58 = vld [vmem:[%s10190_s6 + $0xb30] sm:$0xff] }
 0x270   : > { %7286 = vmatpush1.bf16.msra.mxu0 %v9066_v1  ;;  %v759_v52 = vld [vmem:[%s10190_s6 + $0xf10] sm:$0xff]  ;;  %v9147_v1 = vcombine.high %v631_v55, %v635_v58  ;;  %v9146_v26 = vcombine.low %v631_v55, %v635_v58 }
 0x271   : > { %7287 = vmatprep.subr.bf16.mxu0 %v9059_v5  ;;  %v763_v59 = vld [vmem:[%s10190_s6 + $0xf30] sm:$0xff] }
 0x272   : > { %7327 = vmatpush1.bf16.msra.mxu1 %v9194_v2  ;;  %v9275_v2 = vcombine.high %v759_v52, %v763_v59  ;;  %v623_v5 = vld [vmem:[%s10190_s6 + $0xad0] sm:$0xff]  ;;  %v9274_v13 = vcombine.low %v759_v52, %v763_v59 }
 0x273   : > { %7328 = vmatprep.subr.bf16.mxu1 %v9187_v6  ;;  %v627_v6 = vld [vmem:[%s10190_s6 + $0xaf0] sm:$0xff] }
 0x274   : > { %7288 = vmatpush1.bf16.msra.mxu0 %v9058_v15  ;;  %v751_v8 = vld [vmem:[%s10190_s6 + $0xed0] sm:$0xff]  ;;  %v9139_v15 = vcombine.high %v623_v5, %v627_v6  ;;  %v9138_v19 = vcombine.low %v623_v5, %v627_v6 }
 0x275   : > { %7289 = vmatprep.subr.bf16.mxu0 %v9051_v16  ;;  %v755_v9 = vld [vmem:[%s10190_s6 + $0xef0] sm:$0xff] }
 0x276   : > { %7329 = vmatpush1.bf16.msra.mxu1 %v9186_v46  ;;  %v9267_v46 = vcombine.high %v751_v8, %v755_v9  ;;  %v615_v16 = vld [vmem:[%s10190_s6 + $0xa90] sm:$0xff]  ;;  %v9266_v21 = vcombine.low %v751_v8, %v755_v9 }
 0x277   : > { %7330 = vmatprep.subr.bf16.mxu1 %v9179_v54  ;;  %v619_v54 = vld [vmem:[%s10190_s6 + $0xab0] sm:$0xff] }
 0x278   : > { %7290 = vmatpush1.bf16.msra.mxu0 %v9050_v63  ;;  %v743_v11 = vld [vmem:[%s10190_s6 + $0xe90] sm:$0xff]  ;;  %v9131_v63 = vcombine.high %v615_v16, %v619_v54  ;;  %v9130_v32 = vcombine.low %v615_v16, %v619_v54 }
 0x279   : > { %7291 = vmatprep.subr.bf16.mxu0 %v9171_v25  ;;  %v747_v18 = vld [vmem:[%s10190_s6 + $0xeb0] sm:$0xff] }
 0x27a   : > { %7331 = vmatpush1.bf16.msra.mxu1 %v9178_v24  ;;  %v9259_v24 = vcombine.high %v743_v11, %v747_v18  ;;  %v607_v25 = vld [vmem:[%s10190_s6 + $0xa50] sm:$0xff]  ;;  %v9258_v34 = vcombine.low %v743_v11, %v747_v18 }
 0x27b   : > { %7332 = vmatprep.subr.bf16.mxu1 %v9299_v27  ;;  %v611_v27 = vld [vmem:[%s10190_s6 + $0xa70] sm:$0xff] }
 0x27c   : > { %7292 = vmatpush2.bf16.msra.mxu0 %v9170_v36  ;;  %v735_v28 = vld [vmem:[%s10190_s6 + $0xe50] sm:$0xff]  ;;  %v9123_v36 = vcombine.high %v607_v25, %v611_v27  ;;  %v9122_v47 = vcombine.low %v607_v25, %v611_v27 }
 0x27d   : > { %7293 = vmatprep.subr.bf16.mxu0 %v9163_v38  ;;  %v739_v29 = vld [vmem:[%s10190_s6 + $0xe70] sm:$0xff] }
 0x27e   : > { %7333 = vmatpush2.bf16.msra.mxu1 %v9298_v37  ;;  %v9251_v37 = vcombine.high %v735_v28, %v739_v29  ;;  %v599_v38 = vld [vmem:[%s10190_s6 + $0xa10] sm:$0xff]  ;;  %v9250_v49 = vcombine.low %v735_v28, %v739_v29 }
 0x27f   : > { %7334 = vmatprep.subr.bf16.mxu1 %v9291_v41  ;;  %v603_v41 = vld [vmem:[%s10190_s6 + $0xa30] sm:$0xff] }
 0x280   : > { %7294 = vmatpush2.bf16.msra.mxu0 %v9162_v39  ;;  %v727_v43 = vld [vmem:[%s10190_s6 + $0xe10] sm:$0xff]  ;;  %v9115_v39 = vcombine.high %v599_v38, %v603_v41  ;;  %v9114_v52 = vcombine.low %v599_v38, %v603_v41 }
 0x281   : > { %7295 = vmatprep.subr.bf16.mxu0 %v9155_v53  ;;  %v731_v30 = vld [vmem:[%s10190_s6 + $0xe30] sm:$0xff] }
 0x282   : > { %7335 = vmatpush2.bf16.msra.mxu1 %v9290_v51  ;;  %v9243_v51 = vcombine.high %v727_v43, %v731_v30  ;;  %v847_v53 = vld [vmem:[%s10190_s6 + $0x11d0] sm:$0xff]  ;;  %v9242_v59 = vcombine.low %v727_v43, %v731_v30 }
 0x283   : > { %7336 = vmatprep.subr.bf16.mxu1 %v9283_v42  ;;  %v851_v42 = vld [vmem:[%s10190_s6 + $0x11f0] sm:$0xff] }
 0x284   : > { %7296 = vmatpush2.bf16.msra.mxu0 %v9154_v62  ;;  %v975_v55 = vld [vmem:[%s10190_s6 + $0x15d0] sm:$0xff]  ;;  %v9363_v62 = vcombine.high %v847_v53, %v851_v42  ;;  %v9362_v8 = vcombine.low %v847_v53, %v851_v42 }
 0x285   : > { %7297 = vmatprep.subr.bf16.mxu0 %v9147_v1  ;;  %v979_v58 = vld [vmem:[%s10190_s6 + $0x15f0] sm:$0xff] }
 0x286   : > { %7337 = vmatpush2.bf16.msra.mxu1 %v9282_v56  ;;  %v9491_v56 = vcombine.high %v975_v55, %v979_v58  ;;  %v839_v1 = vld [vmem:[%s10190_s6 + $0x1190] sm:$0xff]  ;;  %v9490_v9 = vcombine.low %v975_v55, %v979_v58 }
 0x287   : > { %7338 = vmatprep.subr.bf16.mxu1 %v9275_v2  ;;  %v843_v2 = vld [vmem:[%s10190_s6 + $0x11b0] sm:$0xff] }
 0x288   : > { %7298 = vmatpush2.bf16.msra.mxu0 %v9146_v26  ;;  %v967_v5 = vld [vmem:[%s10190_s6 + $0x1590] sm:$0xff]  ;;  %v9355_v26 = vcombine.high %v839_v1, %v843_v2 }
 0x289   : > { %7299 = vmatprep.subr.bf16.mxu0 %v9139_v15  ;;  %v971_v6 = vld [vmem:[%s10190_s6 + $0x15b0] sm:$0xff] }
 0x28a   : > { %7339 = vmatpush2.bf16.msra.mxu1 %v9274_v13  ;;  %v9483_v13 = vcombine.high %v967_v5, %v971_v6  ;;  %v831_v15 = vld [vmem:[%s10190_s6 + $0x1150] sm:$0xff] }
 0x28b   : > { %7340 = vmatprep.subr.bf16.mxu1 %v9267_v46  ;;  %v835_v46 = vld [vmem:[%s10190_s6 + $0x1170] sm:$0xff] }
 0x28c   : > { %7300 = vmatpush2.bf16.msra.mxu0 %v9138_v19  ;;  %v959_v54 = vld [vmem:[%s10190_s6 + $0x1550] sm:$0xff]  ;;  %v9354_v19 = vcombine.low %v839_v1, %v843_v2  ;;  %v9346_v38 = vcombine.low %v831_v15, %v835_v46 }
 0x28d   : > { %7301 = vmatprep.subr.bf16.mxu0 %v9131_v63  ;;  %v963_v11 = vld [vmem:[%s10190_s6 + $0x1570] sm:$0xff]  ;;  %v9482_v63 = vcombine.low %v967_v5, %v971_v6 }
 0x28e   : > { %7341 = vmatpush2.bf16.msra.mxu1 %v9266_v21  ;;  %v9475_v27 = vcombine.high %v959_v54, %v963_v11  ;;  %v823_v28 = vld [vmem:[%s10190_s6 + $0x1110] sm:$0xff]  ;;  %v9474_v43 = vcombine.low %v959_v54, %v963_v11 }
 0x28f   : > { %7342 = vmatprep.subr.bf16.mxu1 %v9259_v24  ;;  %v9347_v24 = vcombine.high %v831_v15, %v835_v46  ;;  %v827_v29 = vld [vmem:[%s10190_s6 + $0x1130] sm:$0xff] }
 0x290   : > { %7302 = vmatpush2.bf16.msra.mxu0 %v9130_v32  ;;  %v9339_v30 = vcombine.high %v823_v28, %v827_v29  ;;  %v943_v53 = vld [vmem:[%s10190_s6 + $0x14d0] sm:$0xff]  ;;  %v9338_v55 = vcombine.low %v823_v28, %v827_v29 }
 0x291   : > { %7303 = vmatprep.subr.bf16.mxu0 %v9123_v36  ;;  %v955_v36 = vld [vmem:[%s10190_s6 + $0x1530] sm:$0xff] }
 0x292   : > { %7343 = vmatpush2.bf16.msra.mxu1 %v9258_v34  ;;  %v951_v34 = vld [vmem:[%s10190_s6 + $0x1510] sm:$0xff] }
 0x293   : > { %7344 = vmatprep.subr.bf16.mxu1 %v9251_v37  ;;  %v947_v42 = vld [vmem:[%s10190_s6 + $0x14f0] sm:$0xff]  ;;  %v9466_v58 = vcombine.low %v951_v34, %v955_v36 }
 0x294   : > { %7304 = vmatpush2.bf16.msra.mxu0 %v9122_v47  ;;  %v935_v1 = vld [vmem:[%s10190_s6 + $0x1490] sm:$0xff]  ;;  %v9458_v6 = vcombine.low %v943_v53, %v947_v42 }
 0x295   : > { %7305 = vmatprep.subr.bf16.mxu0 %v9115_v39  ;;  %v815_v39 = vld [vmem:[%s10190_s6 + $0x10d0] sm:$0xff] }
 0x296   : > { %7345 = vmatpush2.bf16.msra.mxu1 %v9250_v49  ;;  %v9467_v49 = vcombine.high %v951_v34, %v955_v36  ;;  %v939_v2 = vld [vmem:[%s10190_s6 + $0x14b0] sm:$0xff] }
 0x297   : > { %7346 = vmatprep.subr.bf16.mxu1 %v9243_v51  ;;  %v819_v51 = vld [vmem:[%s10190_s6 + $0x10f0] sm:$0xff]  ;;  %v9450_v11 = vcombine.low %v935_v1, %v939_v2 }
 0x298   : > { %7306 = vmatpush2.bf16.msra.mxu0 %v9114_v52  ;;  %v9331_v52 = vcombine.high %v815_v39, %v819_v51  ;;  %v9330_v5 = vcombine.low %v815_v39, %v819_v51  ;;  %v927_v15 = vld [vmem:[%s10190_s6 + $0x1450] sm:$0xff] }
 0x299   : > { %7357 = vmatprep.subr.bf16.mxu0 %v9363_v62  ;;  %v807_v62 = vld [vmem:[%s10190_s6 + $0x1090] sm:$0xff] }
 0x29a   : > { %7347 = vmatpush2.bf16.msra.mxu1 %v9242_v59  ;;  %v9459_v59 = vcombine.high %v943_v53, %v947_v42  ;;  %v931_v46 = vld [vmem:[%s10190_s6 + $0x1470] sm:$0xff] }
 0x29b   : > { %7398 = vmatprep.subr.bf16.mxu1 %v9491_v56  ;;  %v11012_v16 = vpop.f32.mrf.mxu0  ;;  %7308 = vmatmul.mubr.bf16.vlgmr.msra.gmra.mxu0 %v10385_v48  ;;  %v811_v56 = vld [vmem:[%s10190_s6 + $0x10b0] sm:$0xff]  ;;  %v9442_v34 = vcombine.low %v927_v15, %v931_v46 }
 0x29c   : > { %7358 = vmatpush1.bf16.msra.mxu0 %v9362_v8  ;;  %7389 = vmatprep.mubr.bf16.mxu0 %v10392_v57  ;;  %v9323_v8 = vcombine.high %v807_v62, %v811_v56  ;;  %v9322_v54 = vcombine.low %v807_v62, %v811_v56  ;;  %v919_v28 = vld [vmem:[%s10190_s6 + $0x1410] sm:$0xff] }
 0x29d   : > { %v11017_v18 = vpop.f32.mrf.mxu1  ;;  %7349 = vmatmul.mubr.bf16.vlgmr.msra.gmra.mxu1 %v10396_v12  ;;  %v11020_v21 = vpop.f32.mrf.mxu0  ;;  %7359 = vmatprep.subr.bf16.mxu0 %v9355_v26  ;;  %v799_v26 = vld [vmem:[%s10190_s6 + $0x1050] sm:$0xff] }
 0x29e   : > { %7399 = vmatpush1.bf16.msra.mxu1 %v9490_v9  ;;  %7430 = vmatprep.mubr.bf16.mxu1 %v10405_v4  ;;  %v9451_v9 = vcombine.high %v935_v1, %v939_v2  ;;  %v923_v29 = vld [vmem:[%s10190_s6 + $0x1430] sm:$0xff] }
 0x29f   : > { %v11022_v25 = vpop.f32.mrf.mxu1  ;;  %7400 = vmatprep.subr.bf16.mxu1 %v9483_v13  ;;  %v7067_v32 = vpop.f32.mrf.mxu0  ;;  %v803_v13 = vld [vmem:[%s10190_s6 + $0x1070] sm:$0xff] }
 0x2a0   : > { %7360 = vmatpush1.bf16.msra.mxu0 %v9354_v19  ;;  %v9315_v19 = vcombine.high %v799_v26, %v803_v13  ;;  %v9314_v32 = vcombine.low %v799_v26, %v803_v13  ;;  %v903_v53 = vld [vmem:[%s10190_s6 + $0x1390] sm:$0xff] }
 0x2a1   : > { %v7108_v37 = vpop.f32.mrf.mxu1  ;;  %v7068_v41 = vpop.f32.mrf.mxu0  ;;  %7361 = vmatprep.subr.bf16.mxu0 %v9347_v24  ;;  %v791_v24 = vld [vmem:[%s10190_s6 + $0x1010] sm:$0xff] }
 0x2a2   : > { %7401 = vmatpush1.bf16.msra.mxu1 %v9482_v63  ;;  %v9443_v63 = vcombine.high %v927_v15, %v931_v46  ;;  %v9435_v37 = vcombine.high %v919_v28, %v923_v29  ;;  %v915_v41 = vld [vmem:[%s10190_s6 + $0x13f0] sm:$0xff] }
 0x2a3   : > { %v7109_v47 = vpop.f32.mrf.mxu1  ;;  %7402 = vmatprep.subr.bf16.mxu1 %v9475_v27  ;;  %v795_v27 = vld [vmem:[%s10190_s6 + $0x1030] sm:$0xff] }
 0x2a4   : > { %7362 = vmatpush1.bf16.msra.mxu0 %v9346_v38  ;;  %v9307_v36 = vcombine.high %v791_v24, %v795_v27  ;;  %v911_v38 = vld [vmem:[%s10190_s6 + $0x13d0] sm:$0xff]  ;;  %v9306_v47 = vcombine.low %v791_v24, %v795_v27 }
 0x2a5   : > { %7363 = vmatprep.subr.bf16.mxu0 %v9339_v30  ;;  %v1043_v30 = vld [vmem:[%s10190_s6 + $0x17f0] sm:$0xff]  ;;  %v9427_v39 = vcombine.high %v911_v38, %v915_v41 }
 0x2a6   : > { %7403 = vmatpush1.bf16.msra.mxu1 %v9474_v43  ;;  %v1039_v43 = vld [vmem:[%s10190_s6 + $0x17d0] sm:$0xff] }
 0x2a7   : > { %7404 = vmatprep.subr.bf16.mxu1 %v9467_v49  ;;  %v9434_v49 = vcombine.low %v919_v28, %v923_v29  ;;  %v9555_v51 = vcombine.high %v1039_v43, %v1043_v30  ;;  %v907_v42 = vld [vmem:[%s10190_s6 + $0x13b0] sm:$0xff] }
 0x2a8   : > { %7364 = vmatpush1.bf16.msra.mxu0 %v9338_v55  ;;  %v1031_v55 = vld [vmem:[%s10190_s6 + $0x1790] sm:$0xff]  ;;  %v9419_v62 = vcombine.high %v903_v53, %v907_v42 }
 0x2a9   : > { %7365 = vmatprep.subr.bf16.mxu0 %v9331_v52  ;;  %v9426_v52 = vcombine.low %v911_v38, %v915_v41  ;;  %v895_v1 = vld [vmem:[%s10190_s6 + $0x1350] sm:$0xff] }
 0x2aa   : > { %7405 = vmatpush1.bf16.msra.mxu1 %v9466_v58  ;;  %v1035_v58 = vld [vmem:[%s10190_s6 + $0x17b0] sm:$0xff] }
 0x2ab   : > { %7406 = vmatprep.subr.bf16.mxu1 %v9459_v59  ;;  %v9554_v59 = vcombine.low %v1039_v43, %v1043_v30  ;;  %v9547_v56 = vcombine.high %v1031_v55, %v1035_v58  ;;  %v899_v2 = vld [vmem:[%s10190_s6 + $0x1370] sm:$0xff] }
 0x2ac   : > { %7366 = vmatpush1.bf16.msra.mxu0 %v9330_v5  ;;  %v1023_v5 = vld [vmem:[%s10190_s6 + $0x1750] sm:$0xff]  ;;  %v9411_v26 = vcombine.high %v895_v1, %v899_v2 }
 0x2ad   : > { %7367 = vmatprep.subr.bf16.mxu0 %v9323_v8  ;;  %v9418_v8 = vcombine.low %v903_v53, %v907_v42  ;;  %v887_v15 = vld [vmem:[%s10190_s6 + $0x1310] sm:$0xff] }
 0x2ae   : > { %7407 = vmatpush1.bf16.msra.mxu1 %v9458_v6  ;;  %v1027_v6 = vld [vmem:[%s10190_s6 + $0x1770] sm:$0xff] }
 0x2af   : > { %7408 = vmatprep.subr.bf16.mxu1 %v9451_v9  ;;  %v9546_v9 = vcombine.low %v1031_v55, %v1035_v58  ;;  %v9539_v13 = vcombine.high %v1023_v5, %v1027_v6  ;;  %v891_v46 = vld [vmem:[%s10190_s6 + $0x1330] sm:$0xff] }
 0x2b0   : > { %7368 = vmatpush1.bf16.msra.mxu0 %v9322_v54  ;;  %v1015_v54 = vld [vmem:[%s10190_s6 + $0x1710] sm:$0xff]  ;;  %v9403_v24 = vcombine.high %v887_v15, %v891_v46 }
 0x2b1   : > { %7369 = vmatprep.subr.bf16.mxu0 %v9315_v19  ;;  %v9410_v19 = vcombine.low %v895_v1, %v899_v2  ;;  %v879_v28 = vld [vmem:[%s10190_s6 + $0x12d0] sm:$0xff] }
 0x2b2   : > { %7409 = vmatpush1.bf16.msra.mxu1 %v9450_v11  ;;  %v1019_v11 = vld [vmem:[%s10190_s6 + $0x1730] sm:$0xff] }
 0x2b3   : > { %7410 = vmatprep.subr.bf16.mxu1 %v9443_v63  ;;  %v9538_v63 = vcombine.low %v1023_v5, %v1027_v6  ;;  %v9531_v27 = vcombine.high %v1015_v54, %v1019_v11  ;;  %v883_v29 = vld [vmem:[%s10190_s6 + $0x12f0] sm:$0xff] }
 0x2b4   : > { %7370 = vmatpush1.bf16.msra.mxu0 %v9314_v32  ;;  %v1007_v32 = vld [vmem:[%s10190_s6 + $0x16d0] sm:$0xff]  ;;  %v9395_v38 = vcombine.high %v879_v28, %v883_v29 }
 0x2b5   : > { %7371 = vmatprep.subr.bf16.mxu0 %v9307_v36  ;;  %v9402_v36 = vcombine.low %v887_v15, %v891_v46  ;;  %v871_v43 = vld [vmem:[%s10190_s6 + $0x1290] sm:$0xff] }
 0x2b6   : > { %7411 = vmatpush1.bf16.msra.mxu1 %v9442_v34  ;;  %v1011_v34 = vld [vmem:[%s10190_s6 + $0x16f0] sm:$0xff] }
 0x2b7   : > { %7412 = vmatprep.subr.bf16.mxu1 %v9435_v37  ;;  %v9530_v37 = vcombine.low %v1015_v54, %v1019_v11  ;;  %v9523_v41 = vcombine.high %v1007_v32, %v1011_v34  ;;  %v875_v30 = vld [vmem:[%s10190_s6 + $0x12b0] sm:$0xff] }
 0x2b8   : > { %7372 = vmatpush1.bf16.msra.mxu0 %v9306_v47  ;;  %v999_v47 = vld [vmem:[%s10190_s6 + $0x1690] sm:$0xff]  ;;  %v9387_v53 = vcombine.high %v871_v43, %v875_v30 }
 0x2b9   : > { %7373 = vmatprep.subr.bf16.mxu0 %v9427_v39  ;;  %v9394_v39 = vcombine.low %v879_v28, %v883_v29  ;;  %v863_v55 = vld [vmem:[%s10190_s6 + $0x1250] sm:$0xff]  ;;  %v7064_v29 = vadd.f32 %v11012_v16, %v10943_v60 }
 0x2ba   : > { %7413 = vmatpush1.bf16.msra.mxu1 %v9434_v49  ;;  %v1003_v49 = vld [vmem:[%s10190_s6 + $0x16b0] sm:$0xff] }
 0x2bb   : > { %7414 = vmatprep.subr.bf16.mxu1 %v9555_v51  ;;  %v9522_v51 = vcombine.low %v1007_v32, %v1011_v34  ;;  %v9515_v42 = vcombine.high %v999_v47, %v1003_v49  ;;  %v867_v58 = vld [vmem:[%s10190_s6 + $0x1270] sm:$0xff] }
 0x2bc   : > { %7374 = vmatpush2.bf16.msra.mxu0 %v9426_v52  ;;  %v991_v52 = vld [vmem:[%s10190_s6 + $0x1650] sm:$0xff]  ;;  %v9379_v1 = vcombine.high %v863_v55, %v867_v58 }
 0x2bd   : > { %7375 = vmatprep.subr.bf16.mxu0 %v9419_v62  ;;  %v9386_v62 = vcombine.low %v871_v43, %v875_v30  ;;  %v855_v5 = vld [vmem:[%s10190_s6 + $0x1210] sm:$0xff]  ;;  %v7066_v30 = vadd.f32 %v11020_v21, %v10952_v20 }
 0x2be   : > { %7415 = vmatpush2.bf16.msra.mxu1 %v9554_v59  ;;  %v995_v59 = vld [vmem:[%s10190_s6 + $0x1670] sm:$0xff] }
 0x2bf   : > { %7416 = vmatprep.subr.bf16.mxu1 %v9547_v56  ;;  %v9514_v56 = vcombine.low %v999_v47, %v1003_v49  ;;  %v9507_v2 = vcombine.high %v991_v52, %v995_v59  ;;  %v859_v6 = vld [vmem:[%s10190_s6 + $0x1230] sm:$0xff]  ;;  %v7105_v49 = vadd.f32 %v11017_v18, %v7064_v29  ;;  %v7107_v20 = vadd.f32 %v11022_v25, %v7066_v30 }
 0x2c0   : > { %7376 = vmatpush2.bf16.msra.mxu0 %v9418_v8  ;;  %v983_v8 = vld [vmem:[%s10190_s6 + $0x1610] sm:$0xff]  ;;  %v9371_v15 = vcombine.high %v855_v5, %v859_v6 }
 0x2c1   : > { %7377 = vmatprep.subr.bf16.mxu0 %v9411_v26  ;;  %v9378_v26 = vcombine.low %v863_v55, %v867_v58  ;;  %v1103_v54 = vld [vmem:[%s10190_s6 + $0x19d0] sm:$0xff] }
 0x2c2   : > { %7417 = vmatpush2.bf16.msra.mxu1 %v9546_v9  ;;  %v987_v9 = vld [vmem:[%s10190_s6 + $0x1630] sm:$0xff] }
 0x2c3   : > { %7418 = vmatprep.subr.bf16.mxu1 %v9539_v13  ;;  %v9506_v13 = vcombine.low %v991_v52, %v995_v59  ;;  %v9499_v46 = vcombine.high %v983_v8, %v987_v9  ;;  %v1107_v11 = vld [vmem:[%s10190_s6 + $0x19f0] sm:$0xff] }
 0x2c4   : > { %7378 = vmatpush2.bf16.msra.mxu0 %v9410_v19  ;;  %v1231_v19 = vld [vmem:[%s10190_s6 + $0x1dd0] sm:$0xff]  ;;  %v9619_v28 = vcombine.high %v1103_v54, %v1107_v11  ;;  %v9618_v47 = vcombine.low %v1103_v54, %v1107_v11 }
 0x2c5   : > { %7379 = vmatprep.subr.bf16.mxu0 %v9403_v24  ;;  %v9370_v24 = vcombine.low %v855_v5, %v859_v6  ;;  %v1095_v34 = vld [vmem:[%s10190_s6 + $0x1990] sm:$0xff] }
 0x2c6   : > { %7419 = vmatpush2.bf16.msra.mxu1 %v9538_v63  ;;  %v1235_v63 = vld [vmem:[%s10190_s6 + $0x1df0] sm:$0xff] }
 0x2c7   : > { %7420 = vmatprep.subr.bf16.mxu1 %v9531_v27  ;;  %v9498_v27 = vcombine.low %v983_v8, %v987_v9  ;;  %v9747_v32 = vcombine.high %v1231_v19, %v1235_v63  ;;  %v9746_v60 = vcombine.low %v1231_v19, %v1235_v63  ;;  %v1215_v55 = vld [vmem:[%s10190_s6 + $0x1d50] sm:$0xff] }
 0x2c8   : > { %7380 = vmatpush2.bf16.msra.mxu0 %v9402_v36  ;;  %v1099_v36 = vld [vmem:[%s10190_s6 + $0x19b0] sm:$0xff] }
 0x2c9   : > { %7381 = vmatprep.subr.bf16.mxu0 %v9395_v38  ;;  %v1227_v38 = vld [vmem:[%s10190_s6 + $0x1db0] sm:$0xff]  ;;  %v9611_v16 = vcombine.high %v1095_v34, %v1099_v36  ;;  %v9610_v18 = vcombine.low %v1095_v34, %v1099_v36 }
 0x2ca   : > { %7421 = vmatpush2.bf16.msra.mxu1 %v9530_v37  ;;  %v1223_v37 = vld [vmem:[%s10190_s6 + $0x1d90] sm:$0xff] }
 0x2cb   : > { %7422 = vmatprep.subr.bf16.mxu1 %v9523_v41  ;;  %v10127_v41 = vmov 1983009808   ;;  %v1219_v58 = vld [vmem:[%s10190_s6 + $0x1d70] sm:$0xff] }
 0x2cc   : > { %7382 = vmatpush2.bf16.msra.mxu0 %v9394_v39  ;;  %v7860_v43 = vunpack.c.l.s4 %v10127_v41  ;;  %v9739_v39 = vcombine.high %v1223_v37, %v1227_v38  ;;  %v9731_v6 = vcombine.high %v1215_v55, %v1219_v58  ;;  %v1079_v8 = vld [vmem:[%s10190_s6 + $0x1910] sm:$0xff] }
 0x2cd   : > { %7383 = vmatprep.subr.bf16.mxu0 %v9387_v53  ;;  %v1091_v53 = vld [vmem:[%s10190_s6 + $0x1970] sm:$0xff] }
 0x2ce   : > { %7423 = vmatpush2.bf16.msra.mxu1 %v9522_v51  ;;  %v1087_v51 = vld [vmem:[%s10190_s6 + $0x1950] sm:$0xff]  ;;  %v7861_v52 = vunpack.c.0.s8 %v7860_v43 }
 0x2cf   : > { %7424 = vmatprep.subr.bf16.mxu1 %v9515_v42  ;;  %v1083_v25 = vld [vmem:[%s10190_s6 + $0x1930] sm:$0xff]  ;;  %v9602_v19 = vcombine.low %v1087_v51, %v1091_v53 }
 0x2d0   : > { %7384 = vmatpush2.bf16.msra.mxu0 %v9386_v62  ;;  %v1071_v34 = vld [vmem:[%s10190_s6 + $0x18d0] sm:$0xff]  ;;  %v9594_v30 = vcombine.low %v1079_v8, %v1083_v25 }
 0x2d1   : > { %7385 = vmatprep.subr.bf16.mxu0 %v9379_v1  ;;  %v9603_v1 = vcombine.high %v1087_v51, %v1091_v53  ;;  %v1075_v36 = vld [vmem:[%s10190_s6 + $0x18f0] sm:$0xff] }
 0x2d2   : > { %7425 = vmatpush2.bf16.msra.mxu1 %v9514_v56  ;;  %v9738_v56 = vcombine.low %v1223_v37, %v1227_v38  ;;  %v1199_v37 = vld [vmem:[%s10190_s6 + $0x1cd0] sm:$0xff] }
 0x2d3   : > { %7426 = vmatprep.subr.bf16.mxu1 %v9507_v2  ;;  %v1203_v38 = vld [vmem:[%s10190_s6 + $0x1cf0] sm:$0xff] }
 0x2d4   : > { %7386 = vmatpush2.bf16.msra.mxu0 %v9378_v26  ;;  %v1207_v26 = vld [vmem:[%s10190_s6 + $0x1d10] sm:$0xff] }
 0x2d5   : > { %7387 = vmatprep.subr.bf16.mxu0 %v9371_v15  ;;  %v11105_v15 = vsub.s32 %v7861_v52, %v10215_v45  ;;  %v1063_v51 = vld [vmem:[%s10190_s6 + $0x1890] sm:$0xff]  ;;  %v9707_v52 = vcombine.high %v1191_v50, %v1195_v61 }
 0x2d6   : > { %7427 = vmatpush2.bf16.msra.mxu1 %v9506_v13  ;;  %v1211_v13 = vld [vmem:[%s10190_s6 + $0x1d30] sm:$0xff] }
 0x2d7   : > { %7428 = vmatprep.subr.bf16.mxu1 %v9499_v46  ;;  %v7865_v41 = vrot.slane %v7857_v3, %v11105_v15  ;;  %v1067_v53 = vld [vmem:[%s10190_s6 + $0x18b0] sm:$0xff] }
 0x2d8   : > { %7388 = vmatpush2.bf16.msra.mxu0 %v9370_v24  ;;  %v9730_v24 = vcombine.low %v1215_v55, %v1219_v58  ;;  %v9714_v55 = vcombine.low %v1199_v37, %v1203_v38  ;;  %v9579_v58 = vcombine.high %v1063_v51, %v1067_v53 }
 0x2d9   : > { %7439 = vmatprep.subr.bf16.mxu0 %v9619_v28 }
 0x2da   : > { %7429 = vmatpush2.bf16.msra.mxu1 %v9498_v27  ;;  %v9595_v27 = vcombine.high %v1079_v8, %v1083_v25  ;;  %v1175_v8 = vld [vmem:[%s10190_s6 + $0x1c10] sm:$0xff] }
 0x2db   : > { %7480 = vmatprep.subr.bf16.mxu1 %v9747_v32  ;;  %v7145_v42 = vpop.f32.mrf.mxu0  ;;  %7390 = vmatmul.mubr.bf16.vlgmr.msra.gmra.mxu0 %v10475_v22  ;;  %v9723_v32 = vcombine.high %v1207_v26, %v1211_v13  ;;  %v1179_v25 = vld [vmem:[%s10190_s6 + $0x1c30] sm:$0xff] }
 0x2dc   : > { %v7146_v21 = vadd.f32 %v7145_v42, %v7105_v49  ;;  %7440 = vmatpush1.bf16.msra.mxu0 %v9618_v47  ;;  %7471 = vmatprep.mubr.bf16.mxu0 %v10482_v33  ;;  %v273_v47 = vld [vmem:[#allocation2] sm:$0xff]  ;;  %v9586_v42 = vcombine.low %v1071_v34, %v1075_v36 }
 0x2dd   : > { %v7186_v59 = vpop.f32.mrf.mxu1  ;;  %7431 = vmatmul.mubr.bf16.vlgmr.msra.gmra.mxu1 %v10486_v35  ;;  %v7147_v62 = vpop.f32.mrf.mxu0  ;;  %7441 = vmatprep.subr.bf16.mxu0 %v9611_v16  ;;  %v9587_v16 = vcombine.high %v1071_v34, %v1075_v36  ;;  %v1163_v34 = vld [vmem:[%s10190_s6 + $0x1bb0] sm:$0xff] }
 0x2de   : > { %7481 = vmatpush1.bf16.msra.mxu1 %v9746_v60  ;;  %v7148_v2 = vadd.f32 %v7147_v62, %v7107_v20  ;;  %7512 = vmatprep.mubr.bf16.mxu1 %v10495_v44  ;;  %v7187_v46 = vadd.f32 %v7186_v59, %v7146_v21  ;;  %v9722_v60 = vcombine.low %v1207_v26, %v1211_v13  ;;  %v1055_v20 = vld [vmem:[%s10190_s6 + $0x1850] sm:$0xff] }
 0x2df   : > { %v7188_v5 = vpop.f32.mrf.mxu1  ;;  %7482 = vmatprep.subr.bf16.mxu1 %v9739_v39  ;;  %v7149_v9 = vpop.f32.mrf.mxu0  ;;  %v9715_v39 = vcombine.high %v1199_v37, %v1203_v38  ;;  %v1059_v21 = vld [vmem:[%s10190_s6 + $0x1870] sm:$0xff]  ;;  %v9578_v62 = vcombine.low %v1063_v51, %v1067_v53 }
 0x2e0   : > { %v7189_v54 = vadd.f32 %v7188_v5, %v7148_v2  ;;  %7442 = vmatpush1.bf16.msra.mxu0 %v9610_v18  ;;  %v1183_v59 = vld [vmem:[%s10190_s6 + $0x1c50] sm:$0xff]  ;;  %v9570_v9 = vcombine.low %v1055_v20, %v1059_v21 }
 0x2e1   : > { %v7190_v11 = vpop.f32.mrf.mxu1  ;;  %v7150_v63 = vpop.f32.mrf.mxu0  ;;  %7443 = vmatprep.subr.bf16.mxu0 %v9603_v1  ;;  %v1187_v18 = vld [vmem:[%s10190_s6 + $0x1c70] sm:$0xff]  ;;  %v9571_v1 = vcombine.high %v1055_v20, %v1059_v21 }
 0x2e2   : > { %7483 = vmatpush1.bf16.msra.mxu1 %v9738_v56  ;;  %v7858_v28 = vcombine.low %v7187_v46, %v7189_v54  ;;  %v9706_v56 = vcombine.low %v1191_v50, %v1195_v61  ;;  %v9699_v2 = vcombine.high %v1183_v59, %v1187_v18  ;;  %v1047_v5 = vld [vmem:[%s10190_s6 + $0x1810] sm:$0xff]  ;;  %v9698_v26 = vcombine.low %v1183_v59, %v1187_v18 }
 0x2e3   : > { %v7191_v29 = vpop.f32.mrf.mxu1  ;;  %7484 = vmatprep.subr.bf16.mxu1 %v9731_v6  ;;  %v1051_v6 = vld [vmem:[%s10190_s6 + $0x1830] sm:$0xff]  ;;  %v9691_v46 = vcombine.high %v1175_v8, %v1179_v25 }
 0x2e4   : > { %v7872_v43 = vrot.slane %v7858_v28, %v11105_v15  ;;  %7444 = vmatpush1.bf16.msra.mxu0 %v9602_v19  ;;  %v9563_v13 = vcombine.high %v1047_v5, %v1051_v6  ;;  %v1167_v54 = vld [vmem:[%s10190_s6 + $0x1bd0] sm:$0xff] }
 0x2e5   : > { %7445 = vmatprep.subr.bf16.mxu0 %v9595_v27  ;;  %v1171_v11 = vld [vmem:[%s10190_s6 + $0x1bf0] sm:$0xff]  ;;  %v9690_v27 = vcombine.low %v1175_v8, %v1179_v25 }
 0x2e6   : > { %7485 = vmatpush1.bf16.msra.mxu1 %v9730_v24  ;;  %v7873_v49 = vcombine.low %v7865_v41, %v7872_v43  ;;  %v1295_v19 = vld [vmem:[%s10190_s6 + $0x1fd0] sm:$0xff]  ;;  %v9562_v24 = vcombine.low %v1047_v5, %v1051_v6  ;;  %v9683_v28 = vcombine.high %v1167_v54, %v1171_v11  ;;  %v9682_v38 = vcombine.low %v1167_v54, %v1171_v11 }
 0x2e7   : > { %7486 = vmatprep.subr.bf16.mxu1 %v9723_v32  ;;  %v1299_v63 = vld [vmem:[%s10190_s6 + $0x1ff0] sm:$0xff] }
 0x2e8   : > { %v7893_v3 = vadd.f32 %v7873_v49, %v273_v47  ;;  %7446 = vmatpush1.bf16.msra.mxu0 %v9594_v30  ;;  %v9811_v29 = vcombine.high %v1295_v19, %v1299_v63  ;;  %v1159_v32 = vld [vmem:[%s10190_s6 + $0x1b90] sm:$0xff]  ;;  %v9810_v41 = vcombine.low %v1295_v19, %v1299_v63 }
 0x2e9   : > { %7447 = vmatprep.subr.bf16.mxu0 %v9587_v16  ;;  %v1287_v36 = vld [vmem:[%s10190_s6 + $0x1f90] sm:$0xff]  ;;  %v9675_v43 = vcombine.high %v1159_v32, %v1163_v34 }
 0x2ea   : > { %7487 = vmatpush1.bf16.msra.mxu1 %v9722_v60  ;;  %7895 = vst [vmem:[#allocation2] sm:$0xff] %v7893_v3  ;;  %v1291_v37 = vld [vmem:[%s10190_s6 + $0x1fb0] sm:$0xff] }
 0x2eb   : > { %7488 = vmatprep.subr.bf16.mxu1 %v9715_v39  ;;  %v9803_v30 = vcombine.high %v1287_v36, %v1291_v37  ;;  %v1151_v47 = vld [vmem:[%s10190_s6 + $0x1b50] sm:$0xff]  ;;  %v9674_v39 = vcombine.low %v1159_v32, %v1163_v34  ;;  %v9802_v51 = vcombine.low %v1287_v36, %v1291_v37 }
 0x2ec   : > { %7448 = vmatpush1.bf16.msra.mxu0 %v9586_v42  ;;  %v1155_v60 = vld [vmem:[%s10190_s6 + $0x1b70] sm:$0xff] }
 0x2ed   : > { %7449 = vmatprep.subr.bf16.mxu0 %v9579_v58  ;;  %v1279_v16 = vld [vmem:[%s10190_s6 + $0x1f50] sm:$0xff]  ;;  %v9667_v53 = vcombine.high %v1151_v47, %v1155_v60  ;;  %v9666_v58 = vcombine.low %v1151_v47, %v1155_v60 }
 0x2ee   : > { %7489 = vmatpush1.bf16.msra.mxu1 %v9714_v55  ;;  %v1283_v49 = vld [vmem:[%s10190_s6 + $0x1f70] sm:$0xff] }
 0x2ef   : > { %7490 = vmatprep.subr.bf16.mxu1 %v9707_v52  ;;  %v9795_v50 = vcombine.high %v1279_v16, %v1283_v49  ;;  %v1143_v61 = vld [vmem:[%s10190_s6 + $0x1b10] sm:$0xff]  ;;  %v9794_v52 = vcombine.low %v1279_v16, %v1283_v49  ;;  %v336_v16 = vld [vmem:[%s10190_s6 + $0x1d8] sm:$0xff] }
 0x2f0   : > { %7450 = vmatpush1.bf16.msra.mxu0 %v9578_v62  ;;  %v1147_v3 = vld [vmem:[%s10190_s6 + $0x1b30] sm:$0xff]  ;;  %v340_v49 = vld [vmem:[%s10190_s6 + $0x1f8] sm:$0xff] }
 0x2f1   : > { %7451 = vmatprep.subr.bf16.mxu0 %v9571_v1  ;;  %v1271_v42 = vld [vmem:[%s10190_s6 + $0x1f10] sm:$0xff]  ;;  %v9659_v20 = vcombine.high %v1143_v61, %v1147_v3  ;;  %v9658_v1 = vcombine.low %v1143_v61, %v1147_v3  ;;  %v8853_v61 = vcombine.high %v336_v16, %v340_v49 }
 0x2f2   : > { %7491 = vmatpush1.bf16.msra.mxu1 %v9706_v56  ;;  %v1275_v55 = vld [vmem:[%s10190_s6 + $0x1f30] sm:$0xff] }
 0x2f3   : > { %7492 = vmatprep.subr.bf16.mxu1 %v9699_v2  ;;  %v9787_v21 = vcombine.high %v1271_v42, %v1275_v55  ;;  %v1135_v59 = vld [vmem:[%s10190_s6 + $0x1ad0] sm:$0xff]  ;;  %v9786_v2 = vcombine.low %v1271_v42, %v1275_v55  ;;  %v328_v42 = vld [vmem:[%s10190_s6 + $0x198] sm:$0xff] }
 0x2f4   : > { %7452 = vmatpush1.bf16.msra.mxu0 %v9570_v9  ;;  %v1139_v18 = vld [vmem:[%s10190_s6 + $0x1af0] sm:$0xff]  ;;  %v332_v55 = vld [vmem:[%s10190_s6 + $0x1b8] sm:$0xff] }
 0x2f5   : > { %7453 = vmatprep.subr.bf16.mxu0 %v9563_v13  ;;  %v1263_v62 = vld [vmem:[%s10190_s6 + $0x1ed0] sm:$0xff]  ;;  %v9651_v5 = vcombine.high %v1135_v59, %v1139_v18  ;;  %v9650_v13 = vcombine.low %v1135_v59, %v1139_v18  ;;  %v8845_v59 = vcombine.high %v328_v42, %v332_v55 }
 0x2f6   : > { %7493 = vmatpush1.bf16.msra.mxu1 %v9698_v26  ;;  %v1267_v56 = vld [vmem:[%s10190_s6 + $0x1ef0] sm:$0xff] }
 0x2f7   : > { %7494 = vmatprep.subr.bf16.mxu1 %v9691_v46  ;;  %v9779_v6 = vcombine.high %v1263_v62, %v1267_v56  ;;  %v1127_v8 = vld [vmem:[%s10190_s6 + $0x1a90] sm:$0xff]  ;;  %v9778_v46 = vcombine.low %v1263_v62, %v1267_v56  ;;  %v320_v62 = vld [vmem:[%s10190_s6 + $0x158] sm:$0xff] }
 0x2f8   : > { %7454 = vmatpush1.bf16.msra.mxu0 %v9562_v24  ;;  %v1131_v25 = vld [vmem:[%s10190_s6 + $0x1ab0] sm:$0xff]  ;;  %v324_v56 = vld [vmem:[%s10190_s6 + $0x178] sm:$0xff] }
 0x2f9   : > { %7455 = vmatprep.subr.bf16.mxu0 %v9683_v28  ;;  %v1255_v9 = vld [vmem:[%s10190_s6 + $0x1e90] sm:$0xff]  ;;  %v9643_v54 = vcombine.high %v1127_v8, %v1131_v25  ;;  %v9642_v28 = vcombine.low %v1127_v8, %v1131_v25  ;;  %v8844_v8 = vcombine.low %v328_v42, %v332_v55 }
 0x2fa   : > { %7495 = vmatpush1.bf16.msra.mxu1 %v9690_v27  ;;  %v1259_v26 = vld [vmem:[%s10190_s6 + $0x1eb0] sm:$0xff] }
 0x2fb   : > { %7496 = vmatprep.subr.bf16.mxu1 %v9811_v29  ;;  %v9771_v11 = vcombine.high %v1255_v9, %v1259_v26  ;;  %v1119_v19 = vld [vmem:[%s10190_s6 + $0x1a50] sm:$0xff]  ;;  %v9770_v29 = vcombine.low %v1255_v9, %v1259_v26 }
 0x2fc   : > { %7456 = vmatpush2.bf16.msra.mxu0 %v9682_v38  ;;  %v1123_v63 = vld [vmem:[%s10190_s6 + $0x1a70] sm:$0xff] }
 0x2fd   : > { %7457 = vmatprep.subr.bf16.mxu0 %v9675_v43  ;;  %v1247_v24 = vld [vmem:[%s10190_s6 + $0x1e50] sm:$0xff]  ;;  %v9635_v32 = vcombine.high %v1119_v19, %v1123_v63  ;;  %v9634_v43 = vcombine.low %v1119_v19, %v1123_v63  ;;  %v316_v19 = vld [vmem:[%s10190_s6 + $0x138] sm:$0xff] }
 0x2fe   : > { %7497 = vmatpush2.bf16.msra.mxu1 %v9810_v41  ;;  %v1251_v27 = vld [vmem:[%s10190_s6 + $0x1e70] sm:$0xff] }
 0x2ff   : > { %7498 = vmatprep.subr.bf16.mxu1 %v9803_v30  ;;  %v9763_v34 = vcombine.high %v1247_v24, %v1251_v27  ;;  %v1111_v36 = vld [vmem:[%s10190_s6 + $0x1a10] sm:$0xff]  ;;  %v9762_v30 = vcombine.low %v1247_v24, %v1251_v27  ;;  %v440_v27 = vld [vmem:[%s10190_s6 + $0x518] sm:$0xff] }
 0x300   : > { %7458 = vmatpush2.bf16.msra.mxu0 %v9674_v39  ;;  %v1115_v37 = vld [vmem:[%s10190_s6 + $0x1a30] sm:$0xff]  ;;  %v464_v39 = vld [vmem:[%s10190_s6 + $0x5d8] sm:$0xff] }
 0x301   : > { %7459 = vmatprep.subr.bf16.mxu0 %v9667_v53  ;;  %v1239_v38 = vld [vmem:[%s10190_s6 + $0x1e10] sm:$0xff]  ;;  %v9627_v47 = vcombine.high %v1111_v36, %v1115_v37  ;;  %v9626_v53 = vcombine.low %v1111_v36, %v1115_v37 }
 0x302   : > { %7499 = vmatpush2.bf16.msra.mxu1 %v9802_v51  ;;  %v1243_v41 = vld [vmem:[%s10190_s6 + $0x1e30] sm:$0xff]  ;;  %v468_v51 = vld [vmem:[%s10190_s6 + $0x5f8] sm:$0xff] }
 0x303   : > { %7500 = vmatprep.subr.bf16.mxu1 %v9795_v50  ;;  %v9755_v60 = vcombine.high %v1239_v38, %v1243_v41  ;;  %v9754_v50 = vcombine.low %v1239_v38, %v1243_v41  ;;  %v8981_v3 = vcombine.high %v464_v39, %v468_v51  ;;  %v304_v41 = vld [vmem:[%s10190_s6 + $0xd8] sm:$0xff] }
 0x304   : > { %7460 = vmatpush2.bf16.msra.mxu0 %v9666_v58  ;;  %v456_v58 = vld [vmem:[%s10190_s6 + $0x598] sm:$0xff] }
 0x305   : > { %7461 = vmatprep.subr.bf16.mxu0 %v9659_v20  ;;  %v8852_v20 = vcombine.low %v336_v16, %v340_v49 }
 0x306   : > { %7501 = vmatpush2.bf16.msra.mxu1 %v9794_v52  ;;  %v460_v52 = vld [vmem:[%s10190_s6 + $0x5b8] sm:$0xff] }
 0x307   : > { %7502 = vmatprep.subr.bf16.mxu1 %v9787_v21  ;;  %v8980_v21 = vcombine.low %v464_v39, %v468_v51  ;;  %v8973_v18 = vcombine.high %v456_v58, %v460_v52  ;;  %v8972_v26 = vcombine.low %v456_v58, %v460_v52  ;;  %v296_v39 = vld [vmem:[%s10190_s6 + $0x98] sm:$0xff] }
 0x308   : > { %7462 = vmatpush2.bf16.msra.mxu0 %v9658_v1  ;;  %v300_v51 = vld [vmem:[%s10190_s6 + $0xb8] sm:$0xff] }
 0x309   : > { %7463 = vmatprep.subr.bf16.mxu0 %v9651_v5  ;;  %v452_v5 = vld [vmem:[%s10190_s6 + $0x578] sm:$0xff]  ;;  %v8813_v42 = vcombine.high %v296_v39, %v300_v51 }
 0x30a   : > { %7503 = vmatpush2.bf16.msra.mxu1 %v9786_v2  ;;  %v448_v2 = vld [vmem:[%s10190_s6 + $0x558] sm:$0xff] }
 0x30b   : > { %7504 = vmatprep.subr.bf16.mxu1 %v9779_v6  ;;  %v8964_v36 = vcombine.low %v448_v2, %v452_v5  ;;  %v288_v58 = vld [vmem:[%s10190_s6 + $0x58] sm:$0xff] }
 0x30c   : > { %7464 = vmatpush2.bf16.msra.mxu0 %v9650_v13  ;;  %v8837_v13 = vcombine.high %v320_v62, %v324_v56  ;;  %v292_v52 = vld [vmem:[%s10190_s6 + $0x78] sm:$0xff] }
 0x30d   : > { %7465 = vmatprep.subr.bf16.mxu0 %v9643_v54  ;;  %v8965_v54 = vcombine.high %v448_v2, %v452_v5  ;;  %v284_v2 = vld [vmem:[%s10190_s6 + $0x38] sm:$0xff] }
 0x30e   : > { %7505 = vmatpush2.bf16.msra.mxu1 %v9778_v46  ;;  %v408_v5 = vld [vmem:[%s10190_s6 + $0x418] sm:$0xff] }
 0x30f   : > { %7506 = vmatprep.subr.bf16.mxu1 %v9771_v11  ;;  %v312_v11 = vld [vmem:[%s10190_s6 + $0x118] sm:$0xff] }
 0x310   : > { %7466 = vmatpush2.bf16.msra.mxu0 %v9642_v28  ;;  %v444_v28 = vld [vmem:[%s10190_s6 + $0x538] sm:$0xff]  ;;  %v8829_v37 = vcombine.high %v312_v11, %v316_v19 }
 0x311   : > { %7467 = vmatprep.subr.bf16.mxu0 %v9635_v32  ;;  %v8836_v32 = vcombine.low %v320_v62, %v324_v56  ;;  %v8957_v38 = vcombine.high %v440_v27, %v444_v28  ;;  %v8805_v62 = vcombine.high %v288_v58, %v292_v52 }
 0x312   : > { %7507 = vmatpush2.bf16.msra.mxu1 %v9770_v29 }
 0x313   : > { %7508 = vmatprep.subr.bf16.mxu1 %v9763_v34 }
 0x314   : > { %7468 = vmatpush2.bf16.msra.mxu0 %v9634_v43  ;;  %v308_v43 = vld [vmem:[%s10190_s6 + $0xf8] sm:$0xff] }
 0x315   : > { %7469 = vmatprep.subr.bf16.mxu0 %v9627_v47  ;;  %v436_v47 = vld [vmem:[%s10190_s6 + $0x4f8] sm:$0xff]  ;;  %v8821_v16 = vcombine.high %v304_v41, %v308_v43 }
 0x316   : > { %7509 = vmatpush2.bf16.msra.mxu1 %v9762_v30  ;;  %v432_v30 = vld [vmem:[%s10190_s6 + $0x4d8] sm:$0xff] }
 0x317   : > { %7510 = vmatprep.subr.bf16.mxu1 %v9755_v60  ;;  %v8956_v60 = vcombine.low %v440_v27, %v444_v28  ;;  %v8949_v49 = vcombine.high %v432_v30, %v436_v47 }
 0x318   : > { %7470 = vmatpush2.bf16.msra.mxu0 %v9626_v53  ;;  %v424_v53 = vld [vmem:[%s10190_s6 + $0x498] sm:$0xff] }
 0x319   : > { %7521 = vmatprep.subr.bf16.mxu0 %v8853_v61  ;;  %v8820_v61 = vcombine.low %v304_v41, %v308_v43 }
 0x31a   : > { %7511 = vmatpush2.bf16.msra.mxu1 %v9754_v50  ;;  %v428_v50 = vld [vmem:[%s10190_s6 + $0x4b8] sm:$0xff] }
 0x31b   : > { %7562 = vmatprep.subr.bf16.mxu1 %v8981_v3  ;;  %v7227_v1 = vpop.f32.mrf.mxu0  ;;  %7472 = vmatmul.mubr.bf16.vlgmr.msra.gmra.mxu0 %v10558_v7  ;;  %v8948_v3 = vcombine.low %v432_v30, %v436_v47  ;;  %v8941_v55 = vcombine.high %v424_v53, %v428_v50  ;;  %v384_v30 = vld [vmem:[%s10190_s6 + $0x358] sm:$0xff] }
 0x31c   : > { %7522 = vmatpush1.bf16.msra.mxu0 %v8852_v20  ;;  %7553 = vmatprep.mubr.bf16.mxu0 %v10242_v10  ;;  %v416_v20 = vld [vmem:[%s10190_s6 + $0x458] sm:$0xff] }
 0x31d   : > { %v7268_v6 = vpop.f32.mrf.mxu1  ;;  %7513 = vmatmul.mubr.bf16.vlgmr.msra.gmra.mxu1 %v10566_v17  ;;  %v7229_v9 = vpop.f32.mrf.mxu0  ;;  %7523 = vmatprep.subr.bf16.mxu0 %v8845_v59  ;;  %v8812_v59 = vcombine.low %v296_v39, %v300_v51  ;;  %v388_v47 = vld [vmem:[%s10190_s6 + $0x378] sm:$0xff] }
 0x31e   : > { %v11174_v25 = vadd.f32 %v7268_v6, %v7227_v1  ;;  %7563 = vmatpush1.bf16.msra.mxu1 %v8980_v21  ;;  %7594 = vmatprep.mubr.bf16.mxu1 %v10249_v14  ;;  %v8828_v14 = vcombine.low %v312_v11, %v316_v19  ;;  %v420_v21 = vld [vmem:[%s10190_s6 + $0x478] sm:$0xff]  ;;  %v8901_v39 = vcombine.high %v384_v30, %v388_v47 }
 0x31f   : > { %v7270_v46 = vpop.f32.mrf.mxu1  ;;  %7564 = vmatprep.subr.bf16.mxu1 %v8973_v18  ;;  %v7231_v24 = vpop.f32.mrf.mxu0  ;;  %v8940_v18 = vcombine.low %v424_v53, %v428_v50  ;;  %v8933_v56 = vcombine.high %v416_v20, %v420_v21  ;;  %v280_v1 = vld [vmem:[%s10190_s6 + $0x18] sm:$0xff] }
 0x320   : > { %v11179_v63 = vadd.f32 %v7270_v46, %v7229_v9  ;;  %7524 = vmatpush1.bf16.msra.mxu0 %v8844_v8  ;;  %v412_v6 = vld [vmem:[%s10190_s6 + $0x438] sm:$0xff]  ;;  %v8804_v8 = vcombine.low %v288_v58, %v292_v52  ;;  %v8932_v9 = vcombine.low %v416_v20, %v420_v21  ;;  %v8796_v24 = vcombine.low %v280_v1, %v284_v2 }
 0x321   : > { %v7272_v29 = vpop.f32.mrf.mxu1  ;;  %v7232_v34 = vpop.f32.mrf.mxu0  ;;  %7525 = vmatprep.subr.bf16.mxu0 %v8837_v13  ;;  %v8925_v13 = vcombine.high %v408_v5, %v412_v6  ;;  %v400_v46 = vld [vmem:[%s10190_s6 + $0x3d8] sm:$0xff]  ;;  %v8924_v27 = vcombine.low %v408_v5, %v412_v6 }
 0x322   : > { %7565 = vmatpush1.bf16.msra.mxu1 %v8972_v26  ;;  %v8797_v26 = vcombine.high %v280_v1, %v284_v2  ;;  %v528_v11 = vld [vmem:[%s10190_s6 + $0x7d8] sm:$0xff] }
 0x323   : > { %v7273_v10 = vpop.f32.mrf.mxu1  ;;  %7566 = vmatprep.subr.bf16.mxu1 %v8965_v54  ;;  %v404_v54 = vld [vmem:[%s10190_s6 + $0x3f8] sm:$0xff] }
 0x324   : > { %7526 = vmatpush1.bf16.msra.mxu0 %v8836_v32  ;;  %v532_v19 = vld [vmem:[%s10190_s6 + $0x7f8] sm:$0xff]  ;;  %v8917_v28 = vcombine.high %v400_v46, %v404_v54  ;;  %v8916_v10 = vcombine.low %v400_v46, %v404_v54 }
 0x325   : > { %7527 = vmatprep.subr.bf16.mxu0 %v8829_v37  ;;  %v9045_v29 = vcombine.high %v528_v11, %v532_v19  ;;  %v392_v32 = vld [vmem:[%s10190_s6 + $0x398] sm:$0xff] }
 0x326   : > { %7567 = vmatpush1.bf16.msra.mxu1 %v8964_v36  ;;  %v396_v34 = vld [vmem:[%s10190_s6 + $0x3b8] sm:$0xff] }
 0x327   : > { %7568 = vmatprep.subr.bf16.mxu1 %v8957_v38  ;;  %v520_v36 = vld [vmem:[%s10190_s6 + $0x798] sm:$0xff]  ;;  %v9044_v38 = vcombine.low %v528_v11, %v532_v19  ;;  %v8909_v41 = vcombine.high %v392_v32, %v396_v34 }
 0x328   : > { %7528 = vmatpush1.bf16.msra.mxu0 %v8828_v14  ;;  %v524_v37 = vld [vmem:[%s10190_s6 + $0x7b8] sm:$0xff] }
 0x329   : > { %7529 = vmatprep.subr.bf16.mxu0 %v8821_v16  ;;  %v9037_v43 = vcombine.high %v520_v36, %v524_v37  ;;  %v512_v14 = vld [vmem:[%s10190_s6 + $0x758] sm:$0xff]  ;;  %v8908_v16 = vcombine.low %v392_v32, %v396_v34 }
 0x32a   : > { %7569 = vmatpush1.bf16.msra.mxu1 %v8956_v60  ;;  %v516_v60 = vld [vmem:[%s10190_s6 + $0x778] sm:$0xff] }
 0x32b   : > { %7570 = vmatprep.subr.bf16.mxu1 %v8949_v49  ;;  %v9036_v49 = vcombine.low %v520_v36, %v524_v37  ;;  %v9029_v51 = vcombine.high %v512_v14, %v516_v60  ;;  %v376_v53 = vld [vmem:[%s10190_s6 + $0x318] sm:$0xff] }
 0x32c   : > { %7530 = vmatpush1.bf16.msra.mxu0 %v8820_v61  ;;  %v380_v50 = vld [vmem:[%s10190_s6 + $0x338] sm:$0xff] }
 0x32d   : > { %7531 = vmatprep.subr.bf16.mxu0 %v8813_v42  ;;  %v504_v61 = vld [vmem:[%s10190_s6 + $0x718] sm:$0xff]  ;;  %v8900_v42 = vcombine.low %v384_v30, %v388_v47  ;;  %v8893_v58 = vcombine.high %v376_v53, %v380_v50 }
 0x32e   : > { %7571 = vmatpush1.bf16.msra.mxu1 %v8948_v3  ;;  %v508_v3 = vld [vmem:[%s10190_s6 + $0x738] sm:$0xff] }
 0x32f   : > { %7572 = vmatprep.subr.bf16.mxu1 %v8941_v55  ;;  %v9028_v55 = vcombine.low %v512_v14, %v516_v60  ;;  %v9021_v52 = vcombine.high %v504_v61, %v508_v3  ;;  %v368_v20 = vld [vmem:[%s10190_s6 + $0x2d8] sm:$0xff] }
 0x330   : > { %7532 = vmatpush1.bf16.msra.mxu0 %v8812_v59  ;;  %v372_v21 = vld [vmem:[%s10190_s6 + $0x2f8] sm:$0xff] }
 0x331   : > { %7533 = vmatprep.subr.bf16.mxu0 %v8805_v62  ;;  %v496_v59 = vld [vmem:[%s10190_s6 + $0x6d8] sm:$0xff]  ;;  %v8892_v62 = vcombine.low %v376_v53, %v380_v50  ;;  %v8885_v1 = vcombine.high %v368_v20, %v372_v21 }
 0x332   : > { %7573 = vmatpush1.bf16.msra.mxu1 %v8940_v18  ;;  %v500_v18 = vld [vmem:[%s10190_s6 + $0x6f8] sm:$0xff] }
 0x333   : > { %7574 = vmatprep.subr.bf16.mxu1 %v8933_v56  ;;  %v9020_v56 = vcombine.low %v504_v61, %v508_v3  ;;  %v9013_v2 = vcombine.high %v496_v59, %v500_v18  ;;  %v360_v5 = vld [vmem:[%s10190_s6 + $0x298] sm:$0xff] }
 0x334   : > { %7534 = vmatpush1.bf16.msra.mxu0 %v8804_v8  ;;  %v364_v6 = vld [vmem:[%s10190_s6 + $0x2b8] sm:$0xff] }
 0x335   : > { %7535 = vmatprep.subr.bf16.mxu0 %v8797_v26  ;;  %v488_v8 = vld [vmem:[%s10190_s6 + $0x698] sm:$0xff]  ;;  %v8884_v26 = vcombine.low %v368_v20, %v372_v21  ;;  %v8877_v46 = vcombine.high %v360_v5, %v364_v6 }
 0x336   : > { %7575 = vmatpush1.bf16.msra.mxu1 %v8932_v9  ;;  %v492_v9 = vld [vmem:[%s10190_s6 + $0x6b8] sm:$0xff] }
 0x337   : > { %7576 = vmatprep.subr.bf16.mxu1 %v8925_v13  ;;  %v9012_v13 = vcombine.low %v496_v59, %v500_v18  ;;  %v9005_v54 = vcombine.high %v488_v8, %v492_v9  ;;  %v352_v11 = vld [vmem:[%s10190_s6 + $0x258] sm:$0xff] }
 0x338   : > { %7536 = vmatpush1.bf16.msra.mxu0 %v8796_v24  ;;  %v356_v19 = vld [vmem:[%s10190_s6 + $0x278] sm:$0xff] }
 0x339   : > { %7537 = vmatprep.subr.bf16.mxu0 %v8917_v28  ;;  %v480_v24 = vld [vmem:[%s10190_s6 + $0x658] sm:$0xff]  ;;  %v8876_v28 = vcombine.low %v360_v5, %v364_v6  ;;  %v8869_v32 = vcombine.high %v352_v11, %v356_v19 }
 0x33a   : > { %7577 = vmatpush1.bf16.msra.mxu1 %v8924_v27  ;;  %v484_v27 = vld [vmem:[%s10190_s6 + $0x678] sm:$0xff] }
 0x33b   : > { %7578 = vmatprep.subr.bf16.mxu1 %v9045_v29  ;;  %v9004_v29 = vcombine.low %v488_v8, %v492_v9  ;;  %v8997_v34 = vcombine.high %v480_v24, %v484_v27  ;;  %v344_v36 = vld [vmem:[%s10190_s6 + $0x218] sm:$0xff] }
 0x33c   : > { %7538 = vmatpush2.bf16.msra.mxu0 %v8916_v10  ;;  %v348_v37 = vld [vmem:[%s10190_s6 + $0x238] sm:$0xff] }
 0x33d   : > { %7539 = vmatprep.subr.bf16.mxu0 %v8909_v41  ;;  %v472_v10 = vld [vmem:[%s10190_s6 + $0x618] sm:$0xff]  ;;  %v8868_v41 = vcombine.low %v352_v11, %v356_v19  ;;  %v8861_v30 = vcombine.high %v344_v36, %v348_v37 }
 0x33e   : > { %7579 = vmatpush2.bf16.msra.mxu1 %v9044_v38  ;;  %v476_v38 = vld [vmem:[%s10190_s6 + $0x638] sm:$0xff] }
 0x33f   : > { %7580 = vmatprep.subr.bf16.mxu1 %v9037_v43  ;;  %v8996_v43 = vcombine.low %v480_v24, %v484_v27  ;;  %v8989_v47 = vcombine.high %v472_v10, %v476_v38  ;;  %v592_v14 = vld [vmem:[%s10190_s6 + $0x9d8] sm:$0xff] }
 0x340   : > { %7540 = vmatpush2.bf16.msra.mxu0 %v8908_v16  ;;  %v596_v60 = vld [vmem:[%s10190_s6 + $0x9f8] sm:$0xff] }
 0x341   : > { %7541 = vmatprep.subr.bf16.mxu0 %v8901_v39  ;;  %v720_v16 = vld [vmem:[%s10190_s6 + $0xdd8] sm:$0xff]  ;;  %v8860_v39 = vcombine.low %v344_v36, %v348_v37  ;;  %v9109_v53 = vcombine.high %v592_v14, %v596_v60 }
 0x342   : > { %7581 = vmatpush2.bf16.msra.mxu1 %v9036_v49  ;;  %v724_v49 = vld [vmem:[%s10190_s6 + $0xdf8] sm:$0xff] }
 0x343   : > { %7582 = vmatprep.subr.bf16.mxu1 %v9029_v51  ;;  %v8988_v51 = vcombine.low %v472_v10, %v476_v38  ;;  %v9237_v50 = vcombine.high %v720_v16, %v724_v49  ;;  %v584_v61 = vld [vmem:[%s10190_s6 + $0x998] sm:$0xff] }
 0x344   : > { %7542 = vmatpush2.bf16.msra.mxu0 %v8900_v42  ;;  %v588_v3 = vld [vmem:[%s10190_s6 + $0x9b8] sm:$0xff] }
 0x345   : > { %7543 = vmatprep.subr.bf16.mxu0 %v8893_v58  ;;  %v712_v42 = vld [vmem:[%s10190_s6 + $0xd98] sm:$0xff]  ;;  %v9108_v58 = vcombine.low %v592_v14, %v596_v60  ;;  %v9101_v20 = vcombine.high %v584_v61, %v588_v3  ;;  %v9100_v6 = vcombine.low %v584_v61, %v588_v3 }
 0x346   : > { %7583 = vmatpush2.bf16.msra.mxu1 %v9028_v55  ;;  %v716_v55 = vld [vmem:[%s10190_s6 + $0xdb8] sm:$0xff] }
 0x347   : > { %7584 = vmatprep.subr.bf16.mxu1 %v9021_v52  ;;  %v9236_v52 = vcombine.low %v720_v16, %v724_v49  ;;  %v9229_v21 = vcombine.high %v712_v42, %v716_v55  ;;  %v576_v59 = vld [vmem:[%s10190_s6 + $0x958] sm:$0xff]  ;;  %v9228_v9 = vcombine.low %v712_v42, %v716_v55 }
 0x348   : > { %7544 = vmatpush2.bf16.msra.mxu0 %v8892_v62  ;;  %v580_v18 = vld [vmem:[%s10190_s6 + $0x978] sm:$0xff] }
 0x349   : > { %7545 = vmatprep.subr.bf16.mxu0 %v8885_v1  ;;  %v708_v1 = vld [vmem:[%s10190_s6 + $0xd78] sm:$0xff] }
 0x34a   : > { %7585 = vmatpush2.bf16.msra.mxu1 %v9020_v56  ;;  %v704_v56 = vld [vmem:[%s10190_s6 + $0xd58] sm:$0xff] }
 0x34b   : > { %7586 = vmatprep.subr.bf16.mxu1 %v9013_v2  ;;  %v572_v11 = vld [vmem:[%s10190_s6 + $0x938] sm:$0xff] }
 0x34c   : > { %7546 = vmatpush2.bf16.msra.mxu0 %v8884_v26  ;;  %v9093_v26 = vcombine.high %v576_v59, %v580_v18  ;;  %v696_v19 = vld [vmem:[%s10190_s6 + $0xd18] sm:$0xff] }
 0x34d   : > { %7547 = vmatprep.subr.bf16.mxu0 %v8877_v46  ;;  %v700_v24 = vld [vmem:[%s10190_s6 + $0xd38] sm:$0xff] }
 0x34e   : > { %7587 = vmatpush2.bf16.msra.mxu1 %v9012_v13  ;;  %v9213_v36 = vcombine.high %v696_v19, %v700_v24  ;;  %v560_v37 = vld [vmem:[%s10190_s6 + $0x8d8] sm:$0xff] }
 0x34f   : > { %7588 = vmatprep.subr.bf16.mxu1 %v9005_v54  ;;  %v568_v54 = vld [vmem:[%s10190_s6 + $0x918] sm:$0xff] }
 0x350   : > { %7548 = vmatpush2.bf16.msra.mxu0 %v8876_v28  ;;  %v688_v10 = vld [vmem:[%s10190_s6 + $0xcd8] sm:$0xff] }
 0x351   : > { %7549 = vmatprep.subr.bf16.mxu0 %v8869_v32  ;;  %v9220_v32 = vcombine.low %v704_v56, %v708_v1  ;;  %v692_v38 = vld [vmem:[%s10190_s6 + $0xcf8] sm:$0xff] }
 0x352   : > { %7589 = vmatpush2.bf16.msra.mxu1 %v9004_v29  ;;  %v552_v14 = vld [vmem:[%s10190_s6 + $0x898] sm:$0xff] }
 0x353   : > { %7590 = vmatprep.subr.bf16.mxu1 %v8997_v34  ;;  %v9085_v34 = vcombine.high %v568_v54, %v572_v11  ;;  %v556_v60 = vld [vmem:[%s10190_s6 + $0x8b8] sm:$0xff] }
 0x354   : > { %7550 = vmatpush2.bf16.msra.mxu0 %v8868_v41  ;;  %v9084_v41 = vcombine.low %v568_v54, %v572_v11  ;;  %v680_v16 = vld [vmem:[%s10190_s6 + $0xc98] sm:$0xff] }
 0x355   : > { %7551 = vmatprep.subr.bf16.mxu0 %v8861_v30  ;;  %v684_v49 = vld [vmem:[%s10190_s6 + $0xcb8] sm:$0xff] }
 0x356   : > { %7591 = vmatpush2.bf16.msra.mxu1 %v8996_v43  ;;  %v9212_v43 = vcombine.low %v696_v19, %v700_v24  ;;  %v544_v61 = vld [vmem:[%s10190_s6 + $0x858] sm:$0xff] }
 0x357   : > { %7592 = vmatprep.subr.bf16.mxu1 %v8989_v47  ;;  %v9205_v47 = vcombine.high %v688_v10, %v692_v38  ;;  %v548_v3 = vld [vmem:[%s10190_s6 + $0x878] sm:$0xff] }
 0x358   : > { %7552 = vmatpush2.bf16.msra.mxu0 %v8860_v39  ;;  %v672_v42 = vld [vmem:[%s10190_s6 + $0xc58] sm:$0xff] }
 0x359   : > { %7603 = vmatprep.subr.bf16.mxu0 %v9109_v53  ;;  %v9069_v53 = vcombine.high %v552_v14, %v556_v60  ;;  %v676_v55 = vld [vmem:[%s10190_s6 + $0xc78] sm:$0xff] }
 0x35a   : > { %7593 = vmatpush2.bf16.msra.mxu1 %v8988_v51  ;;  %v9204_v51 = vcombine.low %v688_v10, %v692_v38  ;;  %v652_v19 = vld [vmem:[%s10190_s6 + $0xbb8] sm:$0xff] }
 0x35b   : > { %7644 = vmatprep.subr.bf16.mxu1 %v9237_v50  ;;  %v7309_v62 = vpop.f32.mrf.mxu0  ;;  %7554 = vmatmul.mubr.bf16.vlgmr.msra.gmra.mxu0 %v10293_v23  ;;  %v9197_v50 = vcombine.high %v680_v16, %v684_v49  ;;  %v776_v24 = vld [vmem:[%s10190_s6 + $0xf98] sm:$0xff] }
 0x35c   : > { %v7310_v2 = vadd.f32 %v7309_v62, %v11174_v25  ;;  %7604 = vmatpush1.bf16.msra.mxu0 %v9108_v58  ;;  %v9221_v25 = vcombine.high %v704_v56, %v708_v1  ;;  %7635 = vmatprep.mubr.bf16.mxu0 %v10300_v31  ;;  %v9068_v58 = vcombine.low %v552_v14, %v556_v60  ;;  %v664_v62 = vld [vmem:[%s10190_s6 + $0xc18] sm:$0xff] }
 0x35d   : > { %v7350_v5 = vpop.f32.mrf.mxu1  ;;  %7595 = vmatmul.mubr.bf16.vlgmr.msra.gmra.mxu1 %v10304_v0  ;;  %v7311_v8 = vpop.f32.mrf.mxu0  ;;  %7605 = vmatprep.subr.bf16.mxu0 %v9101_v20  ;;  %v9061_v20 = vcombine.high %v544_v61, %v548_v3  ;;  %v668_v56 = vld [vmem:[%s10190_s6 + $0xc38] sm:$0xff]  ;;  %v9060_v1 = vcombine.low %v544_v61, %v548_v3 }
 0x35e   : > { %7645 = vmatpush1.bf16.msra.mxu1 %v9236_v52  ;;  %v11247_v13 = vadd.f32 %v7350_v5, %v7310_v2  ;;  %v7312_v23 = vadd.f32 %v7311_v8, %v11179_v63  ;;  %7676 = vmatprep.mubr.bf16.mxu1 %v10313_v40  ;;  %v9092_v63 = vcombine.low %v576_v59, %v580_v18  ;;  %v564_v40 = vld [vmem:[%s10190_s6 + $0x8f8] sm:$0xff] }
 0x35f   : > { %v7352_v46 = vpop.f32.mrf.mxu1  ;;  %7646 = vmatprep.subr.bf16.mxu1 %v9229_v21  ;;  %v7313_v0 = vpop.f32.mrf.mxu0  ;;  %v9077_v30 = vcombine.high %v560_v37, %v564_v40  ;;  %v9076_v39 = vcombine.low %v560_v37, %v564_v40  ;;  %v9196_v52 = vcombine.low %v680_v16, %v684_v49  ;;  %v9189_v21 = vcombine.high %v672_v42, %v676_v55  ;;  %v536_v59 = vld [vmem:[%s10190_s6 + $0x818] sm:$0xff] }
 0x360   : > { %v11256_v27 = vadd.f32 %v7352_v46, %v7312_v23  ;;  %7606 = vmatpush1.bf16.msra.mxu0 %v9100_v6  ;;  %v540_v18 = vld [vmem:[%s10190_s6 + $0x838] sm:$0xff]  ;;  %v9188_v2 = vcombine.low %v672_v42, %v676_v55  ;;  %v9181_v6 = vcombine.high %v664_v62, %v668_v56 }
 0x361   : > { %v7354_v28 = vpop.f32.mrf.mxu1  ;;  %v7314_v29 = vpop.f32.mrf.mxu0  ;;  %7607 = vmatprep.subr.bf16.mxu0 %v9093_v26  ;;  %v9053_v5 = vcombine.high %v536_v59, %v540_v18  ;;  %v656_v8 = vld [vmem:[%s10190_s6 + $0xbd8] sm:$0xff]  ;;  %v9052_v46 = vcombine.low %v536_v59, %v540_v18 }
 0x362   : > { %7647 = vmatpush1.bf16.msra.mxu1 %v9228_v9  ;;  %v660_v9 = vld [vmem:[%s10190_s6 + $0xbf8] sm:$0xff] }
 0x363   : > { %v7355_v31 = vpop.f32.mrf.mxu1  ;;  %7648 = vmatprep.subr.bf16.mxu1 %v9221_v25  ;;  %v784_v26 = vld [vmem:[%s10190_s6 + $0xfd8] sm:$0xff]  ;;  %v9180_v25 = vcombine.low %v664_v62, %v668_v56  ;;  %v9173_v54 = vcombine.high %v656_v8, %v660_v9 }
 0x364   : > { %7608 = vmatpush1.bf16.msra.mxu0 %v9092_v63  ;;  %v788_v23 = vld [vmem:[%s10190_s6 + $0xff8] sm:$0xff]  ;;  %v9172_v63 = vcombine.low %v656_v8, %v660_v9 }
 0x365   : > { %7609 = vmatprep.subr.bf16.mxu0 %v9085_v34  ;;  %v9301_v11 = vcombine.high %v784_v26, %v788_v23  ;;  %v648_v0 = vld [vmem:[%s10190_s6 + $0xb98] sm:$0xff]  ;;  %v9300_v29 = vcombine.low %v784_v26, %v788_v23 }
 0x366   : > { %7649 = vmatpush1.bf16.msra.mxu1 %v9220_v32  ;;  %v780_v28 = vld [vmem:[%s10190_s6 + $0xfb8] sm:$0xff]  ;;  %v9165_v32 = vcombine.high %v648_v0, %v652_v19  ;;  %v9164_v10 = vcombine.low %v648_v0, %v652_v19 }
 0x367   : > { %7650 = vmatprep.subr.bf16.mxu1 %v9213_v36  ;;  %v9293_v34 = vcombine.high %v776_v24, %v780_v28  ;;  %v640_v31 = vld [vmem:[%s10190_s6 + $0xb58] sm:$0xff]  ;;  %v9292_v38 = vcombine.low %v776_v24, %v780_v28 }
 0x368   : > { %7610 = vmatpush1.bf16.msra.mxu0 %v9084_v41  ;;  %v644_v36 = vld [vmem:[%s10190_s6 + $0xb78] sm:$0xff] }
 0x369   : > { %7611 = vmatprep.subr.bf16.mxu0 %v9077_v30  ;;  %v768_v37 = vld [vmem:[%s10190_s6 + $0xf58] sm:$0xff]  ;;  %v9157_v41 = vcombine.high %v640_v31, %v644_v36  ;;  %v9156_v16 = vcombine.low %v640_v31, %v644_v36 }
 0x36a   : > { %7651 = vmatpush1.bf16.msra.mxu1 %v9212_v43  ;;  %v772_v40 = vld [vmem:[%s10190_s6 + $0xf78] sm:$0xff] }
 0x36b   : > { %7652 = vmatprep.subr.bf16.mxu1 %v9205_v47  ;;  %v9285_v43 = vcombine.high %v768_v37, %v772_v40  ;;  %v632_v30 = vld [vmem:[%s10190_s6 + $0xb18] sm:$0xff]  ;;  %v9284_v49 = vcombine.low %v768_v37, %v772_v40 }
 0x36c   : > { %7612 = vmatpush1.bf16.msra.mxu0 %v9076_v39  ;;  %v636_v47 = vld [vmem:[%s10190_s6 + $0xb38] sm:$0xff] }
 0x36d   : > { %7613 = vmatprep.subr.bf16.mxu0 %v9069_v53  ;;  %v760_v14 = vld [vmem:[%s10190_s6 + $0xf18] sm:$0xff]  ;;  %v9149_v39 = vcombine.high %v632_v30, %v636_v47  ;;  %v9148_v42 = vcombine.low %v632_v30, %v636_v47 }
 0x36e   : > { %7653 = vmatpush1.bf16.msra.mxu1 %v9204_v51  ;;  %v764_v60 = vld [vmem:[%s10190_s6 + $0xf38] sm:$0xff] }
 0x36f   : > { %7654 = vmatprep.subr.bf16.mxu1 %v9197_v50  ;;  %v9277_v51 = vcombine.high %v760_v14, %v764_v60  ;;  %v624_v53 = vld [vmem:[%s10190_s6 + $0xad8] sm:$0xff]  ;;  %v9276_v55 = vcombine.low %v760_v14, %v764_v60 }
 0x370   : > { %7614 = vmatpush1.bf16.msra.mxu0 %v9068_v58  ;;  %v628_v50 = vld [vmem:[%s10190_s6 + $0xaf8] sm:$0xff] }
 0x371   : > { %7615 = vmatprep.subr.bf16.mxu0 %v9061_v20  ;;  %v752_v61 = vld [vmem:[%s10190_s6 + $0xed8] sm:$0xff]  ;;  %v9141_v58 = vcombine.high %v624_v53, %v628_v50  ;;  %v9140_v62 = vcombine.low %v624_v53, %v628_v50 }
 0x372   : > { %7655 = vmatpush1.bf16.msra.mxu1 %v9196_v52  ;;  %v756_v3 = vld [vmem:[%s10190_s6 + $0xef8] sm:$0xff] }
 0x373   : > { %7656 = vmatprep.subr.bf16.mxu1 %v9189_v21  ;;  %v9269_v52 = vcombine.high %v752_v61, %v756_v3  ;;  %v616_v20 = vld [vmem:[%s10190_s6 + $0xa98] sm:$0xff]  ;;  %v9268_v56 = vcombine.low %v752_v61, %v756_v3 }
 0x374   : > { %7616 = vmatpush1.bf16.msra.mxu0 %v9060_v1  ;;  %v620_v21 = vld [vmem:[%s10190_s6 + $0xab8] sm:$0xff] }
 0x375   : > { %7617 = vmatprep.subr.bf16.mxu0 %v9053_v5  ;;  %v744_v59 = vld [vmem:[%s10190_s6 + $0xe98] sm:$0xff]  ;;  %v9133_v1 = vcombine.high %v616_v20, %v620_v21  ;;  %v9132_v26 = vcombine.low %v616_v20, %v620_v21 }
 0x376   : > { %7657 = vmatpush1.bf16.msra.mxu1 %v9188_v2  ;;  %v748_v18 = vld [vmem:[%s10190_s6 + $0xeb8] sm:$0xff] }
 0x377   : > { %7658 = vmatprep.subr.bf16.mxu1 %v9181_v6  ;;  %v9261_v2 = vcombine.high %v744_v59, %v748_v18  ;;  %v608_v5 = vld [vmem:[%s10190_s6 + $0xa58] sm:$0xff]  ;;  %v9260_v23 = vcombine.low %v744_v59, %v748_v18 }
 0x378   : > { %7618 = vmatpush1.bf16.msra.mxu0 %v9052_v46  ;;  %v612_v6 = vld [vmem:[%s10190_s6 + $0xa78] sm:$0xff] }
 0x379   : > { %7619 = vmatprep.subr.bf16.mxu0 %v9173_v54  ;;  %v736_v8 = vld [vmem:[%s10190_s6 + $0xe58] sm:$0xff]  ;;  %v9125_v46 = vcombine.high %v608_v5, %v612_v6  ;;  %v9124_v24 = vcombine.low %v608_v5, %v612_v6 }
 0x37a   : > { %7659 = vmatpush1.bf16.msra.mxu1 %v9180_v25  ;;  %v740_v9 = vld [vmem:[%s10190_s6 + $0xe78] sm:$0xff] }
 0x37b   : > { %7660 = vmatprep.subr.bf16.mxu1 %v9301_v11  ;;  %v9253_v25 = vcombine.high %v736_v8, %v740_v9  ;;  %v600_v54 = vld [vmem:[%s10190_s6 + $0xa18] sm:$0xff]  ;;  %v9252_v28 = vcombine.low %v736_v8, %v740_v9 }
 0x37c   : > { %7620 = vmatpush2.bf16.msra.mxu0 %v9172_v63  ;;  %v604_v11 = vld [vmem:[%s10190_s6 + $0xa38] sm:$0xff] }
 0x37d   : > { %7621 = vmatprep.subr.bf16.mxu0 %v9165_v32  ;;  %v728_v0 = vld [vmem:[%s10190_s6 + $0xe18] sm:$0xff]  ;;  %v9117_v63 = vcombine.high %v600_v54, %v604_v11  ;;  %v9116_v37 = vcombine.low %v600_v54, %v604_v11 }
 0x37e   : > { %7661 = vmatpush2.bf16.msra.mxu1 %v9300_v29  ;;  %v732_v19 = vld [vmem:[%s10190_s6 + $0xe38] sm:$0xff] }
 0x37f   : > { %7662 = vmatprep.subr.bf16.mxu1 %v9293_v34  ;;  %v9245_v29 = vcombine.high %v728_v0, %v732_v19  ;;  %v848_v32 = vld [vmem:[%s10190_s6 + $0x11d8] sm:$0xff]  ;;  %v9244_v40 = vcombine.low %v728_v0, %v732_v19 }
 0x380   : > { %7622 = vmatpush2.bf16.msra.mxu0 %v9164_v10  ;;  %v852_v34 = vld [vmem:[%s10190_s6 + $0x11f8] sm:$0xff] }
 0x381   : > { %7623 = vmatprep.subr.bf16.mxu0 %v9157_v41  ;;  %v976_v31 = vld [vmem:[%s10190_s6 + $0x15d8] sm:$0xff]  ;;  %v9365_v10 = vcombine.high %v848_v32, %v852_v34  ;;  %v9364_v14 = vcombine.low %v848_v32, %v852_v34 }
 0x382   : > { %7663 = vmatpush2.bf16.msra.mxu1 %v9292_v38  ;;  %v980_v36 = vld [vmem:[%s10190_s6 + $0x15f8] sm:$0xff] }
 0x383   : > { %7664 = vmatprep.subr.bf16.mxu1 %v9285_v43  ;;  %v9493_v38 = vcombine.high %v976_v31, %v980_v36  ;;  %v840_v41 = vld [vmem:[%s10190_s6 + $0x1198] sm:$0xff]  ;;  %v9492_v60 = vcombine.low %v976_v31, %v980_v36 }
 0x384   : > { %7624 = vmatpush2.bf16.msra.mxu0 %v9156_v16  ;;  %v844_v43 = vld [vmem:[%s10190_s6 + $0x11b8] sm:$0xff] }
 0x385   : > { %7625 = vmatprep.subr.bf16.mxu0 %v9149_v39  ;;  %v968_v30 = vld [vmem:[%s10190_s6 + $0x1598] sm:$0xff]  ;;  %v9357_v16 = vcombine.high %v840_v41, %v844_v43 }
 0x386   : > { %7665 = vmatpush2.bf16.msra.mxu1 %v9284_v49  ;;  %v972_v47 = vld [vmem:[%s10190_s6 + $0x15b8] sm:$0xff] }
 0x387   : > { %7666 = vmatprep.subr.bf16.mxu1 %v9277_v51  ;;  %v9485_v49 = vcombine.high %v968_v30, %v972_v47  ;;  %v832_v39 = vld [vmem:[%s10190_s6 + $0x1158] sm:$0xff] }
 0x388   : > { %7626 = vmatpush2.bf16.msra.mxu0 %v9148_v42  ;;  %v836_v51 = vld [vmem:[%s10190_s6 + $0x1178] sm:$0xff] }
 0x389   : > { %7627 = vmatprep.subr.bf16.mxu0 %v9141_v58  ;;  %v960_v50 = vld [vmem:[%s10190_s6 + $0x1558] sm:$0xff]  ;;  %v9349_v20 = vcombine.high %v832_v39, %v836_v51 }
 0x38a   : > { %7667 = vmatpush2.bf16.msra.mxu1 %v9276_v55  ;;  %v964_v61 = vld [vmem:[%s10190_s6 + $0x1578] sm:$0xff]  ;;  %v9356_v55 = vcombine.low %v840_v41, %v844_v43 }
 0x38b   : > { %7668 = vmatprep.subr.bf16.mxu1 %v9269_v52  ;;  %v9484_v52 = vcombine.low %v968_v30, %v972_v47  ;;  %v824_v18 = vld [vmem:[%s10190_s6 + $0x1118] sm:$0xff]  ;;  %v9476_v8 = vcombine.low %v960_v50, %v964_v61 }
 0x38c   : > { %7628 = vmatpush2.bf16.msra.mxu0 %v9140_v62  ;;  %v828_v62 = vld [vmem:[%s10190_s6 + $0x1138] sm:$0xff] }
 0x38d   : > { %7629 = vmatprep.subr.bf16.mxu0 %v9133_v1  ;;  %v956_v1 = vld [vmem:[%s10190_s6 + $0x1538] sm:$0xff]  ;;  %v9341_v9 = vcombine.high %v824_v18, %v828_v62  ;;  %v9340_v54 = vcombine.low %v824_v18, %v828_v62 }
 0x38e   : > { %7669 = vmatpush2.bf16.msra.mxu1 %v9268_v56  ;;  %v952_v56 = vld [vmem:[%s10190_s6 + $0x1518] sm:$0xff] }
 0x38f   : > { %7670 = vmatprep.subr.bf16.mxu1 %v9261_v2  ;;  %v9468_v11 = vcombine.low %v952_v56, %v956_v1  ;;  %v1032_v18 = vld [vmem:[%s10190_s6 + $0x1798] sm:$0xff] }
 0x390   : > { %7630 = vmatpush2.bf16.msra.mxu0 %v9132_v26  ;;  %v9469_v26 = vcombine.high %v952_v56, %v956_v1  ;;  %v1036_v62 = vld [vmem:[%s10190_s6 + $0x17b8] sm:$0xff] }
 0x391   : > { %7631 = vmatprep.subr.bf16.mxu0 %v9125_v46  ;;  %v944_v46 = vld [vmem:[%s10190_s6 + $0x14d8] sm:$0xff] }
 0x392   : > { %7671 = vmatpush2.bf16.msra.mxu1 %v9260_v23  ;;  %v816_v23 = vld [vmem:[%s10190_s6 + $0x10d8] sm:$0xff] }
 0x393   : > { %7672 = vmatprep.subr.bf16.mxu1 %v9253_v25  ;;  %v948_v25 = vld [vmem:[%s10190_s6 + $0x14f8] sm:$0xff] }
 0x394   : > { %7632 = vmatpush2.bf16.msra.mxu0 %v9124_v24  ;;  %v9461_v19 = vcombine.high %v944_v46, %v948_v25  ;;  %v808_v24 = vld [vmem:[%s10190_s6 + $0x1098] sm:$0xff]  ;;  %v9460_v34 = vcombine.low %v944_v46, %v948_v25 }
 0x395   : > { %7633 = vmatprep.subr.bf16.mxu0 %v9117_v63  ;;  %v936_v63 = vld [vmem:[%s10190_s6 + $0x1498] sm:$0xff] }
 0x396   : > { %7673 = vmatpush2.bf16.msra.mxu1 %v9252_v28  ;;  %v812_v28 = vld [vmem:[%s10190_s6 + $0x10b8] sm:$0xff] }
 0x397   : > { %7674 = vmatprep.subr.bf16.mxu1 %v9245_v29  ;;  %v940_v29 = vld [vmem:[%s10190_s6 + $0x14b8] sm:$0xff]  ;;  %v9325_v31 = vcombine.high %v808_v24, %v812_v28  ;;  %v9324_v41 = vcombine.low %v808_v24, %v812_v28 }
 0x398   : > { %7634 = vmatpush2.bf16.msra.mxu0 %v9116_v37  ;;  %v9453_v36 = vcombine.high %v936_v63, %v940_v29  ;;  %v800_v37 = vld [vmem:[%s10190_s6 + $0x1058] sm:$0xff]  ;;  %v9452_v43 = vcombine.low %v936_v63, %v940_v29 }
 0x399   : > { %7685 = vmatprep.subr.bf16.mxu0 %v9365_v10  ;;  %v928_v10 = vld [vmem:[%s10190_s6 + $0x1458] sm:$0xff] }
 0x39a   : > { %7675 = vmatpush2.bf16.msra.mxu1 %v9244_v40  ;;  %v804_v40 = vld [vmem:[%s10190_s6 + $0x1078] sm:$0xff] }
 0x39b   : > { %7726 = vmatprep.subr.bf16.mxu1 %v9493_v38  ;;  %v7391_v53 = vpop.f32.mrf.mxu0  ;;  %7636 = vmatmul.mubr.bf16.vlgmr.msra.gmra.mxu0 %v10385_v48  ;;  %v932_v38 = vld [vmem:[%s10190_s6 + $0x1478] sm:$0xff]  ;;  %v9317_v30 = vcombine.high %v800_v37, %v804_v40 }
 0x39c   : > { %v7392_v3 = vadd.f32 %v7391_v53, %v11247_v13  ;;  %7686 = vmatpush1.bf16.msra.mxu0 %v9364_v14  ;;  %v9477_v13 = vcombine.high %v960_v50, %v964_v61  ;;  %7717 = vmatprep.mubr.bf16.mxu0 %v10392_v57  ;;  %v9445_v47 = vcombine.high %v928_v10, %v932_v38  ;;  %v792_v14 = vld [vmem:[%s10190_s6 + $0x1018] sm:$0xff] }
 0x39d   : > { %v7432_v42 = vpop.f32.mrf.mxu1  ;;  %7677 = vmatmul.mubr.bf16.vlgmr.msra.gmra.mxu1 %v10396_v12  ;;  %v7393_v58 = vpop.f32.mrf.mxu0  ;;  %7687 = vmatprep.subr.bf16.mxu0 %v9357_v16  ;;  %v920_v16 = vld [vmem:[%s10190_s6 + $0x1418] sm:$0xff] }
 0x39e   : > { %7727 = vmatpush1.bf16.msra.mxu1 %v9492_v60  ;;  %v11321_v21 = vadd.f32 %v7432_v42, %v7392_v3  ;;  %v7394_v48 = vadd.f32 %v7393_v58, %v11256_v27  ;;  %7758 = vmatprep.mubr.bf16.mxu1 %v10405_v4  ;;  %v9348_v27 = vcombine.low %v832_v39, %v836_v51  ;;  %v820_v4 = vld [vmem:[%s10190_s6 + $0x10f8] sm:$0xff] }
 0x39f   : > { %v7434_v59 = vpop.f32.mrf.mxu1  ;;  %7728 = vmatprep.subr.bf16.mxu1 %v9485_v49  ;;  %v7395_v12 = vpop.f32.mrf.mxu0  ;;  %v9333_v0 = vcombine.high %v816_v23, %v820_v4  ;;  %v9332_v32 = vcombine.low %v816_v23, %v820_v4  ;;  %v796_v60 = vld [vmem:[%s10190_s6 + $0x1038] sm:$0xff]  ;;  %v9316_v39 = vcombine.low %v800_v37, %v804_v40  ;;  %v9444_v51 = vcombine.low %v928_v10, %v932_v38 }
 0x3a0   : > { %v11330_v2 = vadd.f32 %v7434_v59, %v7394_v48  ;;  %7688 = vmatpush1.bf16.msra.mxu0 %v9356_v55  ;;  %v924_v49 = vld [vmem:[%s10190_s6 + $0x1438] sm:$0xff]  ;;  %v9309_v53 = vcombine.high %v792_v14, %v796_v60  ;;  %v9308_v58 = vcombine.low %v792_v14, %v796_v60 }
 0x3a1   : > { %v7436_v5 = vpop.f32.mrf.mxu1  ;;  %v7396_v6 = vpop.f32.mrf.mxu0  ;;  %7689 = vmatprep.subr.bf16.mxu0 %v9349_v20  ;;  %v9437_v50 = vcombine.high %v920_v16, %v924_v49  ;;  %v912_v61 = vld [vmem:[%s10190_s6 + $0x13d8] sm:$0xff] }
 0x3a2   : > { %7729 = vmatpush1.bf16.msra.mxu1 %v9484_v52  ;;  %v916_v3 = vld [vmem:[%s10190_s6 + $0x13f8] sm:$0xff]  ;;  %v9436_v52 = vcombine.low %v920_v16, %v924_v49  ;;  %v9549_v5 = vcombine.high %v1032_v18, %v1036_v62 }
 0x3a3   : > { %v7437_v57 = vpop.f32.mrf.mxu1  ;;  %7730 = vmatprep.subr.bf16.mxu1 %v9477_v13  ;;  %v1040_v42 = vld [vmem:[%s10190_s6 + $0x17d8] sm:$0xff]  ;;  %v9429_v20 = vcombine.high %v912_v61, %v916_v3  ;;  %v9428_v12 = vcombine.low %v912_v61, %v916_v3 }
 0x3a4   : > { %7690 = vmatpush1.bf16.msra.mxu0 %v9348_v27  ;;  %v1044_v55 = vld [vmem:[%s10190_s6 + $0x17f8] sm:$0xff] }
 0x3a5   : > { %7691 = vmatprep.subr.bf16.mxu0 %v9341_v9  ;;  %v9557_v48 = vcombine.high %v1040_v42, %v1044_v55  ;;  %v904_v59 = vld [vmem:[%s10190_s6 + $0x1398] sm:$0xff]  ;;  %v9556_v56 = vcombine.low %v1040_v42, %v1044_v55 }
 0x3a6   : > { %7731 = vmatpush1.bf16.msra.mxu1 %v9476_v8  ;;  %v908_v13 = vld [vmem:[%s10190_s6 + $0x13b8] sm:$0xff] }
 0x3a7   : > { %7732 = vmatprep.subr.bf16.mxu1 %v9469_v26  ;;  %v9421_v1 = vcombine.high %v904_v59, %v908_v13  ;;  %v896_v27 = vld [vmem:[%s10190_s6 + $0x1358] sm:$0xff]  ;;  %v9420_v57 = vcombine.low %v904_v59, %v908_v13  ;;  %v9548_v26 = vcombine.low %v1032_v18, %v1036_v62 }
 0x3a8   : > { %7692 = vmatpush1.bf16.msra.mxu0 %v9340_v54  ;;  %v900_v6 = vld [vmem:[%s10190_s6 + $0x1378] sm:$0xff] }
 0x3a9   : > { %7693 = vmatprep.subr.bf16.mxu0 %v9333_v0  ;;  %v1024_v8 = vld [vmem:[%s10190_s6 + $0x1758] sm:$0xff]  ;;  %v9413_v23 = vcombine.high %v896_v27, %v900_v6  ;;  %v9412_v0 = vcombine.low %v896_v27, %v900_v6 }
 0x3aa   : > { %7733 = vmatpush1.bf16.msra.mxu1 %v9468_v11  ;;  %v1028_v9 = vld [vmem:[%s10190_s6 + $0x1778] sm:$0xff] }
 0x3ab   : > { %7734 = vmatprep.subr.bf16.mxu1 %v9461_v19  ;;  %v9541_v4 = vcombine.high %v1024_v8, %v1028_v9  ;;  %v888_v46 = vld [vmem:[%s10190_s6 + $0x1318] sm:$0xff]  ;;  %v9540_v19 = vcombine.low %v1024_v8, %v1028_v9 }
 0x3ac   : > { %7694 = vmatpush1.bf16.msra.mxu0 %v9332_v32  ;;  %v892_v25 = vld [vmem:[%s10190_s6 + $0x1338] sm:$0xff] }
 0x3ad   : > { %7695 = vmatprep.subr.bf16.mxu0 %v9325_v31  ;;  %v1016_v54 = vld [vmem:[%s10190_s6 + $0x1718] sm:$0xff]  ;;  %v9405_v24 = vcombine.high %v888_v46, %v892_v25  ;;  %v9404_v31 = vcombine.low %v888_v46, %v892_v25 }
 0x3ae   : > { %7735 = vmatpush1.bf16.msra.mxu1 %v9460_v34  ;;  %v1020_v11 = vld [vmem:[%s10190_s6 + $0x1738] sm:$0xff] }
 0x3af   : > { %7736 = vmatprep.subr.bf16.mxu1 %v9453_v36  ;;  %v9533_v28 = vcombine.high %v1016_v54, %v1020_v11  ;;  %v880_v63 = vld [vmem:[%s10190_s6 + $0x12d8] sm:$0xff]  ;;  %v9532_v36 = vcombine.low %v1016_v54, %v1020_v11 }
 0x3b0   : > { %7696 = vmatpush1.bf16.msra.mxu0 %v9324_v41  ;;  %v884_v29 = vld [vmem:[%s10190_s6 + $0x12f8] sm:$0xff] }
 0x3b1   : > { %7697 = vmatprep.subr.bf16.mxu0 %v9317_v30  ;;  %v1008_v32 = vld [vmem:[%s10190_s6 + $0x16d8] sm:$0xff]  ;;  %v9397_v37 = vcombine.high %v880_v63, %v884_v29  ;;  %v9396_v30 = vcombine.low %v880_v63, %v884_v29 }
 0x3b2   : > { %7737 = vmatpush1.bf16.msra.mxu1 %v9452_v43  ;;  %v1012_v34 = vld [vmem:[%s10190_s6 + $0x16f8] sm:$0xff] }
 0x3b3   : > { %7738 = vmatprep.subr.bf16.mxu1 %v9445_v47  ;;  %v9525_v40 = vcombine.high %v1008_v32, %v1012_v34  ;;  %v872_v10 = vld [vmem:[%s10190_s6 + $0x1298] sm:$0xff]  ;;  %v9524_v47 = vcombine.low %v1008_v32, %v1012_v34 }
 0x3b4   : > { %7698 = vmatpush1.bf16.msra.mxu0 %v9316_v39  ;;  %v876_v38 = vld [vmem:[%s10190_s6 + $0x12b8] sm:$0xff] }
 0x3b5   : > { %7699 = vmatprep.subr.bf16.mxu0 %v9309_v53  ;;  %v1000_v41 = vld [vmem:[%s10190_s6 + $0x1698] sm:$0xff]  ;;  %v9389_v14 = vcombine.high %v872_v10, %v876_v38  ;;  %v9388_v53 = vcombine.low %v872_v10, %v876_v38 }
 0x3b6   : > { %7739 = vmatpush1.bf16.msra.mxu1 %v9444_v51  ;;  %v1004_v43 = vld [vmem:[%s10190_s6 + $0x16b8] sm:$0xff] }
 0x3b7   : > { %7740 = vmatprep.subr.bf16.mxu1 %v9437_v50  ;;  %v9517_v60 = vcombine.high %v1000_v41, %v1004_v43  ;;  %v864_v16 = vld [vmem:[%s10190_s6 + $0x1258] sm:$0xff]  ;;  %v9516_v50 = vcombine.low %v1000_v41, %v1004_v43 }
 0x3b8   : > { %7700 = vmatpush1.bf16.msra.mxu0 %v9308_v58  ;;  %v868_v49 = vld [vmem:[%s10190_s6 + $0x1278] sm:$0xff] }
 0x3b9   : > { %7701 = vmatprep.subr.bf16.mxu0 %v9429_v20  ;;  %v992_v39 = vld [vmem:[%s10190_s6 + $0x1658] sm:$0xff]  ;;  %v9381_v61 = vcombine.high %v864_v16, %v868_v49  ;;  %v9380_v20 = vcombine.low %v864_v16, %v868_v49 }
 0x3ba   : > { %7741 = vmatpush1.bf16.msra.mxu1 %v9436_v52  ;;  %v996_v51 = vld [vmem:[%s10190_s6 + $0x1678] sm:$0xff] }
 0x3bb   : > { %7742 = vmatprep.subr.bf16.mxu1 %v9557_v48  ;;  %v9509_v3 = vcombine.high %v992_v39, %v996_v51  ;;  %v856_v42 = vld [vmem:[%s10190_s6 + $0x1218] sm:$0xff]  ;;  %v9508_v48 = vcombine.low %v992_v39, %v996_v51 }
 0x3bc   : > { %7702 = vmatpush2.bf16.msra.mxu0 %v9428_v12  ;;  %v860_v55 = vld [vmem:[%s10190_s6 + $0x1238] sm:$0xff] }
 0x3bd   : > { %7703 = vmatprep.subr.bf16.mxu0 %v9421_v1  ;;  %v984_v58 = vld [vmem:[%s10190_s6 + $0x1618] sm:$0xff]  ;;  %v9373_v59 = vcombine.high %v856_v42, %v860_v55  ;;  %v9372_v1 = vcombine.low %v856_v42, %v860_v55 }
 0x3be   : > { %7743 = vmatpush2.bf16.msra.mxu1 %v9556_v56  ;;  %v988_v52 = vld [vmem:[%s10190_s6 + $0x1638] sm:$0xff] }
 0x3bf   : > { %7744 = vmatprep.subr.bf16.mxu1 %v9549_v5  ;;  %v9501_v13 = vcombine.high %v984_v58, %v988_v52  ;;  %v1104_v18 = vld [vmem:[%s10190_s6 + $0x19d8] sm:$0xff]  ;;  %v9500_v5 = vcombine.low %v984_v58, %v988_v52 }
 0x3c0   : > { %7704 = vmatpush2.bf16.msra.mxu0 %v9420_v57  ;;  %v1108_v62 = vld [vmem:[%s10190_s6 + $0x19f8] sm:$0xff] }
 0x3c1   : > { %7705 = vmatprep.subr.bf16.mxu0 %v9413_v23  ;;  %v1232_v12 = vld [vmem:[%s10190_s6 + $0x1dd8] sm:$0xff]  ;;  %v9621_v27 = vcombine.high %v1104_v18, %v1108_v62  ;;  %v9620_v23 = vcombine.low %v1104_v18, %v1108_v62 }
 0x3c2   : > { %7745 = vmatpush2.bf16.msra.mxu1 %v9548_v26  ;;  %v1236_v56 = vld [vmem:[%s10190_s6 + $0x1df8] sm:$0xff] }
 0x3c3   : > { %7746 = vmatprep.subr.bf16.mxu1 %v9541_v4  ;;  %v9749_v6 = vcombine.high %v1232_v12, %v1236_v56  ;;  %v1096_v8 = vld [vmem:[%s10190_s6 + $0x1998] sm:$0xff]  ;;  %v9748_v4 = vcombine.low %v1232_v12, %v1236_v56 }
 0x3c4   : > { %7706 = vmatpush2.bf16.msra.mxu0 %v9412_v0  ;;  %v1100_v9 = vld [vmem:[%s10190_s6 + $0x19b8] sm:$0xff] }
 0x3c5   : > { %7707 = vmatprep.subr.bf16.mxu0 %v9405_v24  ;;  %v1224_v57 = vld [vmem:[%s10190_s6 + $0x1d98] sm:$0xff]  ;;  %v9613_v46 = vcombine.high %v1096_v8, %v1100_v9  ;;  %v9612_v29 = vcombine.low %v1096_v8, %v1100_v9 }
 0x3c6   : > { %7747 = vmatpush2.bf16.msra.mxu1 %v9540_v19  ;;  %v1228_v26 = vld [vmem:[%s10190_s6 + $0x1db8] sm:$0xff] }
 0x3c7   : > { %7748 = vmatprep.subr.bf16.mxu1 %v9533_v28  ;;  %v9741_v25 = vcombine.high %v1224_v57, %v1228_v26  ;;  %v1088_v54 = vld [vmem:[%s10190_s6 + $0x1958] sm:$0xff]  ;;  %v9740_v34 = vcombine.low %v1224_v57, %v1228_v26 }
 0x3c8   : > { %7708 = vmatpush2.bf16.msra.mxu0 %v9404_v31  ;;  %v1092_v11 = vld [vmem:[%s10190_s6 + $0x1978] sm:$0xff] }
 0x3c9   : > { %7709 = vmatprep.subr.bf16.mxu0 %v9397_v37  ;;  %v1216_v19 = vld [vmem:[%s10190_s6 + $0x1d58] sm:$0xff]  ;;  %v9605_v31 = vcombine.high %v1088_v54, %v1092_v11 }
 0x3ca   : > { %7749 = vmatpush2.bf16.msra.mxu1 %v9532_v36  ;;  %v1220_v24 = vld [vmem:[%s10190_s6 + $0x1d78] sm:$0xff] }
 0x3cb   : > { %7750 = vmatprep.subr.bf16.mxu1 %v9525_v40  ;;  %v1080_v40 = vld [vmem:[%s10190_s6 + $0x1918] sm:$0xff] }
 0x3cc   : > { %7710 = vmatpush2.bf16.msra.mxu0 %v9396_v30  ;;  %v1084_v10 = vld [vmem:[%s10190_s6 + $0x1938] sm:$0xff] }
 0x3cd   : > { %7711 = vmatprep.subr.bf16.mxu0 %v9389_v14  ;;  %v1208_v38 = vld [vmem:[%s10190_s6 + $0x1d18] sm:$0xff]  ;;  %v9732_v14 = vcombine.low %v1216_v19, %v1220_v24 }
 0x3ce   : > { %7751 = vmatpush2.bf16.msra.mxu1 %v9524_v47  ;;  %v1212_v41 = vld [vmem:[%s10190_s6 + $0x1d38] sm:$0xff] }
 0x3cf   : > { %7752 = vmatprep.subr.bf16.mxu1 %v9517_v60  ;;  %v9597_v60 = vcombine.high %v1080_v40, %v1084_v10  ;;  %v1072_v49 = vld [vmem:[%s10190_s6 + $0x18d8] sm:$0xff] }
 0x3d0   : > { %7712 = vmatpush2.bf16.msra.mxu0 %v9388_v53  ;;  %v1076_v39 = vld [vmem:[%s10190_s6 + $0x18f8] sm:$0xff] }
 0x3d1   : > { %7713 = vmatprep.subr.bf16.mxu0 %v9381_v61  ;;  %v1200_v51 = vld [vmem:[%s10190_s6 + $0x1cd8] sm:$0xff]  ;;  %v9724_v61 = vcombine.low %v1208_v38, %v1212_v41 }
 0x3d2   : > { %7753 = vmatpush2.bf16.msra.mxu1 %v9516_v50  ;;  %v1204_v53 = vld [vmem:[%s10190_s6 + $0x1cf8] sm:$0xff]  ;;  %v9596_v50 = vcombine.low %v1080_v40, %v1084_v10 }
 0x3d3   : > { %7754 = vmatprep.subr.bf16.mxu1 %v9509_v3  ;;  %v9589_v3 = vcombine.high %v1072_v49, %v1076_v39  ;;  %v9717_v42 = vcombine.high %v1200_v51, %v1204_v53  ;;  %v1064_v55 = vld [vmem:[%s10190_s6 + $0x1898] sm:$0xff] }
 0x3d4   : > { %7714 = vmatpush2.bf16.msra.mxu0 %v9380_v20  ;;  %v1068_v58 = vld [vmem:[%s10190_s6 + $0x18b8] sm:$0xff] }
 0x3d5   : > { %7715 = vmatprep.subr.bf16.mxu0 %v9373_v59  ;;  %v1192_v52 = vld [vmem:[%s10190_s6 + $0x1c98] sm:$0xff]  ;;  %v9716_v59 = vcombine.low %v1200_v51, %v1204_v53 }
 0x3d6   : > { %7755 = vmatpush2.bf16.msra.mxu1 %v9508_v48  ;;  %v1196_v20 = vld [vmem:[%s10190_s6 + $0x1cb8] sm:$0xff]  ;;  %v9588_v48 = vcombine.low %v1072_v49, %v1076_v39 }
 0x3d7   : > { %7756 = vmatprep.subr.bf16.mxu1 %v9501_v13  ;;  %v9581_v13 = vcombine.high %v1064_v55, %v1068_v58  ;;  %v9709_v18 = vcombine.high %v1192_v52, %v1196_v20  ;;  %v1056_v62 = vld [vmem:[%s10190_s6 + $0x1858] sm:$0xff] }
 0x3d8   : > { %7716 = vmatpush2.bf16.msra.mxu0 %v9372_v1  ;;  %v1060_v12 = vld [vmem:[%s10190_s6 + $0x1878] sm:$0xff] }
 0x3d9   : > { %7767 = vmatprep.subr.bf16.mxu0 %v9621_v27  ;;  %v1184_v56 = vld [vmem:[%s10190_s6 + $0x1c58] sm:$0xff]  ;;  %v9708_v27 = vcombine.low %v1192_v52, %v1196_v20 }
 0x3da   : > { %7757 = vmatpush2.bf16.msra.mxu1 %v9500_v5  ;;  %v1188_v1 = vld [vmem:[%s10190_s6 + $0x1c78] sm:$0xff]  ;;  %v9580_v5 = vcombine.low %v1064_v55, %v1068_v58 }
 0x3db   : > { %7808 = vmatprep.subr.bf16.mxu1 %v9749_v6  ;;  %v7473_v0 = vpop.f32.mrf.mxu0  ;;  %7718 = vmatmul.mubr.bf16.vlgmr.msra.gmra.mxu0 %v10475_v22  ;;  %v9573_v6 = vcombine.high %v1056_v62, %v1060_v12  ;;  %v9701_v8 = vcombine.high %v1184_v56, %v1188_v1  ;;  %v1048_v9 = vld [vmem:[%s10190_s6 + $0x1818] sm:$0xff] }
 0x3dc   : > { %v7474_v28 = vadd.f32 %v7473_v0, %v11321_v21  ;;  %7768 = vmatpush1.bf16.msra.mxu0 %v9620_v23  ;;  %v9733_v21 = vcombine.high %v1216_v19, %v1220_v24  ;;  %7799 = vmatprep.mubr.bf16.mxu0 %v10482_v33  ;;  %v1052_v57 = vld [vmem:[%s10190_s6 + $0x1838] sm:$0xff] }
 0x3dd   : > { %v7514_v63 = vpop.f32.mrf.mxu1  ;;  %7759 = vmatmul.mubr.bf16.vlgmr.msra.gmra.mxu1 %v10486_v35  ;;  %v7475_v32 = vpop.f32.mrf.mxu0  ;;  %7769 = vmatprep.subr.bf16.mxu0 %v9613_v46  ;;  %v1176_v26 = vld [vmem:[%s10190_s6 + $0x1c18] sm:$0xff]  ;;  %v9700_v46 = vcombine.low %v1184_v56, %v1188_v1 }
 0x3de   : > { %7809 = vmatpush1.bf16.msra.mxu1 %v9748_v4  ;;  %v11395_v36 = vadd.f32 %v7514_v63, %v7474_v28  ;;  %v7476_v22 = vadd.f32 %v7475_v32, %v11330_v2  ;;  %7840 = vmatprep.mubr.bf16.mxu1 %v10495_v44  ;;  %v9604_v2 = vcombine.low %v1088_v54, %v1092_v11  ;;  %v1180_v23 = vld [vmem:[%s10190_s6 + $0x1c38] sm:$0xff] }
 0x3df   : > { %v7516_v37 = vpop.f32.mrf.mxu1  ;;  %7810 = vmatprep.subr.bf16.mxu1 %v9741_v25  ;;  %v7477_v35 = vpop.f32.mrf.mxu0  ;;  %v9725_v44 = vcombine.high %v1208_v38, %v1212_v41  ;;  %v9572_v4 = vcombine.low %v1056_v62, %v1060_v12  ;;  %v9565_v25 = vcombine.high %v1048_v9, %v1052_v57  ;;  %v9693_v54 = vcombine.high %v1176_v26, %v1180_v23  ;;  %v1168_v11 = vld [vmem:[%s10190_s6 + $0x1bd8] sm:$0xff] }
 0x3e0   : > { %v11404_v43 = vadd.f32 %v7516_v37, %v7476_v22  ;;  %7770 = vmatpush1.bf16.msra.mxu0 %v9612_v29  ;;  %v1172_v0 = vld [vmem:[%s10190_s6 + $0x1bf8] sm:$0xff]  ;;  %v9564_v28 = vcombine.low %v1048_v9, %v1052_v57  ;;  %v9692_v63 = vcombine.low %v1176_v26, %v1180_v23 }
 0x3e1   : > { %v7518_v30 = vpop.f32.mrf.mxu1  ;;  %v7478_v47 = vpop.f32.mrf.mxu0  ;;  %7771 = vmatprep.subr.bf16.mxu0 %v9605_v31  ;;  %v1296_v19 = vld [vmem:[%s10190_s6 + $0x1fd8] sm:$0xff]  ;;  %v9685_v29 = vcombine.high %v1168_v11, %v1172_v0 }
 0x3e2   : > { %7811 = vmatpush1.bf16.msra.mxu1 %v9740_v34  ;;  %v7874_v33 = vcombine.low %v11395_v36, %v11404_v43  ;;  %v1300_v24 = vld [vmem:[%s10190_s6 + $0x1ff8] sm:$0xff] }
 0x3e3   : > { %v7519_v16 = vpop.f32.mrf.mxu1  ;;  %7812 = vmatprep.subr.bf16.mxu1 %v9733_v21  ;;  %v9813_v32 = vcombine.high %v1296_v19, %v1300_v24  ;;  %v1160_v34 = vld [vmem:[%s10190_s6 + $0x1b98] sm:$0xff]  ;;  %v9684_v21 = vcombine.low %v1168_v11, %v1172_v0  ;;  %v9812_v40 = vcombine.low %v1296_v19, %v1300_v24 }
 0x3e4   : > { %7772 = vmatpush1.bf16.msra.mxu0 %v9604_v2  ;;  %v1164_v31 = vld [vmem:[%s10190_s6 + $0x1bb8] sm:$0xff] }
 0x3e5   : > { %7773 = vmatprep.subr.bf16.mxu0 %v9597_v60  ;;  %v1288_v22 = vld [vmem:[%s10190_s6 + $0x1f98] sm:$0xff]  ;;  %v9677_v10 = vcombine.high %v1160_v34, %v1164_v31  ;;  %v9676_v47 = vcombine.low %v1160_v34, %v1164_v31 }
 0x3e6   : > { %7813 = vmatpush1.bf16.msra.mxu1 %v9732_v14  ;;  %v1292_v37 = vld [vmem:[%s10190_s6 + $0x1fb8] sm:$0xff] }
 0x3e7   : > { %7814 = vmatprep.subr.bf16.mxu1 %v9725_v44  ;;  %v9805_v35 = vcombine.high %v1288_v22, %v1292_v37  ;;  %v1152_v38 = vld [vmem:[%s10190_s6 + $0x1b58] sm:$0xff]  ;;  %v9804_v14 = vcombine.low %v1288_v22, %v1292_v37 }
 0x3e8   : > { %7774 = vmatpush1.bf16.msra.mxu0 %v9596_v50  ;;  %v1156_v41 = vld [vmem:[%s10190_s6 + $0x1b78] sm:$0xff] }
 0x3e9   : > { %7775 = vmatprep.subr.bf16.mxu0 %v9589_v3  ;;  %v1280_v30 = vld [vmem:[%s10190_s6 + $0x1f58] sm:$0xff]  ;;  %v9669_v60 = vcombine.high %v1152_v38, %v1156_v41  ;;  %v9668_v53 = vcombine.low %v1152_v38, %v1156_v41 }
 0x3ea   : > { %7815 = vmatpush1.bf16.msra.mxu1 %v9724_v61  ;;  %v1284_v2 = vld [vmem:[%s10190_s6 + $0x1f78] sm:$0xff] }
 0x3eb   : > { %7816 = vmatprep.subr.bf16.mxu1 %v9717_v42  ;;  %v9797_v16 = vcombine.high %v1280_v30, %v1284_v2  ;;  %v1144_v44 = vld [vmem:[%s10190_s6 + $0x1b18] sm:$0xff]  ;;  %v9796_v50 = vcombine.low %v1280_v30, %v1284_v2 }
 0x3ec   : > { %7776 = vmatpush1.bf16.msra.mxu0 %v9588_v48  ;;  %v1148_v49 = vld [vmem:[%s10190_s6 + $0x1b38] sm:$0xff] }
 0x3ed   : > { %7777 = vmatprep.subr.bf16.mxu0 %v9581_v13  ;;  %v1272_v39 = vld [vmem:[%s10190_s6 + $0x1f18] sm:$0xff]  ;;  %v9661_v61 = vcombine.high %v1144_v44, %v1148_v49  ;;  %v9660_v20 = vcombine.low %v1144_v44, %v1148_v49 }
 0x3ee   : > { %7817 = vmatpush1.bf16.msra.mxu1 %v9716_v59  ;;  %v1276_v51 = vld [vmem:[%s10190_s6 + $0x1f38] sm:$0xff] }
 0x3ef   : > { %7818 = vmatprep.subr.bf16.mxu1 %v9709_v18  ;;  %v9789_v3 = vcombine.high %v1272_v39, %v1276_v51  ;;  %v1136_v42 = vld [vmem:[%s10190_s6 + $0x1ad8] sm:$0xff]  ;;  %v9788_v48 = vcombine.low %v1272_v39, %v1276_v51 }
 0x3f0   : > { %7778 = vmatpush1.bf16.msra.mxu0 %v9580_v5  ;;  %v1140_v55 = vld [vmem:[%s10190_s6 + $0x1af8] sm:$0xff] }
 0x3f1   : > { %7779 = vmatprep.subr.bf16.mxu0 %v9573_v6  ;;  %v1264_v58 = vld [vmem:[%s10190_s6 + $0x1ed8] sm:$0xff]  ;;  %v9653_v59 = vcombine.high %v1136_v42, %v1140_v55  ;;  %v9652_v1 = vcombine.low %v1136_v42, %v1140_v55 }
 0x3f2   : > { %7819 = vmatpush1.bf16.msra.mxu1 %v9708_v27  ;;  %v1268_v52 = vld [vmem:[%s10190_s6 + $0x1ef8] sm:$0xff] }
 0x3f3   : > { %7820 = vmatprep.subr.bf16.mxu1 %v9701_v8  ;;  %v9781_v13 = vcombine.high %v1264_v58, %v1268_v52  ;;  %v1128_v18 = vld [vmem:[%s10190_s6 + $0x1a98] sm:$0xff]  ;;  %v9780_v5 = vcombine.low %v1264_v58, %v1268_v52 }
 0x3f4   : > { %7780 = vmatpush1.bf16.msra.mxu0 %v9572_v4  ;;  %v1132_v62 = vld [vmem:[%s10190_s6 + $0x1ab8] sm:$0xff] }
 0x3f5   : > { %7781 = vmatprep.subr.bf16.mxu0 %v9565_v25  ;;  %v1256_v12 = vld [vmem:[%s10190_s6 + $0x1e98] sm:$0xff]  ;;  %v9645_v27 = vcombine.high %v1128_v18, %v1132_v62  ;;  %v9644_v23 = vcombine.low %v1128_v18, %v1132_v62 }
 0x3f6   : > { %7821 = vmatpush1.bf16.msra.mxu1 %v9700_v46  ;;  %v1260_v56 = vld [vmem:[%s10190_s6 + $0x1eb8] sm:$0xff] }
 0x3f7   : > { %7822 = vmatprep.subr.bf16.mxu1 %v9693_v54  ;;  %v9773_v6 = vcombine.high %v1256_v12, %v1260_v56  ;;  %v1120_v8 = vld [vmem:[%s10190_s6 + $0x1a58] sm:$0xff]  ;;  %v9772_v4 = vcombine.low %v1256_v12, %v1260_v56 }
 0x3f8   : > { %7782 = vmatpush1.bf16.msra.mxu0 %v9564_v28  ;;  %v1124_v9 = vld [vmem:[%s10190_s6 + $0x1a78] sm:$0xff] }
 0x3f9   : > { %7783 = vmatprep.subr.bf16.mxu0 %v9685_v29  ;;  %v1248_v57 = vld [vmem:[%s10190_s6 + $0x1e58] sm:$0xff]  ;;  %v9637_v46 = vcombine.high %v1120_v8, %v1124_v9  ;;  %v9636_v24 = vcombine.low %v1120_v8, %v1124_v9 }
 0x3fa   : > { %7823 = vmatpush1.bf16.msra.mxu1 %v9692_v63  ;;  %v1252_v26 = vld [vmem:[%s10190_s6 + $0x1e78] sm:$0xff] }
 0x3fb   : > { %7824 = vmatprep.subr.bf16.mxu1 %v9813_v32  ;;  %v9765_v25 = vcombine.high %v1248_v57, %v1252_v26  ;;  %v1112_v54 = vld [vmem:[%s10190_s6 + $0x1a18] sm:$0xff]  ;;  %v9764_v28 = vcombine.low %v1248_v57, %v1252_v26 }
 0x3fc   : > { %7784 = vmatpush2.bf16.msra.mxu0 %v9684_v21  ;;  %v1116_v11 = vld [vmem:[%s10190_s6 + $0x1a38] sm:$0xff] }
 0x3fd   : > { %7785 = vmatprep.subr.bf16.mxu0 %v9677_v10  ;;  %v1240_v0 = vld [vmem:[%s10190_s6 + $0x1e18] sm:$0xff]  ;;  %v9629_v63 = vcombine.high %v1112_v54, %v1116_v11  ;;  %v9628_v32 = vcombine.low %v1112_v54, %v1116_v11  ;;  %v274_v54 = vld [vmem:[#allocation2 + $0x8] sm:$0xff] }
 0x3fe   : > { %7825 = vmatpush2.bf16.msra.mxu1 %v9812_v40  ;;  %v1244_v19 = vld [vmem:[%s10190_s6 + $0x1e38] sm:$0xff] }
 0x3ff   : > { %7826 = vmatprep.subr.bf16.mxu1 %v9805_v35  ;;  %v9757_v29 = vcombine.high %v1240_v0, %v1244_v19  ;;  %v9756_v34 = vcombine.low %v1240_v0, %v1244_v19 }
 0x400   : > { %7786 = vmatpush2.bf16.msra.mxu0 %v9676_v47 }
 0x401   : > { %7787 = vmatprep.subr.bf16.mxu0 %v9669_v60 }
 0x402   : > { %7827 = vmatpush2.bf16.msra.mxu1 %v9804_v14 }
 0x403   : > { %7828 = vmatprep.subr.bf16.mxu1 %v9797_v16 }
 0x404   : > { %7788 = vmatpush2.bf16.msra.mxu0 %v9668_v53 }
 0x405   : > { %7789 = vmatprep.subr.bf16.mxu0 %v9661_v61 }
 0x406   : > { %7829 = vmatpush2.bf16.msra.mxu1 %v9796_v50 }
 0x407   : > { %7830 = vmatprep.subr.bf16.mxu1 %v9789_v3 }
 0x408   : > { %7790 = vmatpush2.bf16.msra.mxu0 %v9660_v20 }
 0x409   : > { %7791 = vmatprep.subr.bf16.mxu0 %v9653_v59 }
 0x40a   : > { %7831 = vmatpush2.bf16.msra.mxu1 %v9788_v48 }
 0x40b   : > { %7832 = vmatprep.subr.bf16.mxu1 %v9781_v13 }
 0x40c   : > { %7792 = vmatpush2.bf16.msra.mxu0 %v9652_v1 }
 0x40d   : > { %7793 = vmatprep.subr.bf16.mxu0 %v9645_v27 }
 0x40e   : > { %7833 = vmatpush2.bf16.msra.mxu1 %v9780_v5 }
 0x40f   : > { %7834 = vmatprep.subr.bf16.mxu1 %v9773_v6 }
 0x410   : > { %7794 = vmatpush2.bf16.msra.mxu0 %v9644_v23 }
 0x411   : > { %7795 = vmatprep.subr.bf16.mxu0 %v9637_v46  ;;  %v7882_v46 = vrot.slane %v7874_v33, %v11105_v15 }
 0x412   : > { %7835 = vmatpush2.bf16.msra.mxu1 %v9772_v4 }
 0x413   : > { %7836 = vmatprep.subr.bf16.mxu1 %v9765_v25 }
 0x414   : > { %7796 = vmatpush2.bf16.msra.mxu0 %v9636_v24 }
 0x415   : > { %7797 = vmatprep.subr.bf16.mxu0 %v9629_v63 }
 0x416   : > { %7837 = vmatpush2.bf16.msra.mxu1 %v9764_v28 }
 0x417   : > { %7838 = vmatprep.subr.bf16.mxu1 %v9757_v29 }
 0x418   : > { %7798 = vmatpush2.bf16.msra.mxu0 %v9628_v32 }
 0x41a   : > { %7839 = vmatpush2.bf16.msra.mxu1 %v9756_v34 }
 0x41b   : > { %v7555_v31 = vpop.f32.mrf.mxu0  ;;  %7800 = vmatmul.mubr.bf16.vlgmr.msra.gmra.mxu0 %v10558_v7 }
 0x41d   : > { %v7596_v22 = vpop.f32.mrf.mxu1  ;;  %7841 = vmatmul.mubr.bf16.vlgmr.msra.gmra.mxu1 %v10566_v17  ;;  %v7557_v21 = vpop.f32.mrf.mxu0 }
 0x41e   : > { %v7597_v37 = vadd.f32 %v7596_v22, %v7555_v31 }
 0x41f   : > { %v7598_v40 = vpop.f32.mrf.mxu1  ;;  %v7559_v35 = vpop.f32.mrf.mxu0 }
 0x420   : > { %v7599_v10 = vadd.f32 %v7598_v40, %v7557_v21 }
 0x421   : > { %v7600_v38 = vpop.f32.mrf.mxu1  ;;  %v7560_v41 = vpop.f32.mrf.mxu0 }
 0x423   : > { %v7601_v30 = vpop.f32.mrf.mxu1 }
 0x45b   : > { %v7637_v2 = vpop.f32.mrf.mxu0 }
 0x45c   : > { %v7638_v47 = vadd.f32 %v7637_v2, %v7597_v37 }
 0x45d   : > { %v7678_v14 = vpop.f32.mrf.mxu1  ;;  %v7639_v60 = vpop.f32.mrf.mxu0 }
 0x45e   : > { %v7679_v16 = vadd.f32 %v7678_v14, %v7638_v47  ;;  %v7640_v44 = vadd.f32 %v7639_v60, %v7599_v10 }
 0x45f   : > { %v7680_v49 = vpop.f32.mrf.mxu1  ;;  %v7641_v39 = vpop.f32.mrf.mxu0 }
 0x460   : > { %v7681_v7 = vadd.f32 %v7680_v49, %v7640_v44 }
 0x461   : > { %v7682_v51 = vpop.f32.mrf.mxu1  ;;  %v7642_v53 = vpop.f32.mrf.mxu0 }
 0x463   : > { %v7683_v17 = vpop.f32.mrf.mxu1 }
 0x49b   : > { %v7719_v50 = vpop.f32.mrf.mxu0 }
 0x49c   : > { %v7720_v48 = vadd.f32 %v7719_v50, %v7679_v16 }
 0x49d   : > { %v7760_v61 = vpop.f32.mrf.mxu1  ;;  %v7721_v3 = vpop.f32.mrf.mxu0 }
 0x49e   : > { %v7722_v59 = vadd.f32 %v7721_v3, %v7681_v7  ;;  %v7761_v13 = vadd.f32 %v7760_v61, %v7720_v48 }
 0x49f   : > { %v7762_v42 = vpop.f32.mrf.mxu1  ;;  %v7723_v55 = vpop.f32.mrf.mxu0 }
 0x4a0   : > { %v7763_v62 = vadd.f32 %v7762_v42, %v7722_v59 }
 0x4a1   : > { %v7764_v58 = vpop.f32.mrf.mxu1  ;;  %v7724_v52 = vpop.f32.mrf.mxu0 }
 0x4a3   : > { %v7765_v20 = vpop.f32.mrf.mxu1 }
 0x4db   : > { %v7801_v18 = vpop.f32.mrf.mxu0 }
 0x4dc   : > { %v7802_v12 = vadd.f32 %v7801_v18, %v7761_v13 }
 0x4dd   : > { %v7842_v56 = vpop.f32.mrf.mxu1  ;;  %v7803_v1 = vpop.f32.mrf.mxu0 }
 0x4de   : > { %v7804_v5 = vadd.f32 %v7803_v1, %v7763_v62  ;;  %v7843_v8 = vadd.f32 %v7842_v56, %v7802_v12 }
 0x4df   : > { %v7844_v27 = vpop.f32.mrf.mxu1  ;;  %v7805_v6 = vpop.f32.mrf.mxu0 }
 0x4e0   : > { %v7845_v9 = vadd.f32 %v7844_v27, %v7804_v5 }
 0x4e1   : > { %v7846_v57 = vpop.f32.mrf.mxu1  ;;  %v7806_v26 = vpop.f32.mrf.mxu0 }
 0x4e2   : > { %v7875_v23 = vcombine.low %v7843_v8, %v7845_v9 }
 0x4e3   : > { %v7847_v4 = vpop.f32.mrf.mxu1 }
 0x4e4   : > { %v7889_v25 = vrot.slane %v7875_v23, %v11105_v15 }
 0x4e6   : > { %v7890_v11 = vcombine.low %v7882_v46, %v7889_v25  ;;  %7900 = sbr.rel (%p9814_p7) target bundleno = 1527 (0x5f7), region = 48 }
 0x4e8   : > { %v7894_v0 = vadd.f32 %v7890_v11, %v274_v54 }
 0x4ea   : > { %7896 = vst [vmem:[#allocation2 + $0x8] sm:$0xff] %v7894_v0 }
 0x4eb   : > { %v10009_v19 = vld [vmem:[%s11707_s3 + $0x78] sm:$0xff]   ;;  %v10013_v33 = vld [vmem:[%s11707_s3 + $0x70] sm:$0xff]   ;;  %v10017_v32 = vld [vmem:[%s11707_s3 + $0x68] sm:$0xff]   ;;  %v7907_v39 = vsub.s32 0, %v10215_v45  ;;  %v7911_v51 = vsub.s32 1, %v10215_v45  ;;  %v7915_v17 = vsub.s32 2, %v10215_v45 }
 0x4ec   : > { %v10010_v24 = vld [vmem:[%s11707_s3 + $0xf8] sm:$0xff]   ;;  %9885 = vmatprep.subr.bf16.mxu0 %v10009_v19  ;;  %v10014_v28 = vld [vmem:[%s11707_s3 + $0xf0] sm:$0xff]   ;;  %v10018_v34 = vld [vmem:[%s11707_s3 + $0xe8] sm:$0xff]   ;;  %v7919_v61 = vsub.s32 3, %v10215_v45  ;;  %v7923_v9 = vsub.s32 4, %v10215_v45  ;;  %v7927_v57 = vsub.s32 5, %v10215_v45 }
 0x4ed   : > { %v10011_v36 = vld [vmem:[%s11707_s3 + $0x38] sm:$0xff]   ;;  %9907 = vmatprep.subr.bf16.mxu1 %v10010_v24  ;;  %v10015_v63 = vld [vmem:[%s11707_s3 + $0x30] sm:$0xff]   ;;  %v10019_v31 = vld [vmem:[%s11707_s3 + $0x28] sm:$0xff]   ;;  %v7931_v4 = vsub.s32 6, %v10215_v45  ;;  %v7935_v46 = vsub.s32 7, %v10215_v45 }
 0x4ee   : > { %v10012_v43 = vld [vmem:[%s11707_s3 + $0xb8] sm:$0xff]   ;;  %9886 = vmatpush3.bf16.msra.mxu0 %v10011_v36  ;;  %v10016_v29 = vld [vmem:[%s11707_s3 + $0xb0] sm:$0xff]   ;;  %v10020_v22 = vld [vmem:[%s11707_s3 + $0xa8] sm:$0xff]  }
 0x4ef   : > { %9908 = vmatpush3.bf16.msra.mxu1 %v10012_v43  ;;  %9887 = vmatprep.subr.bf16.mxu0 %v10013_v33  ;;  %v10021_v37 = vld [vmem:[%s11707_s3 + $0x60] sm:$0xff]   ;;  %v10025_v35 = vld [vmem:[%s11707_s3 + $0x58] sm:$0xff]   ;;  %v10029_v2 = vld [vmem:[%s11707_s3 + $0x50] sm:$0xff]  }
 0x4f0   : > { %9909 = vmatprep.subr.bf16.mxu1 %v10014_v28  ;;  %v10022_v21 = vld [vmem:[%s11707_s3 + $0xe0] sm:$0xff]   ;;  %v10026_v38 = vld [vmem:[%s11707_s3 + $0xd8] sm:$0xff]   ;;  %v10030_v47 = vld [vmem:[%s11707_s3 + $0xd0] sm:$0xff]  }
 0x4f1   : > { %v10023_v40 = vld [vmem:[%s11707_s3 + $0x20] sm:$0xff]   ;;  %v10027_v41 = vld [vmem:[%s11707_s3 + $0x18] sm:$0xff]   ;;  %v10031_v14 = vld [vmem:[%s11707_s3 + $0x10] sm:$0xff]  }
 0x4f2   : > { %9888 = vmatpush3.bf16.msra.mxu0 %v10015_v63  ;;  %v10024_v10 = vld [vmem:[%s11707_s3 + $0xa0] sm:$0xff]   ;;  %v10028_v30 = vld [vmem:[%s11707_s3 + $0x98] sm:$0xff]   ;;  %v10032_v60 = vld [vmem:[%s11707_s3 + $0x90] sm:$0xff]  }
 0x4f3   : > { %9910 = vmatpush3.bf16.msra.mxu1 %v10016_v29  ;;  %9889 = vmatprep.subr.bf16.mxu0 %v10017_v32  ;;  %v10033_v16 = vld [vmem:[%s11707_s3 + $0x48] sm:$0xff]   ;;  %v10037_v53 = vld [vmem:[%s11707_s3 + $0x40] sm:$0xff]   ;;  %v10041_v59 = vld [vmem:[%s11707_s3 + $0x178] sm:$0xff]  }
 0x4f4   : > { %9911 = vmatprep.subr.bf16.mxu1 %v10018_v34  ;;  %v10034_v44 = vld [vmem:[%s11707_s3 + $0xc8] sm:$0xff]   ;;  %v10038_v50 = vld [vmem:[%s11707_s3 + $0xc0] sm:$0xff]   ;;  %v10042_v13 = vld [vmem:[%s11707_s3 + $0x1f8] sm:$0xff]  }
 0x4f5   : > { %v10035_v49 = vld [vmem:[%s11707_s3 + $0x8] sm:$0xff]   ;;  %v10039_v3 = vld [vmem:[%s11707_s3] sm:$0xff]   ;;  %v10043_v0 = vld [vmem:[%s11707_s3 + $0x138] sm:$0xff]  }
 0x4f6   : > { %9890 = vmatpush3.bf16.msra.mxu0 %v10019_v31  ;;  %v10036_v7 = vld [vmem:[%s11707_s3 + $0x88] sm:$0xff]   ;;  %v10040_v42 = vld [vmem:[%s11707_s3 + $0x80] sm:$0xff]   ;;  %v10045_v24 = vld [vmem:[%s11707_s3 + $0x170] sm:$0xff]  }
 0x4f7   : > { %9912 = vmatpush3.bf16.msra.mxu1 %v10020_v22  ;;  %9891 = vmatprep.subr.bf16.mxu0 %v10021_v37  ;;  %v7903_v55 = vld [vmem:[%s11706_s2] sm:$0xff]  ;;  %v10044_v33 = vld [vmem:[%s11707_s3 + $0x1b8] sm:$0xff]   ;;  %v10046_v29 = vld [vmem:[%s11707_s3 + $0x1f0] sm:$0xff]  }
 0x4f8   : > { %9913 = vmatprep.subr.bf16.mxu1 %v10022_v21  ;;  %v7908_v58 = vrot.slane %v7903_v55, %v7907_v39  ;;  %v7912_v52 = vrot.slane %v7903_v55, %v7911_v51  ;;  %v7916_v20 = vrot.slane %v7903_v55, %v7915_v17  ;;  %v7920_v48 = vrot.slane %v7903_v55, %v7919_v61  ;;  %v7901_v1 = vld [vmem:[#allocation2] sm:$0xff]  ;;  %v10047_v32 = vld [vmem:[%s11707_s3 + $0x130] sm:$0xff]   ;;  %v10049_v34 = vld [vmem:[%s11707_s3 + $0x168] sm:$0xff]  }
 0x4f9   : > { %v7924_v36 = vrot.slane %v7903_v55, %v7923_v9  ;;  %v7928_v45 = vrot.slane %v7903_v55, %v7927_v57  ;;  %v7932_v28 = vrot.slane %v7903_v55, %v7931_v4  ;;  %v7936_v63 = vrot.slane %v7903_v55, %v7935_v46  ;;  %v10048_v31 = vld [vmem:[%s11707_s3 + $0x1b0] sm:$0xff]   ;;  %v10050_v21 = vld [vmem:[%s11707_s3 + $0x1e8] sm:$0xff]  }
 0x4fa   : > { %9892 = vmatpush3.bf16.msra.mxu0 %v10023_v40  ;;  %v7937_v18 = vcombine.low %v7908_v58, %v7912_v52  ;;  %v7938_v62 = vcombine.low %v7916_v20, %v7920_v48  ;;  %v10051_v40 = vld [vmem:[%s11707_s3 + $0x128] sm:$0xff]   ;;  %v10063_v17 = vld [vmem:[%s11707_s3 + $0x110] sm:$0xff]  }
 0x4fb   : > { %9914 = vmatpush3.bf16.msra.mxu1 %v10024_v10  ;;  %9893 = vmatprep.subr.bf16.mxu0 %v10025_v35  ;;  %v7954_v22 = vcombine.low %v7924_v36, %v7928_v45  ;;  %v7955_v37 = vcombine.low %v7932_v28, %v7936_v63  ;;  %v10053_v10 = vld [vmem:[%s11707_s3 + $0x160] sm:$0xff]   ;;  %v10052_v35 = vld [vmem:[%s11707_s3 + $0x1a8] sm:$0xff]  }
 0x4fc   : > { %9915 = vmatprep.subr.bf16.mxu1 %v10026_v38  ;;  %v7945_v12 = vrot.slane %v7937_v18, %v11105_v15  ;;  %v7952_v56 = vrot.slane %v7938_v62, %v11105_v15  ;;  %v7902_v39 = vld [vmem:[#allocation2 + $0x8] sm:$0xff]  ;;  %v10070_v62 = vld [vmem:[%s11707_s3 + $0x1c0] sm:$0xff]  }
 0x4fd   : > { %v7962_v38 = vrot.slane %v7954_v22, %v11105_v15  ;;  %v10066_v52 = vld [vmem:[%s11707_s3 + $0x1c8] sm:$0xff]  }
 0x4fe   : > { %9894 = vmatpush3.bf16.msra.mxu0 %v10027_v41  ;;  %v7953_v5 = vcombine.low %v7945_v12, %v7952_v56  ;;  %v7969_v41 = vrot.slane %v7955_v37, %v11105_v15  ;;  %v10067_v20 = vld [vmem:[%s11707_s3 + $0x108] sm:$0xff]   ;;  %v10071_v12 = vld [vmem:[%s11707_s3 + $0x100] sm:$0xff]  }
 0x4ff   : > { %9916 = vmatpush3.bf16.msra.mxu1 %v10028_v30  ;;  %9895 = vmatprep.subr.bf16.mxu0 %v10029_v2  ;;  %v10054_v30 = vld [vmem:[%s11707_s3 + $0x1e0] sm:$0xff]  }
 0x500   : > { %9917 = vmatprep.subr.bf16.mxu1 %v10030_v47  ;;  %v7973_v27 = vadd.f32 %v7953_v5, %v7901_v1  ;;  %v10055_v2 = vld [vmem:[%s11707_s3 + $0x120] sm:$0xff]   ;;  %v10057_v47 = vld [vmem:[%s11707_s3 + $0x158] sm:$0xff]  }
 0x501   : > { %v10072_v56 = vld [vmem:[%s11707_s3 + $0x180] sm:$0xff]  }
 0x502   : > { %9896 = vmatpush3.bf16.msra.mxu0 %v10031_v14  ;;  %v7984_v6 = vrot.slane %v7973_v27, %v11105_v15  ;;  %v7977_v8 = vcombine.high %v7973_v27, %v7973_v27  ;;  %v10056_v14 = vld [vmem:[%s11707_s3 + $0x1a0] sm:$0xff]  }
 0x503   : > { %9918 = vmatpush3.bf16.msra.mxu1 %v10032_v60  ;;  %9897 = vmatprep.subr.bf16.mxu0 %v10033_v16  ;;  %v7970_v60 = vcombine.low %v7962_v38, %v7969_v41  ;;  %v10058_v16 = vld [vmem:[%s11707_s3 + $0x1d8] sm:$0xff]  }
 0x504   : > { %9919 = vmatprep.subr.bf16.mxu1 %v10034_v44  ;;  %v7992_v26 = vcombine.high %v7984_v6, %v7984_v6  ;;  %v7991_v23 = vrot.slane %v7977_v8, %v11105_v15  ;;  %v8019_v25 = vpack.c.bf16 %v7984_v6, %v7984_v6  ;;  %v10059_v44 = vld [vmem:[%s11707_s3 + $0x118] sm:$0xff]  }
 0x505   : > { %v7974_v51 = vadd.f32 %v7970_v60, %v7902_v39 }
 0x506   : > { %9898 = vmatpush3.bf16.msra.mxu0 %v10035_v49  ;;  %v8020_v54 = vpack.c.bf16 %v7992_v26, %v7992_v26  ;;  %v7993_v11 = vcombine.high %v7991_v23, %v7991_v23  ;;  %v8021_v19 = vpack.c.bf16 %v7991_v23, %v7991_v23  ;;  %v10061_v49 = vld [vmem:[%s11707_s3 + $0x150] sm:$0xff]  }
 0x507   : > { %9920 = vmatpush3.bf16.msra.mxu1 %v10036_v7  ;;  %9899 = vmatprep.subr.bf16.mxu0 %v10037_v53  ;;  %v10060_v7 = vld [vmem:[%s11707_s3 + $0x198] sm:$0xff]   ;;  %v10062_v53 = vld [vmem:[%s11707_s3 + $0x1d0] sm:$0xff]   ;;  %v7994_v61 = vcombine.high %v7974_v51, %v7974_v51 }
 0x508   : > { %9921 = vmatprep.subr.bf16.mxu1 %v10038_v50  ;;  %8578 = vmatprep.mubr.bf16.mxu0 %v8020_v54  ;;  %v8022_v43 = vpack.c.bf16 %v7993_v11, %v7993_v11  ;;  %v8001_v50 = vrot.slane %v7974_v51, %v11105_v15 }
 0x509   : > { %v8008_v58 = vrot.slane %v7994_v61, %v11105_v15  ;;  %v10068_v15 = vld [vmem:[%s11707_s3 + $0x188] sm:$0xff]  }
 0x50a   : > { %9900 = vmatpush3.bf16.msra.mxu0 %v10039_v3  ;;  %8618 = vmatprep.mubr.bf16.mxu1 %v8022_v43  ;;  %v10065_v3 = vld [vmem:[%s11707_s3 + $0x148] sm:$0xff]   ;;  %v8009_v55 = vcombine.high %v8001_v50, %v8001_v50  ;;  %v8023_v1 = vpack.c.bf16 %v8001_v50, %v8001_v50 }
 0x50b   : > { %9922 = vmatpush3.bf16.msra.mxu1 %v10040_v42  ;;  %9929 = vmatprep.subr.bf16.mxu0 %v10041_v59  ;;  %v10064_v42 = vld [vmem:[%s11707_s3 + $0x190] sm:$0xff]   ;;  %v8010_v59 = vcombine.high %v8008_v58, %v8008_v58  ;;  %v8025_v5 = vpack.c.bf16 %v8008_v58, %v8008_v58 }
 0x50c   : > { %9951 = vmatprep.subr.bf16.mxu1 %v10042_v13  ;;  %v8024_v48 = vpack.c.bf16 %v8009_v55, %v8009_v55  ;;  %v10069_v13 = vld [vmem:[%s11707_s3 + $0x140] sm:$0xff]  }
 0x50d   : > { %8579 = vmatmul.mubr.bf16.vlgmr.msra.gmra.mxu0 %v8019_v25  ;;  %v8026_v18 = vpack.c.bf16 %v8010_v59, %v8010_v59  ;;  %v9815_v25 = vld [vmem:[%s11708_s4] ss:$0 sm:$0xff] }
 0x50e   : > { %9930 = vmatpush3.bf16.msra.mxu0 %v10043_v0  ;;  %8619 = vmatmul.mubr.bf16.vlgmr.msra.gmra.mxu1 %v8021_v19 }
 0x50f   : > { %9931 = vmatprep.subr.bf16.mxu0 %v10045_v24  ;;  %9952 = vmatpush3.bf16.msra.mxu1 %v10044_v33 }
 0x510   : > { %9953 = vmatprep.subr.bf16.mxu1 %v10046_v29  ;;  %8658 = vmatprep.mubr.bf16.mxu0 %v8024_v48 }
 0x511   : > { %8698 = vmatprep.mubr.bf16.mxu1 %v8026_v18 }
 0x512   : > { %9932 = vmatpush3.bf16.msra.mxu0 %v10047_v32 }
 0x513   : > { %9933 = vmatprep.subr.bf16.mxu0 %v10049_v34  ;;  %9954 = vmatpush3.bf16.msra.mxu1 %v10048_v31 }
 0x514   : > { %9955 = vmatprep.subr.bf16.mxu1 %v10050_v21 }
 0x516   : > { %9934 = vmatpush3.bf16.msra.mxu0 %v10051_v40 }
 0x517   : > { %9935 = vmatprep.subr.bf16.mxu0 %v10053_v10  ;;  %9956 = vmatpush3.bf16.msra.mxu1 %v10052_v35 }
 0x518   : > { %9957 = vmatprep.subr.bf16.mxu1 %v10054_v30 }
 0x51a   : > { %9936 = vmatpush3.bf16.msra.mxu0 %v10055_v2 }
 0x51b   : > { %9937 = vmatprep.subr.bf16.mxu0 %v10057_v47  ;;  %9958 = vmatpush3.bf16.msra.mxu1 %v10056_v14 }
 0x51c   : > { %9959 = vmatprep.subr.bf16.mxu1 %v10058_v16 }
 0x51e   : > { %9938 = vmatpush3.bf16.msra.mxu0 %v10059_v44 }
 0x51f   : > { %9939 = vmatprep.subr.bf16.mxu0 %v10061_v49  ;;  %9960 = vmatpush3.bf16.msra.mxu1 %v10060_v7 }
 0x520   : > { %9961 = vmatprep.subr.bf16.mxu1 %v10062_v53 }
 0x522   : > { %9940 = vmatpush3.bf16.msra.mxu0 %v10063_v17 }
 0x523   : > { %9941 = vmatprep.subr.bf16.mxu0 %v10065_v3  ;;  %9962 = vmatpush3.bf16.msra.mxu1 %v10064_v42 }
 0x524   : > { %9963 = vmatprep.subr.bf16.mxu1 %v10066_v52 }
 0x526   : > { %9942 = vmatpush3.bf16.msra.mxu0 %v10067_v20 }
 0x527   : > { %9943 = vmatprep.subr.bf16.mxu0 %v10069_v13  ;;  %9964 = vmatpush3.bf16.msra.mxu1 %v10068_v15 }
 0x528   : > { %9965 = vmatprep.subr.bf16.mxu1 %v10070_v62 }
 0x52a   : > { %9944 = vmatpush3.bf16.msra.mxu0 %v10071_v12 }
 0x52b   : > { %9966 = vmatpush3.bf16.msra.mxu1 %v10072_v56 }
 0x52d   : > { %8659 = vmatmul.mubr.bf16.vlgmr.msra.gmra.mxu0 %v8023_v1 }
 0x52e   : > { %8699 = vmatmul.mubr.bf16.vlgmr.msra.gmra.mxu1 %v8025_v5 }
 0x5cd   : > { %v9901_v27 = vpop.f32.mrf.mxu0 }
 0x5ce   : > { %v9923_v6 = vpop.f32.mrf.mxu1 }
 0x5cf   : > { %v9902_v8 = vpop.f32.mrf.mxu0 }
 0x5d0   : > { %v9924_v9 = vpop.f32.mrf.mxu1  ;;  %v9903_v46 = vadd.f32 %v9902_v8, %v9901_v27 }
 0x5d1   : > { %v9904_v57 = vpop.f32.mrf.mxu0  ;;  %v9925_v11 = vadd.f32 %v9924_v9, %v9923_v6 }
 0x5d2   : > { %v9926_v26 = vpop.f32.mrf.mxu1  ;;  %v8581_v54 = vadd.f32 %v9903_v46, %v9815_v25 }
 0x5d3   : > { %v9905_v23 = vpop.f32.mrf.mxu0 }
 0x5d4   : > { %v9927_v4 = vpop.f32.mrf.mxu1  ;;  %v8621_v36 = vadd.f32 %v9925_v11, %v8581_v54 }
 0x5ed   : > { %v9945_v0 = vpop.f32.mrf.mxu0 }
 0x5ee   : > { %v9967_v19 = vpop.f32.mrf.mxu1 }
 0x5ef   : > { %v9946_v24 = vpop.f32.mrf.mxu0 }
 0x5f0   : > { %v9947_v43 = vadd.f32 %v9946_v24, %v9945_v0  ;;  %v9968_v33 = vpop.f32.mrf.mxu1 }
 0x5f1   : > { %v9948_v45 = vpop.f32.mrf.mxu0  ;;  %v9969_v63 = vadd.f32 %v9968_v33, %v9967_v19 }
 0x5f2   : > { %v8661_v28 = vadd.f32 %v9947_v43, %v8621_v36  ;;  %v9970_v29 = vpop.f32.mrf.mxu1 }
 0x5f3   : > { %v9949_v32 = vpop.f32.mrf.mxu0 }
 0x5f4   : > { %v8701_v34 = vadd.f32 %v9969_v63, %v8661_v28  ;;  %v9971_v31 = vpop.f32.mrf.mxu1 }
 0x5f6   : > { %8706 = vst [vmem:[#allocation3] sm:$0x3] %v8701_v34 }
 0x5f7 PF: > { %p11680_p8 = scmp.eq.s32.totalorder %s8781_s21, 1  ;;  %s10128_s14 = smov [#allocation3]  }
 0x5f8   : > { %s8716_s15 = sshll.u32 %s10128_s14, 4  ;;  %s8717_s15 = int_to_ptr.vmem [resolvable:$true] %s8716_s15 }
 0x5f9   : > { %s10073_s16 = scalar_lea.vmem %s8717_s15, 32  ;;  %p10080_p12 = scmp.lt.s32.totalorder %s8717_s15, %s8717_s15 }
 0x5fa   : > { %p10074_p9 = scmp.ne.s32.totalorder %s8717_s15, %s10073_s16  ;;  %p10081_p13 = scmp.lt.s32.totalorder %s10073_s16, %s10073_s16 }
 0x5fc   : > { %p10075_p10 = pnand %p10074_p9, %p11680_p8  ;;  %p10082_p0 = por %p10081_p13, %p10080_p12 }
 0x5fe   : > { %p10076_p11 = pneg %p10075_p10 }
 0x600   : > { %p10083_p1 = pnand %p10082_p0, %p10076_p11 }
 0x602   : > { %10086 = shalt.err (!%p10083_p1)
}
 0x603   : > { %9974 = dma.vmem_to_hbm [thread:$0]  (%p11680_p8), %s8717_s15, 32, %s11709_s5, [#allocation4]  }
 0x604   : > { %10110 = dma.done.wait (%p11680_p8), [#allocation4], 32  }
 0x605   : > { %10112 = vsyncadd (%p11680_p8), [#allocation4], 4294967264 }
 0x606 PF: > { %s16_s20 = sadd.s32 1, %s10123_s20   ;;  %s11711_s18 = smov %s10119_s19 }
 0x607   : > { %p13_p2 = scmp.ge.s32.totalorder %s16_s20, 4   ;;  %s11712_s19 = smov %s11714_s22 }
 0x609   :  { %15 = sbr.rel (!%p13_p2) target bundleno = 2 (0x2), region = 79 }
 0x60e   :  { %8729 = vsyncpa [#allocation4], 1 }
 0x60f   :  { %8731 = vsyncpa [#allocation4 + $0x1], 1 }

</bundles_post_ra>
